<compile_context>
chip_gen: v5e
topology: v5e:2x2
jax: 0.10.0
libtpu: 0.0.40
codegen_flags: <defaults>
</compile_context>

<pallas_src>
import functools

import jax
import jax.numpy as jnp
from jax.experimental import pallas as pl
from jax.experimental.pallas import tpu as pltpu

NHEAD = 4           # nn.MultiheadAttention head count (layer def not provided)
LN_EPS = 1e-5
NEG_INF = -1e9


def _layer_norm(z, w, b):
    mu = jnp.mean(z, axis=-1, keepdims=True)
    var = jnp.mean((z - mu) ** 2, axis=-1, keepdims=True)
    return (z - mu) * jax.lax.rsqrt(var + LN_EPS) * w + b


def graph_transformer_kernel(
    x_ref, bias_ref, pad_ref,
    emb_w_ref,
    wqkv_ref, bqkv_ref, wo_ref,
    small_ref,                 # (L, 6, D): [bo, ln1_w, ln1_b, ln2_w, ln2_b, ff_b2]
    ff_w1_ref, ff_b1_ref, ff_w2_ref,
    cls_w1_ref, cls_b1_ref, cls_w2_ref, cls_b2_ref,
    out_ref,
    *, nhead, compute_dtype,
):
    Bt, N, F = x_ref.shape
    L, D, _ = wqkv_ref.shape
    H = nhead
    Dh = D // H
    scale = 1.0 / float(Dh) ** 0.5
    cd = compute_dtype

    x = x_ref[...]                                   # (Bt, N, F)
    pad = pad_ref[...]                               # (Bt, 1, N), 1.0 = padded
    bias = bias_ref[...]                             # (Bt, N, N)  pe + pad*-1e9

    # Layer-invariant, head-broadcast attention bias (hoisted once).
    bias_h = jnp.broadcast_to(bias[None], (H, Bt, N, N)).reshape(H * Bt, N, N)

    def split_heads(t):        # (Bt*N, D) -> (H*Bt, N, Dh); cheap lane slices
        heads = [t[:, hd * Dh:(hd + 1) * Dh].reshape(Bt, N, Dh)
                 for hd in range(H)]
        return jnp.stack(heads, axis=0).reshape(H * Bt, N, Dh)

    def merge_heads(t):        # (H*Bt, N, Dh) -> (Bt*N, D); lane concat
        t = t.reshape(H, Bt * N, Dh)
        return jnp.concatenate([t[hd] for hd in range(H)], axis=-1)

    # Embedding (bias=False) on the stacked row slab.
    h = jnp.dot(x.reshape(Bt * N, F).astype(cd), emb_w_ref[...],
                preferred_element_type=jnp.float32)              # (Bt*N, D) f32

    for l in range(L):                                # static unroll, L small
        sp = small_ref[l]                             # (6, D)
        bo, ln1_w, ln1_b = sp[0], sp[1], sp[2]
        ln2_w, ln2_b, ff_b2 = sp[3], sp[4], sp[5]

        # --- Multi-head attention: fused QKV, heads in the einsum batch ---
        qkv = jnp.dot(h.astype(cd), wqkv_ref[l],
                      preferred_element_type=jnp.float32) + bqkv_ref[l]
        qh = split_heads(qkv[:, :D])
        kh = split_heads(qkv[:, D:2 * D])
        vh = split_heads(qkv[:, 2 * D:])

        s = jnp.einsum("bqd,bkd->bqk", qh.astype(cd), kh.astype(cd),
                       preferred_element_type=jnp.float32) * scale + bias_h
        m = jnp.max(s, axis=-1, keepdims=True)
        e = jnp.exp(s - m)
        p = e * pl.reciprocal(jnp.sum(e, axis=-1, keepdims=True), approx=True)
        ctx = jnp.einsum("bqk,bkd->bqd", p.astype(cd), vh.astype(cd),
                         preferred_element_type=jnp.float32)      # (H*Bt,N,Dh)
        ctx = jnp.dot(merge_heads(ctx).astype(cd), wo_ref[l],
                      preferred_element_type=jnp.float32) + bo    # (Bt*N, D)

        h = _layer_norm(h + ctx, ln1_w, ln1_b)

        # --- Feed-forward ---
        f = jnp.dot(h.astype(cd), ff_w1_ref[l],
                    preferred_element_type=jnp.float32)
        f = jnp.maximum(f + ff_b1_ref[l], 0.0)
        f = jnp.dot(f.astype(cd), ff_w2_ref[l],
                    preferred_element_type=jnp.float32) + ff_b2

        h = _layer_norm(h + f, ln2_w, ln2_b)

    # Masked global average pooling (GlobalAvg1D with mask).
    valid = 1.0 - pad                                             # (Bt, 1, N)
    pooled = jnp.einsum("bon,bnd->bod", valid, h.reshape(Bt, N, D),
                        preferred_element_type=jnp.float32)       # (Bt, 1, D)
    cnt = jnp.sum(valid, axis=-1, keepdims=True)                  # (Bt, 1, 1)
    pooled = (pooled * pl.reciprocal(jnp.maximum(cnt, 1.0),
                                     approx=True)).reshape(Bt, D)

    # Classifier: Linear -> ReLU -> Linear.
    z = jnp.dot(pooled.astype(cd), cls_w1_ref[...],
                preferred_element_type=jnp.float32)
    z = jnp.maximum(z + cls_b1_ref[...], 0.0)
    logits = jnp.dot(z.astype(cd), cls_w2_ref[...],
                     preferred_element_type=jnp.float32) + cls_b2_ref[...]

    out_ref[...] = logits                                         # (Bt, C)


def graph_transformer_forward(params, x, masks, pe, *, batch_tile=None,
                              compute_dtype=jnp.float32):
    B, N, F = x.shape
    C = params["cls_w2"].shape[1]

    if batch_tile is None:
        # Smallest divisor of B that stacks >= 256 rows for the MXU and keeps
        # the (Bt, C) output block sublane-aligned; fall back to the full batch.
        batch_tile = B
        for cand in range(1, B + 1):
            if B % cand == 0 and cand * N >= 256 and (cand % 8 == 0 or cand == B):
                batch_tile = cand
                break
    Bt = batch_tile
    assert B % Bt == 0 and (Bt % 8 == 0 or Bt == B), (B, Bt)

    pad = masks.astype(jnp.float32).reshape(B, 1, N)   # 1.0 == padded position
    # Attention bias precomputed once in XLA (layer- and head-invariant);
    # replaces the pe DMA one-for-one.
    bias = pe.astype(jnp.float32) + pad * jnp.float32(NEG_INF)    # (B, N, N)

    wd = compute_dtype
    wqkv = jnp.concatenate(
        [params["wq"], params["wk"], params["wv"]], axis=-1).astype(wd)
    bqkv = jnp.concatenate([params["bq"], params["bk"], params["bv"]], axis=-1)
    small = jnp.stack([params["bo"], params["ln1_w"], params["ln1_b"],
                       params["ln2_w"], params["ln2_b"], params["ff_b2"]],
                      axis=1)                                      # (L, 6, D)

    inputs = [
        x, bias, pad,
        params["emb_w"].astype(wd),
        wqkv, bqkv, params["wo"].astype(wd),
        small,
        params["ff_w1"].astype(wd), params["ff_b1"], params["ff_w2"].astype(wd),
        params["cls_w1"].astype(wd), params["cls_b1"],
        params["cls_w2"].astype(wd), params["cls_b2"],
    ]

    def full_spec(a):
        nd = a.ndim
        return pl.BlockSpec(a.shape, lambda g, _n=nd: (0,) * _n)

    in_specs = [
        pl.BlockSpec((Bt, N, F), lambda g: (g, 0, 0)),   # x
        pl.BlockSpec((Bt, N, N), lambda g: (g, 0, 0)),   # attention bias
        pl.BlockSpec((Bt, 1, N), lambda g: (g, 0, 0)),   # pad mask
    ] + [full_spec(a) for a in inputs[3:]]

    kernel = functools.partial(graph_transformer_kernel,
                               nhead=NHEAD, compute_dtype=compute_dtype)

    out = pl.pallas_call(
        kernel,
        out_shape=jax.ShapeDtypeStruct((B, C), jnp.float32),
        grid=(B // Bt,),
        in_specs=in_specs,
        out_specs=pl.BlockSpec((Bt, C), lambda g: (g, 0)),
        compiler_params=pltpu.CompilerParams(
            dimension_semantics=("parallel",)),  # megacore on v7x; no-op v5e/v6e
    )(*inputs)

    return out


def init_params(key, in_size, d_model, dim_ff, nb_class, nb_layers):
    keys = jax.random.split(key, 20)
    w, b = 0.1, 0.02

    def nrm(k, shape, s):
        return jax.random.normal(k, shape, jnp.float32) * s

    return {
        "emb_w": nrm(keys[0], (in_size, d_model), w),
        "wq": nrm(keys[1], (nb_layers, d_model, d_model), w),
        "bq": nrm(keys[2], (nb_layers, d_model), b),
        "wk": nrm(keys[3], (nb_layers, d_model, d_model), w),
        "bk": nrm(keys[4], (nb_layers, d_model), b),
        "wv": nrm(keys[5], (nb_layers, d_model, d_model), w),
        "bv": nrm(keys[6], (nb_layers, d_model), b),
        "wo": nrm(keys[7], (nb_layers, d_model, d_model), w),
        "bo": nrm(keys[8], (nb_layers, d_model), b),
        "ln1_w": jnp.ones((nb_layers, d_model), jnp.float32),
        "ln1_b": jnp.zeros((nb_layers, d_model), jnp.float32),
        "ln2_w": jnp.ones((nb_layers, d_model), jnp.float32),
        "ln2_b": jnp.zeros((nb_layers, d_model), jnp.float32),
        "ff_w1": nrm(keys[9], (nb_layers, d_model, dim_ff), w),
        "ff_b1": nrm(keys[10], (nb_layers, dim_ff), b),
        "ff_w2": nrm(keys[11], (nb_layers, dim_ff, d_model), w),
        "ff_b2": nrm(keys[12], (nb_layers, d_model), b),
        "cls_w1": nrm(keys[13], (d_model, d_model), w),
        "cls_b1": nrm(keys[14], (1, d_model), b),
        "cls_w2": nrm(keys[15], (d_model, nb_class), w),
        "cls_b2": nrm(keys[16], (1, nb_class), b),
    }


def ref_forward(params, x, masks, pe):
    """Pure-JAX reference mirroring the kernel math (for verification)."""
    B, N, _ = x.shape
    D = params["emb_w"].shape[1]
    L = params["wq"].shape[0]
    Dh = D // NHEAD
    scale = 1.0 / float(Dh) ** 0.5

    pad = masks.astype(jnp.float32)
    kb = pad[:, None, None, :] * jnp.float32(NEG_INF)   # (B,1,1,N)

    h = x @ params["emb_w"]
    for l in range(L):
        q = h @ params["wq"][l] + params["bq"][l]
        k = h @ params["wk"][l] + params["bk"][l]
        v = h @ params["wv"][l] + params["bv"][l]
        qh = q.reshape(B, N, NHEAD, Dh).transpose(0, 2, 1, 3)
        kh = k.reshape(B, N, NHEAD, Dh).transpose(0, 2, 1, 3)
        vh = v.reshape(B, N, NHEAD, Dh).transpose(0, 2, 1, 3)
        s = jnp.einsum("bhqd,bhkd->bhqk", qh, kh) * scale
        s = s + pe[:, None, :, :] + kb
        a = jax.nn.softmax(s, axis=-1)
        o = jnp.einsum("bhqk,bhkd->bhqd", a, vh)
        o = o.transpose(0, 2, 1, 3).reshape(B, N, D)
        o = o @ params["wo"][l] + params["bo"][l]
        h = _layer_norm(h + o, params["ln1_w"][l], params["ln1_b"][l])
        f = jnp.maximum(h @ params["ff_w1"][l] + params["ff_b1"][l], 0.0)
        f = f @ params["ff_w2"][l] + params["ff_b2"][l]
        h = _layer_norm(h + f, params["ln2_w"][l], params["ln2_b"][l])

    valid = 1.0 - pad
    pooled = jnp.einsum("bn,bnd->bd", valid, h) / valid.sum(axis=1, keepdims=True)
    z = jnp.maximum(pooled @ params["cls_w1"] + params["cls_b1"], 0.0)
    return z @ params["cls_w2"] + params["cls_b2"]


if __name__ == "__main__":
    B, N = 32, 8                     # batch (graphs), nodes per graph
    IN_SIZE, D_MODEL = 16, 32
    DIM_FF, NB_CLASS, NB_LAYERS = 64, 3, 2

    key = jax.random.PRNGKey(0)
    kx, kpe, kp = jax.random.split(key, 3)

    x = jax.random.normal(kx, (B, N, IN_SIZE), jnp.float32)
    pe = jax.random.normal(kpe, (B, N, N), jnp.float32) * 0.1
    # Deterministic padding pattern: row i has (i % 4) trailing padded nodes.
    num_pad = jnp.arange(B) % 4
    masks = jnp.arange(N)[None, :] >= (N - num_pad)[:, None]      # bool (B, N)

    params = init_params(kp, IN_SIZE, D_MODEL, DIM_FF, NB_CLASS, NB_LAYERS)

    ref = ref_forward(params, x, masks, pe)

    # f32 MXU path: Bt=16 -> Bt*N = 128 stacked rows, grid=(2,).
    out = graph_transformer_forward(params, x, masks, pe, batch_tile=16)
    out = jax.block_until_ready(out)
    assert out.shape == (B, NB_CLASS), out.shape
    assert bool(jnp.all(jnp.isfinite(out)))
    assert jnp.allclose(out, ref, atol=2e-3, rtol=2e-3), \
        float(jnp.max(jnp.abs(out - ref)))

    # bf16 MXU-input / f32-accumulate path (v6e/v7x-preferred), looser check.
    out_bf16 = graph_transformer_forward(params, x, masks, pe, batch_tile=16,
                                         compute_dtype=jnp.bfloat16)
    out_bf16 = jax.block_until_ready(out_bf16)
    assert bool(jnp.all(jnp.isfinite(out_bf16)))
    assert jnp.allclose(out_bf16, ref, atol=5e-2, rtol=5e-2), \
        float(jnp.max(jnp.abs(out_bf16 - ref)))

    print("KERNEL_OK")
</pallas_src>

<mosaic_0001>
module attributes {stable_mosaic.version = 11 : i64} {
  func.func @graph_transformer_kernel(%arg0: i32, %arg1: memref<16x8x16xf32, #tpu.memory_space<vmem>>, %arg2: memref<16x8x8xf32, #tpu.memory_space<vmem>>, %arg3: memref<16x1x8xf32, #tpu.memory_space<vmem>>, %arg4: memref<16x32xf32, #tpu.memory_space<vmem>>, %arg5: memref<2x32x96xf32, #tpu.memory_space<vmem>>, %arg6: memref<2x96xf32, #tpu.memory_space<vmem>>, %arg7: memref<2x32x32xf32, #tpu.memory_space<vmem>>, %arg8: memref<2x6x32xf32, #tpu.memory_space<vmem>>, %arg9: memref<2x32x64xf32, #tpu.memory_space<vmem>>, %arg10: memref<2x64xf32, #tpu.memory_space<vmem>>, %arg11: memref<2x64x32xf32, #tpu.memory_space<vmem>>, %arg12: memref<32x32xf32, #tpu.memory_space<vmem>>, %arg13: memref<1x32xf32, #tpu.memory_space<vmem>>, %arg14: memref<32x3xf32, #tpu.memory_space<vmem>>, %arg15: memref<1x3xf32, #tpu.memory_space<vmem>>, %arg16: memref<16x3xf32, #tpu.memory_space<vmem>>) attributes {dimension_semantics = [#tpu.dimension_semantics<parallel>], iteration_bounds = array<i64: 2>, scalar_prefetch = 0 : i64, scratch_operands = 0 : i64, tpu.core_type = #tpu.core_type<tc>, window_params = [{transform_indices = @transform_0, window_bounds = array<i64: 16, 8, 16>}, {transform_indices = @transform_1, window_bounds = array<i64: 16, 8, 8>}, {transform_indices = @transform_2, window_bounds = array<i64: 16, 1, 8>}, {pipeline_mode = #tpu.pipeline_mode<synchronous>, transform_indices = @transform_3, window_bounds = array<i64: 16, 32>}, {pipeline_mode = #tpu.pipeline_mode<synchronous>, transform_indices = @transform_4, window_bounds = array<i64: 2, 32, 96>}, {pipeline_mode = #tpu.pipeline_mode<synchronous>, transform_indices = @transform_5, window_bounds = array<i64: 2, 96>}, {pipeline_mode = #tpu.pipeline_mode<synchronous>, transform_indices = @transform_6, window_bounds = array<i64: 2, 32, 32>}, {pipeline_mode = #tpu.pipeline_mode<synchronous>, transform_indices = @transform_7, window_bounds = array<i64: 2, 6, 32>}, {pipeline_mode = #tpu.pipeline_mode<synchronous>, transform_indices = @transform_8, window_bounds = array<i64: 2, 32, 64>}, {pipeline_mode = #tpu.pipeline_mode<synchronous>, transform_indices = @transform_9, window_bounds = array<i64: 2, 64>}, {pipeline_mode = #tpu.pipeline_mode<synchronous>, transform_indices = @transform_10, window_bounds = array<i64: 2, 64, 32>}, {pipeline_mode = #tpu.pipeline_mode<synchronous>, transform_indices = @transform_11, window_bounds = array<i64: 32, 32>}, {pipeline_mode = #tpu.pipeline_mode<synchronous>, transform_indices = @transform_12, window_bounds = array<i64: 1, 32>}, {pipeline_mode = #tpu.pipeline_mode<synchronous>, transform_indices = @transform_13, window_bounds = array<i64: 32, 3>}, {pipeline_mode = #tpu.pipeline_mode<synchronous>, transform_indices = @transform_14, window_bounds = array<i64: 1, 3>}, {transform_indices = @transform_15, window_bounds = array<i64: 16, 3>}]} {
    %c0 = arith.constant 0 : index
    %c0_0 = arith.constant 0 : index
    %c0_1 = arith.constant 0 : index
    %0 = vector.load %arg1[%c0, %c0_0, %c0_1] : memref<16x8x16xf32, #tpu.memory_space<vmem>>, vector<16x8x16xf32>
    %c0_2 = arith.constant 0 : index
    %c0_3 = arith.constant 0 : index
    %c0_4 = arith.constant 0 : index
    %1 = vector.load %arg3[%c0_2, %c0_3, %c0_4] : memref<16x1x8xf32, #tpu.memory_space<vmem>>, vector<16x1x8xf32>
    %c0_5 = arith.constant 0 : index
    %c0_6 = arith.constant 0 : index
    %c0_7 = arith.constant 0 : index
    %2 = vector.load %arg2[%c0_5, %c0_6, %c0_7] : memref<16x8x8xf32, #tpu.memory_space<vmem>>, vector<16x8x8xf32>
    %3 = vector.shape_cast %2 : vector<16x8x8xf32> to vector<1x16x8x8xf32>
    %4 = vector.shape_cast %3 : vector<1x16x8x8xf32> to vector<1x16x8x8xf32>
    %5 = vector.broadcast %4 : vector<1x16x8x8xf32> to vector<4x16x8x8xf32>
    %6 = vector.shape_cast %5 : vector<4x16x8x8xf32> to vector<64x8x8xf32>
    %7 = vector.shape_cast %0 : vector<16x8x16xf32> to vector<128x16xf32>
    %c0_8 = arith.constant 0 : index
    %c0_9 = arith.constant 0 : index
    %8 = vector.load %arg4[%c0_8, %c0_9] : memref<16x32xf32, #tpu.memory_space<vmem>>, vector<16x32xf32>
    %cst = arith.constant dense<0.000000e+00> : vector<128x32xf32>
    %9 = tpu.matmul %7, %8, %cst {dimension_numbers = #tpu.dot_dimension_numbers<[1], [0], [0], [1], [0, 0, 1, 1], [], []>} : vector<128x16xf32>, vector<16x32xf32>, vector<128x32xf32> -> vector<128x32xf32>
    %c0_10 = arith.constant 0 : index
    %c0_11 = arith.constant 0 : index
    %c0_12 = arith.constant 0 : index
    %10 = vector.load %arg8[%c0_10, %c0_11, %c0_12] : memref<2x6x32xf32, #tpu.memory_space<vmem>>, vector<1x6x32xf32>
    %11 = vector.shape_cast %10 : vector<1x6x32xf32> to vector<6x32xf32>
    %12 = vector.extract_strided_slice %11 {offsets = [0, 0], sizes = [1, 32], strides = [1, 1]} : vector<6x32xf32> to vector<1x32xf32>
    %13 = vector.shape_cast %12 : vector<1x32xf32> to vector<32xf32>
    %14 = vector.extract_strided_slice %11 {offsets = [1, 0], sizes = [1, 32], strides = [1, 1]} : vector<6x32xf32> to vector<1x32xf32>
    %15 = vector.shape_cast %14 : vector<1x32xf32> to vector<32xf32>
    %16 = vector.extract_strided_slice %11 {offsets = [2, 0], sizes = [1, 32], strides = [1, 1]} : vector<6x32xf32> to vector<1x32xf32>
    %17 = vector.shape_cast %16 : vector<1x32xf32> to vector<32xf32>
    %18 = vector.extract_strided_slice %11 {offsets = [3, 0], sizes = [1, 32], strides = [1, 1]} : vector<6x32xf32> to vector<1x32xf32>
    %19 = vector.shape_cast %18 : vector<1x32xf32> to vector<32xf32>
    %20 = vector.extract_strided_slice %11 {offsets = [4, 0], sizes = [1, 32], strides = [1, 1]} : vector<6x32xf32> to vector<1x32xf32>
    %21 = vector.shape_cast %20 : vector<1x32xf32> to vector<32xf32>
    %22 = vector.extract_strided_slice %11 {offsets = [5, 0], sizes = [1, 32], strides = [1, 1]} : vector<6x32xf32> to vector<1x32xf32>
    %23 = vector.shape_cast %22 : vector<1x32xf32> to vector<32xf32>
    %c0_13 = arith.constant 0 : index
    %c0_14 = arith.constant 0 : index
    %c0_15 = arith.constant 0 : index
    %24 = vector.load %arg5[%c0_13, %c0_14, %c0_15] : memref<2x32x96xf32, #tpu.memory_space<vmem>>, vector<1x32x96xf32>
    %25 = vector.shape_cast %24 : vector<1x32x96xf32> to vector<32x96xf32>
    %cst_16 = arith.constant dense<0.000000e+00> : vector<128x96xf32>
    %26 = tpu.matmul %9, %25, %cst_16 {dimension_numbers = #tpu.dot_dimension_numbers<[1], [0], [0], [1], [0, 0, 1, 1], [], []>} : vector<128x32xf32>, vector<32x96xf32>, vector<128x96xf32> -> vector<128x96xf32>
    %c0_17 = arith.constant 0 : index
    %c0_18 = arith.constant 0 : index
    %27 = vector.load %arg6[%c0_17, %c0_18] : memref<2x96xf32, #tpu.memory_space<vmem>>, vector<1x96xf32>
    %28 = vector.shape_cast %27 : vector<1x96xf32> to vector<96xf32>
    %29 = vector.shape_cast %28 : vector<96xf32> to vector<1x96xf32>
    %30 = vector.broadcast %29 : vector<1x96xf32> to vector<128x96xf32>
    %31 = arith.addf %26, %30 : vector<128x96xf32>
    %32 = vector.extract_strided_slice %31 {offsets = [0, 0], sizes = [128, 32], strides = [1, 1]} : vector<128x96xf32> to vector<128x32xf32>
    %33 = vector.extract_strided_slice %32 {offsets = [0, 0], sizes = [128, 8], strides = [1, 1]} : vector<128x32xf32> to vector<128x8xf32>
    %34 = vector.shape_cast %33 : vector<128x8xf32> to vector<16x8x8xf32>
    %35 = vector.extract_strided_slice %32 {offsets = [0, 8], sizes = [128, 8], strides = [1, 1]} : vector<128x32xf32> to vector<128x8xf32>
    %36 = vector.shape_cast %35 : vector<128x8xf32> to vector<16x8x8xf32>
    %37 = vector.extract_strided_slice %32 {offsets = [0, 16], sizes = [128, 8], strides = [1, 1]} : vector<128x32xf32> to vector<128x8xf32>
    %38 = vector.shape_cast %37 : vector<128x8xf32> to vector<16x8x8xf32>
    %39 = vector.extract_strided_slice %32 {offsets = [0, 24], sizes = [128, 8], strides = [1, 1]} : vector<128x32xf32> to vector<128x8xf32>
    %40 = vector.shape_cast %39 : vector<128x8xf32> to vector<16x8x8xf32>
    %41 = vector.shape_cast %34 : vector<16x8x8xf32> to vector<1x16x8x8xf32>
    %42 = vector.shape_cast %36 : vector<16x8x8xf32> to vector<1x16x8x8xf32>
    %43 = vector.shape_cast %38 : vector<16x8x8xf32> to vector<1x16x8x8xf32>
    %44 = vector.shape_cast %40 : vector<16x8x8xf32> to vector<1x16x8x8xf32>
    %45 = tpu.concatenate %41, %42, %43, %44 in 0 : vector<1x16x8x8xf32>, vector<1x16x8x8xf32>, vector<1x16x8x8xf32>, vector<1x16x8x8xf32> -> vector<4x16x8x8xf32>
    %46 = vector.shape_cast %45 : vector<4x16x8x8xf32> to vector<64x8x8xf32>
    %47 = vector.extract_strided_slice %31 {offsets = [0, 32], sizes = [128, 32], strides = [1, 1]} : vector<128x96xf32> to vector<128x32xf32>
    %48 = vector.extract_strided_slice %47 {offsets = [0, 0], sizes = [128, 8], strides = [1, 1]} : vector<128x32xf32> to vector<128x8xf32>
    %49 = vector.shape_cast %48 : vector<128x8xf32> to vector<16x8x8xf32>
    %50 = vector.extract_strided_slice %47 {offsets = [0, 8], sizes = [128, 8], strides = [1, 1]} : vector<128x32xf32> to vector<128x8xf32>
    %51 = vector.shape_cast %50 : vector<128x8xf32> to vector<16x8x8xf32>
    %52 = vector.extract_strided_slice %47 {offsets = [0, 16], sizes = [128, 8], strides = [1, 1]} : vector<128x32xf32> to vector<128x8xf32>
    %53 = vector.shape_cast %52 : vector<128x8xf32> to vector<16x8x8xf32>
    %54 = vector.extract_strided_slice %47 {offsets = [0, 24], sizes = [128, 8], strides = [1, 1]} : vector<128x32xf32> to vector<128x8xf32>
    %55 = vector.shape_cast %54 : vector<128x8xf32> to vector<16x8x8xf32>
    %56 = vector.shape_cast %49 : vector<16x8x8xf32> to vector<1x16x8x8xf32>
    %57 = vector.shape_cast %51 : vector<16x8x8xf32> to vector<1x16x8x8xf32>
    %58 = vector.shape_cast %53 : vector<16x8x8xf32> to vector<1x16x8x8xf32>
    %59 = vector.shape_cast %55 : vector<16x8x8xf32> to vector<1x16x8x8xf32>
    %60 = tpu.concatenate %56, %57, %58, %59 in 0 : vector<1x16x8x8xf32>, vector<1x16x8x8xf32>, vector<1x16x8x8xf32>, vector<1x16x8x8xf32> -> vector<4x16x8x8xf32>
    %61 = vector.shape_cast %60 : vector<4x16x8x8xf32> to vector<64x8x8xf32>
    %62 = vector.extract_strided_slice %31 {offsets = [0, 64], sizes = [128, 32], strides = [1, 1]} : vector<128x96xf32> to vector<128x32xf32>
    %63 = vector.extract_strided_slice %62 {offsets = [0, 0], sizes = [128, 8], strides = [1, 1]} : vector<128x32xf32> to vector<128x8xf32>
    %64 = vector.shape_cast %63 : vector<128x8xf32> to vector<16x8x8xf32>
    %65 = vector.extract_strided_slice %62 {offsets = [0, 8], sizes = [128, 8], strides = [1, 1]} : vector<128x32xf32> to vector<128x8xf32>
    %66 = vector.shape_cast %65 : vector<128x8xf32> to vector<16x8x8xf32>
    %67 = vector.extract_strided_slice %62 {offsets = [0, 16], sizes = [128, 8], strides = [1, 1]} : vector<128x32xf32> to vector<128x8xf32>
    %68 = vector.shape_cast %67 : vector<128x8xf32> to vector<16x8x8xf32>
    %69 = vector.extract_strided_slice %62 {offsets = [0, 24], sizes = [128, 8], strides = [1, 1]} : vector<128x32xf32> to vector<128x8xf32>
    %70 = vector.shape_cast %69 : vector<128x8xf32> to vector<16x8x8xf32>
    %71 = vector.shape_cast %64 : vector<16x8x8xf32> to vector<1x16x8x8xf32>
    %72 = vector.shape_cast %66 : vector<16x8x8xf32> to vector<1x16x8x8xf32>
    %73 = vector.shape_cast %68 : vector<16x8x8xf32> to vector<1x16x8x8xf32>
    %74 = vector.shape_cast %70 : vector<16x8x8xf32> to vector<1x16x8x8xf32>
    %75 = tpu.concatenate %71, %72, %73, %74 in 0 : vector<1x16x8x8xf32>, vector<1x16x8x8xf32>, vector<1x16x8x8xf32>, vector<1x16x8x8xf32> -> vector<4x16x8x8xf32>
    %76 = vector.shape_cast %75 : vector<4x16x8x8xf32> to vector<64x8x8xf32>
    "tpu.trace_start"() <{level = 10 : i32, message = "bqd,bkd->bqk"}> : () -> ()
    %cst_19 = arith.constant dense<0.000000e+00> : vector<64x8x8xf32>
    %77 = tpu.matmul %46, %61, %cst_19 {dimension_numbers = #tpu.dot_dimension_numbers<[2], [2], [1], [1], [0, 0, 0, 1, 1, 1], [0], [0]>} : vector<64x8x8xf32>, vector<64x8x8xf32>, vector<64x8x8xf32> -> vector<64x8x8xf32>
    "tpu.trace_stop"() : () -> ()
    %cst_20 = arith.constant 0.353553385 : f32
    %78 = vector.broadcast %cst_20 : f32 to vector<64x8x8xf32>
    %79 = arith.mulf %77, %78 : vector<64x8x8xf32>
    %80 = arith.addf %79, %6 : vector<64x8x8xf32>
    %cst_21 = arith.constant dense<0xFF800000> : vector<64x8xf32>
    %81 = vector.multi_reduction <maximumf>, %80, %cst_21 [2] : vector<64x8x8xf32> to vector<64x8xf32>
    %82 = vector.shape_cast %81 : vector<64x8xf32> to vector<64x8x1xf32>
    %83 = vector.broadcast %82 : vector<64x8x1xf32> to vector<64x8x8xf32>
    %84 = arith.subf %80, %83 : vector<64x8x8xf32>
    %85 = math.exp %84 : vector<64x8x8xf32>
    %cst_22 = arith.constant dense<0.000000e+00> : vector<64x8xf32>
    %86 = vector.multi_reduction <add>, %85, %cst_22 [2] : vector<64x8x8xf32> to vector<64x8xf32>
    %87 = vector.shape_cast %86 : vector<64x8xf32> to vector<64x8x1xf32>
    %88 = tpu.reciprocal %87 {approx = true} : vector<64x8x1xf32> -> vector<64x8x1xf32>
    %89 = vector.broadcast %88 : vector<64x8x1xf32> to vector<64x8x8xf32>
    %90 = arith.mulf %85, %89 : vector<64x8x8xf32>
    "tpu.trace_start"() <{level = 10 : i32, message = "bqk,bkd->bqd"}> : () -> ()
    %cst_23 = arith.constant dense<0.000000e+00> : vector<64x8x8xf32>
    %91 = tpu.matmul %90, %76, %cst_23 {dimension_numbers = #tpu.dot_dimension_numbers<[2], [1], [1], [2], [0, 0, 0, 1, 1, 2], [0], [0]>} : vector<64x8x8xf32>, vector<64x8x8xf32>, vector<64x8x8xf32> -> vector<64x8x8xf32>
    "tpu.trace_stop"() : () -> ()
    %92 = vector.shape_cast %91 : vector<64x8x8xf32> to vector<4x128x8xf32>
    %93 = vector.extract_strided_slice %92 {offsets = [0, 0, 0], sizes = [1, 128, 8], strides = [1, 1, 1]} : vector<4x128x8xf32> to vector<1x128x8xf32>
    %94 = vector.shape_cast %93 : vector<1x128x8xf32> to vector<128x8xf32>
    %95 = vector.extract_strided_slice %92 {offsets = [1, 0, 0], sizes = [1, 128, 8], strides = [1, 1, 1]} : vector<4x128x8xf32> to vector<1x128x8xf32>
    %96 = vector.shape_cast %95 : vector<1x128x8xf32> to vector<128x8xf32>
    %97 = vector.extract_strided_slice %92 {offsets = [2, 0, 0], sizes = [1, 128, 8], strides = [1, 1, 1]} : vector<4x128x8xf32> to vector<1x128x8xf32>
    %98 = vector.shape_cast %97 : vector<1x128x8xf32> to vector<128x8xf32>
    %99 = vector.extract_strided_slice %92 {offsets = [3, 0, 0], sizes = [1, 128, 8], strides = [1, 1, 1]} : vector<4x128x8xf32> to vector<1x128x8xf32>
    %100 = vector.shape_cast %99 : vector<1x128x8xf32> to vector<128x8xf32>
    %101 = tpu.concatenate %94, %96, %98, %100 in 1 : vector<128x8xf32>, vector<128x8xf32>, vector<128x8xf32>, vector<128x8xf32> -> vector<128x32xf32>
    %c0_24 = arith.constant 0 : index
    %c0_25 = arith.constant 0 : index
    %c0_26 = arith.constant 0 : index
    %102 = vector.load %arg7[%c0_24, %c0_25, %c0_26] : memref<2x32x32xf32, #tpu.memory_space<vmem>>, vector<1x32x32xf32>
    %103 = vector.shape_cast %102 : vector<1x32x32xf32> to vector<32x32xf32>
    %cst_27 = arith.constant dense<0.000000e+00> : vector<128x32xf32>
    %104 = tpu.matmul %101, %103, %cst_27 {dimension_numbers = #tpu.dot_dimension_numbers<[1], [0], [0], [1], [0, 0, 1, 1], [], []>} : vector<128x32xf32>, vector<32x32xf32>, vector<128x32xf32> -> vector<128x32xf32>
    %105 = vector.shape_cast %13 : vector<32xf32> to vector<1x32xf32>
    %106 = vector.broadcast %105 : vector<1x32xf32> to vector<128x32xf32>
    %107 = arith.addf %104, %106 : vector<128x32xf32>
    %108 = arith.addf %9, %107 : vector<128x32xf32>
    %cst_28 = arith.constant dense<0.000000e+00> : vector<128xf32>
    %109 = vector.multi_reduction <add>, %108, %cst_28 [1] : vector<128x32xf32> to vector<128xf32>
    %110 = vector.shape_cast %109 : vector<128xf32> to vector<128x1xf32>
    %cst_29 = arith.constant 3.200000e+01 : f32
    %111 = vector.broadcast %cst_29 : f32 to vector<128x1xf32>
    %112 = arith.divf %110, %111 : vector<128x1xf32>
    %113 = vector.broadcast %112 : vector<128x1xf32> to vector<128x32xf32>
    %114 = arith.subf %108, %113 : vector<128x32xf32>
    %115 = arith.mulf %114, %114 : vector<128x32xf32>
    %cst_30 = arith.constant dense<0.000000e+00> : vector<128xf32>
    %116 = vector.multi_reduction <add>, %115, %cst_30 [1] : vector<128x32xf32> to vector<128xf32>
    %117 = vector.shape_cast %116 : vector<128xf32> to vector<128x1xf32>
    %cst_31 = arith.constant 3.200000e+01 : f32
    %118 = vector.broadcast %cst_31 : f32 to vector<128x1xf32>
    %119 = arith.divf %117, %118 : vector<128x1xf32>
    %120 = vector.broadcast %112 : vector<128x1xf32> to vector<128x32xf32>
    %121 = arith.subf %108, %120 : vector<128x32xf32>
    %cst_32 = arith.constant 9.99999974E-6 : f32
    %122 = vector.broadcast %cst_32 : f32 to vector<128x1xf32>
    %123 = arith.addf %119, %122 : vector<128x1xf32>
    %124 = math.rsqrt %123 : vector<128x1xf32>
    %125 = vector.broadcast %124 : vector<128x1xf32> to vector<128x32xf32>
    %126 = arith.mulf %121, %125 : vector<128x32xf32>
    %127 = vector.shape_cast %15 : vector<32xf32> to vector<1x32xf32>
    %128 = vector.broadcast %127 : vector<1x32xf32> to vector<128x32xf32>
    %129 = arith.mulf %126, %128 : vector<128x32xf32>
    %130 = vector.shape_cast %17 : vector<32xf32> to vector<1x32xf32>
    %131 = vector.broadcast %130 : vector<1x32xf32> to vector<128x32xf32>
    %132 = arith.addf %129, %131 : vector<128x32xf32>
    %c0_33 = arith.constant 0 : index
    %c0_34 = arith.constant 0 : index
    %c0_35 = arith.constant 0 : index
    %133 = vector.load %arg9[%c0_33, %c0_34, %c0_35] : memref<2x32x64xf32, #tpu.memory_space<vmem>>, vector<1x32x64xf32>
    %134 = vector.shape_cast %133 : vector<1x32x64xf32> to vector<32x64xf32>
    %cst_36 = arith.constant dense<0.000000e+00> : vector<128x64xf32>
    %135 = tpu.matmul %132, %134, %cst_36 {dimension_numbers = #tpu.dot_dimension_numbers<[1], [0], [0], [1], [0, 0, 1, 1], [], []>} : vector<128x32xf32>, vector<32x64xf32>, vector<128x64xf32> -> vector<128x64xf32>
    %c0_37 = arith.constant 0 : index
    %c0_38 = arith.constant 0 : index
    %136 = vector.load %arg10[%c0_37, %c0_38] : memref<2x64xf32, #tpu.memory_space<vmem>>, vector<1x64xf32>
    %137 = vector.shape_cast %136 : vector<1x64xf32> to vector<64xf32>
    %138 = vector.shape_cast %137 : vector<64xf32> to vector<1x64xf32>
    %139 = vector.broadcast %138 : vector<1x64xf32> to vector<128x64xf32>
    %140 = arith.addf %135, %139 : vector<128x64xf32>
    %cst_39 = arith.constant 0.000000e+00 : f32
    %141 = vector.broadcast %cst_39 : f32 to vector<128x64xf32>
    %142 = arith.maximumf %140, %141 : vector<128x64xf32>
    %c0_40 = arith.constant 0 : index
    %c0_41 = arith.constant 0 : index
    %c0_42 = arith.constant 0 : index
    %143 = vector.load %arg11[%c0_40, %c0_41, %c0_42] : memref<2x64x32xf32, #tpu.memory_space<vmem>>, vector<1x64x32xf32>
    %144 = vector.shape_cast %143 : vector<1x64x32xf32> to vector<64x32xf32>
    %cst_43 = arith.constant dense<0.000000e+00> : vector<128x32xf32>
    %145 = tpu.matmul %142, %144, %cst_43 {dimension_numbers = #tpu.dot_dimension_numbers<[1], [0], [0], [1], [0, 0, 1, 1], [], []>} : vector<128x64xf32>, vector<64x32xf32>, vector<128x32xf32> -> vector<128x32xf32>
    %146 = vector.shape_cast %23 : vector<32xf32> to vector<1x32xf32>
    %147 = vector.broadcast %146 : vector<1x32xf32> to vector<128x32xf32>
    %148 = arith.addf %145, %147 : vector<128x32xf32>
    %149 = arith.addf %132, %148 : vector<128x32xf32>
    %cst_44 = arith.constant dense<0.000000e+00> : vector<128xf32>
    %150 = vector.multi_reduction <add>, %149, %cst_44 [1] : vector<128x32xf32> to vector<128xf32>
    %151 = vector.shape_cast %150 : vector<128xf32> to vector<128x1xf32>
    %cst_45 = arith.constant 3.200000e+01 : f32
    %152 = vector.broadcast %cst_45 : f32 to vector<128x1xf32>
    %153 = arith.divf %151, %152 : vector<128x1xf32>
    %154 = vector.broadcast %153 : vector<128x1xf32> to vector<128x32xf32>
    %155 = arith.subf %149, %154 : vector<128x32xf32>
    %156 = arith.mulf %155, %155 : vector<128x32xf32>
    %cst_46 = arith.constant dense<0.000000e+00> : vector<128xf32>
    %157 = vector.multi_reduction <add>, %156, %cst_46 [1] : vector<128x32xf32> to vector<128xf32>
    %158 = vector.shape_cast %157 : vector<128xf32> to vector<128x1xf32>
    %cst_47 = arith.constant 3.200000e+01 : f32
    %159 = vector.broadcast %cst_47 : f32 to vector<128x1xf32>
    %160 = arith.divf %158, %159 : vector<128x1xf32>
    %161 = vector.broadcast %153 : vector<128x1xf32> to vector<128x32xf32>
    %162 = arith.subf %149, %161 : vector<128x32xf32>
    %cst_48 = arith.constant 9.99999974E-6 : f32
    %163 = vector.broadcast %cst_48 : f32 to vector<128x1xf32>
    %164 = arith.addf %160, %163 : vector<128x1xf32>
    %165 = math.rsqrt %164 : vector<128x1xf32>
    %166 = vector.broadcast %165 : vector<128x1xf32> to vector<128x32xf32>
    %167 = arith.mulf %162, %166 : vector<128x32xf32>
    %168 = vector.shape_cast %19 : vector<32xf32> to vector<1x32xf32>
    %169 = vector.broadcast %168 : vector<1x32xf32> to vector<128x32xf32>
    %170 = arith.mulf %167, %169 : vector<128x32xf32>
    %171 = vector.shape_cast %21 : vector<32xf32> to vector<1x32xf32>
    %172 = vector.broadcast %171 : vector<1x32xf32> to vector<128x32xf32>
    %173 = arith.addf %170, %172 : vector<128x32xf32>
    %c1 = arith.constant 1 : index
    %c0_49 = arith.constant 0 : index
    %c0_50 = arith.constant 0 : index
    %174 = vector.load %arg8[%c1, %c0_49, %c0_50] : memref<2x6x32xf32, #tpu.memory_space<vmem>>, vector<1x6x32xf32>
    %175 = vector.shape_cast %174 : vector<1x6x32xf32> to vector<6x32xf32>
    %176 = vector.extract_strided_slice %175 {offsets = [0, 0], sizes = [1, 32], strides = [1, 1]} : vector<6x32xf32> to vector<1x32xf32>
    %177 = vector.shape_cast %176 : vector<1x32xf32> to vector<32xf32>
    %178 = vector.extract_strided_slice %175 {offsets = [1, 0], sizes = [1, 32], strides = [1, 1]} : vector<6x32xf32> to vector<1x32xf32>
    %179 = vector.shape_cast %178 : vector<1x32xf32> to vector<32xf32>
    %180 = vector.extract_strided_slice %175 {offsets = [2, 0], sizes = [1, 32], strides = [1, 1]} : vector<6x32xf32> to vector<1x32xf32>
    %181 = vector.shape_cast %180 : vector<1x32xf32> to vector<32xf32>
    %182 = vector.extract_strided_slice %175 {offsets = [3, 0], sizes = [1, 32], strides = [1, 1]} : vector<6x32xf32> to vector<1x32xf32>
    %183 = vector.shape_cast %182 : vector<1x32xf32> to vector<32xf32>
    %184 = vector.extract_strided_slice %175 {offsets = [4, 0], sizes = [1, 32], strides = [1, 1]} : vector<6x32xf32> to vector<1x32xf32>
    %185 = vector.shape_cast %184 : vector<1x32xf32> to vector<32xf32>
    %186 = vector.extract_strided_slice %175 {offsets = [5, 0], sizes = [1, 32], strides = [1, 1]} : vector<6x32xf32> to vector<1x32xf32>
    %187 = vector.shape_cast %186 : vector<1x32xf32> to vector<32xf32>
    %c1_51 = arith.constant 1 : index
    %c0_52 = arith.constant 0 : index
    %c0_53 = arith.constant 0 : index
    %188 = vector.load %arg5[%c1_51, %c0_52, %c0_53] : memref<2x32x96xf32, #tpu.memory_space<vmem>>, vector<1x32x96xf32>
    %189 = vector.shape_cast %188 : vector<1x32x96xf32> to vector<32x96xf32>
    %cst_54 = arith.constant dense<0.000000e+00> : vector<128x96xf32>
    %190 = tpu.matmul %173, %189, %cst_54 {dimension_numbers = #tpu.dot_dimension_numbers<[1], [0], [0], [1], [0, 0, 1, 1], [], []>} : vector<128x32xf32>, vector<32x96xf32>, vector<128x96xf32> -> vector<128x96xf32>
    %c1_55 = arith.constant 1 : index
    %c0_56 = arith.constant 0 : index
    %191 = vector.load %arg6[%c1_55, %c0_56] : memref<2x96xf32, #tpu.memory_space<vmem>>, vector<1x96xf32>
    %192 = vector.shape_cast %191 : vector<1x96xf32> to vector<96xf32>
    %193 = vector.shape_cast %192 : vector<96xf32> to vector<1x96xf32>
    %194 = vector.broadcast %193 : vector<1x96xf32> to vector<128x96xf32>
    %195 = arith.addf %190, %194 : vector<128x96xf32>
    %196 = vector.extract_strided_slice %195 {offsets = [0, 0], sizes = [128, 32], strides = [1, 1]} : vector<128x96xf32> to vector<128x32xf32>
    %197 = vector.extract_strided_slice %196 {offsets = [0, 0], sizes = [128, 8], strides = [1, 1]} : vector<128x32xf32> to vector<128x8xf32>
    %198 = vector.shape_cast %197 : vector<128x8xf32> to vector<16x8x8xf32>
    %199 = vector.extract_strided_slice %196 {offsets = [0, 8], sizes = [128, 8], strides = [1, 1]} : vector<128x32xf32> to vector<128x8xf32>
    %200 = vector.shape_cast %199 : vector<128x8xf32> to vector<16x8x8xf32>
    %201 = vector.extract_strided_slice %196 {offsets = [0, 16], sizes = [128, 8], strides = [1, 1]} : vector<128x32xf32> to vector<128x8xf32>
    %202 = vector.shape_cast %201 : vector<128x8xf32> to vector<16x8x8xf32>
    %203 = vector.extract_strided_slice %196 {offsets = [0, 24], sizes = [128, 8], strides = [1, 1]} : vector<128x32xf32> to vector<128x8xf32>
    %204 = vector.shape_cast %203 : vector<128x8xf32> to vector<16x8x8xf32>
    %205 = vector.shape_cast %198 : vector<16x8x8xf32> to vector<1x16x8x8xf32>
    %206 = vector.shape_cast %200 : vector<16x8x8xf32> to vector<1x16x8x8xf32>
    %207 = vector.shape_cast %202 : vector<16x8x8xf32> to vector<1x16x8x8xf32>
    %208 = vector.shape_cast %204 : vector<16x8x8xf32> to vector<1x16x8x8xf32>
    %209 = tpu.concatenate %205, %206, %207, %208 in 0 : vector<1x16x8x8xf32>, vector<1x16x8x8xf32>, vector<1x16x8x8xf32>, vector<1x16x8x8xf32> -> vector<4x16x8x8xf32>
    %210 = vector.shape_cast %209 : vector<4x16x8x8xf32> to vector<64x8x8xf32>
    %211 = vector.extract_strided_slice %195 {offsets = [0, 32], sizes = [128, 32], strides = [1, 1]} : vector<128x96xf32> to vector<128x32xf32>
    %212 = vector.extract_strided_slice %211 {offsets = [0, 0], sizes = [128, 8], strides = [1, 1]} : vector<128x32xf32> to vector<128x8xf32>
    %213 = vector.shape_cast %212 : vector<128x8xf32> to vector<16x8x8xf32>
    %214 = vector.extract_strided_slice %211 {offsets = [0, 8], sizes = [128, 8], strides = [1, 1]} : vector<128x32xf32> to vector<128x8xf32>
    %215 = vector.shape_cast %214 : vector<128x8xf32> to vector<16x8x8xf32>
    %216 = vector.extract_strided_slice %211 {offsets = [0, 16], sizes = [128, 8], strides = [1, 1]} : vector<128x32xf32> to vector<128x8xf32>
    %217 = vector.shape_cast %216 : vector<128x8xf32> to vector<16x8x8xf32>
    %218 = vector.extract_strided_slice %211 {offsets = [0, 24], sizes = [128, 8], strides = [1, 1]} : vector<128x32xf32> to vector<128x8xf32>
    %219 = vector.shape_cast %218 : vector<128x8xf32> to vector<16x8x8xf32>
    %220 = vector.shape_cast %213 : vector<16x8x8xf32> to vector<1x16x8x8xf32>
    %221 = vector.shape_cast %215 : vector<16x8x8xf32> to vector<1x16x8x8xf32>
    %222 = vector.shape_cast %217 : vector<16x8x8xf32> to vector<1x16x8x8xf32>
    %223 = vector.shape_cast %219 : vector<16x8x8xf32> to vector<1x16x8x8xf32>
    %224 = tpu.concatenate %220, %221, %222, %223 in 0 : vector<1x16x8x8xf32>, vector<1x16x8x8xf32>, vector<1x16x8x8xf32>, vector<1x16x8x8xf32> -> vector<4x16x8x8xf32>
    %225 = vector.shape_cast %224 : vector<4x16x8x8xf32> to vector<64x8x8xf32>
    %226 = vector.extract_strided_slice %195 {offsets = [0, 64], sizes = [128, 32], strides = [1, 1]} : vector<128x96xf32> to vector<128x32xf32>
    %227 = vector.extract_strided_slice %226 {offsets = [0, 0], sizes = [128, 8], strides = [1, 1]} : vector<128x32xf32> to vector<128x8xf32>
    %228 = vector.shape_cast %227 : vector<128x8xf32> to vector<16x8x8xf32>
    %229 = vector.extract_strided_slice %226 {offsets = [0, 8], sizes = [128, 8], strides = [1, 1]} : vector<128x32xf32> to vector<128x8xf32>
    %230 = vector.shape_cast %229 : vector<128x8xf32> to vector<16x8x8xf32>
    %231 = vector.extract_strided_slice %226 {offsets = [0, 16], sizes = [128, 8], strides = [1, 1]} : vector<128x32xf32> to vector<128x8xf32>
    %232 = vector.shape_cast %231 : vector<128x8xf32> to vector<16x8x8xf32>
    %233 = vector.extract_strided_slice %226 {offsets = [0, 24], sizes = [128, 8], strides = [1, 1]} : vector<128x32xf32> to vector<128x8xf32>
    %234 = vector.shape_cast %233 : vector<128x8xf32> to vector<16x8x8xf32>
    %235 = vector.shape_cast %228 : vector<16x8x8xf32> to vector<1x16x8x8xf32>
    %236 = vector.shape_cast %230 : vector<16x8x8xf32> to vector<1x16x8x8xf32>
    %237 = vector.shape_cast %232 : vector<16x8x8xf32> to vector<1x16x8x8xf32>
    %238 = vector.shape_cast %234 : vector<16x8x8xf32> to vector<1x16x8x8xf32>
    %239 = tpu.concatenate %235, %236, %237, %238 in 0 : vector<1x16x8x8xf32>, vector<1x16x8x8xf32>, vector<1x16x8x8xf32>, vector<1x16x8x8xf32> -> vector<4x16x8x8xf32>
    %240 = vector.shape_cast %239 : vector<4x16x8x8xf32> to vector<64x8x8xf32>
    "tpu.trace_start"() <{level = 10 : i32, message = "bqd,bkd->bqk"}> : () -> ()
    %cst_57 = arith.constant dense<0.000000e+00> : vector<64x8x8xf32>
    %241 = tpu.matmul %210, %225, %cst_57 {dimension_numbers = #tpu.dot_dimension_numbers<[2], [2], [1], [1], [0, 0, 0, 1, 1, 1], [0], [0]>} : vector<64x8x8xf32>, vector<64x8x8xf32>, vector<64x8x8xf32> -> vector<64x8x8xf32>
    "tpu.trace_stop"() : () -> ()
    %cst_58 = arith.constant 0.353553385 : f32
    %242 = vector.broadcast %cst_58 : f32 to vector<64x8x8xf32>
    %243 = arith.mulf %241, %242 : vector<64x8x8xf32>
    %244 = arith.addf %243, %6 : vector<64x8x8xf32>
    %cst_59 = arith.constant dense<0xFF800000> : vector<64x8xf32>
    %245 = vector.multi_reduction <maximumf>, %244, %cst_59 [2] : vector<64x8x8xf32> to vector<64x8xf32>
    %246 = vector.shape_cast %245 : vector<64x8xf32> to vector<64x8x1xf32>
    %247 = vector.broadcast %246 : vector<64x8x1xf32> to vector<64x8x8xf32>
    %248 = arith.subf %244, %247 : vector<64x8x8xf32>
    %249 = math.exp %248 : vector<64x8x8xf32>
    %cst_60 = arith.constant dense<0.000000e+00> : vector<64x8xf32>
    %250 = vector.multi_reduction <add>, %249, %cst_60 [2] : vector<64x8x8xf32> to vector<64x8xf32>
    %251 = vector.shape_cast %250 : vector<64x8xf32> to vector<64x8x1xf32>
    %252 = tpu.reciprocal %251 {approx = true} : vector<64x8x1xf32> -> vector<64x8x1xf32>
    %253 = vector.broadcast %252 : vector<64x8x1xf32> to vector<64x8x8xf32>
    %254 = arith.mulf %249, %253 : vector<64x8x8xf32>
    "tpu.trace_start"() <{level = 10 : i32, message = "bqk,bkd->bqd"}> : () -> ()
    %cst_61 = arith.constant dense<0.000000e+00> : vector<64x8x8xf32>
    %255 = tpu.matmul %254, %240, %cst_61 {dimension_numbers = #tpu.dot_dimension_numbers<[2], [1], [1], [2], [0, 0, 0, 1, 1, 2], [0], [0]>} : vector<64x8x8xf32>, vector<64x8x8xf32>, vector<64x8x8xf32> -> vector<64x8x8xf32>
    "tpu.trace_stop"() : () -> ()
    %256 = vector.shape_cast %255 : vector<64x8x8xf32> to vector<4x128x8xf32>
    %257 = vector.extract_strided_slice %256 {offsets = [0, 0, 0], sizes = [1, 128, 8], strides = [1, 1, 1]} : vector<4x128x8xf32> to vector<1x128x8xf32>
    %258 = vector.shape_cast %257 : vector<1x128x8xf32> to vector<128x8xf32>
    %259 = vector.extract_strided_slice %256 {offsets = [1, 0, 0], sizes = [1, 128, 8], strides = [1, 1, 1]} : vector<4x128x8xf32> to vector<1x128x8xf32>
    %260 = vector.shape_cast %259 : vector<1x128x8xf32> to vector<128x8xf32>
    %261 = vector.extract_strided_slice %256 {offsets = [2, 0, 0], sizes = [1, 128, 8], strides = [1, 1, 1]} : vector<4x128x8xf32> to vector<1x128x8xf32>
    %262 = vector.shape_cast %261 : vector<1x128x8xf32> to vector<128x8xf32>
    %263 = vector.extract_strided_slice %256 {offsets = [3, 0, 0], sizes = [1, 128, 8], strides = [1, 1, 1]} : vector<4x128x8xf32> to vector<1x128x8xf32>
    %264 = vector.shape_cast %263 : vector<1x128x8xf32> to vector<128x8xf32>
    %265 = tpu.concatenate %258, %260, %262, %264 in 1 : vector<128x8xf32>, vector<128x8xf32>, vector<128x8xf32>, vector<128x8xf32> -> vector<128x32xf32>
    %c1_62 = arith.constant 1 : index
    %c0_63 = arith.constant 0 : index
    %c0_64 = arith.constant 0 : index
    %266 = vector.load %arg7[%c1_62, %c0_63, %c0_64] : memref<2x32x32xf32, #tpu.memory_space<vmem>>, vector<1x32x32xf32>
    %267 = vector.shape_cast %266 : vector<1x32x32xf32> to vector<32x32xf32>
    %cst_65 = arith.constant dense<0.000000e+00> : vector<128x32xf32>
    %268 = tpu.matmul %265, %267, %cst_65 {dimension_numbers = #tpu.dot_dimension_numbers<[1], [0], [0], [1], [0, 0, 1, 1], [], []>} : vector<128x32xf32>, vector<32x32xf32>, vector<128x32xf32> -> vector<128x32xf32>
    %269 = vector.shape_cast %177 : vector<32xf32> to vector<1x32xf32>
    %270 = vector.broadcast %269 : vector<1x32xf32> to vector<128x32xf32>
    %271 = arith.addf %268, %270 : vector<128x32xf32>
    %272 = arith.addf %173, %271 : vector<128x32xf32>
    %cst_66 = arith.constant dense<0.000000e+00> : vector<128xf32>
    %273 = vector.multi_reduction <add>, %272, %cst_66 [1] : vector<128x32xf32> to vector<128xf32>
    %274 = vector.shape_cast %273 : vector<128xf32> to vector<128x1xf32>
    %cst_67 = arith.constant 3.200000e+01 : f32
    %275 = vector.broadcast %cst_67 : f32 to vector<128x1xf32>
    %276 = arith.divf %274, %275 : vector<128x1xf32>
    %277 = vector.broadcast %276 : vector<128x1xf32> to vector<128x32xf32>
    %278 = arith.subf %272, %277 : vector<128x32xf32>
    %279 = arith.mulf %278, %278 : vector<128x32xf32>
    %cst_68 = arith.constant dense<0.000000e+00> : vector<128xf32>
    %280 = vector.multi_reduction <add>, %279, %cst_68 [1] : vector<128x32xf32> to vector<128xf32>
    %281 = vector.shape_cast %280 : vector<128xf32> to vector<128x1xf32>
    %cst_69 = arith.constant 3.200000e+01 : f32
    %282 = vector.broadcast %cst_69 : f32 to vector<128x1xf32>
    %283 = arith.divf %281, %282 : vector<128x1xf32>
    %284 = vector.broadcast %276 : vector<128x1xf32> to vector<128x32xf32>
    %285 = arith.subf %272, %284 : vector<128x32xf32>
    %cst_70 = arith.constant 9.99999974E-6 : f32
    %286 = vector.broadcast %cst_70 : f32 to vector<128x1xf32>
    %287 = arith.addf %283, %286 : vector<128x1xf32>
    %288 = math.rsqrt %287 : vector<128x1xf32>
    %289 = vector.broadcast %288 : vector<128x1xf32> to vector<128x32xf32>
    %290 = arith.mulf %285, %289 : vector<128x32xf32>
    %291 = vector.shape_cast %179 : vector<32xf32> to vector<1x32xf32>
    %292 = vector.broadcast %291 : vector<1x32xf32> to vector<128x32xf32>
    %293 = arith.mulf %290, %292 : vector<128x32xf32>
    %294 = vector.shape_cast %181 : vector<32xf32> to vector<1x32xf32>
    %295 = vector.broadcast %294 : vector<1x32xf32> to vector<128x32xf32>
    %296 = arith.addf %293, %295 : vector<128x32xf32>
    %c1_71 = arith.constant 1 : index
    %c0_72 = arith.constant 0 : index
    %c0_73 = arith.constant 0 : index
    %297 = vector.load %arg9[%c1_71, %c0_72, %c0_73] : memref<2x32x64xf32, #tpu.memory_space<vmem>>, vector<1x32x64xf32>
    %298 = vector.shape_cast %297 : vector<1x32x64xf32> to vector<32x64xf32>
    %cst_74 = arith.constant dense<0.000000e+00> : vector<128x64xf32>
    %299 = tpu.matmul %296, %298, %cst_74 {dimension_numbers = #tpu.dot_dimension_numbers<[1], [0], [0], [1], [0, 0, 1, 1], [], []>} : vector<128x32xf32>, vector<32x64xf32>, vector<128x64xf32> -> vector<128x64xf32>
    %c1_75 = arith.constant 1 : index
    %c0_76 = arith.constant 0 : index
    %300 = vector.load %arg10[%c1_75, %c0_76] : memref<2x64xf32, #tpu.memory_space<vmem>>, vector<1x64xf32>
    %301 = vector.shape_cast %300 : vector<1x64xf32> to vector<64xf32>
    %302 = vector.shape_cast %301 : vector<64xf32> to vector<1x64xf32>
    %303 = vector.broadcast %302 : vector<1x64xf32> to vector<128x64xf32>
    %304 = arith.addf %299, %303 : vector<128x64xf32>
    %cst_77 = arith.constant 0.000000e+00 : f32
    %305 = vector.broadcast %cst_77 : f32 to vector<128x64xf32>
    %306 = arith.maximumf %304, %305 : vector<128x64xf32>
    %c1_78 = arith.constant 1 : index
    %c0_79 = arith.constant 0 : index
    %c0_80 = arith.constant 0 : index
    %307 = vector.load %arg11[%c1_78, %c0_79, %c0_80] : memref<2x64x32xf32, #tpu.memory_space<vmem>>, vector<1x64x32xf32>
    %308 = vector.shape_cast %307 : vector<1x64x32xf32> to vector<64x32xf32>
    %cst_81 = arith.constant dense<0.000000e+00> : vector<128x32xf32>
    %309 = tpu.matmul %306, %308, %cst_81 {dimension_numbers = #tpu.dot_dimension_numbers<[1], [0], [0], [1], [0, 0, 1, 1], [], []>} : vector<128x64xf32>, vector<64x32xf32>, vector<128x32xf32> -> vector<128x32xf32>
    %310 = vector.shape_cast %187 : vector<32xf32> to vector<1x32xf32>
    %311 = vector.broadcast %310 : vector<1x32xf32> to vector<128x32xf32>
    %312 = arith.addf %309, %311 : vector<128x32xf32>
    %313 = arith.addf %296, %312 : vector<128x32xf32>
    %cst_82 = arith.constant dense<0.000000e+00> : vector<128xf32>
    %314 = vector.multi_reduction <add>, %313, %cst_82 [1] : vector<128x32xf32> to vector<128xf32>
    %315 = vector.shape_cast %314 : vector<128xf32> to vector<128x1xf32>
    %cst_83 = arith.constant 3.200000e+01 : f32
    %316 = vector.broadcast %cst_83 : f32 to vector<128x1xf32>
    %317 = arith.divf %315, %316 : vector<128x1xf32>
    %318 = vector.broadcast %317 : vector<128x1xf32> to vector<128x32xf32>
    %319 = arith.subf %313, %318 : vector<128x32xf32>
    %320 = arith.mulf %319, %319 : vector<128x32xf32>
    %cst_84 = arith.constant dense<0.000000e+00> : vector<128xf32>
    %321 = vector.multi_reduction <add>, %320, %cst_84 [1] : vector<128x32xf32> to vector<128xf32>
    %322 = vector.shape_cast %321 : vector<128xf32> to vector<128x1xf32>
    %cst_85 = arith.constant 3.200000e+01 : f32
    %323 = vector.broadcast %cst_85 : f32 to vector<128x1xf32>
    %324 = arith.divf %322, %323 : vector<128x1xf32>
    %325 = vector.broadcast %317 : vector<128x1xf32> to vector<128x32xf32>
    %326 = arith.subf %313, %325 : vector<128x32xf32>
    %cst_86 = arith.constant 9.99999974E-6 : f32
    %327 = vector.broadcast %cst_86 : f32 to vector<128x1xf32>
    %328 = arith.addf %324, %327 : vector<128x1xf32>
    %329 = math.rsqrt %328 : vector<128x1xf32>
    %330 = vector.broadcast %329 : vector<128x1xf32> to vector<128x32xf32>
    %331 = arith.mulf %326, %330 : vector<128x32xf32>
    %332 = vector.shape_cast %183 : vector<32xf32> to vector<1x32xf32>
    %333 = vector.broadcast %332 : vector<1x32xf32> to vector<128x32xf32>
    %334 = arith.mulf %331, %333 : vector<128x32xf32>
    %335 = vector.shape_cast %185 : vector<32xf32> to vector<1x32xf32>
    %336 = vector.broadcast %335 : vector<1x32xf32> to vector<128x32xf32>
    %337 = arith.addf %334, %336 : vector<128x32xf32>
    %cst_87 = arith.constant 1.000000e+00 : f32
    %338 = vector.broadcast %cst_87 : f32 to vector<16x1x8xf32>
    %339 = arith.subf %338, %1 : vector<16x1x8xf32>
    %340 = vector.shape_cast %337 : vector<128x32xf32> to vector<16x8x32xf32>
    "tpu.trace_start"() <{level = 10 : i32, message = "bon,bnd->bod"}> : () -> ()
    %cst_88 = arith.constant dense<0.000000e+00> : vector<16x1x32xf32>
    %341 = tpu.matmul %339, %340, %cst_88 {dimension_numbers = #tpu.dot_dimension_numbers<[2], [1], [1], [2], [0, 0, 0, 1, 1, 2], [0], [0]>} : vector<16x1x8xf32>, vector<16x8x32xf32>, vector<16x1x32xf32> -> vector<16x1x32xf32>
    "tpu.trace_stop"() : () -> ()
    %cst_89 = arith.constant dense<0.000000e+00> : vector<16x1xf32>
    %342 = vector.multi_reduction <add>, %339, %cst_89 [2] : vector<16x1x8xf32> to vector<16x1xf32>
    %343 = vector.shape_cast %342 : vector<16x1xf32> to vector<16x1x1xf32>
    %cst_90 = arith.constant 1.000000e+00 : f32
    %344 = vector.broadcast %cst_90 : f32 to vector<16x1x1xf32>
    %345 = arith.maximumf %343, %344 : vector<16x1x1xf32>
    %346 = tpu.reciprocal %345 {approx = true} : vector<16x1x1xf32> -> vector<16x1x1xf32>
    %347 = vector.broadcast %346 : vector<16x1x1xf32> to vector<16x1x32xf32>
    %348 = arith.mulf %341, %347 : vector<16x1x32xf32>
    %349 = vector.shape_cast %348 : vector<16x1x32xf32> to vector<16x32xf32>
    %c0_91 = arith.constant 0 : index
    %c0_92 = arith.constant 0 : index
    %350 = vector.load %arg12[%c0_91, %c0_92] : memref<32x32xf32, #tpu.memory_space<vmem>>, vector<32x32xf32>
    %cst_93 = arith.constant dense<0.000000e+00> : vector<16x32xf32>
    %351 = tpu.matmul %349, %350, %cst_93 {dimension_numbers = #tpu.dot_dimension_numbers<[1], [0], [0], [1], [0, 0, 1, 1], [], []>} : vector<16x32xf32>, vector<32x32xf32>, vector<16x32xf32> -> vector<16x32xf32>
    %c0_94 = arith.constant 0 : index
    %c0_95 = arith.constant 0 : index
    %352 = vector.load %arg13[%c0_94, %c0_95] : memref<1x32xf32, #tpu.memory_space<vmem>>, vector<1x32xf32>
    %353 = vector.broadcast %352 : vector<1x32xf32> to vector<16x32xf32>
    %354 = arith.addf %351, %353 : vector<16x32xf32>
    %cst_96 = arith.constant 0.000000e+00 : f32
    %355 = vector.broadcast %cst_96 : f32 to vector<16x32xf32>
    %356 = arith.maximumf %354, %355 : vector<16x32xf32>
    %c0_97 = arith.constant 0 : index
    %c0_98 = arith.constant 0 : index
    %357 = vector.load %arg14[%c0_97, %c0_98] : memref<32x3xf32, #tpu.memory_space<vmem>>, vector<32x3xf32>
    %cst_99 = arith.constant dense<0.000000e+00> : vector<16x3xf32>
    %358 = tpu.matmul %356, %357, %cst_99 {dimension_numbers = #tpu.dot_dimension_numbers<[1], [0], [0], [1], [0, 0, 1, 1], [], []>} : vector<16x32xf32>, vector<32x3xf32>, vector<16x3xf32> -> vector<16x3xf32>
    %c0_100 = arith.constant 0 : index
    %c0_101 = arith.constant 0 : index
    %359 = vector.load %arg15[%c0_100, %c0_101] : memref<1x3xf32, #tpu.memory_space<vmem>>, vector<1x3xf32>
    %360 = vector.broadcast %359 : vector<1x3xf32> to vector<16x3xf32>
    %361 = arith.addf %358, %360 : vector<16x3xf32>
    %c0_102 = arith.constant 0 : index
    %c0_103 = arith.constant 0 : index
    %362 = vector.load %arg16[%c0_102, %c0_103] : memref<16x3xf32, #tpu.memory_space<vmem>>, vector<16x3xf32>
    tpu.vector_store %arg16[%c0_102, %c0_103], %361 {strides = array<i32>} : memref<16x3xf32, #tpu.memory_space<vmem>>, vector<16x3xf32>,
    return
  }
  func.func @transform_0(%arg0: i32) -> (i32, i32, i32) {
    %c0_i32 = arith.constant 0 : i32
    %c0_i32_0 = arith.constant 0 : i32
    %c0_i32_1 = arith.constant 0 : i32
    return %arg0, %c0_i32, %c0_i32_0 : i32, i32, i32
  }
  func.func @transform_1(%arg0: i32) -> (i32, i32, i32) {
    %c0_i32 = arith.constant 0 : i32
    %c0_i32_0 = arith.constant 0 : i32
    %c0_i32_1 = arith.constant 0 : i32
    return %arg0, %c0_i32, %c0_i32_0 : i32, i32, i32
  }
  func.func @transform_2(%arg0: i32) -> (i32, i32, i32) {
    %c0_i32 = arith.constant 0 : i32
    %c0_i32_0 = arith.constant 0 : i32
    %c0_i32_1 = arith.constant 0 : i32
    return %arg0, %c0_i32, %c0_i32_0 : i32, i32, i32
  }
  func.func @transform_3(%arg0: i32) -> (i32, i32) {
    %c0_i32 = arith.constant 0 : i32
    %c0_i32_0 = arith.constant 0 : i32
    %c0_i32_1 = arith.constant 0 : i32
    return %c0_i32, %c0_i32_0 : i32, i32
  }
  func.func @transform_4(%arg0: i32) -> (i32, i32, i32) {
    %c0_i32 = arith.constant 0 : i32
    %c0_i32_0 = arith.constant 0 : i32
    %c0_i32_1 = arith.constant 0 : i32
    %c0_i32_2 = arith.constant 0 : i32
    return %c0_i32, %c0_i32_0, %c0_i32_1 : i32, i32, i32
  }
  func.func @transform_5(%arg0: i32) -> (i32, i32) {
    %c0_i32 = arith.constant 0 : i32
    %c0_i32_0 = arith.constant 0 : i32
    %c0_i32_1 = arith.constant 0 : i32
    return %c0_i32, %c0_i32_0 : i32, i32
  }
  func.func @transform_6(%arg0: i32) -> (i32, i32, i32) {
    %c0_i32 = arith.constant 0 : i32
    %c0_i32_0 = arith.constant 0 : i32
    %c0_i32_1 = arith.constant 0 : i32
    %c0_i32_2 = arith.constant 0 : i32
    return %c0_i32, %c0_i32_0, %c0_i32_1 : i32, i32, i32
  }
  func.func @transform_7(%arg0: i32) -> (i32, i32, i32) {
    %c0_i32 = arith.constant 0 : i32
    %c0_i32_0 = arith.constant 0 : i32
    %c0_i32_1 = arith.constant 0 : i32
    %c0_i32_2 = arith.constant 0 : i32
    return %c0_i32, %c0_i32_0, %c0_i32_1 : i32, i32, i32
  }
  func.func @transform_8(%arg0: i32) -> (i32, i32, i32) {
    %c0_i32 = arith.constant 0 : i32
    %c0_i32_0 = arith.constant 0 : i32
    %c0_i32_1 = arith.constant 0 : i32
    %c0_i32_2 = arith.constant 0 : i32
    return %c0_i32, %c0_i32_0, %c0_i32_1 : i32, i32, i32
  }
  func.func @transform_9(%arg0: i32) -> (i32, i32) {
    %c0_i32 = arith.constant 0 : i32
    %c0_i32_0 = arith.constant 0 : i32
    %c0_i32_1 = arith.constant 0 : i32
    return %c0_i32, %c0_i32_0 : i32, i32
  }
  func.func @transform_10(%arg0: i32) -> (i32, i32, i32) {
    %c0_i32 = arith.constant 0 : i32
    %c0_i32_0 = arith.constant 0 : i32
    %c0_i32_1 = arith.constant 0 : i32
    %c0_i32_2 = arith.constant 0 : i32
    return %c0_i32, %c0_i32_0, %c0_i32_1 : i32, i32, i32
  }
  func.func @transform_11(%arg0: i32) -> (i32, i32) {
    %c0_i32 = arith.constant 0 : i32
    %c0_i32_0 = arith.constant 0 : i32
    %c0_i32_1 = arith.constant 0 : i32
    return %c0_i32, %c0_i32_0 : i32, i32
  }
  func.func @transform_12(%arg0: i32) -> (i32, i32) {
    %c0_i32 = arith.constant 0 : i32
    %c0_i32_0 = arith.constant 0 : i32
    %c0_i32_1 = arith.constant 0 : i32
    return %c0_i32, %c0_i32_0 : i32, i32
  }
  func.func @transform_13(%arg0: i32) -> (i32, i32) {
    %c0_i32 = arith.constant 0 : i32
    %c0_i32_0 = arith.constant 0 : i32
    %c0_i32_1 = arith.constant 0 : i32
    return %c0_i32, %c0_i32_0 : i32, i32
  }
  func.func @transform_14(%arg0: i32) -> (i32, i32) {
    %c0_i32 = arith.constant 0 : i32
    %c0_i32_0 = arith.constant 0 : i32
    %c0_i32_1 = arith.constant 0 : i32
    return %c0_i32, %c0_i32_0 : i32, i32
  }
  func.func @transform_15(%arg0: i32) -> (i32, i32) {
    %c0_i32 = arith.constant 0 : i32
    %c0_i32_0 = arith.constant 0 : i32
    return %arg0, %c0_i32 : i32, i32
  }
}

</mosaic_0001>

<bundles_post_ra>
// kernel: tpu_custom_call.1
= control target key start
LH: loop header
LB: loop body
LE: loop exit
PB: predicated region body
PF: predicated region fallthrough
CT: control target
= control target key end

     0   :  { %s14758_s18 = smov 0   ;;  %s20582_s0 = inlined_call_operand.vmem [shape: f32[32,8,16], index: 0, kind: input, shape index: {}]   ;;  %s20583_s1 = inlined_call_operand.vmem [shape: f32[32,8,8], index: 1, kind: input, shape index: {}]   ;;  %s20584_s2 = inlined_call_operand.vmem [shape: f32[32,1,8], index: 2, kind: input, shape index: {}]   ;;  %s20585_s3 = inlined_call_operand.vmem [shape: f32[16,32], index: 3, kind: input, shape index: {}]   ;;  %s20586_s4 = inlined_call_operand.vmem [shape: f32[2,32,96], index: 4, kind: input, shape index: {}]   ;;  %s20587_s5 = inlined_call_operand.vmem [shape: f32[2,96], index: 5, kind: input, shape index: {}]   ;;  %s20588_s6 = inlined_call_operand.vmem [shape: f32[2,32,32], index: 6, kind: input, shape index: {}]   ;;  %s20589_s7 = inlined_call_operand.vmem [shape: f32[2,6,32], index: 7, kind: input, shape index: {}]   ;;  %s20590_s8 = inlined_call_operand.vmem [shape: f32[2,32,64], index: 8, kind: input, shape index: {}]   ;;  %s20591_s9 = inlined_call_operand.vmem [shape: f32[2,64], index: 9, kind: input, shape index: {}]   ;;  %s20592_s10 = inlined_call_operand.vmem [shape: f32[2,64,32], index: 10, kind: input, shape index: {}]   ;;  %s20593_s11 = inlined_call_operand.vmem [shape: f32[32,32], index: 11, kind: input, shape index: {}]   ;;  %s20594_s12 = inlined_call_operand.vmem [shape: f32[1,32], index: 12, kind: input, shape index: {}]   ;;  %s20595_s13 = inlined_call_operand.vmem [shape: f32[32,3], index: 13, kind: input, shape index: {}]   ;;  %s20596_s14 = inlined_call_operand.vmem [shape: f32[1,3], index: 14, kind: input, shape index: {}]   ;;  %s20597_s15 = inlined_call_operand.vmem [shape: f32[32,3], index: 15, kind: output, shape index: {}]  }
   0x1 LB: > { %s20695_s19 = sadd.s32 4294967295, %s14667_s18   ;;  %p13031_p0 = scmp.ge.s32.totalorder %s14667_s18, 1  ;;  %s14667_s18 = sphi %s14758_s18, %s25_s18  }
   0x2   : > { %p459_p1 = scmp.lt.s32.totalorder %s14667_s18, 3 }
   0x4   : > { %p460_p2 = pnand %p13031_p0, %p459_p1 }
   0x6   : > { %463 = sbr.rel (%p460_p2) target bundleno = 5680 (0x1630), region = 80 }
   0xb   : > { %v588_v0 = vld [vmem:[%s20585_s3 + $0x8] sm:$0xff]  ;;  %v587_v1 = vld [vmem:[%s20585_s3] sm:$0xff]  ;;  %s13032_s24 = sshll.u32 %s20695_s19, 4  ;;  %vm589_vm0 = vcmask 130048   ;;  %v707_v11 = vld [vmem:[%s20586_s4 + $0x18] sm:$0xff]  ;;  %vm710_vm1 = vcmask 261120  }
   0xc   : > { %652 = vmatpush.msra.mxu0 %v588_v0  ;;  %p517_p3 = scmp.lt.s32.totalorder %s13032_s24, 31  ;;  %v706_v12 = vld [vmem:[%s20586_s4 + $0x10] sm:$0xff]  ;;  %771 = vmatpush.msra.mxu1 %v707_v11  ;;  %v705_v14 = vld [vmem:[%s20586_s4 + $0x8] sm:$0xff]  ;;  %v704_v17 = vld [vmem:[%s20586_s4] sm:$0xff]  ;;  %s14670_s29 = smov 120   ;;  %vm938_vm2 = vcmask 64512  }
   0xd   : > { %v14891_v37 = vld [vmem:[%s20587_s5] ss:$0 sm:$0xff]  ;;  %s20702_s30 = smov 96   ;;  %s20700_s16 = smov 112   ;;  %vm5321_vm3 = vcmask 195584  }
   0xe   : > { %653 = vmatpush.msra.mxu0 %v587_v1  ;;  %s21168_s24 = smov (!%p517_p3, %s13032_s24), 31  ;;  %772 = vmatpush.msra.mxu1 %v706_v12  ;;  %s20698_s17 = smov 64  }
   0xf   : > { %s13033_s25 = sshll.u32 %s21168_s24, 3  ;;  %s20696_s23 = smov 16  }
  0x10   : > { %s14782_s28 = scalar_lea.vmem %s20582_s0, %s13033_s25  ;;  %773 = vmatpush.msra.mxu1 %v705_v14  ;;  %s15399_s22 = scalar_lea.vmem %s20583_s1, %s13033_s25 }
  0x11   : > { %v539_v2 = vld [vmem:[%s14782_s28] sm:$0xff]  ;;  %v540_v3 = vld [vmem:[%s14782_s28 + $0x8] sm:$0xff]  ;;  %v541_v4 = vld [vmem:[%s14782_s28 + $0x10] sm:$0xff]  ;;  %s20706_s25 = smov 8   ;;  %s20704_s26 = smov 24  }
  0x12   : > { %13039 = vmatmul.msk.f32.vlgmr.msra.gmra.mxu0 %vm589_vm0, %v539_v2  ;;  %v542_v5 = vld [vmem:[%s14782_s28 + $0x18] sm:$0xff]  ;;  %v543_v6 = vld [vmem:[%s14782_s28 + $0x20] sm:$0xff]  ;;  %v544_v7 = vld [vmem:[%s14782_s28 + $0x28] sm:$0xff]  ;;  %774 = vmatpush.msra.mxu1 %v704_v17  ;;  %s20260_s20 = scalar_lea.vmem %s20584_s2, %s21168_s24  ;;  %s21166_s19 = sadd.s32 4294967295, %s14667_s18  }
  0x13   : > { %v545_v8 = vld [vmem:[%s14782_s28 + $0x30] sm:$0xff]  ;;  %v546_v9 = vld [vmem:[%s14782_s28 + $0x38] sm:$0xff]  ;;  %v547_v10 = vld [vmem:[%s14782_s28 + $0x40] sm:$0xff] }
  0x14   : > { %v548_v13 = vld [vmem:[%s14782_s28 + $0x48] sm:$0xff]  ;;  %v549_v15 = vld [vmem:[%s14782_s28 + $0x50] sm:$0xff]  ;;  %v550_v16 = vld [vmem:[%s14782_s28 + $0x58] sm:$0xff] }
  0x15   : > { %v551_v18 = vld [vmem:[%s14782_s28 + $0x60] sm:$0xff]  ;;  %v552_v19 = vld [vmem:[%s14782_s28 + $0x68] sm:$0xff]  ;;  %v553_v20 = vld [vmem:[%s14782_s28 + $0x70] sm:$0xff] }
  0x16   : > { %v554_v22 = vld [vmem:[%s14782_s28 + $0x78] sm:$0xff]  ;;  %s14669_s28 = smov 104  }
  0x1a   : > { %13040 = vmatmul.msk.f32.gmra.mxu0 %vm589_vm0, %v540_v3 }
  0x22   : > { %13041 = vmatmul.msk.f32.gmra.mxu0 %vm589_vm0, %v541_v4 }
  0x2a   : > { %13042 = vmatmul.msk.f32.gmra.mxu0 %vm589_vm0, %v542_v5 }
  0x32   : > { %13043 = vmatmul.msk.f32.gmra.mxu0 %vm589_vm0, %v543_v6 }
  0x3a   : > { %13044 = vmatmul.msk.f32.gmra.mxu0 %vm589_vm0, %v544_v7 }
  0x42   : > { %13045 = vmatmul.msk.f32.gmra.mxu0 %vm589_vm0, %v545_v8 }
  0x4a   : > { %13046 = vmatmul.msk.f32.gmra.mxu0 %vm589_vm0, %v546_v9 }
  0x52   : > { %13047 = vmatmul.msk.f32.gmra.mxu0 %vm589_vm0, %v547_v10 }
  0x5a   : > { %13048 = vmatmul.msk.f32.gmra.mxu0 %vm589_vm0, %v548_v13 }
  0x62   : > { %13049 = vmatmul.msk.f32.gmra.mxu0 %vm589_vm0, %v549_v15 }
  0x6a   : > { %13050 = vmatmul.msk.f32.gmra.mxu0 %vm589_vm0, %v550_v16 }
  0x72   : > { %13051 = vmatmul.msk.f32.gmra.mxu0 %vm589_vm0, %v551_v18 }
  0x7a   : > { %13052 = vmatmul.msk.f32.gmra.mxu0 %vm589_vm0, %v552_v19 }
  0x82   : > { %13053 = vmatmul.msk.f32.gmra.mxu0 %vm589_vm0, %v553_v20 }
  0x8a   : > { %13054 = vmatmul.msk.f32.gmra.mxu0 %vm589_vm0, %v554_v22 }
  0x8f   : > { %v14826_v21 = vpop.f32.mrf.mxu0 }
  0x90   : > { %20802 = vst [vmem:[#allocation2_spill] sm:$0xff] %v14826_v21  ;;  %13055 = vmatmul.msk.f32.vlgmr.msra.gmra.mxu1 %vm710_vm1, %v14826_v21 }
  0x97   : > { %v14832_v23 = vpop.f32.mrf.mxu0 }
  0x98   : > { %20803 = vst [vmem:[#allocation3_spill] sm:$0xff] %v14832_v23  ;;  %13056 = vmatmul.msk.f32.gmra.mxu1 %vm710_vm1, %v14832_v23 }
  0x9f   : > { %v14836_v24 = vpop.f32.mrf.mxu0 }
  0xa0   : > { %20804 = vst [vmem:[#allocation4_spill] sm:$0xff] %v14836_v24  ;;  %13057 = vmatmul.msk.f32.gmra.mxu1 %vm710_vm1, %v14836_v24 }
  0xa7   : > { %v14840_v25 = vpop.f32.mrf.mxu0 }
  0xa8   : > { %20805 = vst [vmem:[#allocation5_spill] sm:$0xff] %v14840_v25  ;;  %13058 = vmatmul.msk.f32.gmra.mxu1 %vm710_vm1, %v14840_v25 }
  0xaf   : > { %v14844_v26 = vpop.f32.mrf.mxu0 }
  0xb0   : > { %20806 = vst [vmem:[#allocation6_spill] sm:$0xff] %v14844_v26  ;;  %13059 = vmatmul.msk.f32.gmra.mxu1 %vm710_vm1, %v14844_v26 }
  0xb7   : > { %v14848_v27 = vpop.f32.mrf.mxu0 }
  0xb8   : > { %20807 = vst [vmem:[#allocation7_spill] sm:$0xff] %v14848_v27  ;;  %13060 = vmatmul.msk.f32.gmra.mxu1 %vm710_vm1, %v14848_v27 }
  0xbf   : > { %v14852_v28 = vpop.f32.mrf.mxu0 }
  0xc0   : > { %20808 = vst [vmem:[#allocation8_spill] sm:$0xff] %v14852_v28  ;;  %13061 = vmatmul.msk.f32.gmra.mxu1 %vm710_vm1, %v14852_v28 }
  0xc7   : > { %v14856_v29 = vpop.f32.mrf.mxu0 }
  0xc8   : > { %20809 = vst [vmem:[#allocation9_spill] sm:$0xff] %v14856_v29  ;;  %13062 = vmatmul.msk.f32.gmra.mxu1 %vm710_vm1, %v14856_v29 }
  0xcf   : > { %v14860_v30 = vpop.f32.mrf.mxu0 }
  0xd0   : > { %20810 = vst [vmem:[#allocation10_spill] sm:$0xff] %v14860_v30  ;;  %13063 = vmatmul.msk.f32.gmra.mxu1 %vm710_vm1, %v14860_v30 }
  0xd7   : > { %v14864_v31 = vpop.f32.mrf.mxu0 }
  0xd8   : > { %20811 = vst [vmem:[#allocation11_spill] sm:$0xff] %v14864_v31  ;;  %13064 = vmatmul.msk.f32.gmra.mxu1 %vm710_vm1, %v14864_v31 }
  0xdf   : > { %v14868_v32 = vpop.f32.mrf.mxu0 }
  0xe0   : > { %20812 = vst [vmem:[#allocation12_spill] sm:$0xff] %v14868_v32  ;;  %13065 = vmatmul.msk.f32.gmra.mxu1 %vm710_vm1, %v14868_v32 }
  0xe7   : > { %v14872_v33 = vpop.f32.mrf.mxu0 }
  0xe8   : > { %20813 = vst [vmem:[#allocation13_spill] sm:$0xff] %v14872_v33  ;;  %13066 = vmatmul.msk.f32.gmra.mxu1 %vm710_vm1, %v14872_v33 }
  0xef   : > { %v14876_v34 = vpop.f32.mrf.mxu0 }
  0xf0   : > { %20814 = vst [vmem:[#allocation14_spill] sm:$0xff] %v14876_v34  ;;  %13067 = vmatmul.msk.f32.gmra.mxu1 %vm710_vm1, %v14876_v34 }
  0xf7   : > { %v14880_v35 = vpop.f32.mrf.mxu0 }
  0xf8   : > { %20815 = vst [vmem:[#allocation15_spill] sm:$0xff] %v14880_v35  ;;  %13068 = vmatmul.msk.f32.gmra.mxu1 %vm710_vm1, %v14880_v35 }
  0xff   : > { %v14884_v36 = vpop.f32.mrf.mxu0 }
 0x100   : > { %20816 = vst [vmem:[#allocation16_spill] sm:$0xff] %v14884_v36  ;;  %13069 = vmatmul.msk.f32.gmra.mxu1 %vm710_vm1, %v14884_v36 }
 0x107   : > { %v14896_v40 = vpop.f32.mrf.mxu0 }
 0x108   : > { %20817 = vst [vmem:[#allocation17_spill] sm:$0xff] %v14896_v40  ;;  %13070 = vmatmul.msk.f32.gmra.mxu1 %vm710_vm1, %v14896_v40 }
 0x10d   : > { %v776_v38 = vpop.f32.mrf.mxu1 }
 0x10e   : > { %v14894_v39 = vadd.f32 %v14891_v37, %v776_v38 }
 0x110   : > { %904 = vrot.lane.b32.xlu2 %v14894_v39, %s14669_s28  ;;  %840 = vrot.lane.b32.xlu1 %v14894_v39, %s14670_s29 }
 0x111   : > { %936 = vrot.lane.b32.xlu0 %v14894_v39, %s20702_s30 }
 0x115   : > { %v779_v41 = vpop.f32.mrf.mxu1 }
 0x116   : > { %v14907_v42 = vadd.f32 %v14891_v37, %v779_v41 }
 0x118   : > { %872 = vrot.lane.b32.xlu1 %v14894_v39, %s20700_s16  ;;  %v13627_v43 = vpack.i.bf16 %v14907_v42, %v14894_v39 }
 0x119   : > { %963 = vrot.lane.b32.xlu0 %v14907_v42, %s20702_s30 }
 0x11a   : > { %13628 = vrot.lane.b32.xlu2 %v13627_v43, %s20698_s17 }
 0x11d   : > { %v782_v44 = vpop.f32.mrf.mxu1 }
 0x11e   : > { %v14917_v45 = vadd.f32 %v14891_v37, %v782_v44 }
 0x120   : > { %842 = vrot.lane.b32.xlu1 %v14907_v42, %s14670_s29 }
 0x121   : > { %874 = vrot.lane.b32.xlu0 %v14907_v42, %s20700_s16 }
 0x122   : > { %844 = vrot.lane.b32.xlu2 %v14917_v45, %s14670_s29 }
 0x125   : > { %v785_v46 = vpop.f32.mrf.mxu1 }
 0x126   : > { %v14932_v47 = vadd.f32 %v14891_v37, %v785_v46 }
 0x128   : > { %989 = vrot.lane.b32.xlu1 %v14917_v45, %s20702_s30 }
 0x129   : > { %906 = vrot.lane.b32.xlu0 %v14907_v42, %s14669_s28 }
 0x12a   : > { %908 = vrot.lane.b32.xlu2 %v14917_v45, %s14669_s28 }
 0x12d   : > { %v788_v48 = vpop.f32.mrf.mxu1 }
 0x12e   : > { %v14941_v49 = vadd.f32 %v14891_v37, %v788_v48 }
 0x130   : > { %876 = vrot.lane.b32.xlu1 %v14917_v45, %s20700_s16  ;;  %v13632_v56 = vpack.i.bf16 %v14917_v45, %v14941_v49 }
 0x131   : > { %910 = vrot.lane.b32.xlu0 %v14932_v47, %s14669_s28 }
 0x132   : > { %846 = vrot.lane.b32.xlu2 %v14932_v47, %s14670_s29 }
 0x135   : > { %v791_v50 = vpop.f32.mrf.mxu1 }
 0x136   : > { %v14950_v51 = vadd.f32 %v14891_v37, %v791_v50 }
 0x138   : > { %1015 = vrot.lane.b32.xlu1 %v14932_v47, %s20702_s30 }
 0x139   : > { %848 = vrot.lane.b32.xlu0 %v14941_v49, %s14670_s29 }
 0x13a   : > { %1041 = vrot.lane.b32.xlu2 %v14941_v49, %s20702_s30 }
 0x13d   : > { %v794_v52 = vpop.f32.mrf.mxu1 }
 0x13e   : > { %v14959_v53 = vadd.f32 %v14891_v37, %v794_v52 }
 0x140   : > { %878 = vrot.lane.b32.xlu1 %v14932_v47, %s20700_s16 }
 0x141   : > { %880 = vrot.lane.b32.xlu0 %v14941_v49, %s20700_s16 }
 0x142   : > { %1067 = vrot.lane.b32.xlu2 %v14950_v51, %s20702_s30 }
 0x145   : > { %v797_v54 = vpop.f32.mrf.mxu1 }
 0x146   : > { %v14968_v55 = vadd.f32 %v14891_v37, %v797_v54 }
 0x148   : > { %852 = vrot.lane.b32.xlu1 %v14959_v53, %s14670_s29 }
 0x149   : > { %912 = vrot.lane.b32.xlu0 %v14941_v49, %s14669_s28 }
 0x14a   : > { %882 = vrot.lane.b32.xlu2 %v14950_v51, %s20700_s16 }
 0x14d   : > { %v800_v57 = vpop.f32.mrf.mxu1 }
 0x14e   : > { %v14978_v58 = vadd.f32 %v14891_v37, %v800_v57 }
 0x150   : > { %854 = vrot.lane.b32.xlu1 %v14968_v55, %s14670_s29  ;;  %v13637_v59 = vpack.i.bf16 %v14978_v58, %v14950_v51 }
 0x151   : > { %13633 = vrot.lane.b32.xlu0 %v13632_v56, %s20698_s17 }
 0x152   : > { %1119 = vrot.lane.b32.xlu2 %v14968_v55, %s20702_s30 }
 0x155   : > { %v803_v60 = vpop.f32.mrf.mxu1 }
 0x156   : > { %v14994_v61 = vadd.f32 %v14891_v37, %v803_v60 }
 0x158   : > { %886 = vrot.lane.b32.xlu1 %v14968_v55, %s20700_s16  ;;  %v13642_v38 = vpack.i.bf16 %v14994_v61, %v14959_v53 }
 0x159   : > { %850 = vrot.lane.b32.xlu0 %v14950_v51, %s14670_s29 }
 0x15a   : > { %856 = vrot.lane.b32.xlu2 %v14978_v58, %s14670_s29 }
 0x15d   : > { %v806_v63 = vpop.f32.mrf.mxu1 }
 0x15e   : > { %v15005_v0 = vadd.f32 %v14891_v37, %v806_v63 }
 0x160   : > { %13638 = vrot.lane.b32.xlu1 %v13637_v59, %s20698_s17 }
 0x161   : > { %914 = vrot.lane.b32.xlu0 %v14950_v51, %s14669_s28 }
 0x162   : > { %888 = vrot.lane.b32.xlu2 %v14978_v58, %s20700_s16 }
 0x165   : > { %v809_v2 = vpop.f32.mrf.mxu1 }
 0x166   : > { %v15022_v3 = vadd.f32 %v14891_v37, %v809_v2 }
 0x168   : > { %890 = vrot.lane.b32.xlu1 %v14994_v61, %s20700_s16 }
 0x169   : > { %1093 = vrot.lane.b32.xlu0 %v14959_v53, %s20702_s30 }
 0x16a   : > { %858 = vrot.lane.b32.xlu2 %v14994_v61, %s14670_s29  ;;  %v15002_v62 = vpop.permute.xlu2 %904 }
 0x16b   : > { %20818 = vst [vmem:[#allocation18_spill] sm:$0xff] %v15002_v62 }
 0x16d   : > { %v812_v8 = vpop.f32.mrf.mxu1 }
 0x16e   : > { %v15040_v9 = vadd.f32 %v14891_v37, %v812_v8 }
 0x170   : > { %922 = vrot.lane.b32.xlu1 %v14994_v61, %s14669_s28 }
 0x171   : > { %884 = vrot.lane.b32.xlu0 %v14959_v53, %s20700_s16 }
 0x172   : > { %892 = vrot.lane.b32.xlu2 %v15005_v0, %s20700_s16 }
 0x174   : > { %v15013_v1 = vpop.permute.xlu2 %13628 }
 0x175   : > { %v815_v14 = vpop.f32.mrf.mxu1 }
 0x176   : > { %v15066_v17 = vadd.f32 %v14891_v37, %v815_v14 }
 0x178   : > { %1197 = vrot.lane.b32.xlu1 %v15005_v0, %s20702_s30  ;;  %v13652_v22 = vpack.i.bf16 %v15066_v17, %v15005_v0 }
 0x179   : > { %916 = vrot.lane.b32.xlu0 %v14959_v53, %s14669_s28 }
 0x17a   : > { %924 = vrot.lane.b32.xlu2 %v15005_v0, %s14669_s28 }
 0x17c   : > { %v15024_v4 = vpop.permute.xlu2 %844 }
 0x17d   : > { %v818_v41 = vpop.f32.mrf.mxu1 }
 0x180   : > { %1223 = vrot.lane.b32.xlu1 %v15022_v3, %s20702_s30 }
 0x181   : > { %918 = vrot.lane.b32.xlu0 %v14968_v55, %s14669_s28 }
 0x182   : > { %v15030_v5 = vpop.permute.xlu1 %840  ;;  %926 = vrot.lane.b32.xlu2 %v15022_v3, %s14669_s28 }
 0x183   : > { %v937_v6 = vpop.permute.xlu0 %936 }
 0x184   : > { %13071 = vmatpush.xpose.msk.msra.mxu2 %vm938_vm2, %v937_v6  ;;  %v15035_v7 = vpop.permute.xlu2 %908 }
 0x185   : > { %20819 = vst [vmem:[#allocation19_spill] sm:$0xff] %v15035_v7 }
 0x187   : > { %13072 = vmatmul.msk.f32.vlgmr.msra.gmra.mxu2 %vm938_vm2, %v14894_v39  ;;  %v13647_v39 = vpack.i.bf16 %v15040_v9, %v14932_v47 }
 0x188   : > { %894 = vrot.lane.b32.xlu1 %v15022_v3, %s20700_s16 }
 0x189   : > { %1145 = vrot.lane.b32.xlu0 %v14978_v58, %s20702_s30 }
 0x18a   : > { %v15046_v10 = vpop.permute.xlu1 %872  ;;  %1249 = vrot.lane.b32.xlu2 %v15040_v9, %s20702_s30 }
 0x18b   : > { %20820 = vst [vmem:[#allocation20_spill] sm:$0xff] %v15046_v10  ;;  %v964_v11 = vpop.permute.xlu0 %963 }
 0x18c   : > { %13073 = vmatpush.xpose.msk.msra.mxu3 %vm938_vm2, %v964_v11  ;;  %v15051_v12 = vpop.permute.xlu2 %846 }
 0x18d   : > { %20821 = vst [vmem:[#allocation21_spill] sm:$0xff] %v15051_v12 }
 0x18f   : > { %13074 = vmatmul.msk.f32.vlgmr.msra.gmra.mxu3 %vm938_vm2, %v14907_v42 }
 0x190   : > { %864 = vrot.lane.b32.xlu1 %v15040_v9, %s14670_s29 }
 0x191   : > { %920 = vrot.lane.b32.xlu0 %v14978_v58, %s14669_s28 }
 0x192   : > { %v15059_v13 = vpop.permute.xlu1 %842  ;;  %896 = vrot.lane.b32.xlu2 %v15040_v9, %s20700_s16 }
 0x193   : > { %v15063_v15 = vpop.permute.xlu0 %874 }
 0x194   : > { %20822 = vst [vmem:[#allocation22_spill] sm:$0xff] %v15063_v15  ;;  %v1042_v16 = vpop.permute.xlu2 %1041 }
 0x198   : > { %866 = vrot.lane.b32.xlu1 %v15066_v17, %s14670_s29 }
 0x199   : > { %1171 = vrot.lane.b32.xlu0 %v14994_v61, %s20702_s30 }
 0x19a   : > { %v990_v18 = vpop.permute.xlu1 %989  ;;  %928 = vrot.lane.b32.xlu2 %v15040_v9, %s14669_s28 }
 0x19b   : > { %v15074_v19 = vpop.permute.xlu0 %906  ;;  %13075 = vmatpush.xpose.msk.msrb.mxu2 %vm938_vm2, %v990_v18 }
 0x19c   : > { %20823 = vst [vmem:[#allocation23_spill] sm:$0xff] %v15074_v19  ;;  %v1068_v20 = vpop.permute.xlu2 %1067 }
 0x19e   : > { %13076 = vmatmul.msk.f32.vlgmr.msrb.gmra.mxu2 %vm938_vm2, %v14917_v45  ;;  %v821_v45 = vpop.f32.mrf.mxu1 }
 0x19f   : > { %13079 = vmatpush.xpose.msk.msra.mxu2 %vm938_vm2, %v1042_v16  ;;  %v15107_v52 = vadd.f32 %v14891_v37, %v821_v45 }
 0x1a0   : > { %13653 = vrot.lane.b32.xlu1 %v13652_v22, %s20698_s17 }
 0x1a1   : > { %13643 = vrot.lane.b32.xlu0 %v13642_v38, %s20698_s17  ;;  %20827 = vst [vmem:[#allocation27_spill] sm:$0xff] %v15107_v52 }
 0x1a2   : > { %v15088_v42 = vpop.permute.xlu1 %876  ;;  %13648 = vrot.lane.b32.xlu2 %v13647_v39, %s20698_s17  ;;  %v13657_v39 = vpack.i.bf16 %v15030_v5, %v14968_v55 }
 0x1a3   : > { %20824 = vst [vmem:[#allocation24_spill] sm:$0xff] %v15088_v42  ;;  %v15091_v43 = vpop.permute.xlu0 %910 }
 0x1a4   : > { %20825 = vst [vmem:[#allocation25_spill] sm:$0xff] %v15091_v43  ;;  %v15093_v44 = vpop.permute.xlu2 %882 }
 0x1a5   : > { %20826 = vst [vmem:[#allocation26_spill] sm:$0xff] %v15093_v44 }
 0x1a6   : > { %13080 = vmatmul.msk.f32.vlgmr.msra.gmra.mxu2 %vm938_vm2, %v14941_v49  ;;  %v15114_v49 = vadd.f32 %v14891_v37, %v818_v41 }
 0x1a8   : > { %1353 = vrot.lane.b32.xlu1 %v15030_v5, %s20702_s30  ;;  %v13662_v41 = vpack.i.bf16 %v15059_v13, %v15114_v49 }
 0x1a9   : > { %860 = vrot.lane.b32.xlu0 %v15005_v0, %s14670_s29 }
 0x1aa   : > { %v1016_v46 = vpop.permute.xlu1 %1015  ;;  %1275 = vrot.lane.b32.xlu2 %v15066_v17, %s20702_s30 }
 0x1ab   : > { %v15103_v48 = vpop.permute.xlu0 %848  ;;  %13077 = vmatpush.xpose.msk.msrb.mxu3 %vm938_vm2, %v1016_v46 }
 0x1ac   : > { %v1120_v50 = vpop.permute.xlu2 %1119  ;;  %v13667_v18 = vpack.i.bf16 %v15103_v48, %v15022_v3 }
 0x1ae   : > { %13078 = vmatmul.msk.f32.vlgmr.msrb.gmra.mxu3 %vm938_vm2, %v14932_v47 }
 0x1af   : > { %13081 = vmatpush.xpose.msk.msra.mxu3 %vm938_vm2, %v1068_v20 }
 0x1b0   : > { %934 = vrot.lane.b32.xlu1 %v15107_v52, %s14669_s28 }
 0x1b1   : > { %862 = vrot.lane.b32.xlu0 %v15022_v3, %s14670_s29 }
 0x1b2   : > { %v15120_v54 = vpop.permute.xlu1 %878  ;;  %868 = vrot.lane.b32.xlu2 %v15114_v49, %s14670_s29 }
 0x1b3   : > { %13085 = vmatpush.xpose.msk.msrb.mxu3 %vm938_vm2, %v1120_v50  ;;  %20828 = vst [vmem:[#allocation28_spill] sm:$0xff] %v15120_v54  ;;  %v15124_v56 = vpop.permute.xlu0 %880 }
 0x1b4   : > { %20829 = vst [vmem:[#allocation29_spill] sm:$0xff] %v15124_v56  ;;  %v15126_v57 = vpop.permute.xlu2 %856 }
 0x1b6   : > { %13082 = vmatmul.msk.f32.vlgmr.msra.gmra.mxu3 %vm938_vm2, %v14950_v51 }
 0x1b8   : > { %1379 = vrot.lane.b32.xlu1 %v15059_v13, %s20702_s30 }
 0x1b9   : > { %898 = vrot.lane.b32.xlu0 %v15066_v17, %s20700_s16 }
 0x1ba   : > { %v15134_v37 = vpop.permute.xlu1 %852  ;;  %900 = vrot.lane.b32.xlu2 %v15114_v49, %s20700_s16 }
 0x1bb   : > { %20830 = vst [vmem:[#allocation30_spill] sm:$0xff] %v15134_v37  ;;  %v15138_v47 = vpop.permute.xlu0 %912 }
 0x1bc   : > { %20831 = vst [vmem:[#allocation31_spill] sm:$0xff] %v15138_v47  ;;  %v15140_v59 = vpop.permute.xlu2 %888 }
 0x1bd   : > { %20832 = vst [vmem:[#allocation32_spill] sm:$0xff] %v15140_v59 }
 0x1be   : > { %13086 = vmatmul.msk.f32.vlgmr.msrb.gmra.mxu3 %vm938_vm2, %v14968_v55 }
 0x1c0   : > { %1795 = vrot.lane.b32.xlu1 %v15063_v15, %s20702_s30 }
 0x1c1   : > { %930 = vrot.lane.b32.xlu0 %v15066_v17, %s14669_s28 }
 0x1c2   : > { %v15148_v51 = vpop.permute.xlu1 %854  ;;  %2185 = vrot.lane.b32.xlu2 %v15002_v62, %s20702_s30 }
 0x1c3   : > { %20833 = vst [vmem:[#allocation33_spill] sm:$0xff] %v15148_v51  ;;  %v15152_v60 = vpop.permute.xlu0 %13633 }
 0x1c4   : > { %v15154_v63 = vpop.permute.xlu2 %858 }
 0x1c5   : > { %20834 = vst [vmem:[#allocation34_spill] sm:$0xff] %v15154_v63 }
 0x1c8   : > { %1847 = vrot.lane.b32.xlu1 %v15120_v54, %s20702_s30 }
 0x1c9   : > { %1301 = vrot.lane.b32.xlu0 %v15114_v49, %s20702_s30 }
 0x1ca   : > { %v15160_v2 = vpop.permute.xlu1 %886  ;;  %870 = vrot.lane.b32.xlu2 %v15107_v52, %s14670_s29 }
 0x1cb   : > { %20835 = vst [vmem:[#allocation35_spill] sm:$0xff] %v15160_v2  ;;  %v15164_v6 = vpop.permute.xlu0 %850 }
 0x1cc   : > { %v15166_v8 = vpop.permute.xlu2 %892 }
 0x1cd   : > { %20836 = vst [vmem:[#allocation36_spill] sm:$0xff] %v15166_v8 }
 0x1d0   : > { %1873 = vrot.lane.b32.xlu1 %v15124_v56, %s20702_s30 }
 0x1d1   : > { %932 = vrot.lane.b32.xlu0 %v15114_v49, %s14669_s28 }
 0x1d2   : > { %v15172_v11 = vpop.permute.xlu1 %13638  ;;  %902 = vrot.lane.b32.xlu2 %v15107_v52, %s20700_s16  ;;  %s20987_s16 = smov 96  }
 0x1d3   : > { %20837 = vst [vmem:[#allocation37_spill] sm:$0xff] %v15172_v11  ;;  %v15176_v14 = vpop.permute.xlu0 %914 }
 0x1d4   : > { %20838 = vst [vmem:[#allocation38_spill] sm:$0xff] %v15176_v14  ;;  %v15178_v16 = vpop.permute.xlu2 %924 }
 0x1d5   : > { %20839 = vst [vmem:[#allocation39_spill] sm:$0xff] %v15178_v16 }
 0x1d8   : > { %13668 = vrot.lane.b32.xlu1 %v13667_v18, %s20698_s17 }
 0x1d9   : > { %1769 = vrot.lane.b32.xlu0 %v15046_v10, %s20702_s30 }
 0x1da   : > { %v15185_v20 = vpop.permute.xlu1 %890  ;;  %2211 = vrot.lane.b32.xlu2 %v15074_v19, %s20702_s30 }
 0x1db   : > { %20840 = vst [vmem:[#allocation40_spill] sm:$0xff] %v15185_v20  ;;  %v1094_v22 = vpop.permute.xlu0 %1093 }
 0x1dc   : > { %13083 = vmatpush.xpose.msk.msrb.mxu2 %vm938_vm2, %v1094_v22  ;;  %v15190_v38 = vpop.permute.xlu2 %926 }
 0x1dd   : > { %20841 = vst [vmem:[#allocation41_spill] sm:$0xff] %v15190_v38 }
 0x1df   : > { %13084 = vmatmul.msk.f32.vlgmr.msrb.gmra.mxu2 %vm938_vm2, %v14959_v53 }
 0x1e0   : > { %2315 = vrot.lane.b32.xlu1 %v15176_v14, %s20702_s30 }
 0x1e1   : > { %13658 = vrot.lane.b32.xlu0 %v13657_v39, %s20698_s17 }
 0x1e2   : > { %v15201_v45 = vpop.permute.xlu1 %922  ;;  %13663 = vrot.lane.b32.xlu2 %v13662_v41, %s20698_s17 }
 0x1e3   : > { %20842 = vst [vmem:[#allocation42_spill] sm:$0xff] %v15201_v45  ;;  %v15204_v46 = vpop.permute.xlu0 %884 }
 0x1e4   : > { %20843 = vst [vmem:[#allocation43_spill] sm:$0xff] %v15204_v46  ;;  %v1250_v50 = vpop.permute.xlu2 %1249 }
 0x1e8   : > { %1509 = vrot.lane.b32.xlu1 %v15134_v37, %s20702_s30 }
 0x1e9   : > { %1327 = vrot.lane.b32.xlu0 %v15107_v52, %s20702_s30 }
 0x1ea   : > { %v1198_v53 = vpop.permute.xlu1 %1197  ;;  %1405 = vrot.lane.b32.xlu2 %v15024_v4, %s20702_s30 }
 0x1eb   : > { %v15212_v55 = vpop.permute.xlu0 %916 }
 0x1ec   : > { %20844 = vst [vmem:[#allocation44_spill] sm:$0xff] %v15212_v55  ;;  %v15214_v18 = vpop.permute.xlu2 %896 }
 0x1ed   : > { %20845 = vst [vmem:[#allocation45_spill] sm:$0xff] %v15214_v18 }
 0x1f0   : > { %2341 = vrot.lane.b32.xlu1 %v15212_v55, %s20702_s30 }
 0x1f1   : > { %2237 = vrot.lane.b32.xlu0 %v15035_v7, %s20702_s30 }
 0x1f2   : > { %v1224_v22 = vpop.permute.xlu1 %1223  ;;  %1821 = vrot.lane.b32.xlu2 %v15088_v42, %s20702_s30 }
 0x1f3   : > { %v15222_v39 = vpop.permute.xlu0 %918 }
 0x1f4   : > { %20846 = vst [vmem:[#allocation46_spill] sm:$0xff] %v15222_v39  ;;  %v15224_v41 = vpop.permute.xlu2 %928 }
 0x1f5   : > { %20847 = vst [vmem:[#allocation47_spill] sm:$0xff] %v15224_v41 }
 0x1f8   : > { %1951 = vrot.lane.b32.xlu1 %v15160_v2, %s20702_s30 }
 0x1f9   : > { %1457 = vrot.lane.b32.xlu0 %v15103_v48, %s20702_s30 }
 0x1fa   : > { %v15230_v40 = vpop.permute.xlu1 %894  ;;  %1431 = vrot.lane.b32.xlu2 %v15051_v12, %s20702_s30 }
 0x1fb   : > { %20848 = vst [vmem:[#allocation48_spill] sm:$0xff] %v15230_v40  ;;  %v1146_v36 = vpop.permute.xlu0 %1145 }
 0x1fc   : > { %13087 = vmatpush.xpose.msk.msra.mxu2 %vm938_vm2, %v1146_v36  ;;  %v15235_v35 = vpop.permute.xlu2 %13648 }
 0x1ff   : > { %13088 = vmatmul.msk.f32.vlgmr.msra.gmra.mxu2 %vm938_vm2, %v14978_v58 }
 0x200   : > { %13091 = vmatpush.xpose.msk.msrb.mxu2 %vm938_vm2, %v1198_v53  ;;  %2367 = vrot.lane.b32.xlu1 %v15222_v39, %s20702_s30 }
 0x201   : > { %2289 = vrot.lane.b32.xlu0 %v15138_v47, %s20702_s30 }
 0x202   : > { %v15245_v34 = vpop.permute.xlu1 %864  ;;  %2263 = vrot.lane.b32.xlu2 %v15091_v43, %s20702_s30 }
 0x203   : > { %v15249_v36 = vpop.permute.xlu0 %920 }
 0x204   : > { %13095 = vmatpush.xpose.msk.msra.mxu2 %vm938_vm2, %v1250_v50  ;;  %20849 = vst [vmem:[#allocation49_spill] sm:$0xff] %v15249_v36  ;;  %v1276_v31 = vpop.permute.xlu2 %1275 }
 0x207   : > { %13092 = vmatmul.msk.f32.vlgmr.msrb.gmra.mxu2 %vm938_vm2, %v15005_v0 }
 0x208   : > { %2393 = vrot.lane.b32.xlu1 %v15249_v36, %s20702_s30 }
 0x209   : > { %1483 = vrot.lane.b32.xlu0 %v15164_v6, %s20702_s30 }
 0x20a   : > { %v15257_v58 = vpop.permute.xlu1 %866  ;;  %1535 = vrot.lane.b32.xlu2 %v15148_v51, %s20702_s30 }
 0x20b   : > { %v1172_v50 = vpop.permute.xlu0 %1171 }
 0x20c   : > { %13089 = vmatpush.xpose.msk.msra.mxu3 %vm938_vm2, %v1172_v50  ;;  %v15262_v53 = vpop.permute.xlu2 %868 }
 0x20d   : > { %20850 = vst [vmem:[#allocation50_spill] sm:$0xff] %v15262_v53 }
 0x20f   : > { %13090 = vmatmul.msk.f32.vlgmr.msra.gmra.mxu3 %vm938_vm2, %v14994_v61  ;;  %13096 = vmatmul.msk.f32.vlgmr.msra.gmra.mxu2 %vm938_vm2, %v15040_v9  ;;  %v13672_v61 = vpack.i.bf16 %v15164_v6, %v15024_v4 }
 0x210   : > { %13093 = vmatpush.xpose.msk.msrb.mxu3 %vm938_vm2, %v1224_v22  ;;  %1587 = vrot.lane.b32.xlu1 %v15154_v63, %s20702_s30 }
 0x211   : > { %1899 = vrot.lane.b32.xlu0 %v15093_v44, %s20702_s30 }
 0x212   : > { %v15274_v0 = vpop.permute.xlu1 %13653  ;;  %1977 = vrot.lane.b32.xlu2 %v15140_v59, %s20702_s30 }
 0x213   : > { %20851 = vst [vmem:[#allocation51_spill] sm:$0xff] %v15274_v0  ;;  %v15278_v22 = vpop.permute.xlu0 %13643  ;;  %v960_v0 = vpop.f32.mrf.mxu2 }
 0x214   : > { %13097 = vmatpush.xpose.msk.msra.mxu3 %vm938_vm2, %v1276_v31  ;;  %20852 = vst [vmem:[#allocation52_spill] sm:$0xff] %v15278_v22  ;;  %v15280_v50 = vpop.permute.xlu2 %900 }
 0x215   : > { %20853 = vst [vmem:[#allocation53_spill] sm:$0xff] %v15280_v50 }
 0x217   : > { %13094 = vmatmul.msk.f32.vlgmr.msrb.gmra.mxu3 %vm938_vm2, %v15022_v3 }
 0x218   : > { %2003 = vrot.lane.b32.xlu1 %v15185_v20, %s20702_s30 }
 0x219   : > { %13673 = vrot.lane.b32.xlu0 %v13672_v61, %s20698_s17 }
 0x21a   : > { %v1354_v31 = vpop.permute.xlu1 %1353 }
 0x21b   : > { %v15289_v9 = vpop.permute.xlu0 %860 }
 0x21c   : > { %1613 = vrot.lane.b32.xlu2 %v15289_v9, %s20702_s30  ;;  %v15293_v33 = vpop.permute.xlu2 %2185 }
 0x21f   : > { %13098 = vmatmul.msk.f32.vlgmr.msra.gmra.mxu3 %vm938_vm2, %v15066_v17 }
 0x220   : > { %2029 = vrot.lane.b32.xlu1 %v15166_v8, %s20702_s30 }
 0x221   : > { %1925 = vrot.lane.b32.xlu0 %v15204_v46, %s20702_s30 }
 0x222   : > { %v15301_v3 = vpop.permute.xlu1 %934 }
 0x223   : > { %20854 = vst [vmem:[#allocation54_spill] sm:$0xff] %v15301_v3  ;;  %v15303_v61 = vpop.permute.xlu0 %862 }
 0x224   : > { %20855 = vst [vmem:[#allocation55_spill] sm:$0xff] %v15303_v61  ;;  %2445 = vrot.lane.b32.xlu2 %v15178_v16, %s20702_s30  ;;  %v15307_v32 = vpop.permute.xlu2 %870 }
 0x225   : > { %20856 = vst [vmem:[#allocation56_spill] sm:$0xff] %v15307_v32 }
 0x228   : > { %2055 = vrot.lane.b32.xlu1 %v15230_v40, %s20702_s30 }
 0x229   : > { %1561 = vrot.lane.b32.xlu0 %v15126_v57, %s20702_s30 }
 0x22a   : > { %v1380_v17 = vpop.permute.xlu1 %1379 }
 0x22b   : > { %v15313_v30 = vpop.permute.xlu0 %898 }
 0x22c   : > { %20857 = vst [vmem:[#allocation57_spill] sm:$0xff] %v15313_v30  ;;  %2471 = vrot.lane.b32.xlu2 %v15190_v38, %s20702_s30  ;;  %v15317_v29 = vpop.permute.xlu2 %902 }
 0x22d   : > { %20858 = vst [vmem:[#allocation58_spill] sm:$0xff] %v15317_v29 }
 0x230   : > { %1665 = vrot.lane.b32.xlu1 %v15245_v34, %s20702_s30 }
 0x231   : > { %2419 = vrot.lane.b32.xlu0 %v15201_v45, %s20702_s30 }
 0x232   : > { %v15323_v28 = vpop.permute.xlu1 %1795 }
 0x233   : > { %v15325_v27 = vpop.permute.xlu0 %930 }
 0x234   : > { %20859 = vst [vmem:[#allocation59_spill] sm:$0xff] %v15325_v27  ;;  %2081 = vrot.lane.b32.xlu2 %v15214_v18, %s20702_s30  ;;  %v15329_v26 = vpop.permute.xlu2 %2211 }
 0x238   : > { %1717 = vrot.lane.b32.xlu1 %v15262_v53, %s20702_s30 }
 0x239   : > { %1639 = vrot.lane.b32.xlu0 %v15303_v61, %s20702_s30 }
 0x23a   : > { %v1848_v24 = vpop.permute.xlu1 %1847 }
 0x23b   : > { %v1302_v25 = vpop.permute.xlu0 %1301  ;;  %13141 = vmatpush.xpose.msk.msrb.mxu1 %vm938_vm2, %v1848_v24 }
 0x23c   : > { %13099 = vmatpush.xpose.msk.msrb.mxu2 %vm938_vm2, %v1302_v25  ;;  %2107 = vrot.lane.b32.xlu2 %v15313_v30, %s20702_s30  ;;  %v15339_v23 = vpop.permute.xlu2 %13663 }
 0x23d   : > { %20860 = vst [vmem:[#allocation60_spill] sm:$0xff] %v15339_v23  ;;  %v986_v23 = vpop.f32.mrf.mxu3 }
 0x23e   : > { %13142 = vmatmul.msk.f32.vlgmr.msrb.gmra.mxu1 %vm938_vm2, %v15120_v54  ;;  %v2602_v55 = vmul.f32 0.35355338, %v986_v23 }
 0x23f   : > { %13100 = vmatmul.msk.f32.vlgmr.msrb.gmra.mxu2 %vm938_vm2, %v15114_v49 }
 0x240   : > { %13103 = vmatpush.xpose.msk.msra.mxu2 %vm938_vm2, %v1354_v31  ;;  %2133 = vrot.lane.b32.xlu1 %v15280_v50, %s20702_s30 }
 0x241   : > { %2497 = vrot.lane.b32.xlu0 %v15224_v41, %s20702_s30 }
 0x242   : > { %v1874_v24 = vpop.permute.xlu1 %1873 }
 0x243   : > { %v15350_v25 = vpop.permute.xlu0 %932 }
 0x244   : > { %20861 = vst [vmem:[#allocation61_spill] sm:$0xff] %v15350_v25  ;;  %2159 = vrot.lane.b32.xlu2 %v15317_v29, %s20702_s30  ;;  %v1406_v21 = vpop.permute.xlu2 %1405 }
 0x245   : > { %13107 = vmatpush.xpose.msk.msrb.mxu2 %vm938_vm2, %v1406_v21 }
 0x247   : > { %13104 = vmatmul.msk.f32.vlgmr.msra.gmra.mxu2 %vm938_vm2, %v15030_v5 }
 0x248   : > { %2549 = vrot.lane.b32.xlu1 %v15350_v25, %s20702_s30  ;;  %v1038_v25 = vpop.f32.mrf.mxu3 }
 0x249   : > { %1691 = vrot.lane.b32.xlu0 %v15257_v58, %s20702_s30  ;;  %v2604_v45 = vmul.f32 0.35355338, %v1038_v25 }
 0x24a   : > { %v15361_v49 = vpop.permute.xlu1 %13668 }
 0x24b   : > { %20862 = vst [vmem:[#allocation62_spill] sm:$0xff] %v15361_v49  ;;  %v1770_v31 = vpop.permute.xlu0 %1769 }
 0x24c   : > { %13135 = vmatpush.xpose.msk.msrb.mxu0 %vm938_vm2, %v1770_v31  ;;  %2575 = vrot.lane.b32.xlu2 %v15301_v3, %s20702_s30  ;;  %v15366_v54 = vpop.permute.xlu2 %1821 }
 0x24f   : > { %13108 = vmatmul.msk.f32.vlgmr.msrb.gmra.mxu2 %vm938_vm2, %v15024_v4  ;;  %13136 = vmatmul.msk.f32.vlgmr.msrb.gmra.mxu0 %vm938_vm2, %v15046_v10 }
 0x250   : > { %13143 = vmatpush.xpose.msk.msra.mxu0 %vm938_vm2, %v1874_v24 }
 0x251   : > { %2523 = vrot.lane.b32.xlu0 %v15325_v27, %s20702_s30 }
 0x252   : > { %v15375_v21 = vpop.permute.xlu1 %2315 }
 0x253   : > { %v15377_v5 = vpop.permute.xlu0 %13658 }
 0x254   : > { %v1432_v31 = vpop.permute.xlu2 %1431 }
 0x257   : > { %13144 = vmatmul.msk.f32.vlgmr.msra.gmra.mxu0 %vm938_vm2, %v15124_v56 }
 0x259   : > { %1743 = vrot.lane.b32.xlu0 %v15307_v32, %s20702_s30  ;;  %s13037_s30 = sshll.u32 %s21166_s19, 1 }
 0x25a   : > { %v1510_v24 = vpop.permute.xlu1 %1509  ;;  %p534_p4 = scmp.lt.s32.totalorder %s13037_s30, 3 }
 0x25b   : > { %v1328_v4 = vpop.permute.xlu0 %1327 }
 0x25c   : > { %13101 = vmatpush.xpose.msk.msrb.mxu3 %vm938_vm2, %v1328_v4  ;;  %v15384_v10 = vpop.permute.xlu2 %2263  ;;  %v2601_v4 = vmul.f32 0.35355338, %v960_v0  ;;  %v1090_v0 = vpop.f32.mrf.mxu3  ;;  %s21170_s30 = smov (!%p534_p4, %s13037_s30), 3 }
 0x25f   : > { %13102 = vmatmul.msk.f32.vlgmr.msrb.gmra.mxu3 %vm938_vm2, %v15107_v52  ;;  %v15404_v52 = vld [vmem:[%s15399_s22] sm:$0xff] }
 0x260   : > { %13105 = vmatpush.xpose.msk.msra.mxu3 %vm938_vm2, %v1380_v17  ;;  %v1012_v17 = vpop.f32.mrf.mxu2  ;;  %v15411_v7 = vadd.f32 %v2601_v4, %v15404_v52 }
 0x262   : > { %v15390_v49 = vpop.permute.xlu1 %2341 }
 0x263   : > { %20863 = vst [vmem:[#allocation63_spill] sm:$0xff] %v15390_v49  ;;  %v15392_v56 = vpop.permute.xlu0 %2237 }
 0x264   : > { %13109 = vmatpush.xpose.msk.msrb.mxu3 %vm938_vm2, %v1432_v31  ;;  %v1536_v22 = vpop.permute.xlu2 %1535 }
 0x267   : > { %13106 = vmatmul.msk.f32.vlgmr.msra.gmra.mxu3 %vm938_vm2, %v15059_v13  ;;  %v15414_v13 = vld [vmem:[%s15399_s22 + $0x8] sm:$0xff] }
 0x268   : > { %v15425_v23 = vadd.f32 %v2602_v55, %v15414_v13 }
 0x26a   : > { %v1952_v31 = vpop.permute.xlu1 %1951 }
 0x26b   : > { %v1458_v16 = vpop.permute.xlu0 %1457  ;;  %13149 = vmatpush.xpose.msk.msra.mxu1 %vm938_vm2, %v1952_v31  ;;  %v15432_v31 = vld [vmem:[%s15399_s22 + $0x28] sm:$0xff] }
 0x26c   : > { %13111 = vmatpush.xpose.msk.msra.mxu2 %vm938_vm2, %v1458_v16  ;;  %v1978_v27 = vpop.permute.xlu2 %1977  ;;  %v2729_v16 = vsel %vm938_vm2, %v15411_v7, -inf  ;;  %20864 = vst [vmem:[#allocation64_spill] sm:$0xff] %v15432_v31 }
 0x26d   : > { %13151 = vmatpush.xpose.msk.msrb.mxu0 %vm938_vm2, %v1978_v27  ;;  %v2606_v27 = vmul.f32 0.35355338, %v1090_v0  ;;  %v15440_v0 = vld [vmem:[%s15399_s22 + $0x10] sm:$0xff] }
 0x26e   : > { %13150 = vmatmul.msk.f32.vlgmr.msra.gmra.mxu1 %vm938_vm2, %v15160_v2  ;;  %20866 = vst [vmem:[#allocation66_spill] sm:$0xff] %v15440_v0 }
 0x26f   : > { %13110 = vmatmul.msk.f32.vlgmr.msrb.gmra.mxu3 %vm938_vm2, %v15051_v12  ;;  %13112 = vmatmul.msk.f32.vlgmr.msra.gmra.mxu2 %vm938_vm2, %v15103_v48  ;;  %v2603_v12 = vmul.f32 0.35355338, %v1012_v17  ;;  %v2732_v48 = vsel %vm938_vm2, %v15425_v23, -inf  ;;  %v15437_v55 = vadd.f32 %v2606_v27, %v15432_v31  ;;  %v15454_v31 = vld [vmem:[%s15399_s22 + $0x20] sm:$0xff] }
 0x270   : > { %13115 = vmatpush.xpose.msk.msrb.mxu2 %vm938_vm2, %v1510_v24  ;;  %13152 = vmatmul.msk.f32.vlgmr.msrb.gmra.mxu0 %vm938_vm2, %v15140_v59  ;;  %v1064_v24 = vpop.f32.mrf.mxu2  ;;  %20867 = vst [vmem:[#allocation67_spill] sm:$0xff] %v15454_v31 }
 0x271   : > { %20865 = vst [vmem:[#allocation65_spill] sm:$0xff] %v15437_v55  ;;  %v2744_v17 = vsel %vm938_vm2, %v15437_v55, -inf  ;;  %v2605_v11 = vmul.f32 0.35355338, %v1064_v24 }
 0x272   : > { %2730 = vmax.xlane.f32.xlu1 %v2729_v16  ;;  %v15429_v4 = vpop.permute.xlu1 %2367  ;;  %v15447_v16 = vadd.f32 %v2603_v12, %v15440_v0  ;;  %v15461_v12 = vld [vmem:[%s15399_s22 + $0x18] sm:$0xff] }
 0x273   : > { %v2290_v2 = vpop.permute.xlu0 %2289  ;;  %20868 = vst [vmem:[#allocation68_spill] sm:$0xff] %v15461_v12  ;;  %v15471_v25 = vadd.f32 %v2604_v45, %v15461_v12  ;;  %v15484_v45 = vld [vmem:[%s15399_s22 + $0x30] sm:$0xff] }
 0x274   : > { %20873 = vst [vmem:[#allocation73_spill] sm:$0xff] %v15484_v45 }
 0x275   : > { %2733 = vmax.xlane.f32.xlu2 %v2732_v48  ;;  %20871 = vst [vmem:[#allocation71_spill] sm:$0xff] %v15471_v25 }
 0x276   : > { %v15442_v59 = vpop.permute.xlu2 %1613 }
 0x277   : > { %13116 = vmatmul.msk.f32.vlgmr.msrb.gmra.mxu2 %vm938_vm2, %v15134_v37  ;;  %v2735_v37 = vsel %vm938_vm2, %v15447_v16, -inf }
 0x278   : > { %v1116_v49 = vpop.f32.mrf.mxu2 }
 0x27a   : > { %2745 = vmax.xlane.f32.xlu1 %v2744_v17  ;;  %v15451_v48 = vpop.permute.xlu1 %2393  ;;  %v15466_v17 = vadd.f32 %v2605_v11, %v15454_v31  ;;  %v2607_v11 = vmul.f32 0.35355338, %v1116_v49 }
 0x27b   : > { %v1484_v27 = vpop.permute.xlu0 %1483 }
 0x27c   : > { %13113 = vmatpush.xpose.msk.msra.mxu3 %vm938_vm2, %v1484_v27  ;;  %20870 = vst [vmem:[#allocation70_spill] sm:$0xff] %v15466_v17 }
 0x27d   : > { %2736 = vmax.xlane.f32.xlu2 %v2735_v37  ;;  %v2741_v37 = vsel %vm938_vm2, %v15466_v17, -inf }
 0x27e   : > { %v15463_v24 = vpop.permute.xlu2 %2445 }
 0x27f   : > { %20869 = vst [vmem:[#allocation69_spill] sm:$0xff] %v15463_v24  ;;  %13114 = vmatmul.msk.f32.vlgmr.msra.gmra.mxu3 %vm938_vm2, %v15164_v6  ;;  %v15479_v24 = vld [vmem:[%s15399_s22 + $0x40] sm:$0xff]  ;;  %v2738_v6 = vsel %vm938_vm2, %v15471_v25, -inf }
 0x280   : > { %13117 = vmatpush.xpose.msk.msrb.mxu3 %vm938_vm2, %v1536_v22  ;;  %20872 = vst [vmem:[#allocation72_spill] sm:$0xff] %v15479_v24 }
 0x282   : > { %v1168_v27 = vpop.f32.mrf.mxu2  ;;  %v1588_v55 = vpop.permute.xlu1 %1587 }
 0x283   : > { %v2609_v22 = vmul.f32 0.35355338, %v1168_v27  ;;  %2742 = vmax.xlane.f32.xlu0 %v2741_v37  ;;  %v15475_v0 = vpop.permute.xlu0 %1899  ;;  %v1142_v27 = vpop.f32.mrf.mxu3 }
 0x284   : > { %13121 = vmatpush.xpose.msk.msra.mxu3 %vm938_vm2, %v1588_v55  ;;  %v15494_v55 = vadd.f32 %v2607_v11, %v15484_v45  ;;  %v2608_v12 = vmul.f32 0.35355338, %v1142_v27 }
 0x285   : > { %2739 = vmax.xlane.f32.xlu2 %v2738_v6  ;;  %v15489_v17 = vadd.f32 %v2609_v22, %v15479_v24 }
 0x286   : > { %v15486_v31 = vpop.permute.xlu2 %2471  ;;  %20875 = vst [vmem:[#allocation75_spill] sm:$0xff] %v15494_v55  ;;  %v2747_v22 = vsel %vm938_vm2, %v15494_v55, -inf }
 0x287   : > { %20874 = vst [vmem:[#allocation74_spill] sm:$0xff] %v15489_v17  ;;  %13118 = vmatmul.msk.f32.vlgmr.msrb.gmra.mxu3 %vm938_vm2, %v15148_v51  ;;  %v2753_v6 = vsel %vm938_vm2, %v15489_v17, -inf  ;;  %v15505_v51 = vld [vmem:[%s15399_s22 + $0x38] sm:$0xff] }
 0x28a   : > { %v1220_v49 = vpop.f32.mrf.mxu2  ;;  %v15496_v37 = vpop.permute.xlu1 %2003 }
 0x28b   : > { %2754 = vmax.xlane.f32.xlu0 %v2753_v6  ;;  %v15500_v25 = vpop.permute.xlu0 %13673  ;;  %v15513_v6 = vadd.f32 %v2608_v12, %v15505_v51 }
 0x28c   : > { %20876 = vst [vmem:[#allocation76_spill] sm:$0xff] %v15500_v25 }
 0x28d   : > { %2748 = vmax.xlane.f32.xlu2 %v2747_v22  ;;  %20877 = vst [vmem:[#allocation77_spill] sm:$0xff] %v15513_v6  ;;  %v15518_v22 = vld [vmem:[%s15399_s22 + $0x48] sm:$0xff] }
 0x28e   : > { %v2082_v11 = vpop.permute.xlu2 %2081  ;;  %20878 = vst [vmem:[#allocation78_spill] sm:$0xff] %v15518_v22 }
 0x28f   : > { %13122 = vmatmul.msk.f32.vlgmr.msra.gmra.mxu3 %vm938_vm2, %v15154_v63  ;;  %13159 = vmatpush.xpose.msk.msra.mxu0 %vm938_vm2, %v2082_v11  ;;  %v2611_v11 = vmul.f32 0.35355338, %v1220_v49  ;;  %v15541_v49 = vld [vmem:[%s15399_s22 + $0x60] sm:$0xff] }
 0x292   : > { %v1194_v27 = vpop.f32.mrf.mxu3  ;;  %13160 = vmatmul.msk.f32.vlgmr.msra.gmra.mxu0 %vm938_vm2, %v15214_v18  ;;  %v15520_v24 = vpop.permute.xlu1 %2029  ;;  %v15531_v18 = vld [vmem:[%s15399_s22 + $0x50] sm:$0xff] }
 0x293   : > { %13167 = vmatpush.xpose.msk.msrb.mxu0 %vm938_vm2, %v15293_v33  ;;  %v2610_v25 = vmul.f32 0.35355338, %v1194_v27  ;;  %v15523_v63 = vpop.permute.xlu0 %1925  ;;  %v1272_v45 = vpop.f32.mrf.mxu2  ;;  %v2750_v33 = vsel %vm938_vm2, %v15513_v6, -inf }
 0x294   : > { %v2613_v27 = vmul.f32 0.35355338, %v1272_v45 }
 0x295   : > { %2751 = vmax.xlane.f32.xlu2 %v2750_v33  ;;  %v15528_v12 = vadd.f32 %v2610_v25, %v15518_v22 }
 0x296   : > { %v15533_v17 = vpop.permute.xlu2 %2107  ;;  %v15548_v45 = vadd.f32 %v2613_v27, %v15541_v49 }
 0x297   : > { %13175 = vmatpush.xpose.msk.msra.mxu0 %vm938_vm2, %v2290_v2  ;;  %v2756_v55 = vsel %vm938_vm2, %v15528_v12, -inf  ;;  %v15538_v2 = vadd.f32 %v2611_v11, %v15531_v18  ;;  %v15557_v11 = vld [vmem:[%s15399_s22 + $0x58] sm:$0xff] }
 0x298   : > { %2757 = vmax.xlane.f32.xlu1 %v2756_v55 }
 0x299   : > { %v2759_v55 = vsel %vm938_vm2, %v15538_v2, -inf }
 0x29a   : > { %v1246_v6 = vpop.f32.mrf.mxu3  ;;  %13168 = vmatmul.msk.f32.vlgmr.msrb.gmra.mxu0 %vm938_vm2, %v15002_v62  ;;  %v2056_v25 = vpop.permute.xlu1 %2055 }
 0x29b   : > { %13183 = vmatpush.xpose.msk.msrb.mxu0 %vm938_vm2, %v15451_v48  ;;  %v1562_v33 = vpop.permute.xlu0 %1561  ;;  %v2612_v22 = vmul.f32 0.35355338, %v1246_v6  ;;  %13157 = vmatpush.xpose.msk.msrb.mxu1 %vm938_vm2, %v2056_v25  ;;  %v2765_v6 = vsel %vm938_vm2, %v15548_v45, -inf  ;;  %v15574_v25 = vld [vmem:[%s15399_s22 + $0x68] sm:$0xff] }
 0x29c   : > { %13119 = vmatpush.xpose.msk.msra.mxu2 %vm938_vm2, %v1562_v33 }
 0x29d   : > { %2760 = vmax.xlane.f32.xlu2 %v2759_v55  ;;  %v15567_v27 = vadd.f32 %v2612_v22, %v15557_v11 }
 0x29e   : > { %v2160_v48 = vpop.permute.xlu2 %2159  ;;  %13158 = vmatmul.msk.f32.vlgmr.msrb.gmra.mxu1 %vm938_vm2, %v15230_v40 }
 0x29f   : > { %13120 = vmatmul.msk.f32.vlgmr.msra.gmra.mxu2 %vm938_vm2, %v15126_v57  ;;  %13165 = vmatpush.xpose.msk.msra.mxu1 %vm938_vm2, %v2160_v48  ;;  %v2762_v48 = vsel %vm938_vm2, %v15567_v27, -inf }
 0x2a0   : > { %13123 = vmatpush.xpose.msk.msrb.mxu2 %vm938_vm2, %v15442_v59  ;;  %2766 = vmax.xlane.f32.xlu1 %v2765_v6 }
 0x2a2   : > { %v1298_v59 = vpop.f32.mrf.mxu3  ;;  %13176 = vmatmul.msk.f32.vlgmr.msra.gmra.mxu0 %vm938_vm2, %v15138_v47  ;;  %v1666_v55 = vpop.permute.xlu1 %1665 }
 0x2a3   : > { %13173 = vmatpush.xpose.msk.msrb.mxu1 %vm938_vm2, %v15384_v10  ;;  %v2614_v33 = vmul.f32 0.35355338, %v1298_v59  ;;  %v15576_v40 = vpop.permute.xlu0 %2419 }
 0x2a4   : > { %13127 = vmatpush.xpose.msk.msra.mxu2 %vm938_vm2, %v1666_v55  ;;  %v13635_v55 = vunpack.i.l.bf16 %v15152_v60 }
 0x2a5   : > { %2763 = vmax.xlane.f32.xlu2 %v2762_v48  ;;  %v15582_v22 = vadd.f32 %v2614_v33, %v15574_v25  ;;  %v13650_v48 = vunpack.i.l.bf16 %v15235_v35 }
 0x2a6   : > { %13166 = vmatmul.msk.f32.vlgmr.msra.gmra.mxu1 %vm938_vm2, %v15317_v29  ;;  %v20891_v29 = vld [vmem:[#allocation39_spill] sm:$0xff] }
 0x2a7   : > { %13124 = vmatmul.msk.f32.vlgmr.msrb.gmra.mxu2 %vm938_vm2, %v15289_v9  ;;  %v2768_v10 = vsel %vm938_vm2, %v15582_v22, -inf  ;;  %13181 = vmatpush.xpose.msk.msra.mxu1 %vm938_vm2, %v15429_v4  ;;  %v13630_v4 = vunpack.i.l.bf16 %v15013_v1 }
 0x2a8   : > { %2769 = vmax.xlane.f32.xlu1 %v2768_v10  ;;  %v15629_v10 = vld [vmem:[%s15399_s22 + $0x70] sm:$0xff] }
 0x2aa   : > { %13184 = vmatmul.msk.f32.vlgmr.msrb.gmra.mxu0 %vm938_vm2, %v15249_v36  ;;  %v1718_v6 = vpop.permute.xlu1 %1717 }
 0x2ab   : > { %v1640_v59 = vpop.permute.xlu0 %1639  ;;  %13131 = vmatpush.xpose.msk.msrb.mxu2 %vm938_vm2, %v1718_v6 }
 0x2ac   : > { %13125 = vmatpush.xpose.msk.msrb.mxu3 %vm938_vm2, %v1640_v59 }
 0x2ae   : > { %13174 = vmatmul.msk.f32.vlgmr.msrb.gmra.mxu1 %vm938_vm2, %v15091_v43 }
 0x2af   : > { %13126 = vmatmul.msk.f32.vlgmr.msrb.gmra.mxu3 %vm938_vm2, %v15303_v61  ;;  %13128 = vmatmul.msk.f32.vlgmr.msra.gmra.mxu2 %vm938_vm2, %v15245_v34 }
 0x2b0   : > { %13137 = vmatpush.xpose.msk.msra.mxu2 %vm938_vm2, %v15323_v28  ;;  %13189 = vmatpush.xpose.msk.msrb.mxu1 %vm938_vm2, %v15486_v31  ;;  %v2576_v28 = vpop.permute.xlu2 %2575 }
 0x2b3   : > { %v2498_v33 = vpop.permute.xlu0 %2497 }
 0x2b4   : > { %13191 = vmatpush.xpose.msk.msra.mxu0 %vm938_vm2, %v2498_v33  ;;  %v13660_v33 = vunpack.i.l.bf16 %v15377_v5 }
 0x2b6   : > { %13182 = vmatmul.msk.f32.vlgmr.msra.gmra.mxu1 %vm938_vm2, %v15222_v39 }
 0x2b7   : > { %13132 = vmatmul.msk.f32.vlgmr.msrb.gmra.mxu2 %vm938_vm2, %v15262_v53  ;;  %13192 = vmatmul.msk.f32.vlgmr.msra.gmra.mxu0 %vm938_vm2, %v15224_v41  ;;  %v20884_v41 = vld [vmem:[#allocation69_spill] sm:$0xff] }
 0x2b8   : > { %3454 = vmatpush.msrb.mxu0 %v13630_v4  ;;  %13145 = vmatpush.xpose.msk.msrb.mxu2 %vm938_vm2, %v15475_v0 }
 0x2b9   : > { %13197 = vmatpush.xpose.msk.msra.mxu1 %vm938_vm2, %v2576_v28 }
 0x2ba   : > { %3558 = vmatpush.msra.mxu0 %v13635_v55 }
 0x2bb   : > { %v1692_v31 = vpop.permute.xlu0 %1691 }
 0x2bc   : > { %13129 = vmatpush.xpose.msk.msra.mxu3 %vm938_vm2, %v1692_v31 }
 0x2be   : > { %13190 = vmatmul.msk.f32.vlgmr.msrb.gmra.mxu1 %vm938_vm2, %v15190_v38  ;;  %v1870_v38 = vpop.f32.mrf.mxu1 }
 0x2bf   : > { %13130 = vmatmul.msk.f32.vlgmr.msra.gmra.mxu3 %vm938_vm2, %v15257_v58  ;;  %13138 = vmatmul.msk.f32.vlgmr.msra.gmra.mxu2 %vm938_vm2, %v15063_v15 }
 0x2c0   : > { %13153 = vmatpush.xpose.msk.msra.mxu2 %vm938_vm2, %v15496_v37  ;;  %3532 = vmatpush.msrb.mxu1 %v13650_v48 }
 0x2c2   : > { %v1324_v0 = vpop.f32.mrf.mxu2 }
 0x2c3   : > { %v2615_v6 = vmul.f32 0.35355338, %v1324_v0  ;;  %v2524_v59 = vpop.permute.xlu0 %2523 }
 0x2c5   : > { %v15632_v4 = vadd.f32 %v2615_v6, %v15629_v10  ;;  %v2134_v6 = vpop.permute.xlu1 %2133 }
 0x2c6   : > { %13198 = vmatmul.msk.f32.vlgmr.msra.gmra.mxu1 %vm938_vm2, %v15301_v3 }
 0x2c7   : > { %13146 = vmatmul.msk.f32.vlgmr.msrb.gmra.mxu2 %vm938_vm2, %v15093_v44  ;;  %v2771_v37 = vsel %vm938_vm2, %v15632_v4, -inf  ;;  %3636 = vmatpush.msra.mxu1 %v13660_v33 }
 0x2c8   : > { %13161 = vmatpush.xpose.msk.msrb.mxu2 %vm938_vm2, %v15533_v17  ;;  %2772 = vmax.xlane.f32.xlu1 %v2771_v37  ;;  %v15682_v37 = vld [vmem:[%s15399_s22 + $0x78] sm:$0xff] }
 0x2ca   : > { %v1376_v48 = vpop.f32.mrf.mxu2 }
 0x2cb   : > { %v1744_v55 = vpop.permute.xlu0 %1743  ;;  %v2617_v0 = vmul.f32 0.35355338, %v1376_v48 }
 0x2cc   : > { %13133 = vmatpush.xpose.msk.msrb.mxu3 %vm938_vm2, %v1744_v55  ;;  %v1792_v28 = vpop.f32.mrf.mxu0 }
 0x2cd   : > { %v2633_v31 = vmul.f32 0.35355338, %v1792_v28  ;;  %v15660_v33 = vadd.f32 %v2617_v0, %v15404_v52 }
 0x2cf   : > { %13134 = vmatmul.msk.f32.vlgmr.msrb.gmra.mxu3 %vm938_vm2, %v15307_v32  ;;  %13154 = vmatmul.msk.f32.vlgmr.msra.gmra.mxu2 %vm938_vm2, %v15185_v20  ;;  %v15651_v17 = vadd.f32 %v2633_v31, %v15404_v52 }
 0x2d0   : > { %13139 = vmatpush.xpose.msk.msra.mxu3 %vm938_vm2, %v15366_v54  ;;  %13169 = vmatpush.xpose.msk.msra.mxu2 %vm938_vm2, %v15329_v26  ;;  %v2777_v26 = vsel %vm938_vm2, %v15660_v33, -inf }
 0x2d1   : > { %v2825_v54 = vsel %vm938_vm2, %v15651_v17, -inf }
 0x2d2   : > { %2826 = vmax.xlane.f32.xlu0 %v2825_v54 }
 0x2d4   : > { %13147 = vmatpush.xpose.msk.msrb.mxu3 %vm938_vm2, %v15523_v63  ;;  %v15672_v63 = vpop.permute.xlu1 %2549  ;;  %v1896_v47 = vpop.f32.mrf.mxu0 }
 0x2d7   : > { %13140 = vmatmul.msk.f32.vlgmr.msra.gmra.mxu3 %vm938_vm2, %v15088_v42  ;;  %13162 = vmatmul.msk.f32.vlgmr.msrb.gmra.mxu2 %vm938_vm2, %v15313_v30 }
 0x2d8   : > { %13155 = vmatpush.xpose.msk.msra.mxu3 %vm938_vm2, %v15520_v24  ;;  %13177 = vmatpush.xpose.msk.msrb.mxu2 %vm938_vm2, %v15375_v21 }
 0x2da   : > { %2778 = vmax.xlane.f32.xlu0 %v2777_v26 }
 0x2df   : > { %13148 = vmatmul.msk.f32.vlgmr.msrb.gmra.mxu3 %vm938_vm2, %v15204_v46  ;;  %13170 = vmatmul.msk.f32.vlgmr.msra.gmra.mxu2 %vm938_vm2, %v15074_v19  ;;  %v20898_v19 = vld [vmem:[#allocation61_spill] sm:$0xff] }
 0x2e0   : > { %13163 = vmatpush.xpose.msk.msrb.mxu3 %vm938_vm2, %v2134_v6  ;;  %13185 = vmatpush.xpose.msk.msra.mxu2 %vm938_vm2, %v15576_v40  ;;  %v20903_v46 = vld [vmem:[#allocation77_spill] sm:$0xff] }
 0x2e2   : > { %v1350_v24 = vpop.f32.mrf.mxu3 }
 0x2e3   : > { %v2616_v21 = vmul.f32 0.35355338, %v1350_v24 }
 0x2e5   : > { %v2731_v55 = vpop.xlane.xlu1 %2730  ;;  %v15685_v28 = vadd.f32 %v2616_v21, %v15682_v37  ;;  %v13631_v21 = vunpack.i.h.bf16 %v15013_v1 }
 0x2e6   : > { %v2921_v31 = vsub.f32 %v15411_v7, %v2731_v55 }
 0x2e7   : > { %13156 = vmatmul.msk.f32.vlgmr.msra.gmra.mxu3 %vm938_vm2, %v15166_v8  ;;  %13178 = vmatmul.msk.f32.vlgmr.msrb.gmra.mxu2 %vm938_vm2, %v15176_v14  ;;  %v2774_v48 = vsel %vm938_vm2, %v15685_v28, -inf }
 0x2e8   : > { %13171 = vmatpush.xpose.msk.msra.mxu3 %vm938_vm2, %v15392_v56  ;;  %13193 = vmatpush.xpose.msk.msrb.mxu2 %vm938_vm2, %v2524_v59  ;;  %v2734_v40 = vpop.xlane.xlu2 %2733  ;;  %v2985_v7 = vmul.f32 1.442695, %v2921_v31  ;;  %v20879_v56 = vld [vmem:[#allocation42_spill] sm:$0xff]  ;;  %v20880_v59 = vld [vmem:[#allocation63_spill] sm:$0xff] }
 0x2e9   : > { %v2922_v0 = vsub.f32 %v15425_v23, %v2734_v40  ;;  %2775 = vmax.xlane.f32.xlu2 %v2774_v48 }
 0x2ea   : > { %v1402_v54 = vpop.f32.mrf.mxu3 }
 0x2eb   : > { %v2987_v6 = vmul.f32 1.442695, %v2922_v0  ;;  %v2618_v26 = vmul.f32 0.35355338, %v1402_v54 }
 0x2ed   : > { %13948 = vpow2.f32 %v2987_v6  ;;  %v15699_v24 = vadd.f32 %v2618_v26, %v15414_v13  ;;  %v20881_v6 = vld [vmem:[#allocation37_spill] sm:$0xff] }
 0x2ee   : > { %13950 = vpow2.f32 %v2985_v7  ;;  %v1428_v7 = vpop.f32.mrf.mxu2  ;;  %v13640_v26 = vunpack.i.l.bf16 %v20881_v6 }
 0x2ef   : > { %13164 = vmatmul.msk.f32.vlgmr.msrb.gmra.mxu3 %vm938_vm2, %v15280_v50  ;;  %13186 = vmatmul.msk.f32.vlgmr.msra.gmra.mxu2 %vm938_vm2, %v20879_v56  ;;  %v2780_v23 = vsel %vm938_vm2, %v15699_v24, -inf }
 0x2f0   : > { %13179 = vmatpush.xpose.msk.msrb.mxu3 %vm938_vm2, %v20880_v59  ;;  %3480 = vmatpush.msra.mxu2 %v13631_v21  ;;  %v2737_v55 = vpop.xlane.xlu2 %2736  ;;  %v20882_v59 = vld [vmem:[#allocation19_spill] sm:$0xff] }
 0x2f1   : > { %2781 = vmax.xlane.f32.xlu2 %v2780_v23  ;;  %v2923_v1 = vsub.f32 %v15447_v16, %v2737_v55  ;;  %v20883_v21 = vld [vmem:[#allocation59_spill] sm:$0xff]  ;;  %v2619_v23 = vmul.f32 0.35355338, %v1428_v7 }
 0x2f2   : > { %v1454_v31 = vpop.f32.mrf.mxu3 }
 0x2f3   : > { %v15710_v48 = vpop.eup %13948  ;;  %v2620_v40 = vmul.f32 0.35355338, %v1454_v31  ;;  %v2989_v3 = vmul.f32 1.442695, %v2923_v1  ;;  %v20885_v31 = vld [vmem:[#allocation68_spill] sm:$0xff]  ;;  %v20886_v1 = vld [vmem:[#allocation71_spill] sm:$0xff] }
 0x2f4   : > { %v3116_v0 = vsel %vm938_vm2, %v15710_v48, 0.0  ;;  %v15715_v54 = vpop.eup %13950 }
 0x2f5   : > { %3117 = vadd.xlane.f32.xlu0 %v3116_v0  ;;  %v3113_v55 = vsel %vm938_vm2, %v15715_v54, 0.0  ;;  %v15727_v0 = vadd.f32 %v2620_v40, %v20885_v31  ;;  %13952 = vpow2.f32 %v2989_v3 }
 0x2f6   : > { %v2743_v40 = vpop.xlane.xlu0 %2742 }
 0x2f7   : > { %13172 = vmatmul.msk.f32.vlgmr.msra.gmra.mxu3 %vm938_vm2, %v20882_v59  ;;  %13194 = vmatmul.msk.f32.vlgmr.msrb.gmra.mxu2 %vm938_vm2, %v20883_v21  ;;  %v2786_v7 = vsel %vm938_vm2, %v15727_v0, -inf  ;;  %v20887_v21 = vld [vmem:[#allocation66_spill] sm:$0xff] }
 0x2f8   : > { %13187 = vmatpush.xpose.msk.msra.mxu3 %vm938_vm2, %v20884_v41  ;;  %3584 = vmatpush.msrb.mxu2 %v13640_v26  ;;  %v2740_v16 = vpop.xlane.xlu2 %2739  ;;  %v15733_v39 = vadd.f32 %v2619_v23, %v20887_v21  ;;  %v2636_v41 = vmul.f32 0.35355338, %v1870_v38  ;;  %v20888_v26 = vld [vmem:[#allocation44_spill] sm:$0xff] }
 0x2f9   : > { %v2924_v56 = vsub.f32 %v20886_v1, %v2740_v16  ;;  %3114 = vadd.xlane.f32.xlu2 %v3113_v55  ;;  %v1974_v16 = vpop.f32.mrf.mxu1 }
 0x2fa   : > { %v2783_v3 = vsel %vm938_vm2, %v15733_v39, -inf  ;;  %v15747_v38 = vadd.f32 %v2636_v41, %v20885_v31  ;;  %v2746_v31 = vpop.xlane.xlu1 %2745 }
 0x2fb   : > { %v2991_v36 = vmul.f32 1.442695, %v2924_v56  ;;  %v15741_v56 = vpop.eup %13952 }
 0x2fc   : > { %20890 = vst [vmem:[#allocation63_spill] sm:$0xff] %v15747_v38  ;;  %v3119_v14 = vsel %vm938_vm2, %v15741_v56, 0.0  ;;  %v2834_v41 = vsel %vm938_vm2, %v15747_v38, -inf }
 0x2fd   : > { %13954 = vpow2.f32 %v2991_v36  ;;  %2787 = vmax.xlane.f32.xlu0 %v2786_v7  ;;  %v20889_v36 = vld [vmem:[#allocation70_spill] sm:$0xff]  ;;  %v2640_v7 = vmul.f32 0.35355338, %v1974_v16 }
 0x2fe   : > { %v2925_v1 = vsub.f32 %v20889_v36, %v2743_v40  ;;  %v2637_v40 = vmul.f32 0.35355338, %v1896_v47 }
 0x2ff   : > { %13180 = vmatmul.msk.f32.vlgmr.msrb.gmra.mxu3 %vm938_vm2, %v20888_v26  ;;  %v15759_v16 = vadd.f32 %v2640_v7, %v15505_v51  ;;  %v20897_v7 = vld [vmem:[#allocation52_spill] sm:$0xff] }
 0x300   : > { %13195 = vmatpush.xpose.msk.msrb.mxu3 %vm938_vm2, %v15672_v63  ;;  %v2993_v43 = vmul.f32 1.442695, %v2925_v1  ;;  %v13645_v59 = vunpack.i.l.bf16 %v20897_v7 }
 0x301   : > { %2784 = vmax.xlane.f32.xlu2 %v2783_v3  ;;  %v13636_v3 = vunpack.i.h.bf16 %v15152_v60  ;;  %20892 = vst [vmem:[#allocation37_spill] sm:$0xff] %v15759_v16  ;;  %v1480_v60 = vpop.f32.mrf.mxu2  ;;  %v2846_v1 = vsel %vm938_vm2, %v15759_v16, -inf }
 0x302   : > { %v1506_v55 = vpop.f32.mrf.mxu3  ;;  %13956 = vpow2.f32 %v2993_v43 }
 0x303   : > { %v15743_v23 = vpop.eup %13954  ;;  %v2622_v26 = vmul.f32 0.35355338, %v1506_v55  ;;  %v20893_v55 = vld [vmem:[#allocation64_spill] sm:$0xff] }
 0x304   : > { %v3122_v63 = vsel %vm938_vm2, %v15743_v23, 0.0 }
 0x305   : > { %3123 = vadd.xlane.f32.xlu1 %v3122_v63  ;;  %3120 = vadd.xlane.f32.xlu0 %v3119_v14  ;;  %v15762_v36 = vadd.f32 %v2622_v26, %v20893_v55  ;;  %v20894_v14 = vld [vmem:[#allocation65_spill] sm:$0xff] }
 0x306   : > { %v2926_v63 = vsub.f32 %v20894_v14, %v2746_v31  ;;  %v2621_v31 = vmul.f32 0.35355338, %v1480_v60 }
 0x307   : > { %13188 = vmatmul.msk.f32.vlgmr.msra.gmra.mxu3 %vm938_vm2, %v20891_v29  ;;  %v2792_v47 = vsel %vm938_vm2, %v15762_v36, -inf }
 0x308   : > { %3506 = vmatpush.msra.mxu3 %v13636_v3  ;;  %v20895_v3 = vld [vmem:[#allocation67_spill] sm:$0xff]  ;;  %v2995_v26 = vmul.f32 1.442695, %v2926_v63  ;;  %v15777_v14 = vpop.eup %13956 }
 0x309   : > { %2835 = vmax.xlane.f32.xlu2 %v2834_v41  ;;  %v15770_v29 = vadd.f32 %v2637_v40, %v20895_v3  ;;  %v2749_v41 = vpop.xlane.xlu2 %2748  ;;  %v20899_v40 = vld [vmem:[#allocation75_spill] sm:$0xff]  ;;  %v15783_v63 = vadd.f32 %v2621_v31, %v20895_v3  ;;  %v20901_v3 = vld [vmem:[#allocation73_spill] sm:$0xff] }
 0x30a   : > { %13958 = vpow2.f32 %v2995_v26  ;;  %v2927_v50 = vsub.f32 %v20899_v40, %v2749_v41  ;;  %v1558_v26 = vpop.f32.mrf.mxu3 }
 0x30b   : > { %20896 = vst [vmem:[#allocation69_spill] sm:$0xff] %v15770_v29  ;;  %v2837_v43 = vsel %vm938_vm2, %v15770_v29, -inf  ;;  %v2789_v62 = vsel %vm938_vm2, %v15783_v63, -inf }
 0x30c   : > { %v2997_v60 = vmul.f32 1.442695, %v2927_v50 }
 0x30d   : > { %2847 = vmax.xlane.f32.xlu0 %v2846_v1  ;;  %2793 = vmax.xlane.f32.xlu1 %v2792_v47  ;;  %v3125_v1 = vsel %vm938_vm2, %v15777_v14, 0.0  ;;  %v1532_v47 = vpop.f32.mrf.mxu2 }
 0x30e   : > { %13960 = vpow2.f32 %v2997_v60 }
 0x30f   : > { %13196 = vmatmul.msk.f32.vlgmr.msrb.gmra.mxu3 %vm938_vm2, %v20898_v19  ;;  %v2623_v19 = vmul.f32 0.35355338, %v1532_v47 }
 0x310   : > { %3610 = vmatpush.msrb.mxu3 %v13645_v59  ;;  %v2755_v59 = vpop.xlane.xlu0 %2754  ;;  %v15787_v30 = vpop.eup %13958 }
 0x311   : > { %2838 = vmax.xlane.f32.xlu2 %v2837_v43  ;;  %v20900_v43 = vld [vmem:[#allocation74_spill] sm:$0xff]  ;;  %v3128_v40 = vsel %vm938_vm2, %v15787_v30, 0.0  ;;  %v15793_v31 = vadd.f32 %v2623_v19, %v20901_v3 }
 0x312   : > { %v2929_v41 = vsub.f32 %v20900_v43, %v2755_v59  ;;  %v2752_v59 = vpop.xlane.xlu2 %2751  ;;  %v1610_v60 = vpop.f32.mrf.mxu3 }
 0x313   : > { %v2795_v47 = vsel %vm938_vm2, %v15793_v31, -inf  ;;  %v2928_v32 = vsub.f32 %v20903_v46, %v2752_v59  ;;  %v2626_v16 = vmul.f32 0.35355338, %v1610_v60 }
 0x314   : > { %v3001_v50 = vmul.f32 1.442695, %v2929_v41  ;;  %v15797_v8 = vpop.eup %13960 }
 0x315   : > { %3126 = vadd.xlane.f32.xlu1 %v3125_v1  ;;  %v2624_v1 = vmul.f32 0.35355338, %v1558_v26  ;;  %v3131_v43 = vsel %vm938_vm2, %v15797_v8, 0.0  ;;  %v20902_v26 = vld [vmem:[#allocation72_spill] sm:$0xff] }
 0x316   : > { %13962 = vpow2.f32 %v3001_v50 }
 0x317   : > { %v15802_v19 = vadd.f32 %v2624_v1, %v15505_v51  ;;  %v2999_v1 = vmul.f32 1.442695, %v2928_v32 }
 0x319   : > { %2790 = vmax.xlane.f32.xlu2 %v2789_v62  ;;  %v2798_v44 = vsel %vm938_vm2, %v15802_v19, -inf  ;;  %13964 = vpow2.f32 %v2999_v1 }
 0x31c   : > { %v15812_v42 = vpop.eup %13962 }
 0x31d   : > { %3129 = vadd.xlane.f32.xlu1 %v3128_v40  ;;  %v2000_v40 = vpop.f32.mrf.mxu0  ;;  %v3137_v59 = vsel %vm938_vm2, %v15812_v42, 0.0 }
 0x321   : > { %2796 = vmax.xlane.f32.xlu2 %v2795_v47  ;;  %v2641_v47 = vmul.f32 0.35355338, %v2000_v40  ;;  %v2761_v40 = vpop.xlane.xlu2 %2760 }
 0x322   : > { %v1584_v62 = vpop.f32.mrf.mxu2 }
 0x323   : > { %v2625_v20 = vmul.f32 0.35355338, %v1584_v62  ;;  %v2758_v62 = vpop.xlane.xlu1 %2757  ;;  %v15821_v60 = vadd.f32 %v2641_v47, %v20902_v26 }
 0x325   : > { %3132 = vadd.xlane.f32.xlu1 %v3131_v43  ;;  %v15805_v41 = vadd.f32 %v2625_v20, %v20902_v26  ;;  %v2930_v20 = vsub.f32 %v15528_v12, %v2758_v62  ;;  %v20904_v43 = vld [vmem:[#allocation78_spill] sm:$0xff]  ;;  %20905 = vst [vmem:[#allocation68_spill] sm:$0xff] %v15821_v60  ;;  %v2104_v61 = vpop.f32.mrf.mxu0  ;;  %v15832_v62 = vpop.eup %13964 }
 0x326   : > { %v15816_v38 = vadd.f32 %v2626_v16, %v20904_v43  ;;  %v3134_v15 = vsel %vm938_vm2, %v15832_v62, 0.0 }
 0x327   : > { %v2801_v50 = vsel %vm938_vm2, %v15805_v41, -inf }
 0x328   : > { %2802 = vmax.xlane.f32.xlu0 %v2801_v50  ;;  %v3003_v50 = vmul.f32 1.442695, %v2930_v20  ;;  %v2804_v32 = vsel %vm938_vm2, %v15816_v38, -inf }
 0x329   : > { %2799 = vmax.xlane.f32.xlu2 %v2798_v44  ;;  %v2849_v44 = vsel %vm938_vm2, %v15821_v60, -inf }
 0x32a   : > { %v1636_v51 = vpop.f32.mrf.mxu2  ;;  %13966 = vpow2.f32 %v3003_v50 }
 0x32b   : > { %v2627_v46 = vmul.f32 0.35355338, %v1636_v51  ;;  %v2078_v51 = vpop.f32.mrf.mxu1  ;;  %v2767_v20 = vpop.xlane.xlu1 %2766 }
 0x32c   : > { %v2644_v50 = vmul.f32 0.35355338, %v2078_v51 }
 0x32d   : > { %3138 = vadd.xlane.f32.xlu1 %v3137_v59  ;;  %v15828_v12 = vadd.f32 %v2627_v46, %v15531_v18  ;;  %v2645_v59 = vmul.f32 0.35355338, %v2104_v61 }
 0x32e   : > { %v15851_v51 = vadd.f32 %v2644_v50, %v15557_v11 }
 0x32f   : > { %v2807_v47 = vsel %vm938_vm2, %v15828_v12, -inf  ;;  %v15846_v61 = vadd.f32 %v2645_v59, %v15541_v49 }
 0x330   : > { %2805 = vmax.xlane.f32.xlu0 %v2804_v32  ;;  %v2931_v32 = vsub.f32 %v15538_v2, %v2761_v40  ;;  %v15842_v53 = vpop.eup %13966  ;;  %20908 = vst [vmem:[#allocation70_spill] sm:$0xff] %v15851_v51  ;;  %v2858_v59 = vsel %vm938_vm2, %v15851_v51, -inf }
 0x331   : > { %2850 = vmax.xlane.f32.xlu2 %v2849_v44  ;;  %v2764_v44 = vpop.xlane.xlu2 %2763  ;;  %20907 = vst [vmem:[#allocation66_spill] sm:$0xff] %v15846_v61  ;;  %v3140_v40 = vsel %vm938_vm2, %v15842_v53, 0.0 }
 0x332   : > { %v1662_v16 = vpop.f32.mrf.mxu3  ;;  %v2932_v60 = vsub.f32 %v15567_v27, %v2764_v44 }
 0x333   : > { %v2628_v26 = vmul.f32 0.35355338, %v1662_v16  ;;  %v1688_v16 = vpop.f32.mrf.mxu2  ;;  %v2770_v27 = vpop.xlane.xlu1 %2769 }
 0x334   : > { %v3007_v29 = vmul.f32 1.442695, %v2932_v60 }
 0x335   : > { %2808 = vmax.xlane.f32.xlu1 %v2807_v47  ;;  %v15835_v1 = vadd.f32 %v2628_v26, %v15557_v11  ;;  %v2208_v47 = vpop.f32.mrf.mxu0  ;;  %v3005_v26 = vmul.f32 1.442695, %v2931_v32 }
 0x336   : > { %v2649_v2 = vmul.f32 0.35355338, %v2208_v47 }
 0x337   : > { %20906 = vst [vmem:[#allocation71_spill] sm:$0xff] %v15835_v1  ;;  %v2810_v46 = vsel %vm938_vm2, %v15835_v1, -inf  ;;  %13968 = vpow2.f32 %v3005_v26  ;;  %v2629_v1 = vmul.f32 0.35355338, %v1688_v16 }
 0x338   : > { %2811 = vmax.xlane.f32.xlu0 %v2810_v46  ;;  %v2933_v46 = vsub.f32 %v15548_v45, %v2767_v20  ;;  %v15859_v32 = vadd.f32 %v2649_v2, %v15404_v52  ;;  %13970 = vpow2.f32 %v3007_v29  ;;  %v2934_v52 = vsub.f32 %v15582_v22, %v2770_v27 }
 0x339   : > { %3135 = vadd.xlane.f32.xlu2 %v3134_v15  ;;  %v2861_v15 = vsel %vm938_vm2, %v15846_v61, -inf  ;;  %v15862_v45 = vadd.f32 %v2629_v1, %v15541_v49 }
 0x33a   : > { %20909 = vst [vmem:[#allocation64_spill] sm:$0xff] %v15859_v32  ;;  %v3009_v44 = vmul.f32 1.442695, %v2933_v46  ;;  %v2873_v20 = vsel %vm938_vm2, %v15859_v32, -inf  ;;  %v3011_v2 = vmul.f32 1.442695, %v2934_v52 }
 0x33b   : > { %v1740_v11 = vpop.f32.mrf.mxu2  ;;  %v2813_v26 = vsel %vm938_vm2, %v15862_v45, -inf  ;;  %v2773_v29 = vpop.xlane.xlu1 %2772 }
 0x33c   : > { %13972 = vpow2.f32 %v3009_v44 }
 0x33d   : > { %3141 = vadd.xlane.f32.xlu1 %v3140_v40  ;;  %v15866_v50 = vpop.eup %13968  ;;  %v2935_v40 = vsub.f32 %v15632_v4, %v2773_v29  ;;  %13974 = vpow2.f32 %v3011_v2 }
 0x33e   : > { %v3143_v49 = vsel %vm938_vm2, %v15866_v50, 0.0  ;;  %v15875_v1 = vpop.eup %13970 }
 0x33f   : > { %v3146_v27 = vsel %vm938_vm2, %v15875_v1, 0.0  ;;  %v3013_v44 = vmul.f32 1.442695, %v2935_v40 }
 0x340   : > { %2862 = vmax.xlane.f32.xlu0 %v2861_v15  ;;  %v2631_v15 = vmul.f32 0.35355338, %v1740_v11 }
 0x341   : > { %2859 = vmax.xlane.f32.xlu2 %v2858_v59  ;;  %13976 = vpow2.f32 %v3013_v44 }
 0x342   : > { %v1714_v60 = vpop.f32.mrf.mxu3  ;;  %v15883_v59 = vpop.eup %13972  ;;  %v15890_v11 = vadd.f32 %v2631_v15, %v15629_v10 }
 0x343   : > { %v2630_v47 = vmul.f32 0.35355338, %v1714_v60  ;;  %v1818_v22 = vpop.f32.mrf.mxu2  ;;  %v3149_v4 = vsel %vm938_vm2, %v15883_v59, 0.0  ;;  %v15898_v2 = vpop.eup %13974 }
 0x344   : > { %v2634_v60 = vmul.f32 0.35355338, %v1818_v22  ;;  %v3152_v44 = vsel %vm938_vm2, %v15898_v2, 0.0 }
 0x345   : > { %2874 = vmax.xlane.f32.xlu1 %v2873_v20  ;;  %v15868_v16 = vpop.xlane.xlu0 %2826  ;;  %v15879_v46 = vadd.f32 %v2630_v47, %v15574_v25 }
 0x346   : > { %v15894_v29 = vadd.f32 %v2634_v60, %v15414_v13 }
 0x347   : > { %v2816_v20 = vsel %vm938_vm2, %v15879_v46, -inf }
 0x348   : > { %2814 = vmax.xlane.f32.xlu0 %v2813_v26  ;;  %v2828_v22 = vsel %vm938_vm2, %v15894_v29, -inf }
 0x349   : > { %3144 = vadd.xlane.f32.xlu2 %v3143_v49  ;;  %v2819_v49 = vsel %vm938_vm2, %v15890_v11, -inf }
 0x34b   : > { %v1922_v15 = vpop.f32.mrf.mxu2 }
 0x34d   : > { %3147 = vadd.xlane.f32.xlu1 %v3146_v27  ;;  %v2779_v52 = vpop.xlane.xlu0 %2778 }
 0x34e   : > { %v2937_v26 = vsub.f32 %v15660_v33, %v2779_v52  ;;  %v15904_v33 = vpop.eup %13976 }
 0x350   : > { %2817 = vmax.xlane.f32.xlu0 %v2816_v20  ;;  %v3017_v40 = vmul.f32 1.442695, %v2937_v26  ;;  %v3155_v20 = vsel %vm938_vm2, %v15904_v33, 0.0 }
 0x351   : > { %3150 = vadd.xlane.f32.xlu2 %v3149_v4 }
 0x352   : > { %v1766_v47 = vpop.f32.mrf.mxu3  ;;  %13978 = vpow2.f32 %v3017_v40 }
 0x353   : > { %v2632_v27 = vmul.f32 0.35355338, %v1766_v47 }
 0x355   : > { %2820 = vmax.xlane.f32.xlu1 %v2819_v49  ;;  %v15909_v52 = vadd.f32 %v2632_v27, %v15682_v37 }
 0x357   : > { %20910 = vst [vmem:[#allocation65_spill] sm:$0xff] %v15909_v52  ;;  %v2822_v49 = vsel %vm938_vm2, %v15909_v52, -inf }
 0x358   : > { %2829 = vmax.xlane.f32.xlu0 %v2828_v22  ;;  %v15914_v22 = vpop.eup %13978 }
 0x359   : > { %3153 = vadd.xlane.f32.xlu2 %v3152_v44  ;;  %v2026_v44 = vpop.f32.mrf.mxu2  ;;  %v3161_v27 = vsel %vm938_vm2, %v15914_v22, 0.0 }
 0x35a   : > { %v1844_v13 = vpop.f32.mrf.mxu3 }
 0x35b   : > { %v2635_v26 = vmul.f32 0.35355338, %v1844_v13 }
 0x35c   : > { %v2776_v60 = vpop.xlane.xlu2 %2775 }
 0x35d   : > { %v2936_v4 = vsub.f32 %v15685_v28, %v2776_v60  ;;  %3156 = vadd.xlane.f32.xlu1 %v3155_v20  ;;  %v15919_v61 = vadd.f32 %v2635_v26, %v20887_v21  ;;  %v2638_v60 = vmul.f32 0.35355338, %v1922_v15 }
 0x35f   : > { %v3015_v47 = vmul.f32 1.442695, %v2936_v4  ;;  %v2831_v20 = vsel %vm938_vm2, %v15919_v61, -inf  ;;  %v15934_v15 = vadd.f32 %v2638_v60, %v20893_v55 }
 0x361   : > { %2823 = vmax.xlane.f32.xlu2 %v2822_v49  ;;  %13980 = vpow2.f32 %v3015_v47 }
 0x362   : > { %v1948_v40 = vpop.f32.mrf.mxu3 }
 0x363   : > { %v2639_v51 = vmul.f32 0.35355338, %v1948_v40  ;;  %v2642_v40 = vmul.f32 0.35355338, %v2026_v44  ;;  %v2840_v44 = vsel %vm938_vm2, %v15934_v15, -inf }
 0x364   : > { %v2782_v32 = vpop.xlane.xlu2 %2781 }
 0x365   : > { %3162 = vadd.xlane.f32.xlu1 %v3161_v27  ;;  %v15922_v28 = vadd.f32 %v2639_v51, %v20901_v3  ;;  %v2938_v21 = vsub.f32 %v15699_v24, %v2782_v32  ;;  %v2130_v3 = vpop.f32.mrf.mxu2  ;;  %v15944_v52 = vadd.f32 %v2642_v40, %v20904_v43  ;;  %v13641_v40 = vunpack.i.h.bf16 %v20881_v6 }
 0x367   : > { %v2843_v13 = vsel %vm938_vm2, %v15922_v28, -inf  ;;  %v15928_v47 = vpop.eup %13980  ;;  %v2852_v43 = vsel %vm938_vm2, %v15944_v52, -inf }
 0x368   : > { %2844 = vmax.xlane.f32.xlu0 %v2843_v13  ;;  %v3118_v4 = vpop.xlane.xlu0 %3117  ;;  %v3158_v27 = vsel %vm938_vm2, %v15928_v47, 0.0 }
 0x369   : > { %2832 = vmax.xlane.f32.xlu2 %v2831_v20  ;;  %13982 = vrcp.f32 %v3118_v4  ;;  %v2646_v20 = vmul.f32 0.35355338, %v2130_v3  ;;  %v3019_v4 = vmul.f32 1.442695, %v2938_v21 }
 0x36a   : > { %v2052_v49 = vpop.f32.mrf.mxu3 }
 0x36b   : > { %v2643_v26 = vmul.f32 0.35355338, %v2052_v49  ;;  %v15950_v21 = vadd.f32 %v2646_v20, %v15574_v25 }
 0x36c   : > { %v3115_v51 = vpop.xlane.xlu2 %3114 }
 0x36d   : > { %13984 = vrcp.f32 %v3115_v51  ;;  %3159 = vadd.xlane.f32.xlu1 %v3158_v27  ;;  %v15937_v13 = vadd.f32 %v2643_v26, %v15531_v18  ;;  %v13646_v18 = vunpack.i.h.bf16 %v20897_v7  ;;  %v2864_v25 = vsel %vm938_vm2, %v15950_v21, -inf }
 0x36e   : > { %13986 = vpow2.f32 %v3019_v4 }
 0x36f   : > { %v2855_v24 = vsel %vm938_vm2, %v15937_v13, -inf  ;;  %v13983_v32 = vpop.eup %13982 }
 0x370   : > { %2856 = vmax.xlane.f32.xlu0 %v2855_v24  ;;  %v2788_v49 = vpop.xlane.xlu0 %2787  ;;  %v3370_v55 = vmul.f32 %v13983_v32, %v15710_v48  ;;  %v2234_v24 = vpop.f32.mrf.mxu2 }
 0x371   : > { %2841 = vmax.xlane.f32.xlu2 %v2840_v44  ;;  %v2940_v44 = vsub.f32 %v15727_v0, %v2788_v49  ;;  %v20912_v49 = vld [vmem:[#allocation51_spill] sm:$0xff] }
 0x372   : > { %13200 = vmatmul.msk.f32.vlgmr.msra.gmra.mxu2 %vm938_vm2, %v3370_v55  ;;  %v2156_v7 = vpop.f32.mrf.mxu3 }
 0x373   : > { %v13985_v60 = vpop.eup %13984  ;;  %3688 = vmatpush.msra.mxu2 %v13646_v18  ;;  %v2647_v6 = vmul.f32 0.35355338, %v2156_v7  ;;  %v2650_v18 = vmul.f32 0.35355338, %v2234_v24  ;;  %v20911_v7 = vld [vmem:[#allocation62_spill] sm:$0xff] }
 0x374   : > { %v3369_v26 = vmul.f32 %v13985_v60, %v15715_v54  ;;  %v2785_v3 = vpop.xlane.xlu2 %2784  ;;  %v15960_v20 = vpop.eup %13986 }
 0x375   : > { %v2939_v48 = vsub.f32 %v15733_v39, %v2785_v3  ;;  %2853 = vmax.xlane.f32.xlu1 %v2852_v43  ;;  %v3164_v39 = vsel %vm938_vm2, %v15960_v20, 0.0  ;;  %v15974_v3 = vadd.f32 %v2647_v6, %v15629_v10  ;;  %v14622_v6 = vld [vmem:[%s15399_s22 + $0x8] sm:$0xff] }
 0x376   : > { %13199 = vmatmul.msk.f32.vlgmr.msrb.gmra.mxu0 %vm938_vm2, %v3369_v26 }
 0x377   : > { %v3021_v51 = vmul.f32 1.442695, %v2939_v48  ;;  %3662 = vmatpush.msrb.mxu0 %v13641_v40 }
 0x378   : > { %v3124_v27 = vpop.xlane.xlu1 %3123  ;;  %2865 = vmax.xlane.f32.xlu0 %v2864_v25  ;;  %v3121_v54 = vpop.xlane.xlu0 %3120  ;;  %v13655_v25 = vunpack.i.l.bf16 %v20912_v49 }
 0x379   : > { %13988 = vpow2.f32 %v3021_v51  ;;  %v13670_v51 = vunpack.i.l.bf16 %v20911_v7 }
 0x37a   : > { %13990 = vrcp.f32 %v3124_v27  ;;  %v2260_v48 = vpop.f32.mrf.mxu3  ;;  %v3023_v27 = vmul.f32 1.442695, %v2940_v44  ;;  %v14623_v44 = vld [vmem:[%s15399_s22 + $0x10] sm:$0xff] }
 0x37b   : > { %13992 = vrcp.f32 %v3121_v54  ;;  %v2651_v54 = vmul.f32 0.35355338, %v2260_v48 }
 0x37c   : > { %v15962_v4 = vpop.xlane.xlu2 %2835  ;;  %13994 = vpow2.f32 %v3023_v27 }
 0x37d   : > { %3165 = vadd.xlane.f32.xlu1 %v3164_v39  ;;  %v15987_v39 = vadd.f32 %v14622_v6, %v2650_v18 }
 0x37f   : > { %v15966_v32 = vpop.eup %13988 }
 0x380   : > { %v13991_v55 = vpop.eup %13990  ;;  %v15969_v60 = vpop.xlane.xlu1 %2793  ;;  %v3167_v26 = vsel %vm938_vm2, %v15966_v32, 0.0 }
 0x381   : > { %v13993_v43 = vpop.eup %13992  ;;  %v3372_v40 = vmul.f32 %v13991_v55, %v15743_v23  ;;  %3168 = vadd.xlane.f32.xlu2 %v3167_v26  ;;  %v2867_v23 = vsel %vm938_vm2, %v15974_v3, -inf  ;;  %v15992_v55 = vadd.f32 %v14623_v44, %v2651_v54  ;;  %v13651_v54 = vunpack.i.h.bf16 %v15235_v35 }
 0x382   : > { %v3371_v0 = vmul.f32 %v13993_v43, %v15741_v56  ;;  %v2876_v56 = vsel %vm938_vm2, %v15987_v39, -inf  ;;  %v13656_v35 = vunpack.i.h.bf16 %v20912_v49 }
 0x383   : > { %13202 = vmatmul.msk.f32.vlgmr.msrb.gmra.mxu1 %vm938_vm2, %v3372_v40  ;;  %v2879_v43 = vsel %vm938_vm2, %v15992_v55, -inf  ;;  %v15996_v40 = vpop.eup %13994 }
 0x384   : > { %13201 = vmatmul.msk.f32.vlgmr.msra.gmra.mxu3 %vm938_vm2, %v3371_v0  ;;  %3740 = vmatpush.msrb.mxu1 %v13670_v51  ;;  %v15982_v10 = vpop.xlane.xlu2 %2838 }
 0x385   : > { %3714 = vmatpush.msra.mxu3 %v13655_v25  ;;  %2868 = vmax.xlane.f32.xlu1 %v2867_v23  ;;  %v3170_v25 = vsel %vm938_vm2, %v15996_v40, 0.0  ;;  %v16003_v23 = vpop.xlane.xlu0 %2847 }
 0x388   : > { %v3127_v24 = vpop.xlane.xlu1 %3126 }
 0x389   : > { %2877 = vmax.xlane.f32.xlu2 %v2876_v56  ;;  %13996 = vrcp.f32 %v3127_v24 }
 0x38c   : > { %v2791_v26 = vpop.xlane.xlu2 %2790 }
 0x38d   : > { %v2941_v18 = vsub.f32 %v15783_v63, %v2791_v26  ;;  %2880 = vmax.xlane.f32.xlu1 %v2879_v43 }
 0x38f   : > { %v3025_v48 = vmul.f32 1.442695, %v2941_v18  ;;  %v13997_v51 = vpop.eup %13996 }
 0x390   : > { %v3130_v0 = vpop.xlane.xlu1 %3129  ;;  %v3373_v27 = vmul.f32 %v13997_v51, %v15777_v14  ;;  %v2182_v51 = vpop.f32.mrf.mxu1 }
 0x391   : > { %13998 = vpow2.f32 %v3025_v48  ;;  %3171 = vadd.xlane.f32.xlu2 %v3170_v25 }
 0x392   : > { %14000 = vrcp.f32 %v3130_v0  ;;  %13203 = vmatmul.msk.f32.vlgmr.msra.gmra.mxu0 %vm938_vm2, %v3373_v27 }
 0x393   : > { %3766 = vmatpush.msra.mxu0 %v13651_v54 }
 0x394   : > { %v2797_v63 = vpop.xlane.xlu2 %2796 }
 0x395   : > { %v2943_v6 = vsub.f32 %v15793_v31, %v2797_v63 }
 0x397   : > { %v16007_v56 = vpop.eup %13998  ;;  %v3029_v24 = vmul.f32 1.442695, %v2943_v6 }
 0x398   : > { %v14001_v44 = vpop.eup %14000  ;;  %v3173_v14 = vsel %vm938_vm2, %v16007_v56, 0.0  ;;  %v3133_v26 = vpop.xlane.xlu1 %3132 }
 0x399   : > { %v3374_v43 = vmul.f32 %v14001_v44, %v15787_v30  ;;  %14002 = vpow2.f32 %v3029_v24  ;;  %3174 = vadd.xlane.f32.xlu0 %v3173_v14  ;;  %v2648_v30 = vmul.f32 0.35355338, %v2182_v51  ;;  %v20913_v24 = vld [vmem:[#allocation60_spill] sm:$0xff] }
 0x39a   : > { %14004 = vrcp.f32 %v3133_v26  ;;  %v13665_v44 = vunpack.i.l.bf16 %v20913_v24 }
 0x39b   : > { %13204 = vmatmul.msk.f32.vlgmr.msrb.gmra.mxu2 %vm938_vm2, %v3374_v43  ;;  %v2803_v18 = vpop.xlane.xlu0 %2802 }
 0x39c   : > { %3792 = vmatpush.msrb.mxu2 %v13656_v35  ;;  %v2800_v31 = vpop.xlane.xlu2 %2799  ;;  %v2945_v48 = vsub.f32 %v15805_v41, %v2803_v18  ;;  %v20914_v35 = vld [vmem:[#allocation27_spill] sm:$0xff] }
 0x39d   : > { %v2944_v27 = vsub.f32 %v15802_v19, %v2800_v31  ;;  %v16026_v19 = vadd.f32 %v2648_v30, %v15682_v37  ;;  %v13677_v18 = vpack.i.bf16 %v15126_v57, %v20914_v35  ;;  %v13661_v57 = vunpack.i.h.bf16 %v15377_v5 }
 0x39e   : > { %v3033_v0 = vmul.f32 1.442695, %v2945_v48 }
 0x39f   : > { %v16015_v25 = vpop.eup %14002  ;;  %v3031_v41 = vmul.f32 1.442695, %v2944_v27  ;;  %v2870_v51 = vsel %vm938_vm2, %v16026_v19, -inf }
 0x3a0   : > { %v14005_v54 = vpop.eup %14004  ;;  %14006 = vpow2.f32 %v3033_v0  ;;  %v3179_v49 = vsel %vm938_vm2, %v16015_v25, 0.0  ;;  %v3139_v63 = vpop.xlane.xlu1 %3138 }
 0x3a1   : > { %v3375_v6 = vmul.f32 %v14005_v54, %v15797_v8  ;;  %3180 = vadd.xlane.f32.xlu0 %v3179_v49  ;;  %14008 = vrcp.f32 %v3139_v63  ;;  %v2953_v8 = vsub.f32 %v15651_v17, %v15868_v16 }
 0x3a2   : > { %14010 = vpow2.f32 %v3031_v41 }
 0x3a3   : > { %13205 = vmatmul.msk.f32.vlgmr.msrb.gmra.mxu3 %vm938_vm2, %v3375_v6  ;;  %v2806_v14 = vpop.xlane.xlu0 %2805  ;;  %v3049_v27 = vmul.f32 1.442695, %v2953_v8 }
 0x3a4   : > { %3818 = vmatpush.msrb.mxu3 %v13665_v44  ;;  %v16023_v26 = vpop.xlane.xlu2 %2850  ;;  %v2286_v44 = vpop.f32.mrf.mxu1 }
 0x3a5   : > { %v2652_v8 = vmul.f32 0.35355338, %v2286_v44 }
 0x3a6   : > { %v16028_v43 = vpop.eup %14006 }
 0x3a7   : > { %v3185_v31 = vsel %vm938_vm2, %v16028_v43, 0.0  ;;  %v14009_v48 = vpop.eup %14008 }
 0x3a8   : > { %v16038_v0 = vpop.xlane.xlu1 %2808  ;;  %3186 = vadd.xlane.f32.xlu1 %v3185_v31  ;;  %v3377_v37 = vmul.f32 %v14009_v48, %v15812_v42  ;;  %v16046_v54 = vpop.eup %14010 }
 0x3a9   : > { %2871 = vmax.xlane.f32.xlu0 %v2870_v51  ;;  %13678 = vrot.lane.b32.xlu2 %v13677_v18, %s20698_s17  ;;  %v3182_v30 = vsel %vm938_vm2, %v16046_v54, 0.0  ;;  %v2946_v18 = vsub.f32 %v15816_v38, %v2806_v14  ;;  %v14624_v38 = vld [vmem:[%s15399_s22 + $0x18] sm:$0xff] }
 0x3aa   : > { %13207 = vmatmul.msk.f32.vlgmr.msrb.gmra.mxu0 %vm938_vm2, %v3377_v37  ;;  %v13666_v37 = vunpack.i.h.bf16 %v20913_v24  ;;  %v16067_v14 = vadd.f32 %v14624_v38, %v2652_v8  ;;  %v2942_v24 = vsub.f32 %v15762_v36, %v15969_v60  ;;  %v20918_v60 = vld [vmem:[#allocation21_spill] sm:$0xff] }
 0x3ab   : > { %v16044_v17 = vpop.xlane.xlu0 %2811  ;;  %3870 = vmatpush.msrb.mxu0 %v13661_v57  ;;  %v3035_v57 = vmul.f32 1.442695, %v2946_v18 }
 0x3ac   : > { %v3136_v16 = vpop.xlane.xlu2 %3135  ;;  %v2882_v44 = vsel %vm938_vm2, %v16067_v14, -inf  ;;  %v3027_v18 = vmul.f32 1.442695, %v2942_v24  ;;  %v13671_v24 = vunpack.i.h.bf16 %v20911_v7 }
 0x3ad   : > { %14012 = vrcp.f32 %v3136_v16  ;;  %v20915_v16 = vld [vmem:[#allocation30_spill] sm:$0xff] }
 0x3ae   : > { %14014 = vpow2.f32 %v3049_v27 }
 0x3b0   : > { %v3142_v42 = vpop.xlane.xlu1 %3141 }
 0x3b1   : > { %3183 = vadd.xlane.f32.xlu0 %v3182_v30  ;;  %14016 = vrcp.f32 %v3142_v42 }
 0x3b3   : > { %v16050_v49 = vpop.xlane.xlu0 %2862  ;;  %v14013_v5 = vpop.eup %14012 }
 0x3b4   : > { %v16052_v63 = vpop.xlane.xlu2 %2859  ;;  %v16054_v6 = vpop.eup %14014  ;;  %v3376_v41 = vmul.f32 %v14013_v5, %v15832_v62 }
 0x3b5   : > { %v3209_v51 = vsel %vm938_vm2, %v16054_v6, 0.0 }
 0x3b6   : > { %13206 = vmatmul.msk.f32.vlgmr.msra.gmra.mxu1 %vm938_vm2, %v3376_v41 }
 0x3b7   : > { %v14017_v35 = vpop.eup %14016 }
 0x3b8   : > { %v3378_v31 = vmul.f32 %v14017_v35, %v15842_v53  ;;  %v16060_v48 = vpop.xlane.xlu1 %2874  ;;  %v20916_v53 = vld [vmem:[#allocation34_spill] sm:$0xff] }
 0x3b9   : > { %3210 = vadd.xlane.f32.xlu0 %v3209_v51  ;;  %v13682_v30 = vpack.i.bf16 %v20916_v53, %v20915_v16 }
 0x3ba   : > { %13208 = vmatmul.msk.f32.vlgmr.msra.gmra.mxu2 %vm938_vm2, %v3378_v31 }
 0x3bb   : > { %3896 = vmatpush.msra.mxu2 %v13666_v37  ;;  %v2815_v27 = vpop.xlane.xlu0 %2814 }
 0x3bc   : > { %v3145_v62 = vpop.xlane.xlu2 %3144  ;;  %v2949_v42 = vsub.f32 %v15862_v45, %v2815_v27  ;;  %v20917_v45 = vld [vmem:[#allocation76_spill] sm:$0xff] }
 0x3bd   : > { %14018 = vrcp.f32 %v3145_v62  ;;  %v13675_v37 = vunpack.i.l.bf16 %v20917_v45  ;;  %v2947_v62 = vsub.f32 %v15828_v12, %v16038_v0 }
 0x3be   : > { %14020 = vpow2.f32 %v3035_v57  ;;  %v3041_v41 = vmul.f32 1.442695, %v2949_v42  ;;  %v13687_v57 = vpack.i.bf16 %v15245_v34, %v20918_v60 }
 0x3bf   : > { %v3037_v42 = vmul.f32 1.442695, %v2947_v62 }
 0x3c0   : > { %v3148_v5 = vpop.xlane.xlu1 %3147 }
 0x3c1   : > { %14022 = vrcp.f32 %v3148_v5  ;;  %2883 = vmax.xlane.f32.xlu0 %v2882_v44  ;;  %13683 = vrot.lane.b32.xlu1 %v13682_v30, %s20698_s17  ;;  %v20919_v44 = vld [vmem:[#allocation71_spill] sm:$0xff] }
 0x3c3   : > { %v14019_v35 = vpop.eup %14018  ;;  %v16092_v53 = vpop.xlane.xlu0 %2817 }
 0x3c4   : > { %v3151_v8 = vpop.xlane.xlu2 %3150  ;;  %v16077_v31 = vpop.eup %14020  ;;  %v3379_v51 = vmul.f32 %v14019_v35, %v15866_v50 }
 0x3c5   : > { %14024 = vrcp.f32 %v3151_v8  ;;  %v3188_v50 = vsel %vm938_vm2, %v16077_v31, 0.0 }
 0x3c6   : > { %14026 = vpow2.f32 %v3041_v41  ;;  %13209 = vmatmul.msk.f32.vlgmr.msra.gmra.mxu3 %vm938_vm2, %v3379_v51  ;;  %v2948_v41 = vsub.f32 %v20919_v44, %v16044_v17 }
 0x3c7   : > { %v14023_v36 = vpop.eup %14022  ;;  %14028 = vpow2.f32 %v3027_v18  ;;  %3922 = vmatpush.msra.mxu3 %v13675_v37 }
 0x3c8   : > { %v3380_v27 = vmul.f32 %v14023_v36, %v15875_v1  ;;  %v2821_v38 = vpop.xlane.xlu1 %2820  ;;  %v13676_v36 = vunpack.i.h.bf16 %v20917_v45 }
 0x3c9   : > { %v2951_v16 = vsub.f32 %v15890_v11, %v2821_v38  ;;  %3189 = vadd.xlane.f32.xlu0 %v3188_v50  ;;  %13688 = vrot.lane.b32.xlu1 %v13687_v57, %s20698_s17  ;;  %v13692_v11 = vpack.i.bf16 %v15257_v58, %v15289_v9  ;;  %v3039_v58 = vmul.f32 1.442695, %v2948_v41  ;;  %v20920_v41 = vld [vmem:[#allocation33_spill] sm:$0xff] }
 0x3ca   : > { %13210 = vmatmul.msk.f32.vlgmr.msrb.gmra.mxu1 %vm938_vm2, %v3380_v27 }
 0x3cb   : > { %v14025_v34 = vpop.eup %14024  ;;  %v3045_v30 = vmul.f32 1.442695, %v2951_v16  ;;  %v2830_v51 = vpop.xlane.xlu0 %2829 }
 0x3cc   : > { %v3381_v12 = vmul.f32 %v14025_v34, %v15883_v59  ;;  %v3154_v1 = vpop.xlane.xlu2 %3153  ;;  %v16095_v0 = vpop.eup %14026  ;;  %v2954_v57 = vsub.f32 %v15894_v29, %v2830_v51 }
 0x3cd   : > { %v16098_v5 = vpop.eup %14028  ;;  %14030 = vrcp.f32 %v3154_v1  ;;  %v3197_v35 = vsel %vm938_vm2, %v16095_v0, 0.0 }
 0x3ce   : > { %13211 = vmatmul.msk.f32.vlgmr.msra.gmra.mxu0 %vm938_vm2, %v3381_v12  ;;  %14032 = vpow2.f32 %v3045_v30  ;;  %v3176_v7 = vsel %vm938_vm2, %v16098_v5, 0.0  ;;  %v3051_v45 = vmul.f32 1.442695, %v2954_v57 }
 0x3cf   : > { %3974 = vmatpush.msra.mxu0 %v13671_v24  ;;  %14034 = vpow2.f32 %v3037_v42 }
 0x3d0   : > { %v3157_v59 = vpop.xlane.xlu1 %3156 }
 0x3d1   : > { %14036 = vrcp.f32 %v3157_v59  ;;  %3198 = vadd.xlane.f32.xlu0 %v3197_v35  ;;  %13693 = vrot.lane.b32.xlu1 %v13692_v11, %s20698_s17  ;;  %v2950_v11 = vsub.f32 %v15879_v46, %v16092_v53  ;;  %v20921_v59 = vld [vmem:[#allocation20_spill] sm:$0xff] }
 0x3d2   : > { %3177 = vadd.xlane.f32.xlu2 %v3176_v7  ;;  %14038 = vpow2.f32 %v3039_v58  ;;  %v13697_v35 = vpack.i.bf16 %v20921_v59, %v20920_v41  ;;  %v14625_v41 = vld [vmem:[%s15399_s22 + $0x28] sm:$0xff] }
 0x3d3   : > { %v14031_v18 = vpop.eup %14030  ;;  %v3043_v7 = vmul.f32 1.442695, %v2950_v11 }
 0x3d4   : > { %v16110_v9 = vpop.xlane.xlu2 %2823  ;;  %v16112_v8 = vpop.eup %14032  ;;  %v3382_v17 = vmul.f32 %v14031_v18, %v15898_v2 }
 0x3d5   : > { %v16115_v37 = vpop.eup %14034  ;;  %v3203_v38 = vsel %vm938_vm2, %v16112_v8, 0.0 }
 0x3d6   : > { %13212 = vmatmul.msk.f32.vlgmr.msrb.gmra.mxu2 %vm938_vm2, %v3382_v17  ;;  %v3191_v2 = vsel %vm938_vm2, %v16115_v37, 0.0 }
 0x3d7   : > { %v14037_v60 = vpop.eup %14036  ;;  %4000 = vmatpush.msrb.mxu2 %v13676_v36 }
 0x3d8   : > { %v3383_v62 = vmul.f32 %v14037_v60, %v15904_v33  ;;  %v3163_v27 = vpop.xlane.xlu1 %3162  ;;  %v16126_v16 = vpop.eup %14038 }
 0x3d9   : > { %3204 = vadd.xlane.f32.xlu0 %v3203_v38  ;;  %14040 = vrcp.f32 %v3163_v27  ;;  %v3194_v42 = vsel %vm938_vm2, %v16126_v16, 0.0 }
 0x3da   : > { %3192 = vadd.xlane.f32.xlu2 %v3191_v2  ;;  %13213 = vmatmul.msk.f32.vlgmr.msrb.gmra.mxu3 %vm938_vm2, %v3383_v62  ;;  %14042 = vpow2.f32 %v3051_v45 }
 0x3db   : > { %v2845_v46 = vpop.xlane.xlu0 %2844 }
 0x3dc   : > { %v2833_v50 = vpop.xlane.xlu2 %2832 }
 0x3dd   : > { %v2955_v33 = vsub.f32 %v15919_v61, %v2833_v50 }
 0x3df   : > { %v14041_v29 = vpop.eup %14040  ;;  %v3053_v12 = vmul.f32 1.442695, %v2955_v33 }
 0x3e0   : > { %v3160_v34 = vpop.xlane.xlu1 %3159  ;;  %v3385_v30 = vmul.f32 %v14041_v29, %v15914_v22  ;;  %v16133_v24 = vpop.eup %14042 }
 0x3e1   : > { %14044 = vpow2.f32 %v3053_v12  ;;  %v3212_v22 = vsel %vm938_vm2, %v16133_v24, 0.0 }
 0x3e2   : > { %3195 = vadd.xlane.f32.xlu2 %v3194_v42  ;;  %13215 = vmatmul.msk.f32.vlgmr.msrb.gmra.mxu0 %vm938_vm2, %v3385_v30  ;;  %14046 = vpow2.f32 %v3043_v7  ;;  %v2338_v30 = vpop.f32.mrf.mxu2  ;;  %v20923_v42 = vld [vmem:[#allocation68_spill] sm:$0xff] }
 0x3e3   : > { %v2961_v12 = vsub.f32 %v20923_v42, %v16023_v26 }
 0x3e4   : > { %v2842_v1 = vpop.xlane.xlu2 %2841 }
 0x3e5   : > { %v2958_v44 = vsub.f32 %v15934_v15, %v2842_v1  ;;  %v20922_v15 = vld [vmem:[#allocation69_spill] sm:$0xff]  ;;  %v2654_v1 = vmul.f32 0.35355338, %v2338_v30 }
 0x3e6   : > { %v2957_v17 = vsub.f32 %v20922_v15, %v15982_v10  ;;  %v16158_v10 = vpop.xlane.xlu0 %2856 }
 0x3e7   : > { %v3059_v18 = vmul.f32 1.442695, %v2958_v44  ;;  %v16145_v58 = vpop.eup %14044  ;;  %v16178_v59 = vadd.f32 %v14625_v41, %v2654_v1 }
 0x3e8   : > { %v16138_v61 = vpop.xlane.xlu1 %2853  ;;  %v3215_v51 = vsel %vm938_vm2, %v16145_v58, 0.0  ;;  %v16151_v60 = vpop.eup %14046  ;;  %v3057_v57 = vmul.f32 1.442695, %v2957_v17  ;;  %v2959_v17 = vsub.f32 %v15922_v28, %v2845_v46  ;;  %v14626_v46 = vld [vmem:[%s15399_s22 + $0x20] sm:$0xff] }
 0x3e9   : > { %14048 = vpow2.f32 %v3059_v18  ;;  %v3200_v45 = vsel %vm938_vm2, %v16151_v60, 0.0  ;;  %v2888_v26 = vsel %vm938_vm2, %v16178_v59, -inf  ;;  %v2312_v18 = vpop.f32.mrf.mxu0  ;;  %v2962_v1 = vsub.f32 %v15944_v52, %v16138_v61 }
 0x3ea   : > { %3213 = vadd.xlane.f32.xlu2 %v3212_v22 }
 0x3ed   : > { %13698 = vrot.lane.b32.xlu0 %v13697_v35, %s20698_s17 }
 0x3ee   : > { %v16173_v44 = vpop.xlane.xlu0 %2865 }
 0x3ef   : > { %v16153_v62 = vpop.eup %14048 }
 0x3f0   : > { %v3166_v53 = vpop.xlane.xlu1 %3165  ;;  %v3224_v2 = vsel %vm938_vm2, %v16153_v62, 0.0 }
 0x3f1   : > { %14050 = vrcp.f32 %v3166_v53 }
 0x3f2   : > { %3216 = vadd.xlane.f32.xlu2 %v3215_v51 }
 0x3f4   : > { %v3169_v36 = vpop.xlane.xlu2 %3168 }
 0x3f5   : > { %14052 = vrcp.f32 %v3169_v36 }
 0x3f6   : > { %14054 = vpow2.f32 %v3057_v57 }
 0x3f7   : > { %v14051_v27 = vpop.eup %14050  ;;  %14056 = vrcp.f32 %v3160_v34  ;;  %v2653_v34 = vmul.f32 0.35355338, %v2312_v18 }
 0x3f8   : > { %v3386_v38 = vmul.f32 %v14051_v27, %v15960_v20  ;;  %v16180_v35 = vpop.xlane.xlu1 %2868 }
 0x3fa   : > { %3225 = vadd.xlane.f32.xlu2 %v3224_v2  ;;  %13216 = vmatmul.msk.f32.vlgmr.msra.gmra.mxu2 %vm938_vm2, %v3386_v38  ;;  %v20924_v38 = vld [vmem:[#allocation50_spill] sm:$0xff] }
 0x3fb   : > { %v14053_v50 = vpop.eup %14052  ;;  %3201 = vadd.xlane.f32.xlu1 %v3200_v45  ;;  %v20925_v2 = vld [vmem:[#allocation22_spill] sm:$0xff] }
 0x3fc   : > { %v3387_v29 = vmul.f32 %v14053_v50, %v15966_v32  ;;  %v16164_v33 = vpop.xlane.xlu2 %2877  ;;  %v16167_v20 = vpop.eup %14054  ;;  %v3065_v32 = vmul.f32 1.442695, %v2961_v12  ;;  %v13702_v45 = vpack.i.bf16 %v20925_v2, %v20924_v38  ;;  %v3061_v50 = vmul.f32 1.442695, %v2959_v17  ;;  %v20926_v17 = vld [vmem:[#allocation65_spill] sm:$0xff]  ;;  %v20929_v2 = vld [vmem:[#allocation63_spill] sm:$0xff] }
 0x3fd   : > { %v3221_v11 = vsel %vm938_vm2, %v16167_v20, 0.0  ;;  %v14057_v7 = vpop.eup %14056 }
 0x3fe   : > { %13217 = vmatmul.msk.f32.vlgmr.msra.gmra.mxu3 %vm938_vm2, %v3387_v29  ;;  %14058 = vpow2.f32 %v3065_v32  ;;  %v3384_v57 = vmul.f32 %v14057_v7, %v15928_v47  ;;  %v16195_v29 = vadd.f32 %v14626_v46, %v2653_v34  ;;  %v3067_v32 = vmul.f32 1.442695, %v2962_v1  ;;  %v20928_v34 = vld [vmem:[#allocation29_spill] sm:$0xff] }
 0x400   : > { %v16197_v47 = vpop.xlane.xlu1 %2880 }
 0x403   : > { %3222 = vadd.xlane.f32.xlu1 %v3221_v11  ;;  %v2885_v11 = vsel %vm938_vm2, %v16195_v29, -inf }
 0x404   : > { %v16175_v22 = vpop.xlane.xlu2 %3171  ;;  %v16186_v27 = vpop.eup %14058 }
 0x405   : > { %v3233_v28 = vsel %vm938_vm2, %v16186_v27, 0.0 }
 0x40b   : > { %2889 = vmax.xlane.f32.xlu1 %v2888_v26 }
 0x40c   : > { %v13679_v53 = vpop.permute.xlu2 %13678  ;;  %v3175_v15 = vpop.xlane.xlu0 %3174 }
 0x40d   : > { %v13681_v51 = vunpack.i.h.bf16 %v13679_v53  ;;  %v13680_v36 = vunpack.i.l.bf16 %v13679_v53  ;;  %14060 = vrcp.f32 %v3175_v15 }
 0x40e   : > { %14062 = vpow2.f32 %v3061_v50 }
 0x40f   : > { %3844 = vmatpush.msra.mxu1 %v13680_v36  ;;  %4078 = vmatpush.msrb.mxu0 %v13681_v51  ;;  %v2952_v51 = vsub.f32 %v20926_v17, %v16110_v9  ;;  %v20927_v36 = vld [vmem:[#allocation55_spill] sm:$0xff] }
 0x410   : > { %13214 = vmatmul.msk.f32.vlgmr.msra.gmra.mxu1 %vm938_vm2, %v3384_v57  ;;  %v13707_v57 = vpack.i.bf16 %v20928_v34, %v20927_v36 }
 0x412   : > { %13703 = vrot.lane.b32.xlu2 %v13702_v45, %s20698_s17  ;;  %v2956_v45 = vsub.f32 %v20929_v2, %v15962_v4  ;;  %v20931_v4 = vld [vmem:[#allocation26_spill] sm:$0xff] }
 0x413   : > { %v14061_v30 = vpop.eup %14060  ;;  %3234 = vadd.xlane.f32.xlu1 %v3233_v28 }
 0x414   : > { %v3389_v42 = vmul.f32 %v14061_v30, %v16007_v56  ;;  %v3181_v12 = vpop.xlane.xlu0 %3180  ;;  %v16205_v41 = vpop.eup %14062 }
 0x415   : > { %v3227_v56 = vsel %vm938_vm2, %v16205_v41, 0.0 }
 0x416   : > { %13219 = vmatmul.msk.f32.vlgmr.msra.gmra.mxu0 %vm938_vm2, %v3389_v42  ;;  %v3055_v42 = vmul.f32 1.442695, %v2956_v45 }
 0x417   : > { %2886 = vmax.xlane.f32.xlu0 %v2885_v11  ;;  %v20930_v11 = vld [vmem:[#allocation24_spill] sm:$0xff] }
 0x41b   : > { %v3187_v26 = vpop.xlane.xlu1 %3186 }
 0x41c   : > { %14064 = vrcp.f32 %v3187_v26  ;;  %v16207_v7 = vpop.xlane.xlu0 %2871  ;;  %v20932_v26 = vld [vmem:[#allocation66_spill] sm:$0xff] }
 0x41d   : > { %14066 = vpow2.f32 %v3067_v32  ;;  %v13712_v32 = vpack.i.bf16 %v20931_v4, %v20930_v11 }
 0x41e   : > { %14068 = vrcp.f32 %v3181_v12 }
 0x41f   : > { %3228 = vadd.xlane.f32.xlu0 %v3227_v56 }
 0x422   : > { %v14065_v18 = vpop.eup %14064 }
 0x423   : > { %v16211_v52 = vpop.eup %14066  ;;  %v3393_v61 = vmul.f32 %v14065_v18, %v16028_v43  ;;  %v3047_v43 = vmul.f32 1.442695, %v2952_v51 }
 0x424   : > { %v16214_v53 = vpop.xlane.xlu0 %3183  ;;  %v3236_v15 = vsel %vm938_vm2, %v16211_v52, 0.0  ;;  %v14069_v50 = vpop.eup %14068 }
 0x425   : > { %13223 = vmatmul.msk.f32.vlgmr.msrb.gmra.mxu0 %vm938_vm2, %v3393_v61  ;;  %14070 = vpow2.f32 %v3047_v43  ;;  %v3391_v12 = vmul.f32 %v14069_v50, %v16015_v25 }
 0x426   : > { %14072 = vrcp.f32 %v16175_v22  ;;  %v2965_v22 = vsub.f32 %v20932_v26, %v16050_v49 }
 0x427   : > { %3237 = vadd.xlane.f32.xlu0 %v3236_v15  ;;  %14074 = vpow2.f32 %v3055_v42  ;;  %v2966_v42 = vsub.f32 %v15950_v21, %v16173_v44  ;;  %v2963_v21 = vsub.f32 %v15937_v13, %v16158_v10  ;;  %v20933_v44 = vld [vmem:[#allocation37_spill] sm:$0xff] }
 0x428   : > { %v3073_v51 = vmul.f32 1.442695, %v2965_v22 }
 0x429   : > { %v3075_v22 = vmul.f32 1.442695, %v2966_v42 }
 0x42a   : > { %14076 = vpow2.f32 %v3073_v51 }
 0x42b   : > { %v16232_v1 = vpop.eup %14070 }
 0x42c   : > { %v16223_v38 = vpop.xlane.xlu0 %3210  ;;  %13708 = vrot.lane.b32.xlu1 %v13707_v57, %s20698_s17  ;;  %v14073_v56 = vpop.eup %14072  ;;  %v3206_v18 = vsel %vm938_vm2, %v16232_v1, 0.0 }
 0x42d   : > { %v3388_v36 = vmul.f32 %v14073_v56, %v15996_v40  ;;  %v16243_v34 = vpop.eup %14074  ;;  %v2364_v40 = vpop.f32.mrf.mxu3  ;;  %v14627_v56 = vld [vmem:[%s15399_s22 + $0x30] sm:$0xff] }
 0x42e   : > { %v3218_v49 = vsel %vm938_vm2, %v16243_v34, 0.0  ;;  %v2655_v11 = vmul.f32 0.35355338, %v2364_v40 }
 0x430   : > { %v16248_v50 = vpop.eup %14076 }
 0x433   : > { %v13684_v28 = vpop.permute.xlu1 %13683 }
 0x434   : > { %v13686_v46 = vunpack.i.h.bf16 %v13684_v28  ;;  %v13685_v30 = vunpack.i.l.bf16 %v13684_v28  ;;  %v16229_v9 = vpop.xlane.xlu0 %2883  ;;  %v3245_v28 = vsel %vm938_vm2, %v16248_v50, 0.0 }
 0x436   : > { %4026 = vmatpush.msrb.mxu3 %v13685_v30  ;;  %4104 = vmatpush.msra.mxu2 %v13686_v46 }
 0x437   : > { %13221 = vmatmul.msk.f32.vlgmr.msrb.gmra.mxu3 %vm938_vm2, %v3391_v12 }
 0x43b   : > { %3207 = vadd.xlane.f32.xlu2 %v3206_v18  ;;  %13713 = vrot.lane.b32.xlu0 %v13712_v32, %s20698_s17  ;;  %v13689_v25 = vpop.permute.xlu1 %13688  ;;  %v16259_v18 = vadd.f32 %v14627_v56, %v2655_v11 }
 0x43c   : > { %v13691_v61 = vunpack.i.h.bf16 %v13689_v25  ;;  %v13690_v15 = vunpack.i.l.bf16 %v13689_v25  ;;  %v3190_v17 = vpop.xlane.xlu0 %3189 }
 0x43d   : > { %v2891_v51 = vsel %vm938_vm2, %v16259_v18, -inf }
 0x43e   : > { %3948 = vmatpush.msrb.mxu1 %v13690_v15  ;;  %4182 = vmatpush.msra.mxu0 %v13691_v61 }
 0x43f   : > { %13218 = vmatmul.msk.f32.vlgmr.msrb.gmra.mxu1 %vm938_vm2, %v3388_v36  ;;  %v3069_v36 = vmul.f32 1.442695, %v2963_v21 }
 0x443   : > { %3219 = vadd.xlane.f32.xlu2 %v3218_v49  ;;  %v13694_v57 = vpop.permute.xlu1 %13693 }
 0x444   : > { %v13695_v43 = vunpack.i.l.bf16 %v13694_v57  ;;  %v3199_v2 = vpop.xlane.xlu0 %3198  ;;  %v13696_v26 = vunpack.i.h.bf16 %v13694_v57 }
 0x445   : > { %14078 = vrcp.f32 %v3199_v2  ;;  %v3178_v45 = vpop.xlane.xlu2 %3177 }
 0x446   : > { %14080 = vrcp.f32 %v3178_v45  ;;  %4130 = vmatpush.msra.mxu3 %v13695_v43 }
 0x447   : > { %14082 = vrcp.f32 %v3190_v17 }
 0x44b   : > { %v14079_v46 = vpop.eup %14078  ;;  %3246 = vadd.xlane.f32.xlu2 %v3245_v28 }
 0x44c   : > { %v14081_v30 = vpop.eup %14080  ;;  %v3397_v12 = vmul.f32 %v14079_v46, %v16095_v0  ;;  %v3205_v49 = vpop.xlane.xlu0 %3204  ;;  %v20935_v46 = vld [vmem:[#allocation32_spill] sm:$0xff] }
 0x44d   : > { %v3390_v4 = vmul.f32 %v14081_v30, %v16098_v5  ;;  %v3193_v32 = vpop.xlane.xlu2 %3192  ;;  %v14083_v25 = vpop.eup %14082  ;;  %v2960_v5 = vsub.f32 %v20933_v44, %v16003_v23 }
 0x44e   : > { %14084 = vrcp.f32 %v3193_v32  ;;  %13227 = vmatmul.msk.f32.vlgmr.msra.gmra.mxu0 %vm938_vm2, %v3397_v12  ;;  %v3394_v61 = vmul.f32 %v14083_v25, %v16077_v31  ;;  %v2967_v31 = vsub.f32 %v15974_v3, %v16180_v35  ;;  %v2970_v12 = vsub.f32 %v15987_v39, %v16164_v33  ;;  %v20936_v39 = vld [vmem:[#allocation43_spill] sm:$0xff]  ;;  %v20937_v33 = vld [vmem:[#allocation40_spill] sm:$0xff] }
 0x44f   : > { %13220 = vmatmul.msk.f32.vlgmr.msrb.gmra.mxu2 %vm938_vm2, %v3390_v4  ;;  %14086 = vpow2.f32 %v3075_v22  ;;  %v3063_v13 = vmul.f32 1.442695, %v2960_v5 }
 0x450   : > { %4208 = vmatpush.msrb.mxu2 %v13696_v26  ;;  %14088 = vrcp.f32 %v16214_v53  ;;  %v3077_v2 = vmul.f32 1.442695, %v2967_v31  ;;  %v3083_v4 = vmul.f32 1.442695, %v2970_v12  ;;  %v13722_v26 = vpack.i.bf16 %v20937_v33, %v20936_v39  ;;  %v20938_v31 = vld [vmem:[#allocation28_spill] sm:$0xff]  ;;  %v20946_v33 = vld [vmem:[#allocation53_spill] sm:$0xff] }
 0x451   : > { %14090 = vrcp.f32 %v16223_v38  ;;  %v20934_v38 = vld [vmem:[#allocation56_spill] sm:$0xff] }
 0x452   : > { %14092 = vpow2.f32 %v3069_v36  ;;  %v13717_v30 = vpack.i.bf16 %v20935_v46, %v20934_v38  ;;  %v20943_v38 = vld [vmem:[#allocation70_spill] sm:$0xff] }
 0x453   : > { %14094 = vpow2.f32 %v3063_v13  ;;  %v2964_v46 = vsub.f32 %v20943_v38, %v16052_v63 }
 0x454   : > { %v14085_v0 = vpop.eup %14084  ;;  %14096 = vpow2.f32 %v3077_v2 }
 0x455   : > { %v3395_v15 = vmul.f32 %v14085_v0, %v16115_v37  ;;  %v16267_v17 = vpop.xlane.xlu2 %3195  ;;  %v16275_v23 = vpop.eup %14086  ;;  %14098 = vpow2.f32 %v3083_v4 }
 0x456   : > { %2892 = vmax.xlane.f32.xlu1 %v2891_v51  ;;  %v3248_v10 = vsel %vm938_vm2, %v16275_v23, 0.0  ;;  %v14089_v57 = vpop.eup %14088  ;;  %14100 = vrcp.f32 %v3205_v49 }
 0x457   : > { %13224 = vmatmul.msk.f32.vlgmr.msra.gmra.mxu2 %vm938_vm2, %v3394_v61  ;;  %13225 = vmatmul.msk.f32.vlgmr.msra.gmra.mxu3 %vm938_vm2, %v3395_v15  ;;  %v14091_v43 = vpop.eup %14090  ;;  %v3392_v42 = vmul.f32 %v14089_v57, %v16046_v54 }
 0x458   : > { %v16281_v28 = vpop.eup %14092  ;;  %v3401_v35 = vmul.f32 %v14091_v43, %v16054_v6 }
 0x459   : > { %v16286_v3 = vpop.eup %14094  ;;  %v3239_v11 = vsel %vm938_vm2, %v16281_v28, 0.0 }
 0x45a   : > { %v3230_v6 = vsel %vm938_vm2, %v16286_v3, 0.0  ;;  %v16300_v32 = vpop.eup %14096 }
 0x45b   : > { %v3251_v22 = vsel %vm938_vm2, %v16300_v32, 0.0  ;;  %v16309_v21 = vpop.eup %14098 }
 0x45c   : > { %v14101_v0 = vpop.eup %14100  ;;  %v3260_v44 = vsel %vm938_vm2, %v16309_v21, 0.0 }
 0x45d   : > { %v3214_v37 = vpop.xlane.xlu2 %3213  ;;  %v3399_v13 = vmul.f32 %v14101_v0, %v16112_v8 }
 0x45e   : > { %3249 = vadd.xlane.f32.xlu1 %v3248_v10  ;;  %v20939_v10 = vld [vmem:[#allocation45_spill] sm:$0xff] }
 0x45f   : > { %v13699_v45 = vpop.permute.xlu0 %13698  ;;  %v13727_v57 = vpack.i.bf16 %v20939_v10, %v20938_v31  ;;  %v2968_v10 = vsub.f32 %v16026_v19, %v16207_v7  ;;  %v14629_v19 = vld [vmem:[%s15399_s22 + $0x40] sm:$0xff] }
 0x460   : > { %v13701_v40 = vunpack.i.h.bf16 %v13699_v45  ;;  %v13700_v53 = vunpack.i.l.bf16 %v13699_v45  ;;  %v20941_v45 = vld [vmem:[#allocation36_spill] sm:$0xff] }
 0x462   : > { %4052 = vmatpush.msra.mxu1 %v13700_v53  ;;  %4286 = vmatpush.msrb.mxu0 %v13701_v40  ;;  %v20942_v40 = vld [vmem:[#allocation57_spill] sm:$0xff] }
 0x463   : > { %13718 = vrot.lane.b32.xlu2 %v13717_v30, %s20698_s17  ;;  %13222 = vmatmul.msk.f32.vlgmr.msra.gmra.mxu1 %vm938_vm2, %v3392_v42  ;;  %v13732_v53 = vpack.i.bf16 %v20942_v40, %v20941_v45  ;;  %v20944_v42 = vld [vmem:[#allocation35_spill] sm:$0xff] }
 0x464   : > { %13231 = vmatmul.msk.f32.vlgmr.msrb.gmra.mxu0 %vm938_vm2, %v3401_v35  ;;  %v20945_v35 = vld [vmem:[#allocation18_spill] sm:$0xff] }
 0x465   : > { %v16296_v54 = vpop.xlane.xlu2 %3216  ;;  %3240 = vadd.xlane.f32.xlu0 %v3239_v11  ;;  %v13737_v12 = vpack.i.bf16 %v20945_v35, %v20944_v42 }
 0x466   : > { %3231 = vadd.xlane.f32.xlu1 %v3230_v6  ;;  %v2971_v6 = vsub.f32 %v15992_v55, %v16197_v47 }
 0x468   : > { %v3085_v4 = vmul.f32 1.442695, %v2971_v6 }
 0x46b   : > { %13723 = vrot.lane.b32.xlu2 %v13722_v26, %s20698_s17  ;;  %v20947_v26 = vld [vmem:[#allocation23_spill] sm:$0xff] }
 0x46d   : > { %v16307_v56 = vpop.xlane.xlu2 %3225  ;;  %3252 = vadd.xlane.f32.xlu0 %v3251_v22  ;;  %v13742_v22 = vpack.i.bf16 %v20947_v26, %v20946_v33  ;;  %v2442_v26 = vpop.f32.mrf.mxu2 }
 0x46e   : > { %v3202_v25 = vpop.xlane.xlu1 %3201 }
 0x46f   : > { %14102 = vrcp.f32 %v3202_v25 }
 0x470   : > { %14104 = vrcp.f32 %v3214_v37 }
 0x475   : > { %v14103_v5 = vpop.eup %14102  ;;  %v13704_v61 = vpop.permute.xlu2 %13703  ;;  %3261 = vadd.xlane.f32.xlu0 %v3260_v44 }
 0x476   : > { %v3398_v15 = vmul.f32 %v14103_v5, %v16151_v60  ;;  %v13706_v51 = vunpack.i.h.bf16 %v13704_v61  ;;  %v13705_v36 = vunpack.i.l.bf16 %v13704_v61  ;;  %v14105_v49 = vpop.eup %14104  ;;  %v20940_v60 = vld [vmem:[#allocation64_spill] sm:$0xff]  ;;  %v3223_v8 = vpop.xlane.xlu1 %3222 }
 0x477   : > { %v3402_v43 = vmul.f32 %v14105_v49, %v16133_v24  ;;  %v2969_v37 = vsub.f32 %v20940_v60, %v16060_v48  ;;  %v3071_v24 = vmul.f32 1.442695, %v2964_v46  ;;  %v14628_v60 = vld [vmem:[%s15399_s22 + $0x38] sm:$0xff] }
 0x478   : > { %4234 = vmatpush.msrb.mxu3 %v13705_v36  ;;  %4312 = vmatpush.msra.mxu2 %v13706_v51  ;;  %v2416_v36 = vpop.f32.mrf.mxu0 }
 0x479   : > { %13228 = vmatmul.msk.f32.vlgmr.msrb.gmra.mxu2 %vm938_vm2, %v3398_v15  ;;  %13229 = vmatmul.msk.f32.vlgmr.msrb.gmra.mxu3 %vm938_vm2, %v3399_v13  ;;  %v3081_v2 = vmul.f32 1.442695, %v2969_v37 }
 0x47b   : > { %14106 = vpow2.f32 %v3081_v2  ;;  %v2972_v2 = vsub.f32 %v16067_v14, %v16229_v9 }
 0x47c   : > { %14108 = vpow2.f32 %v3071_v24  ;;  %v14630_v24 = vld [vmem:[%s15399_s22 + $0x50] sm:$0xff] }
 0x47d   : > { %14110 = vrcp.f32 %v16267_v17  ;;  %v2390_v17 = vpop.f32.mrf.mxu1  ;;  %v3087_v46 = vmul.f32 1.442695, %v2972_v2 }
 0x47e   : > { %v16329_v30 = vpop.xlane.xlu1 %2889  ;;  %14112 = vrcp.f32 %v3223_v8  ;;  %v2656_v13 = vmul.f32 0.35355338, %v2390_v17  ;;  %v3079_v8 = vmul.f32 1.442695, %v2968_v10 }
 0x47f   : > { %13728 = vrot.lane.b32.xlu1 %v13727_v57, %s20698_s17  ;;  %14114 = vpow2.f32 %v3085_v4  ;;  %v2657_v57 = vmul.f32 0.35355338, %v2416_v36 }
 0x480   : > { %v16365_v37 = vadd.f32 %v14628_v60, %v2656_v13  ;;  %14116 = vrcp.f32 %v16296_v54  ;;  %v20948_v60 = vld [vmem:[#allocation48_spill] sm:$0xff] }
 0x481   : > { %13232 = vmatmul.msk.f32.vlgmr.msra.gmra.mxu2 %vm938_vm2, %v3402_v43  ;;  %v16333_v11 = vpop.eup %14106  ;;  %14118 = vrcp.f32 %v16307_v56  ;;  %v16370_v7 = vadd.f32 %v14629_v19, %v2657_v57 }
 0x482   : > { %v3257_v63 = vsel %vm938_vm2, %v16333_v11, 0.0  ;;  %v16347_v25 = vpop.eup %14108  ;;  %v2894_v45 = vsel %vm938_vm2, %v16365_v37, -inf  ;;  %14120 = vpow2.f32 %v3079_v8 }
 0x483   : > { %v3242_v55 = vsel %vm938_vm2, %v16347_v25, 0.0  ;;  %v14111_v47 = vpop.eup %14110  ;;  %v2897_v54 = vsel %vm938_vm2, %v16370_v7, -inf  ;;  %14122 = vpow2.f32 %v3087_v46 }
 0x484   : > { %v14113_v44 = vpop.eup %14112  ;;  %v3396_v49 = vmul.f32 %v14111_v47, %v16126_v16  ;;  %v2658_v47 = vmul.f32 0.35355338, %v2442_v26  ;;  %v14633_v26 = vld [vmem:[%s15399_s22 + $0x68] sm:$0xff] }
 0x485   : > { %v16354_v51 = vpop.eup %14114  ;;  %v3405_v31 = vmul.f32 %v14113_v44, %v16167_v20  ;;  %v2468_v20 = vpop.f32.mrf.mxu3 }
 0x486   : > { %v16343_v39 = vpop.xlane.xlu1 %3234  ;;  %v3263_v43 = vsel %vm938_vm2, %v16354_v51, 0.0  ;;  %v2659_v40 = vmul.f32 0.35355338, %v2468_v20  ;;  %v20949_v20 = vld [vmem:[#allocation19_spill] sm:$0xff] }
 0x487   : > { %14124 = vrcp.f32 %v16343_v39  ;;  %v13747_v8 = vpack.i.bf16 %v20949_v20, %v20948_v60 }
 0x488   : > { %v16379_v42 = vadd.f32 %v14630_v24, %v2659_v40  ;;  %v14632_v40 = vld [vmem:[%s15399_s22 + $0x58] sm:$0xff] }
 0x489   : > { %13733 = vrot.lane.b32.xlu0 %v13732_v53, %s20698_s17  ;;  %v14117_v53 = vpop.eup %14116  ;;  %v20951_v24 = vld [vmem:[#allocation25_spill] sm:$0xff] }
 0x48a   : > { %v16335_v48 = vpop.xlane.xlu0 %2886  ;;  %v14119_v38 = vpop.eup %14118  ;;  %v3403_v9 = vmul.f32 %v14117_v53, %v16145_v58  ;;  %v2903_v4 = vsel %vm938_vm2, %v16379_v42, -inf }
 0x48b   : > { %v3406_v6 = vmul.f32 %v14119_v38, %v16153_v62 }
 0x491   : > { %13738 = vrot.lane.b32.xlu0 %v13737_v12, %s20698_s17 }
 0x492   : > { %v16350_v0 = vpop.xlane.xlu0 %3228 }
 0x494   : > { %3258 = vadd.xlane.f32.xlu2 %v3257_v63  ;;  %v16383_v63 = vpop.eup %14120 }
 0x495   : > { %v3254_v33 = vsel %vm938_vm2, %v16383_v63, 0.0  ;;  %v16391_v58 = vpop.eup %14122 }
 0x499   : > { %13743 = vrot.lane.b32.xlu0 %v13742_v22, %s20698_s17  ;;  %v2974_v22 = vsub.f32 %v16178_v59, %v16329_v30  ;;  %v14125_v59 = vpop.eup %14124 }
 0x49a   : > { %v3238_v16 = vpop.xlane.xlu0 %3237  ;;  %v3409_v10 = vmul.f32 %v14125_v59, %v16186_v27 }
 0x49b   : > { %v3091_v44 = vmul.f32 1.442695, %v2974_v22 }
 0x49c   : > { %3243 = vadd.xlane.f32.xlu2 %v3242_v55  ;;  %v3266_v55 = vsel %vm938_vm2, %v16391_v58, 0.0 }
 0x49e   : > { %v13709_v5 = vpop.permute.xlu1 %13708 }
 0x49f   : > { %v13711_v61 = vunpack.i.h.bf16 %v13709_v5  ;;  %v13710_v15 = vunpack.i.l.bf16 %v13709_v5  ;;  %v14631_v5 = vld [vmem:[%s15399_s22 + $0x48] sm:$0xff] }
 0x4a1   : > { %4156 = vmatpush.msrb.mxu1 %v13710_v15  ;;  %4390 = vmatpush.msra.mxu0 %v13711_v61  ;;  %v16403_v61 = vadd.f32 %v14631_v5, %v2658_v47 }
 0x4a2   : > { %13226 = vmatmul.msk.f32.vlgmr.msrb.gmra.mxu1 %vm938_vm2, %v3396_v49  ;;  %13235 = vmatmul.msk.f32.vlgmr.msra.gmra.mxu0 %vm938_vm2, %v3405_v31  ;;  %v2494_v49 = vpop.f32.mrf.mxu1 }
 0x4a3   : > { %v2900_v15 = vsel %vm938_vm2, %v16403_v61, -inf  ;;  %v2660_v19 = vmul.f32 0.35355338, %v2494_v49 }
 0x4a4   : > { %3264 = vadd.xlane.f32.xlu2 %v3263_v43 }
 0x4a5   : > { %v16421_v53 = vadd.f32 %v14632_v40, %v2660_v19 }
 0x4a9   : > { %2895 = vmax.xlane.f32.xlu1 %v2894_v45 }
 0x4ac   : > { %2898 = vmax.xlane.f32.xlu2 %v2897_v54 }
 0x4ad   : > { %v13714_v56 = vpop.permute.xlu0 %13713 }
 0x4ae   : > { %v13716_v35 = vunpack.i.h.bf16 %v13714_v56  ;;  %v13715_v12 = vunpack.i.l.bf16 %v13714_v56  ;;  %v3208_v14 = vpop.xlane.xlu2 %3207  ;;  %v20950_v56 = vld [vmem:[#allocation58_spill] sm:$0xff] }
 0x4af   : > { %14126 = vrcp.f32 %v3208_v14  ;;  %v20952_v14 = vld [vmem:[#allocation31_spill] sm:$0xff] }
 0x4b0   : > { %4338 = vmatpush.msra.mxu3 %v13715_v12  ;;  %4416 = vmatpush.msrb.mxu2 %v13716_v35  ;;  %14128 = vpow2.f32 %v3091_v44  ;;  %v13752_v35 = vpack.i.bf16 %v20951_v24, %v20950_v56  ;;  %v2906_v12 = vsel %vm938_vm2, %v16421_v53, -inf  ;;  %v2973_v44 = vsub.f32 %v16195_v29, %v16335_v48 }
 0x4b1   : > { %13233 = vmatmul.msk.f32.vlgmr.msra.gmra.mxu3 %vm938_vm2, %v3403_v9  ;;  %13236 = vmatmul.msk.f32.vlgmr.msrb.gmra.mxu2 %vm938_vm2, %v3406_v6  ;;  %14130 = vrcp.f32 %v16350_v0  ;;  %v20953_v9 = vld [vmem:[#allocation38_spill] sm:$0xff] }
 0x4b2   : > { %2904 = vmax.xlane.f32.xlu1 %v2903_v4  ;;  %14132 = vrcp.f32 %v3238_v16  ;;  %v13757_v6 = vpack.i.bf16 %v20953_v9, %v20952_v14 }
 0x4b4   : > { %3255 = vadd.xlane.f32.xlu2 %v3254_v33 }
 0x4b5   : > { %v14127_v30 = vpop.eup %14126 }
 0x4b6   : > { %v16393_v62 = vpop.xlane.xlu2 %3219  ;;  %v16408_v13 = vpop.eup %14128  ;;  %v3400_v57 = vmul.f32 %v14127_v30, %v16232_v1 }
 0x4b7   : > { %v3272_v16 = vsel %vm938_vm2, %v16408_v13, 0.0  ;;  %v14131_v27 = vpop.eup %14130 }
 0x4b8   : > { %v14133_v1 = vpop.eup %14132 }
 0x4b9   : > { %v3410_v46 = vmul.f32 %v14133_v1, %v16211_v52  ;;  %v2546_v52 = vpop.f32.mrf.mxu2 }
 0x4ba   : > { %3267 = vadd.xlane.f32.xlu1 %v3266_v55  ;;  %v2662_v4 = vmul.f32 0.35355338, %v2546_v52 }
 0x4bc   : > { %v16440_v22 = vadd.f32 %v14633_v26, %v2662_v4 }
 0x4be   : > { %v16400_v17 = vpop.xlane.xlu2 %3246  ;;  %v2912_v5 = vsel %vm938_vm2, %v16440_v22, -inf }
 0x4c3   : > { %2901 = vmax.xlane.f32.xlu0 %v2900_v15  ;;  %v3089_v15 = vmul.f32 1.442695, %v2973_v44 }
 0x4c6   : > { %v13719_v36 = vpop.permute.xlu2 %13718 }
 0x4c7   : > { %v13721_v39 = vunpack.i.h.bf16 %v13719_v36  ;;  %v13720_v31 = vunpack.i.l.bf16 %v13719_v36 }
 0x4c9   : > { %4260 = vmatpush.msra.mxu1 %v13720_v31  ;;  %4494 = vmatpush.msrb.mxu0 %v13721_v39  ;;  %v2893_v43 = vpop.xlane.xlu1 %2892 }
 0x4ca   : > { %v2975_v0 = vsub.f32 %v16259_v18, %v2893_v43  ;;  %13230 = vmatmul.msk.f32.vlgmr.msra.gmra.mxu1 %vm938_vm2, %v3400_v57  ;;  %13239 = vmatmul.msk.f32.vlgmr.msrb.gmra.mxu0 %vm938_vm2, %v3409_v10  ;;  %v3407_v18 = vmul.f32 %v14131_v27, %v16205_v41 }
 0x4cb   : > { %3273 = vadd.xlane.f32.xlu0 %v3272_v16 }
 0x4cc   : > { %13748 = vrot.lane.b32.xlu2 %v13747_v8, %s20698_s17  ;;  %v3093_v2 = vmul.f32 1.442695, %v2975_v0  ;;  %v2520_v8 = vpop.f32.mrf.mxu0 }
 0x4cd   : > { %v2661_v0 = vmul.f32 0.35355338, %v2520_v8 }
 0x4ce   : > { %v13724_v45 = vpop.permute.xlu2 %13723  ;;  %14134 = vpow2.f32 %v3093_v2 }
 0x4cf   : > { %v13726_v54 = vunpack.i.h.bf16 %v13724_v45  ;;  %v13725_v38 = vunpack.i.l.bf16 %v13724_v45  ;;  %14136 = vpow2.f32 %v3089_v15  ;;  %v14634_v45 = vld [vmem:[%s15399_s22 + $0x60] sm:$0xff] }
 0x4d0   : > { %14138 = vrcp.f32 %v16393_v62  ;;  %v20954_v62 = vld [vmem:[#allocation44_spill] sm:$0xff]  ;;  %v16464_v40 = vadd.f32 %v14634_v45, %v2661_v0 }
 0x4d1   : > { %4442 = vmatpush.msrb.mxu3 %v13725_v38  ;;  %4520 = vmatpush.msra.mxu2 %v13726_v54  ;;  %v3250_v55 = vpop.xlane.xlu1 %3249  ;;  %14140 = vrcp.f32 %v16400_v17  ;;  %v20955_v17 = vld [vmem:[#allocation46_spill] sm:$0xff] }
 0x4d2   : > { %13237 = vmatmul.msk.f32.vlgmr.msrb.gmra.mxu3 %vm938_vm2, %v3407_v18  ;;  %13240 = vmatmul.msk.f32.vlgmr.msra.gmra.mxu2 %vm938_vm2, %v3410_v46  ;;  %14142 = vrcp.f32 %v3250_v55  ;;  %v13762_v20 = vpack.i.bf16 %v20955_v17, %v20954_v62 }
 0x4d3   : > { %2907 = vmax.xlane.f32.xlu0 %v2906_v12  ;;  %13753 = vrot.lane.b32.xlu1 %v13752_v35, %s20698_s17 }
 0x4d4   : > { %v16432_v41 = vpop.eup %14134 }
 0x4d5   : > { %v3275_v33 = vsel %vm938_vm2, %v16432_v41, 0.0  ;;  %v16448_v36 = vpop.eup %14136 }
 0x4d6   : > { %v14139_v49 = vpop.eup %14138  ;;  %v3269_v60 = vsel %vm938_vm2, %v16448_v36, 0.0 }
 0x4d7   : > { %v14141_v39 = vpop.eup %14140  ;;  %v3404_v29 = vmul.f32 %v14139_v49, %v16243_v34 }
 0x4d8   : > { %v3241_v47 = vpop.xlane.xlu0 %3240  ;;  %v3413_v43 = vmul.f32 %v14141_v39, %v16248_v50  ;;  %v14143_v34 = vpop.eup %14142 }
 0x4d9   : > { %v3232_v59 = vpop.xlane.xlu1 %3231  ;;  %14144 = vrcp.f32 %v3241_v47  ;;  %v3414_v1 = vmul.f32 %v14143_v34, %v16275_v23  ;;  %v2909_v23 = vsel %vm938_vm2, %v16464_v40, -inf }
 0x4da   : > { %14146 = vrcp.f32 %v3232_v59 }
 0x4db   : > { %3276 = vadd.xlane.f32.xlu0 %v3275_v33  ;;  %13758 = vrot.lane.b32.xlu1 %v13757_v6, %s20698_s17 }
 0x4df   : > { %v14145_v50 = vpop.eup %14144 }
 0x4e0   : > { %v3253_v30 = vpop.xlane.xlu0 %3252  ;;  %v3411_v2 = vmul.f32 %v14145_v50, %v16281_v28  ;;  %v14147_v54 = vpop.eup %14146 }
 0x4e1   : > { %14148 = vrcp.f32 %v3253_v30  ;;  %v3408_v28 = vmul.f32 %v14147_v54, %v16286_v3 }
 0x4e3   : > { %2913 = vmax.xlane.f32.xlu0 %v2912_v5 }
 0x4e7   : > { %v14149_v24 = vpop.eup %14148 }
 0x4e8   : > { %v3262_v48 = vpop.xlane.xlu0 %3261  ;;  %v3415_v9 = vmul.f32 %v14149_v24, %v16300_v32 }
 0x4e9   : > { %14150 = vrcp.f32 %v3262_v48 }
 0x4ef   : > { %v14151_v35 = vpop.eup %14150 }
 0x4f0   : > { %v3418_v6 = vmul.f32 %v14151_v35, %v16309_v21 }
 0x4f1   : > { %v13729_v31 = vpop.permute.xlu1 %13728 }
 0x4f2   : > { %v13731_v10 = vunpack.i.h.bf16 %v13729_v31  ;;  %v13730_v57 = vunpack.i.l.bf16 %v13729_v31 }
 0x4f4   : > { %4364 = vmatpush.msrb.mxu1 %v13730_v57  ;;  %4598 = vmatpush.msra.mxu0 %v13731_v10  ;;  %v2598_v10 = vpop.f32.mrf.mxu1  ;;  %v16485_v57 = vpop.f32.mrf.mxu2 }
 0x4f5   : > { %3270 = vadd.xlane.f32.xlu2 %v3269_v60  ;;  %13234 = vmatmul.msk.f32.vlgmr.msrb.gmra.mxu1 %vm938_vm2, %v3404_v29 }
 0x4f6   : > { %13243 = vmatmul.msk.f32.vlgmr.msra.gmra.mxu0 %vm938_vm2, %v3413_v43 }
 0x4f7   : > { %13763 = vrot.lane.b32.xlu0 %v13762_v20, %s20698_s17  ;;  %v2664_v20 = vmul.f32 0.35355338, %v2598_v10 }
 0x4fb   : > { %v13734_v19 = vpop.permute.xlu0 %13733 }
 0x4fc   : > { %v13736_v16 = vunpack.i.h.bf16 %v13734_v19  ;;  %v13735_v27 = vunpack.i.l.bf16 %v13734_v19  ;;  %v14635_v19 = vld [vmem:[%s15399_s22 + $0x70] sm:$0xff] }
 0x4fe   : > { %4546 = vmatpush.msra.mxu3 %v13735_v27  ;;  %4624 = vmatpush.msrb.mxu2 %v13736_v16  ;;  %v14636_v16 = vld [vmem:[%s15399_s22 + $0x78] sm:$0xff] }
 0x4ff   : > { %13241 = vmatmul.msk.f32.vlgmr.msra.gmra.mxu3 %vm938_vm2, %v3411_v2  ;;  %13244 = vmatmul.msk.f32.vlgmr.msrb.gmra.mxu2 %vm938_vm2, %v3414_v1  ;;  %v16501_v27 = vadd.f32 %v14636_v16, %v2664_v20  ;;  %v16549_v20 = vpop.f32.mrf.mxu1 }
 0x501   : > { %v2918_v54 = vsel %vm938_vm2, %v16501_v27, -inf }
 0x503   : > { %v13739_v38 = vpop.permute.xlu0 %13738 }
 0x504   : > { %v13741_v18 = vunpack.i.h.bf16 %v13739_v38  ;;  %v13740_v46 = vunpack.i.l.bf16 %v13739_v38 }
 0x505   : > { %2910 = vmax.xlane.f32.xlu1 %v2909_v23 }
 0x506   : > { %4468 = vmatpush.msra.mxu1 %v13740_v46  ;;  %4702 = vmatpush.msrb.mxu0 %v13741_v18 }
 0x507   : > { %v3259_v56 = vpop.xlane.xlu2 %3258  ;;  %13238 = vmatmul.msk.f32.vlgmr.msra.gmra.mxu1 %vm938_vm2, %v3408_v28 }
 0x508   : > { %14152 = vrcp.f32 %v3259_v56 }
 0x50b   : > { %v13744_v12 = vpop.permute.xlu0 %13743 }
 0x50c   : > { %v13746_v52 = vunpack.i.h.bf16 %v13744_v12  ;;  %v13745_v14 = vunpack.i.l.bf16 %v13744_v12 }
 0x50e   : > { %v14153_v4 = vpop.eup %14152  ;;  %4650 = vmatpush.msrb.mxu3 %v13745_v14  ;;  %4728 = vmatpush.msra.mxu2 %v13746_v52  ;;  %v16520_v14 = vpop.f32.mrf.mxu0 }
 0x50f   : > { %v3417_v3 = vmul.f32 %v14153_v4, %v16333_v11  ;;  %v3244_v33 = vpop.xlane.xlu2 %3243  ;;  %13245 = vmatmul.msk.f32.vlgmr.msrb.gmra.mxu3 %vm938_vm2, %v3415_v9  ;;  %13248 = vmatmul.msk.f32.vlgmr.msra.gmra.mxu2 %vm938_vm2, %v3418_v6 }
 0x511   : > { %13247 = vmatmul.msk.f32.vlgmr.msrb.gmra.mxu0 %vm938_vm2, %v3417_v3 }
 0x517   : > { %v3265_v26 = vpop.xlane.xlu2 %3264 }
 0x51c   : > { %v2896_v55 = vpop.xlane.xlu1 %2895 }
 0x51d   : > { %v2976_v47 = vsub.f32 %v16365_v37, %v2896_v55 }
 0x51f   : > { %v3095_v44 = vmul.f32 1.442695, %v2976_v47  ;;  %v2899_v32 = vpop.xlane.xlu2 %2898 }
 0x520   : > { %v2977_v21 = vsub.f32 %v16370_v7, %v2899_v32  ;;  %v2572_v7 = vpop.f32.mrf.mxu3  ;;  %v20956_v32 = vld [vmem:[#allocation49_spill] sm:$0xff] }
 0x521   : > { %14154 = vpow2.f32 %v3095_v44  ;;  %v2663_v43 = vmul.f32 0.35355338, %v2572_v7  ;;  %v20961_v7 = vld [vmem:[#allocation59_spill] sm:$0xff] }
 0x522   : > { %v3097_v5 = vmul.f32 1.442695, %v2977_v21  ;;  %v20957_v21 = vld [vmem:[#allocation42_spill] sm:$0xff] }
 0x523   : > { %v16498_v0 = vadd.f32 %v14635_v19, %v2663_v43  ;;  %v20962_v43 = vld [vmem:[#allocation61_spill] sm:$0xff] }
 0x524   : > { %14156 = vpow2.f32 %v3097_v5  ;;  %v20958_v5 = vld [vmem:[#allocation39_spill] sm:$0xff] }
 0x525   : > { %v2905_v15 = vpop.xlane.xlu1 %2904  ;;  %14158 = vrcp.f32 %v3244_v33 }
 0x526   : > { %v2979_v11 = vsub.f32 %v16379_v42, %v2905_v15  ;;  %14160 = vrcp.f32 %v3265_v26  ;;  %v20959_v15 = vld [vmem:[#allocation41_spill] sm:$0xff] }
 0x527   : > { %v16479_v59 = vpop.eup %14154  ;;  %v3256_v30 = vpop.xlane.xlu2 %3255 }
 0x528   : > { %v3101_v49 = vmul.f32 1.442695, %v2979_v11  ;;  %v3278_v39 = vsel %vm938_vm2, %v16479_v59, 0.0  ;;  %v13772_v11 = vpack.i.bf16 %v20959_v15, %v20958_v5 }
 0x529   : > { %3279 = vadd.xlane.f32.xlu2 %v3278_v39  ;;  %v20960_v39 = vld [vmem:[#allocation47_spill] sm:$0xff] }
 0x52a   : > { %14162 = vpow2.f32 %v3101_v49  ;;  %v16483_v37 = vpop.eup %14156 }
 0x52b   : > { %v14159_v31 = vpop.eup %14158  ;;  %v3281_v17 = vsel %vm938_vm2, %v16483_v37, 0.0 }
 0x52c   : > { %v14161_v42 = vpop.eup %14160  ;;  %v3412_v34 = vmul.f32 %v14159_v31, %v16347_v25  ;;  %v16503_v25 = vpop.f32.mrf.mxu2  ;;  %v13777_v31 = vpack.i.bf16 %v20961_v7, %v20960_v39 }
 0x52d   : > { %v3419_v50 = vmul.f32 %v14161_v42, %v16354_v51  ;;  %v2915_v51 = vsel %vm938_vm2, %v16498_v0, -inf  ;;  %v3268_v38 = vpop.xlane.xlu1 %3267 }
 0x52f   : > { %v13749_v29 = vpop.permute.xlu2 %13748 }
 0x530   : > { %v16487_v48 = vpop.eup %14162  ;;  %v13751_v60 = vunpack.i.h.bf16 %v13749_v29  ;;  %v13750_v62 = vunpack.i.l.bf16 %v13749_v29 }
 0x531   : > { %v3287_v8 = vsel %vm938_vm2, %v16487_v48, 0.0  ;;  %3282 = vadd.xlane.f32.xlu2 %v3281_v17 }
 0x532   : > { %3288 = vadd.xlane.f32.xlu1 %v3287_v8  ;;  %4572 = vmatpush.msrb.mxu1 %v13750_v62 }
 0x533   : > { %4754 = vmatpush.msra.mxu3 %v13751_v60  ;;  %13242 = vmatmul.msk.f32.vlgmr.msrb.gmra.mxu1 %vm938_vm2, %v3412_v34  ;;  %v20963_v60 = vld [vmem:[#allocation54_spill] sm:$0xff] }
 0x534   : > { %13249 = vmatmul.msk.f32.vlgmr.msra.gmra.mxu3 %vm938_vm2, %v3419_v50  ;;  %v16510_v18 = vpop.f32.mrf.mxu2  ;;  %v13782_v62 = vpack.i.bf16 %v20963_v60, %v20962_v43 }
 0x536   : > { %v2902_v1 = vpop.xlane.xlu0 %2901 }
 0x537   : > { %v2978_v2 = vsub.f32 %v16403_v61, %v2902_v1 }
 0x539   : > { %v3099_v45 = vmul.f32 1.442695, %v2978_v2  ;;  %2916 = vmax.xlane.f32.xlu2 %v2915_v51  ;;  %v16559_v51 = vpop.f32.mrf.mxu1 }
 0x53a   : > { %2919 = vmax.xlane.f32.xlu1 %v2918_v54 }
 0x53b   : > { %14164 = vpow2.f32 %v3099_v45 }
 0x53c   : > { %14166 = vrcp.f32 %v3256_v30  ;;  %v16516_v24 = vpop.f32.mrf.mxu2  ;;  %v16530_v30 = vpop.f32.mrf.mxu0 }
 0x53d   : > { %14168 = vrcp.f32 %v3268_v38 }
 0x53e   : > { %v3274_v61 = vpop.xlane.xlu0 %3273 }
 0x53f   : > { %14170 = vrcp.f32 %v3274_v61 }
 0x541   : > { %v16512_v46 = vpop.eup %14164 }
 0x542   : > { %v3284_v23 = vsel %vm938_vm2, %v16512_v46, 0.0  ;;  %v14167_v28 = vpop.eup %14166 }
 0x543   : > { %3285 = vadd.xlane.f32.xlu0 %v3284_v23  ;;  %v3416_v52 = vmul.f32 %v14167_v28, %v16383_v63  ;;  %v14169_v9 = vpop.eup %14168  ;;  %v13767_v63 = vpack.i.bf16 %v20957_v21, %v20956_v32 }
 0x544   : > { %v3898_v33 = vpop.f32.mrf.mxu2  ;;  %v3420_v47 = vmul.f32 %v14169_v9, %v16391_v58  ;;  %v16540_v10 = vpop.f32.mrf.mxu0 }
 0x545   : > { %v13754_v56 = vpop.permute.xlu1 %13753  ;;  %v14171_v6 = vpop.eup %14170 }
 0x546   : > { %v13756_v35 = vunpack.i.h.bf16 %v13754_v56  ;;  %v13755_v12 = vunpack.i.l.bf16 %v13754_v56  ;;  %v2908_v4 = vpop.xlane.xlu0 %2907  ;;  %v3422_v44 = vmul.f32 %v14171_v6, %v16408_v13  ;;  %v16536_v13 = vpop.f32.mrf.mxu3 }
 0x547   : > { %v2980_v1 = vsub.f32 %v16421_v53, %v2908_v4 }
 0x548   : > { %4676 = vmatpush.msra.mxu1 %v13755_v12 }
 0x549   : > { %13246 = vmatmul.msk.f32.vlgmr.msra.gmra.mxu1 %vm938_vm2, %v3416_v52  ;;  %v3103_v61 = vmul.f32 1.442695, %v2980_v1 }
 0x54a   : > { %4780 = vmatpush.msrb.mxu1 %v13756_v35  ;;  %v16567_v35 = vpop.f32.mrf.mxu1 }
 0x54c   : > { %v16534_v58 = vpop.f32.mrf.mxu2  ;;  %v16551_v34 = vpop.f32.mrf.mxu0 }
 0x54d   : > { %v13759_v3 = vpop.permute.xlu1 %13758 }
 0x54e   : > { %v13761_v26 = vunpack.i.h.bf16 %v13759_v3  ;;  %v13760_v55 = vunpack.i.l.bf16 %v13759_v3  ;;  %v3277_v49 = vpop.xlane.xlu0 %3276  ;;  %v16543_v42 = vpop.f32.mrf.mxu3 }
 0x54f   : > { %14172 = vrcp.f32 %v3277_v49 }
 0x550   : > { %4806 = vmatpush.msra.mxu0 %v13760_v55  ;;  %4832 = vmatpush.msrb.mxu2 %v13761_v26 }
 0x551   : > { %13250 = vmatmul.msk.f32.vlgmr.msrb.gmra.mxu1 %vm938_vm2, %v3420_v47  ;;  %13252 = vmatmul.msk.f32.vlgmr.msrb.gmra.mxu2 %vm938_vm2, %v3422_v44 }
 0x552   : > { %13768 = vrot.lane.b32.xlu2 %v13767_v63, %s20698_s17  ;;  %v16578_v3 = vpop.f32.mrf.mxu1 }
 0x553   : > { %13773 = vrot.lane.b32.xlu1 %v13772_v11, %s20698_s17 }
 0x554   : > { %v16545_v29 = vpop.f32.mrf.mxu2  ;;  %v3872_v45 = vpop.f32.mrf.mxu0 }
 0x555   : > { %v14173_v50 = vpop.eup %14172 }
 0x556   : > { %v2914_v17 = vpop.xlane.xlu0 %2913  ;;  %v16554_v8 = vpop.f32.mrf.mxu3  ;;  %v3423_v23 = vmul.f32 %v14173_v50, %v16432_v41 }
 0x557   : > { %v2982_v55 = vsub.f32 %v16440_v22, %v2914_v17 }
 0x559   : > { %v3107_v44 = vmul.f32 1.442695, %v2982_v55 }
 0x55b   : > { %13778 = vrot.lane.b32.xlu1 %v13777_v31, %s20698_s17 }
 0x55c   : > { %v16556_v19 = vpop.f32.mrf.mxu2  ;;  %v16575_v6 = vpop.f32.mrf.mxu0 }
 0x55e   : > { %v16564_v56 = vpop.f32.mrf.mxu3 }
 0x563   : > { %13783 = vrot.lane.b32.xlu1 %v13782_v62, %s20698_s17  ;;  %s20989_s17 = smov 112  }
 0x564   : > { %v4314_v12 = vpop.f32.mrf.mxu2  ;;  %v16586_v32 = vpop.f32.mrf.mxu0 }
 0x566   : > { %v16573_v52 = vpop.f32.mrf.mxu3 }
 0x568   : > { %v3271_v16 = vpop.xlane.xlu2 %3270 }
 0x569   : > { %14174 = vrcp.f32 %v3271_v16  ;;  %v13764_v2 = vpop.permute.xlu0 %13763 }
 0x56a   : > { %v13766_v54 = vunpack.i.h.bf16 %v13764_v2  ;;  %v13765_v38 = vunpack.i.l.bf16 %v13764_v2  ;;  %14176 = vpow2.f32 %v3103_v61 }
 0x56b   : > { %5113 = vrot.lane.b32.xlu1 %v3872_v45, %s20706_s25 }
 0x56c   : > { %4858 = vmatpush.msrb.mxu3 %v13765_v38  ;;  %4884 = vmatpush.msra.mxu1 %v13766_v54  ;;  %v16600_v11 = vpop.f32.mrf.mxu0 }
 0x56d   : > { %13253 = vmatmul.msk.f32.vlgmr.msrb.gmra.mxu3 %vm938_vm2, %v3423_v23 }
 0x56f   : > { %v14175_v28 = vpop.eup %14174 }
 0x570   : > { %v3421_v53 = vmul.f32 %v14175_v28, %v16448_v36  ;;  %v16571_v41 = vpop.eup %14176  ;;  %v4418_v36 = vpop.f32.mrf.mxu2 }
 0x571   : > { %v3290_v26 = vsel %vm938_vm2, %v16571_v41, 0.0 }
 0x572   : > { %13251 = vmatmul.msk.f32.vlgmr.msra.gmra.mxu0 %vm938_vm2, %v3421_v53 }
 0x573   : > { %5115 = vrot.lane.b32.xlu1 %v3898_v33, %s20706_s25  ;;  %v16584_v33 = vpop.f32.mrf.mxu3 }
 0x574   : > { %v4288_v43 = vpop.f32.mrf.mxu0 }
 0x578   : > { %v2911_v9 = vpop.xlane.xlu1 %2910  ;;  %v16590_v21 = vpop.f32.mrf.mxu2 }
 0x579   : > { %v2981_v4 = vsub.f32 %v16464_v40, %v2911_v9  ;;  %v16588_v40 = vpop.f32.mrf.mxu1 }
 0x57b   : > { %v3105_v47 = vmul.f32 1.442695, %v2981_v4  ;;  %3291 = vadd.xlane.f32.xlu2 %v3290_v26  ;;  %5179 = vrot.lane.b32.xlu1 %v4314_v12, %s20696_s23  ;;  %v16596_v5 = vpop.f32.mrf.mxu3 }
 0x57c   : > { %v4392_v28 = vpop.f32.mrf.mxu0 }
 0x57d   : > { %14178 = vpow2.f32 %v3105_v47 }
 0x57e   : > { %14180 = vpow2.f32 %v3107_v44 }
 0x581   : > { %v16602_v49 = vpop.f32.mrf.mxu1 }
 0x582   : > { %v16604_v39 = vpop.f32.mrf.mxu2 }
 0x583   : > { %v16592_v63 = vpop.eup %14178  ;;  %v16608_v31 = vpop.f32.mrf.mxu3 }
 0x584   : > { %v3293_v22 = vsel %vm938_vm2, %v16592_v63, 0.0  ;;  %v16598_v15 = vpop.eup %14180 }
 0x585   : > { %3294 = vadd.xlane.f32.xlu0 %v3293_v22  ;;  %v3296_v7 = vsel %vm938_vm2, %v16598_v15, 0.0 }
 0x589   : > { %v16610_v60 = vpop.f32.mrf.mxu1 }
 0x58b   : > { %v4340_v17 = vpop.f32.mrf.mxu3 }
 0x58d   : > { %3297 = vadd.xlane.f32.xlu0 %v3296_v7 }
 0x591   : > { %v16614_v50 = vpop.f32.mrf.mxu1 }
 0x592   : > { %v4730_v62 = vpop.f32.mrf.mxu2 }
 0x593   : > { %5177 = vrot.lane.b32.xlu2 %v4288_v43, %s20696_s23  ;;  %5243 = vrot.lane.b32.xlu1 %v4730_v62, %s20704_s26  ;;  %v4444_v1 = vpop.f32.mrf.mxu3 }
 0x599   : > { %v4366_v2 = vpop.f32.mrf.mxu1 }
 0x59b   : > { %5181 = vrot.lane.b32.xlu2 %v4340_v17, %s20696_s23  ;;  %v16620_v61 = vpop.f32.mrf.mxu3 }
 0x59c   : > { %v3280_v16 = vpop.xlane.xlu2 %3279 }
 0x59d   : > { %14182 = vrcp.f32 %v3280_v16 }
 0x5a1   : > { %v4470_v43 = vpop.f32.mrf.mxu1 }
 0x5a3   : > { %v14183_v45 = vpop.eup %14182  ;;  %5183 = vrot.lane.b32.xlu2 %v4366_v2, %s20696_s23  ;;  %v16625_v26 = vpop.f32.mrf.mxu3 }
 0x5a4   : > { %v3424_v54 = vmul.f32 %v14183_v45, %v16479_v59  ;;  %v3283_v38 = vpop.xlane.xlu2 %3282 }
 0x5a5   : > { %v3289_v23 = vpop.xlane.xlu1 %3288  ;;  %14184 = vrcp.f32 %v3283_v38 }
 0x5a6   : > { %13254 = vmatmul.msk.f32.vlgmr.msra.gmra.mxu1 %vm938_vm2, %v3424_v54 }
 0x5ab   : > { %5185 = vrot.lane.b32.xlu2 %v4392_v28, %s20696_s23  ;;  %v14185_v47 = vpop.eup %14184  ;;  %v4496_v28 = vpop.f32.mrf.mxu0 }
 0x5ac   : > { %v2917_v53 = vpop.xlane.xlu2 %2916  ;;  %v3425_v62 = vmul.f32 %v14185_v47, %v16483_v37 }
 0x5ad   : > { %v2920_v12 = vpop.xlane.xlu1 %2919  ;;  %v2983_v9 = vsub.f32 %v16498_v0, %v2917_v53 }
 0x5ae   : > { %v2984_v4 = vsub.f32 %v16501_v27, %v2920_v12 }
 0x5af   : > { %v3109_v55 = vmul.f32 1.442695, %v2983_v9 }
 0x5b0   : > { %v3111_v59 = vmul.f32 1.442695, %v2984_v4  ;;  %v4574_v2 = vpop.f32.mrf.mxu1 }
 0x5b1   : > { %14186 = vpow2.f32 %v3109_v55 }
 0x5b2   : > { %14188 = vpow2.f32 %v3111_v59 }
 0x5b3   : > { %5187 = vrot.lane.b32.xlu2 %v4418_v36, %s20696_s23 }
 0x5b4   : > { %v13769_v44 = vpop.permute.xlu2 %13768 }
 0x5b5   : > { %v13771_v22 = vunpack.i.h.bf16 %v13769_v44  ;;  %v13770_v7 = vunpack.i.l.bf16 %v13769_v44 }
 0x5b6   : > { %v3286_v17 = vpop.xlane.xlu0 %3285 }
 0x5b7   : > { %v16629_v16 = vpop.eup %14186  ;;  %14190 = vrcp.f32 %v3286_v17  ;;  %v4756_v0 = vpop.f32.mrf.mxu3  ;;  %4910 = vmatpush.msrb.mxu0 %v13770_v7  ;;  %4936 = vmatpush.msra.mxu2 %v13771_v22 }
 0x5b8   : > { %5245 = vrot.lane.b32.xlu1 %v4756_v0, %s20704_s26  ;;  %13255 = vmatmul.msk.f32.vlgmr.msrb.gmra.mxu0 %vm938_vm2, %v3425_v62  ;;  %v3299_v27 = vsel %vm938_vm2, %v16629_v16, 0.0  ;;  %v16636_v36 = vpop.eup %14188  ;;  %14192 = vrcp.f32 %v3289_v23 }
 0x5b9   : > { %3300 = vadd.xlane.f32.xlu0 %v3299_v27  ;;  %v3302_v54 = vsel %vm938_vm2, %v16636_v36, 0.0 }
 0x5bb   : > { %5189 = vrot.lane.b32.xlu2 %v4444_v1, %s20696_s23 }
 0x5bd   : > { %v14191_v37 = vpop.eup %14190 }
 0x5be   : > { %v3426_v45 = vmul.f32 %v14191_v37, %v16512_v46  ;;  %v14193_v38 = vpop.eup %14192  ;;  %v4600_v46 = vpop.f32.mrf.mxu0 }
 0x5bf   : > { %v3427_v4 = vmul.f32 %v14193_v38, %v16487_v48 }
 0x5c0   : > { %13256 = vmatmul.msk.f32.vlgmr.msra.gmra.mxu2 %vm938_vm2, %v3426_v45 }
 0x5c1   : > { %3303 = vadd.xlane.f32.xlu0 %v3302_v54 }
 0x5c3   : > { %5191 = vrot.lane.b32.xlu2 %v4470_v43, %s20696_s23 }
 0x5c5   : > { %v13774_v53 = vpop.permute.xlu1 %13773 }
 0x5c6   : > { %v13776_v12 = vunpack.i.h.bf16 %v13774_v53  ;;  %v13775_v1 = vunpack.i.l.bf16 %v13774_v53  ;;  %v4678_v9 = vpop.f32.mrf.mxu1  ;;  %v4704_v44 = vpop.f32.mrf.mxu0 }
 0x5c8   : > { %4962 = vmatpush.msra.mxu3 %v13775_v1  ;;  %4988 = vmatpush.msrb.mxu1 %v13776_v12 }
 0x5c9   : > { %13257 = vmatmul.msk.f32.vlgmr.msra.gmra.mxu3 %vm938_vm2, %v3427_v4 }
 0x5cb   : > { %5193 = vrot.lane.b32.xlu2 %v4496_v28, %s20696_s23 }
 0x5cd   : > { %v13779_v23 = vpop.permute.xlu1 %13778 }
 0x5ce   : > { %v13781_v55 = vunpack.i.h.bf16 %v13779_v23  ;;  %v13780_v59 = vunpack.i.l.bf16 %v13779_v23  ;;  %v4782_v47 = vpop.f32.mrf.mxu1 }
 0x5cf   : > { %5247 = vrot.lane.b32.xlu1 %v4782_v47, %s20704_s26 }
 0x5d0   : > { %5014 = vmatpush.msra.mxu0 %v13780_v59  ;;  %5040 = vmatpush.msrb.mxu2 %v13781_v55 }
 0x5d3   : > { %5195 = vrot.lane.b32.xlu2 %v16590_v21, %s20696_s23 }
 0x5d5   : > { %v13784_v48 = vpop.permute.xlu1 %13783  ;;  %5241 = vrot.lane.b32.xlu0 %v4704_v44, %s20704_s26 }
 0x5d6   : > { %v13786_v22 = vunpack.i.h.bf16 %v13784_v48  ;;  %v13785_v7 = vunpack.i.l.bf16 %v13784_v48 }
 0x5d8   : > { %5066 = vmatpush.msrb.mxu3 %v13785_v7  ;;  %5092 = vmatpush.msra.mxu1 %v13786_v22 }
 0x5db   : > { %5197 = vrot.lane.b32.xlu2 %v16620_v61, %s20696_s23 }
 0x5dd   : > { %5117 = vrot.lane.b32.xlu0 %v16573_v52, %s20706_s25 }
 0x5e3   : > { %5199 = vrot.lane.b32.xlu2 %v4574_v2, %s20696_s23 }
 0x5e5   : > { %5119 = vrot.lane.b32.xlu0 %v16588_v40, %s20706_s25  ;;  %v4834_v40 = vpop.f32.mrf.mxu2 }
 0x5eb   : > { %5201 = vrot.lane.b32.xlu2 %v4600_v46, %s20696_s23 }
 0x5ed   : > { %5121 = vrot.lane.b32.xlu0 %v16575_v6, %s20706_s25 }
 0x5ee   : > { %v3292_v21 = vpop.xlane.xlu2 %3291 }
 0x5ef   : > { %14194 = vrcp.f32 %v3292_v21  ;;  %v4808_v43 = vpop.f32.mrf.mxu0 }
 0x5f0   : > { %5249 = vrot.lane.b32.xlu1 %v4808_v43, %s20704_s26 }
 0x5f3   : > { %5203 = vrot.lane.b32.xlu2 %v16604_v39, %s20696_s23  ;;  %v4860_v39 = vpop.f32.mrf.mxu3 }
 0x5f5   : > { %v14195_v61 = vpop.eup %14194  ;;  %5123 = vrot.lane.b32.xlu0 %v16534_v58, %s20706_s25 }
 0x5f6   : > { %v3428_v52 = vmul.f32 %v14195_v61, %v16571_v41 }
 0x5f8   : > { %v3295_v62 = vpop.xlane.xlu0 %3294  ;;  %13258 = vmatmul.msk.f32.vlgmr.msrb.gmra.mxu1 %vm938_vm2, %v3428_v52  ;;  %5251 = vrot.lane.b32.xlu1 %v4834_v40, %s20704_s26 }
 0x5f9   : > { %14196 = vrcp.f32 %v3295_v62 }
 0x5fb   : > { %5205 = vrot.lane.b32.xlu2 %v16625_v26, %s20696_s23 }
 0x5fd   : > { %5125 = vrot.lane.b32.xlu0 %v16584_v33, %s20706_s25 }
 0x5ff   : > { %v14197_v6 = vpop.eup %14196 }
 0x600   : > { %v3429_v17 = vmul.f32 %v14197_v6, %v16592_v63  ;;  %v3298_v58 = vpop.xlane.xlu0 %3297  ;;  %5253 = vrot.lane.b32.xlu1 %v4860_v39, %s20704_s26  ;;  %v5341_v63 = vld [vmem:[%s20588_s6 + $0x18] sm:$0xff] }
 0x601   : > { %14198 = vrcp.f32 %v3298_v58  ;;  %5403 = vmatpush.msrb.mxu0 %v5341_v63 }
 0x602   : > { %13259 = vmatmul.msk.f32.vlgmr.msra.gmra.mxu0 %vm938_vm2, %v3429_v17 }
 0x603   : > { %5207 = vrot.lane.b32.xlu2 %v4678_v9, %s20696_s23  ;;  %s20999_s23 = smov 64  }
 0x605   : > { %5127 = vrot.lane.b32.xlu0 %v16602_v49, %s20706_s25  ;;  %v5114_v49 = vpop.permute.xlu1 %5113 }
 0x607   : > { %v14199_v41 = vpop.eup %14198 }
 0x608   : > { %v3430_v26 = vmul.f32 %v14199_v41, %v16598_v15  ;;  %v5340_v15 = vld [vmem:[%s20588_s6 + $0x10] sm:$0xff] }
 0x609   : > { %5404 = vmatpush.msrb.mxu0 %v5340_v15 }
 0x60a   : > { %13260 = vmatmul.msk.f32.vlgmr.msrb.gmra.mxu2 %vm938_vm2, %v3430_v26 }
 0x60d   : > { %5129 = vrot.lane.b32.xlu0 %v16586_v32, %s20706_s25  ;;  %v5338_v32 = vld [vmem:[%s20588_s6] sm:$0xff]  ;;  %v5116_v2 = vpop.permute.xlu1 %5115 }
 0x60e   : > { %v5290_v9 = vsel %vm938_vm2, %v16485_v57, %v5116_v2 }
 0x615   : > { %5131 = vrot.lane.b32.xlu0 %v16545_v29, %s20706_s25  ;;  %v5339_v29 = vld [vmem:[%s20588_s6 + $0x8] sm:$0xff] }
 0x616   : > { %5405 = vmatpush.msrb.mxu0 %v5339_v29 }
 0x618   : > { %5406 = vmatpush.msrb.mxu0 %v5338_v32 }
 0x61d   : > { %5133 = vrot.lane.b32.xlu0 %v16596_v5, %s20706_s25 }
 0x623   : > { %v4886_v33 = vpop.f32.mrf.mxu1 }
 0x624   : > { %5255 = vrot.lane.b32.xlu1 %v4886_v33, %s20704_s26 }
 0x625   : > { %5135 = vrot.lane.b32.xlu0 %v16610_v60, %s20706_s25 }
 0x62c   : > { %v3301_v5 = vpop.xlane.xlu0 %3300 }
 0x62d   : > { %14200 = vrcp.f32 %v3301_v5  ;;  %5137 = vrot.lane.b32.xlu0 %v16600_v11, %s20706_s25  ;;  %v5180_v11 = vpop.permute.xlu1 %5179 }
 0x633   : > { %v14201_v0 = vpop.eup %14200 }
 0x634   : > { %v3431_v60 = vmul.f32 %v14201_v0, %v16629_v16  ;;  %v3304_v27 = vpop.xlane.xlu0 %3303  ;;  %v5178_v16 = vpop.permute.xlu2 %5177 }
 0x635   : > { %14202 = vrcp.f32 %v3304_v27  ;;  %v4912_v37 = vpop.f32.mrf.mxu0  ;;  %5139 = vrot.lane.b32.xlu0 %v16556_v19, %s20706_s25  ;;  %v5289_v19 = vsel %vm938_vm2, %v16520_v14, %v5114_v49 }
 0x636   : > { %13261 = vmatmul.msk.f32.vlgmr.msrb.gmra.mxu3 %vm938_vm2, %v3431_v60  ;;  %5257 = vrot.lane.b32.xlu1 %v4912_v37, %s20704_s26  ;;  %v5305_v28 = vsel %vm589_vm0, %v5289_v19, %v5178_v16 }
 0x63b   : > { %v14203_v45 = vpop.eup %14202 }
 0x63c   : > { %v3432_v54 = vmul.f32 %v14203_v45, %v16636_v36  ;;  %v5182_v12 = vpop.permute.xlu2 %5181 }
 0x63d   : > { %5141 = vrot.lane.b32.xlu0 %v16608_v31, %s20706_s25  ;;  %v5244_v31 = vpop.permute.xlu1 %5243 }
 0x63e   : > { %13262 = vmatmul.msk.f32.vlgmr.msra.gmra.mxu1 %vm938_vm2, %v3432_v54 }
 0x643   : > { %v4938_v38 = vpop.f32.mrf.mxu2 }
 0x644   : > { %5259 = vrot.lane.b32.xlu1 %v4938_v38, %s20704_s26  ;;  %v5184_v59 = vpop.permute.xlu2 %5183 }
 0x645   : > { %5143 = vrot.lane.b32.xlu0 %v16614_v50, %s20706_s25  ;;  %v5306_v50 = vsel %vm589_vm0, %v5290_v9, %v5180_v11  ;;  %v5246_v46 = vpop.permute.xlu1 %5245 }
 0x646   : > { %v5323_v14 = vsel %vm5321_vm3, %v5306_v50, %v5244_v31 }
 0x647   : > { %v5242_v36 = vpop.permute.xlu0 %5241 }
 0x648   : > { %v5322_v53 = vsel %vm5321_vm3, %v5305_v28, %v5242_v36 }
 0x649   : > { %13263 = vmatmul.msk.f32.vlgmr.msrb.gmra.mxu0 %vm710_vm1, %v5322_v53 }
 0x64c   : > { %v4964_v1 = vpop.f32.mrf.mxu3  ;;  %v5186_v21 = vpop.permute.xlu2 %5185 }
 0x64d   : > { %5261 = vrot.lane.b32.xlu1 %v4964_v1, %s20704_s26  ;;  %v5248_v57 = vpop.permute.xlu1 %5247 }
 0x64f   : > { %v5118_v4 = vpop.permute.xlu0 %5117 }
 0x650   : > { %v5291_v23 = vsel %vm938_vm2, %v16536_v13, %v5118_v4  ;;  %v16777_v4 = vld [vmem:[%s20589_s7] sm:$0x3f] }
 0x651   : > { %13264 = vmatmul.msk.f32.gmra.mxu0 %vm710_vm1, %v5323_v14  ;;  %v5307_v55 = vsel %vm589_vm0, %v5291_v23, %v5182_v12 }
 0x652   : > { %v5324_v44 = vsel %vm5321_vm3, %v5307_v55, %v5246_v46  ;;  %v16782_v46 = vperm.slane %v16777_v4, 0  ;;  %v20964_v55 = vld [vmem:[#allocation2_spill] sm:$0xff] }
 0x657   : > { %v5120_v47 = vpop.permute.xlu0 %5119 }
 0x658   : > { %v5292_v48 = vsel %vm938_vm2, %v16549_v20, %v5120_v47  ;;  %v5188_v20 = vpop.permute.xlu2 %5187 }
 0x659   : > { %13265 = vmatmul.msk.f32.gmra.mxu0 %vm710_vm1, %v5324_v44  ;;  %v5308_v22 = vsel %vm589_vm0, %v5292_v48, %v5184_v59  ;;  %v20965_v48 = vld [vmem:[#allocation3_spill] sm:$0xff] }
 0x65a   : > { %v5325_v43 = vsel %vm5321_vm3, %v5308_v22, %v5248_v57 }
 0x65f   : > { %v5122_v7 = vpop.permute.xlu0 %5121 }
 0x660   : > { %v5293_v13 = vsel %vm938_vm2, %v16530_v30, %v5122_v7  ;;  %v5190_v26 = vpop.permute.xlu2 %5189 }
 0x661   : > { %13266 = vmatmul.msk.f32.gmra.mxu0 %vm710_vm1, %v5325_v43  ;;  %v5309_v52 = vsel %vm589_vm0, %v5293_v13, %v5186_v21 }
 0x662   : > { %v5250_v61 = vpop.permute.xlu1 %5249 }
 0x663   : > { %v5326_v62 = vsel %vm5321_vm3, %v5309_v52, %v5250_v61  ;;  %v20966_v61 = vld [vmem:[#allocation5_spill] sm:$0xff] }
 0x667   : > { %v5124_v40 = vpop.permute.xlu0 %5123 }
 0x668   : > { %v5294_v6 = vsel %vm938_vm2, %v16503_v25, %v5124_v40  ;;  %v5192_v49 = vpop.permute.xlu2 %5191 }
 0x669   : > { %13267 = vmatmul.msk.f32.gmra.mxu0 %vm710_vm1, %v5326_v62  ;;  %v5310_v17 = vsel %vm589_vm0, %v5294_v6, %v5188_v20 }
 0x66a   : > { %v5252_v39 = vpop.permute.xlu1 %5251 }
 0x66b   : > { %v5327_v41 = vsel %vm5321_vm3, %v5310_v17, %v5252_v39 }
 0x66f   : > { %v5126_v58 = vpop.permute.xlu0 %5125 }
 0x670   : > { %v5295_v30 = vsel %vm938_vm2, %v16543_v42, %v5126_v58  ;;  %v5194_v45 = vpop.permute.xlu2 %5193 }
 0x671   : > { %13268 = vmatmul.msk.f32.gmra.mxu0 %vm710_vm1, %v5327_v41  ;;  %v5311_v33 = vsel %vm589_vm0, %v5295_v30, %v5190_v26  ;;  %v20967_v41 = vld [vmem:[#allocation4_spill] sm:$0xff] }
 0x672   : > { %v5254_v63 = vpop.permute.xlu1 %5253 }
 0x673   : > { %v5328_v25 = vsel %vm5321_vm3, %v5311_v33, %v5254_v63 }
 0x675   : > { %v4990_v15 = vpop.f32.mrf.mxu1 }
 0x676   : > { %5263 = vrot.lane.b32.xlu1 %v4990_v15, %s20704_s26  ;;  %v20968_v15 = vld [vmem:[#allocation6_spill] sm:$0xff] }
 0x677   : > { %v5128_v5 = vpop.permute.xlu0 %5127 }
 0x678   : > { %v5296_v42 = vsel %vm938_vm2, %v16559_v51, %v5128_v5  ;;  %v5196_v19 = vpop.permute.xlu2 %5195 }
 0x679   : > { %13269 = vmatmul.msk.f32.gmra.mxu0 %vm710_vm1, %v5328_v25  ;;  %v5312_v0 = vsel %vm589_vm0, %v5296_v42, %v5192_v49 }
 0x67f   : > { %v5016_v29 = vpop.f32.mrf.mxu0  ;;  %v5130_v37 = vpop.permute.xlu0 %5129 }
 0x680   : > { %5265 = vrot.lane.b32.xlu1 %v5016_v29, %s20704_s26  ;;  %v5297_v2 = vsel %vm938_vm2, %v16540_v10, %v5130_v37  ;;  %v5198_v1 = vpop.permute.xlu2 %5197 }
 0x681   : > { %v5313_v54 = vsel %vm589_vm0, %v5297_v2, %v5194_v45 }
 0x687   : > { %v5132_v51 = vpop.permute.xlu0 %5131 }
 0x688   : > { %v5298_v38 = vsel %vm938_vm2, %v16510_v18, %v5132_v51  ;;  %v5200_v17 = vpop.permute.xlu2 %5199 }
 0x689   : > { %v5314_v28 = vsel %vm589_vm0, %v5298_v38, %v5196_v19 }
 0x68d   : > { %v5042_v32 = vpop.f32.mrf.mxu2 }
 0x68e   : > { %5267 = vrot.lane.b32.xlu1 %v5042_v32, %s20704_s26 }
 0x68f   : > { %v5134_v10 = vpop.permute.xlu0 %5133 }
 0x690   : > { %v5299_v12 = vsel %vm938_vm2, %v16554_v8, %v5134_v10 }
 0x691   : > { %v5315_v9 = vsel %vm589_vm0, %v5299_v12, %v5198_v1  ;;  %v14677_v1 = vmov 32.0  }
 0x692   : > { %14204 = vrcp.f32 %v14677_v1 }
 0x696   : > { %v5256_v60 = vpop.permute.xlu1 %5255 }
 0x697   : > { %v5329_v27 = vsel %vm5321_vm3, %v5312_v0, %v5256_v60  ;;  %v5136_v40 = vpop.permute.xlu0 %5135  ;;  %v5202_v0 = vpop.permute.xlu2 %5201  ;;  %v20969_v60 = vld [vmem:[#allocation7_spill] sm:$0xff] }
 0x698   : > { %13270 = vmatmul.msk.f32.gmra.mxu0 %vm710_vm1, %v5329_v27  ;;  %v5300_v6 = vsel %vm938_vm2, %v16567_v35, %v5136_v40 }
 0x699   : > { %v5316_v26 = vsel %vm589_vm0, %v5300_v6, %v5200_v17 }
 0x69f   : > { %v5138_v32 = vpop.permute.xlu0 %5137 }
 0x6a0   : > { %v5301_v42 = vsel %vm938_vm2, %v16551_v34, %v5138_v32 }
 0x6a1   : > { %v5317_v37 = vsel %vm589_vm0, %v5301_v42, %v5202_v0 }
 0x6a7   : > { %v5140_v38 = vpop.permute.xlu0 %5139 }
 0x6a8   : > { %v5258_v11 = vpop.permute.xlu1 %5257 }
 0x6a9   : > { %v5330_v16 = vsel %vm5321_vm3, %v5313_v54, %v5258_v11 }
 0x6aa   : > { %13271 = vmatmul.msk.f32.gmra.mxu0 %vm710_vm1, %v5330_v16  ;;  %v20970_v16 = vld [vmem:[#allocation8_spill] sm:$0xff] }
 0x6af   : > { %v5142_v12 = vpop.permute.xlu0 %5141 }
 0x6b6   : > { %v5260_v36 = vpop.permute.xlu1 %5259 }
 0x6b7   : > { %v5331_v53 = vsel %vm5321_vm3, %v5314_v28, %v5260_v36  ;;  %v5302_v28 = vsel %vm938_vm2, %v16516_v24, %v5140_v38  ;;  %v5204_v36 = vpop.permute.xlu2 %5203 }
 0x6b8   : > { %13272 = vmatmul.msk.f32.gmra.mxu0 %vm710_vm1, %v5331_v53  ;;  %v5318_v53 = vsel %vm589_vm0, %v5302_v28, %v5204_v36  ;;  %v20974_v28 = vld [vmem:[#allocation12_spill] sm:$0xff] }
 0x6b9   : > { %v5068_v31 = vpop.f32.mrf.mxu3 }
 0x6ba   : > { %5269 = vrot.lane.b32.xlu1 %v5068_v31, %s20704_s26 }
 0x6bb   : > { %v5094_v14 = vpop.f32.mrf.mxu1 }
 0x6bf   : > { %v5262_v50 = vpop.permute.xlu1 %5261 }
 0x6c0   : > { %v5332_v18 = vsel %vm5321_vm3, %v5315_v9, %v5262_v50  ;;  %v5206_v9 = vpop.permute.xlu2 %5205  ;;  %v5303_v50 = vsel %vm938_vm2, %v16564_v56, %v5142_v12 }
 0x6c1   : > { %13273 = vmatmul.msk.f32.gmra.mxu0 %vm710_vm1, %v5332_v18  ;;  %v14205_v18 = vpop.eup %14204 }
 0x6c2   : > { %5271 = vrot.lane.b32.xlu1 %v5094_v14, %s20704_s26  ;;  %v5319_v14 = vsel %vm589_vm0, %v5303_v50, %v5206_v9  ;;  %vm5525_vm4 = vweird.f32 %v14205_v18 }
 0x6c6   : > { %v5408_v8 = vpop.f32.mrf.mxu0 }
 0x6c7   : > { %v5409_v23 = vadd.f32 %v5408_v8, %v16782_v46 }
 0x6c9   : > { %v16786_v59 = vadd.f32 %v5409_v23, %v20964_v55  ;;  %v5521_v23 = vmul.f32 32.0, %v14205_v18  ;;  %v5144_v55 = vpop.permute.xlu0 %5143 }
 0x6cb   : > { %v5472_v47 = vsel %vm710_vm1, %v16786_v59, 0.0 }
 0x6cc   : > { %5473 = vadd.xlane.f32.xlu0 %v5472_v47  ;;  %v5304_v47 = vsel %vm938_vm2, %v16578_v3, %v5144_v55 }
 0x6ce   : > { %v5411_v44 = vpop.f32.mrf.mxu0 }
 0x6cf   : > { %v5412_v57 = vadd.f32 %v5411_v44, %v16782_v46  ;;  %v5522_v44 = vsub.f32 1.0, %v5521_v23 }
 0x6d1   : > { %v16792_v22 = vadd.f32 %v5412_v57, %v20965_v48  ;;  %v5208_v57 = vpop.permute.xlu2 %5207 }
 0x6d2   : > { %v5320_v48 = vsel %vm589_vm0, %v5304_v47, %v5208_v57 }
 0x6d3   : > { %v5475_v7 = vsel %vm710_vm1, %v16792_v22, 0.0 }
 0x6d4   : > { %5476 = vadd.xlane.f32.xlu2 %v5475_v7 }
 0x6d6   : > { %v5414_v21 = vpop.f32.mrf.mxu0 }
 0x6d7   : > { %v5415_v62 = vadd.f32 %v5414_v21, %v16782_v46  ;;  %v5523_v21 = vmul.f32 %v14205_v18, %v5522_v44 }
 0x6d9   : > { %v16807_v30 = vadd.f32 %v5415_v62, %v20967_v41 }
 0x6db   : > { %v5478_v29 = vsel %vm710_vm1, %v16807_v30, 0.0 }
 0x6de   : > { %v5417_v43 = vpop.f32.mrf.mxu0 }
 0x6df   : > { %v5418_v13 = vadd.f32 %v5417_v43, %v16782_v46  ;;  %v5524_v43 = vadd.f32 %v14205_v18, %v5523_v21 }
 0x6e1   : > { %v16798_v52 = vadd.f32 %v5418_v13, %v20966_v61  ;;  %v16851_v13 = vsel %vm5525_vm4, %v14205_v18, %v5524_v43  ;;  %v20975_v18 = vld [vmem:[#allocation13_spill] sm:$0xff] }
 0x6e2   : > { %20971 = vst [vmem:[#allocation67_spill] sm:$0xff] %v16851_v13 }
 0x6e3   : > { %v5481_v20 = vsel %vm710_vm1, %v16798_v52, 0.0 }
 0x6e4   : > { %5482 = vadd.xlane.f32.xlu2 %v5481_v20 }
 0x6e6   : > { %v5420_v39 = vpop.f32.mrf.mxu0 }
 0x6e7   : > { %v5421_v58 = vadd.f32 %v5420_v39, %v16782_v46 }
 0x6e8   : > { %v5264_v33 = vpop.permute.xlu1 %5263 }
 0x6e9   : > { %v5333_v63 = vsel %vm5321_vm3, %v5316_v26, %v5264_v33  ;;  %v16812_v25 = vadd.f32 %v5421_v58, %v20968_v15  ;;  %v20972_v33 = vld [vmem:[#allocation9_spill] sm:$0xff] }
 0x6ea   : > { %13274 = vmatmul.msk.f32.gmra.mxu0 %vm710_vm1, %v5333_v63 }
 0x6eb   : > { %v5484_v35 = vsel %vm710_vm1, %v16812_v25, 0.0 }
 0x6ec   : > { %5485 = vadd.xlane.f32.xlu0 %v5484_v35  ;;  %5479 = vadd.xlane.f32.xlu1 %v5478_v29 }
 0x6ee   : > { %v5423_v5 = vpop.f32.mrf.mxu0 }
 0x6ef   : > { %v5424_v49 = vadd.f32 %v5423_v5, %v16782_v46  ;;  %v20973_v5 = vld [vmem:[#allocation10_spill] sm:$0xff] }
 0x6f1   : > { %v16823_v27 = vadd.f32 %v5424_v49, %v20969_v60 }
 0x6f2   : > { %v5266_v2 = vpop.permute.xlu1 %5265 }
 0x6f3   : > { %v5334_v45 = vsel %vm5321_vm3, %v5317_v37, %v5266_v2  ;;  %v5487_v54 = vsel %vm710_vm1, %v16823_v27, 0.0 }
 0x6f4   : > { %13275 = vmatmul.msk.f32.gmra.mxu0 %vm710_vm1, %v5334_v45  ;;  %5488 = vadd.xlane.f32.xlu1 %v5487_v54 }
 0x6f6   : > { %v5426_v11 = vpop.f32.mrf.mxu0 }
 0x6f7   : > { %v5427_v34 = vadd.f32 %v5426_v11, %v16782_v46 }
 0x6f9   : > { %v16832_v51 = vadd.f32 %v5427_v34, %v20970_v16 }
 0x6fb   : > { %v5490_v19 = vsel %vm710_vm1, %v16832_v51, 0.0 }
 0x6fc   : > { %5491 = vadd.xlane.f32.xlu0 %v5490_v19 }
 0x700   : > { %v5268_v10 = vpop.permute.xlu1 %5267 }
 0x701   : > { %v5335_v31 = vsel %vm5321_vm3, %v5318_v53, %v5268_v10 }
 0x702   : > { %13276 = vmatmul.msk.f32.gmra.mxu0 %vm710_vm1, %v5335_v31 }
 0x715   : > { %v5429_v62 = vpop.f32.mrf.mxu0 }
 0x716   : > { %v5430_v6 = vadd.f32 %v5429_v62, %v16782_v46  ;;  %v20977_v62 = vld [vmem:[#allocation14_spill] sm:$0xff] }
 0x718   : > { %v16866_v63 = vadd.f32 %v5430_v6, %v20972_v33 }
 0x71a   : > { %v5493_v35 = vsel %vm710_vm1, %v16866_v63, 0.0 }
 0x727   : > { %v5432_v41 = vpop.f32.mrf.mxu0 }
 0x728   : > { %v5433_v15 = vadd.f32 %v5432_v41, %v16782_v46 }
 0x72a   : > { %v16875_v42 = vadd.f32 %v5433_v15, %v20973_v5  ;;  %v20979_v15 = vld [vmem:[#allocation16_spill] sm:$0xff] }
 0x72b   : > { %v5867_v5 = vld [vmem:[%s20590_s8 + $0x10] sm:$0xff] }
 0x72c   : > { %v5270_v8 = vpop.permute.xlu1 %5269 }
 0x72d   : > { %v5336_v24 = vsel %vm5321_vm3, %v5319_v14, %v5270_v8 }
 0x72e   : > { %13277 = vmatmul.msk.f32.gmra.mxu0 %vm710_vm1, %v5336_v24  ;;  %v20976_v24 = vld [vmem:[#allocation11_spill] sm:$0xff] }
 0x734   : > { %v5272_v7 = vpop.permute.xlu1 %5271 }
 0x735   : > { %v5337_v56 = vsel %vm5321_vm3, %v5320_v48, %v5272_v7  ;;  %v5435_v32 = vpop.f32.mrf.mxu0 }
 0x736   : > { %13278 = vmatmul.msk.f32.gmra.mxu0 %vm710_vm1, %v5337_v56  ;;  %v5436_v1 = vadd.f32 %v5435_v32, %v16782_v46  ;;  %v5868_v32 = vld [vmem:[%s20590_s8 + $0x18] sm:$0xff] }
 0x737   : > { %5931 = vmatpush.msra.mxu2 %v5868_v32 }
 0x738   : > { %v16913_v23 = vadd.f32 %v5436_v1, %v20976_v24  ;;  %v16976_v24 = vperm.slane %v16777_v4, 1 }
 0x739   : > { %5932 = vmatpush.msra.mxu2 %v5867_v5 }
 0x73a   : > { %v5499_v57 = vsel %vm710_vm1, %v16913_v23, 0.0 }
 0x73e   : > { %v5438_v37 = vpop.f32.mrf.mxu0 }
 0x73f   : > { %v5474_v61 = vpop.xlane.xlu0 %5473  ;;  %v5439_v45 = vadd.f32 %v5438_v37, %v16782_v46 }
 0x740   : > { %v5527_v40 = vmul.f32 %v16851_v13, %v5474_v61 }
 0x741   : > { %v16896_v36 = vadd.f32 %v5439_v45, %v20974_v28 }
 0x742   : > { %v16855_v3 = vsub.f32 %v16786_v59, %v5527_v40 }
 0x743   : > { %v5502_v31 = vsel %vm710_vm1, %v16896_v36, 0.0 }
 0x744   : > { %v5559_v20 = vmul.f32 %v16855_v3, %v16855_v3 }
 0x746   : > { %v5575_v39 = vsel %vm710_vm1, %v5559_v20, 0.0 }
 0x747   : > { %v5477_v17 = vpop.xlane.xlu2 %5476  ;;  %5576 = vadd.xlane.f32.xlu2 %v5575_v39 }
 0x748   : > { %v5528_v58 = vmul.f32 %v16851_v13, %v5477_v17  ;;  %v20978_v17 = vld [vmem:[#allocation15_spill] sm:$0xff] }
 0x74a   : > { %v16863_v26 = vsub.f32 %v16792_v22, %v5528_v58  ;;  %v5496_v22 = vsel %vm710_vm1, %v16875_v42, 0.0 }
 0x74c   : > { %v5560_v59 = vmul.f32 %v16863_v26, %v16863_v26 }
 0x74e   : > { %v5578_v29 = vsel %vm710_vm1, %v5560_v59, 0.0 }
 0x74f   : > { %5494 = vadd.xlane.f32.xlu2 %v5493_v35  ;;  %5579 = vadd.xlane.f32.xlu1 %v5578_v29 }
 0x757   : > { %v5483_v49 = vpop.xlane.xlu2 %5482  ;;  %5497 = vadd.xlane.f32.xlu1 %v5496_v22  ;;  %v5866_v22 = vld [vmem:[%s20590_s8 + $0x8] sm:$0xff] }
 0x758   : > { %v5530_v0 = vmul.f32 %v16851_v13, %v5483_v49  ;;  %5933 = vmatpush.msra.mxu2 %v5866_v22  ;;  %v5865_v49 = vld [vmem:[%s20590_s8] sm:$0xff] }
 0x75a   : > { %v16881_v60 = vsub.f32 %v16798_v52, %v5530_v0  ;;  %5934 = vmatpush.msra.mxu2 %v5865_v49 }
 0x75c   : > { %v5562_v2 = vmul.f32 %v16881_v60, %v16881_v60 }
 0x75e   : > { %v5584_v54 = vsel %vm710_vm1, %v5562_v2, 0.0 }
 0x75f   : > { %v5486_v11 = vpop.xlane.xlu0 %5485  ;;  %5585 = vadd.xlane.f32.xlu2 %v5584_v54  ;;  %v5480_v34 = vpop.xlane.xlu1 %5479 }
 0x760   : > { %v5531_v16 = vmul.f32 %v16851_v13, %v5486_v11  ;;  %v5529_v38 = vmul.f32 %v16851_v13, %v5480_v34 }
 0x762   : > { %v16890_v19 = vsub.f32 %v16812_v25, %v5531_v16  ;;  %v16893_v52 = vsub.f32 %v16807_v30, %v5529_v38 }
 0x764   : > { %v5563_v53 = vmul.f32 %v16890_v19, %v16890_v19  ;;  %v5561_v10 = vmul.f32 %v16893_v52, %v16893_v52 }
 0x766   : > { %v5587_v12 = vsel %vm710_vm1, %v5563_v53, 0.0  ;;  %v5581_v25 = vsel %vm710_vm1, %v5561_v10, 0.0 }
 0x767   : > { %v5441_v30 = vpop.f32.mrf.mxu0  ;;  %5503 = vadd.xlane.f32.xlu2 %v5502_v31  ;;  %5588 = vadd.xlane.f32.xlu1 %v5587_v12  ;;  %v5489_v50 = vpop.xlane.xlu1 %5488 }
 0x768   : > { %v5442_v9 = vadd.f32 %v5441_v30, %v16782_v46  ;;  %5582 = vadd.xlane.f32.xlu0 %v5581_v25  ;;  %v5532_v8 = vmul.f32 %v16851_v13, %v5489_v50 }
 0x76a   : > { %v16909_v14 = vadd.f32 %v5442_v9, %v20975_v18  ;;  %v16918_v47 = vsub.f32 %v16823_v27, %v5532_v8 }
 0x76c   : > { %v5505_v55 = vsel %vm710_vm1, %v16909_v14, 0.0  ;;  %v5564_v56 = vmul.f32 %v16918_v47, %v16918_v47 }
 0x76e   : > { %v5590_v40 = vsel %vm710_vm1, %v5564_v56, 0.0 }
 0x76f   : > { %v5492_v44 = vpop.xlane.xlu0 %5491  ;;  %5506 = vadd.xlane.f32.xlu1 %v5505_v55 }
 0x770   : > { %v5533_v48 = vmul.f32 %v16851_v13, %v5492_v44  ;;  %5500 = vadd.xlane.f32.xlu0 %v5499_v57 }
 0x771   : > { %v5444_v21 = vpop.f32.mrf.mxu0 }
 0x772   : > { %v16924_v7 = vsub.f32 %v16832_v51, %v5533_v48  ;;  %v5445_v61 = vadd.f32 %v5444_v21, %v16782_v46  ;;  %v16981_v48 = vperm.slane %v16777_v4, 2 }
 0x774   : > { %v5565_v43 = vmul.f32 %v16924_v7, %v16924_v7  ;;  %v16934_v20 = vadd.f32 %v5445_v61, %v20977_v62 }
 0x776   : > { %v5593_v27 = vsel %vm710_vm1, %v5565_v43, 0.0  ;;  %v5508_v6 = vsel %vm710_vm1, %v16934_v20, 0.0 }
 0x777   : > { %5594 = vadd.xlane.f32.xlu2 %v5593_v27 }
 0x778   : > { %5591 = vadd.xlane.f32.xlu0 %v5590_v40 }
 0x77f   : > { %v5447_v51 = vpop.f32.mrf.mxu0 }
 0x780   : > { %v5448_v39 = vadd.f32 %v5447_v51, %v16782_v46  ;;  %5509 = vadd.xlane.f32.xlu0 %v5508_v6 }
 0x782   : > { %v16940_v58 = vadd.f32 %v5448_v39, %v20978_v17 }
 0x784   : > { %v5511_v41 = vsel %vm710_vm1, %v16940_v58, 0.0 }
 0x785   : > { %5512 = vadd.xlane.f32.xlu2 %v5511_v41 }
 0x7ab   : > { %v5450_v33 = vpop.f32.mrf.mxu0 }
 0x7ac   : > { %v5451_v59 = vadd.f32 %v5450_v33, %v16782_v46 }
 0x7ae   : > { %v16946_v35 = vadd.f32 %v5451_v59, %v20979_v15 }
 0x7b0   : > { %v5514_v29 = vsel %vm710_vm1, %v16946_v35, 0.0 }
 0x7b1   : > { %5515 = vadd.xlane.f32.xlu2 %v5514_v29 }
 0x7ba   : > { %v5577_v0 = vpop.xlane.xlu2 %5576 }
 0x7bb   : > { %v5623_v37 = vmul.f32 %v5577_v0, %v16851_v13 }
 0x7bd   : > { %v5639_v2 = vadd.f32 1e-05, %v5623_v37 }
 0x7bf   : > { %14206 = vrsqrt.f32 %v5639_v2  ;;  %vm5661_vm6 = vweird.f32 %v5639_v2 }
 0x7c2   : > { %v5495_v45 = vpop.xlane.xlu2 %5494  ;;  %v5580_v54 = vpop.xlane.xlu1 %5579 }
 0x7c3   : > { %v5534_v11 = vmul.f32 %v16851_v13, %v5495_v45  ;;  %v5624_v34 = vmul.f32 %v5580_v54, %v16851_v13 }
 0x7c5   : > { %v14207_v16 = vpop.eup %14206  ;;  %v16966_v38 = vsub.f32 %v16866_v63, %v5534_v11  ;;  %v5640_v28 = vadd.f32 1e-05, %v5624_v34 }
 0x7c6   : > { %v5656_v53 = vmul.f32 %v14207_v16, %v5639_v2  ;;  %vm5662_vm5 = vweird.f32 %v14207_v16 }
 0x7c7   : > { %14208 = vrsqrt.f32 %v5640_v28  ;;  %v5566_v10 = vmul.f32 %v16966_v38, %v16966_v38  ;;  %vm5663_vm7 = vmor %vm5661_vm6, %vm5662_vm5  ;;  %vm5671_vm9 = vweird.f32 %v5640_v28 }
 0x7c8   : > { %v5657_v31 = vmul.f32 %v14207_v16, %v5656_v53 }
 0x7c9   : > { %v5596_v12 = vsel %vm710_vm1, %v5566_v10, 0.0 }
 0x7ca   : > { %v5658_v25 = vmul.f32 0.5, %v5657_v31  ;;  %5597 = vadd.xlane.f32.xlu1 %v5596_v12  ;;  %v5498_v1 = vpop.xlane.xlu1 %5497  ;;  %v5453_v31 = vpop.f32.mrf.mxu0 }
 0x7cb   : > { %v5535_v30 = vmul.f32 %v16851_v13, %v5498_v1 }
 0x7cc   : > { %v5659_v9 = vsub.f32 1.5, %v5658_v25 }
 0x7cd   : > { %v14209_v50 = vpop.eup %14208  ;;  %v16973_v63 = vsub.f32 %v16875_v42, %v5535_v30 }
 0x7ce   : > { %v5660_v18 = vmul.f32 %v14207_v16, %v5659_v9  ;;  %v5666_v8 = vmul.f32 %v14209_v50, %v5640_v28  ;;  %vm5672_vm8 = vweird.f32 %v14209_v50 }
 0x7cf   : > { %v5567_v55 = vmul.f32 %v16973_v63, %v16973_v63  ;;  %vm5673_vm10 = vmor %vm5671_vm9, %vm5672_vm8 }
 0x7d0   : > { %v5664_v44 = vsel %vm5663_vm7, %v14207_v16, %v5660_v18  ;;  %v5667_v57 = vmul.f32 %v14209_v50, %v5666_v8  ;;  %v5454_v18 = vadd.f32 %v5453_v31, %v16782_v46 }
 0x7d1   : > { %v5815_v56 = vmul.f32 %v5664_v44, %v16855_v3  ;;  %v5599_v42 = vsel %vm710_vm1, %v5567_v55, 0.0 }
 0x7d2   : > { %v5668_v21 = vmul.f32 0.5, %v5667_v57  ;;  %v5586_v43 = vpop.xlane.xlu2 %5585  ;;  %5600 = vadd.xlane.f32.xlu0 %v5599_v42 }
 0x7d3   : > { %v5832_v27 = vmul.f32 %v16976_v24, %v5815_v56  ;;  %v5626_v61 = vmul.f32 %v5586_v43, %v16851_v13 }
 0x7d4   : > { %v5669_v40 = vsub.f32 1.5, %v5668_v21 }
 0x7d5   : > { %v16988_v62 = vadd.f32 %v16981_v48, %v5832_v27  ;;  %v16990_v51 = vadd.f32 1e-05, %v5626_v61  ;;  %v20980_v61 = vld [vmem:[#allocation17_spill] sm:$0xff] }
 0x7d6   : > { %v5670_v4 = vmul.f32 %v14209_v50, %v5669_v40  ;;  %v17045_v40 = vadd.f32 %v5454_v18, %v20980_v61 }
 0x7d7   : > { %14210 = vrsqrt.f32 %v16990_v51  ;;  %13279 = vmatmul.msk.f32.vlgmr.msra.gmra.mxu2 %vm710_vm1, %v16988_v62  ;;  %vm5691_vm15 = vweird.f32 %v16990_v51 }
 0x7d8   : > { %v5674_v3 = vsel %vm5673_vm10, %v14209_v50, %v5670_v4 }
 0x7d9   : > { %v5816_v6 = vmul.f32 %v5674_v3, %v16863_v26 }
 0x7da   : > { %v5504_v39 = vpop.xlane.xlu2 %5503  ;;  %v5589_v17 = vpop.xlane.xlu1 %5588 }
 0x7db   : > { %v5537_v41 = vmul.f32 %v16851_v13, %v5504_v39  ;;  %v5583_v33 = vpop.xlane.xlu0 %5582  ;;  %v5627_v59 = vmul.f32 %v5589_v17, %v16851_v13  ;;  %v5833_v15 = vmul.f32 %v16976_v24, %v5816_v6 }
 0x7dc   : > { %v5625_v29 = vmul.f32 %v5583_v33, %v16851_v13 }
 0x7dd   : > { %v17000_v32 = vpop.eup %14210  ;;  %v17003_v5 = vsub.f32 %v16896_v36, %v5537_v41  ;;  %v17005_v22 = vadd.f32 1e-05, %v5627_v59  ;;  %v17008_v26 = vadd.f32 %v16981_v48, %v5833_v15  ;;  %v5517_v41 = vsel %vm710_vm1, %v17045_v40, 0.0 }
 0x7de   : > { %v5641_v49 = vadd.f32 1e-05, %v5625_v29  ;;  %v5686_v0 = vmul.f32 %v17000_v32, %v16990_v51  ;;  %vm5692_vm12 = vweird.f32 %v17000_v32 }
 0x7df   : > { %14212 = vrsqrt.f32 %v17005_v22  ;;  %13280 = vmatmul.msk.f32.gmra.mxu2 %vm710_vm1, %v17008_v26  ;;  %v5569_v37 = vmul.f32 %v17003_v5, %v17003_v5  ;;  %vm5693_vm4 = vmor %vm5691_vm15, %vm5692_vm12  ;;  %vm5701_vm6 = vweird.f32 %v17005_v22 }
 0x7e0   : > { %14214 = vrsqrt.f32 %v5641_v49  ;;  %v5687_v45 = vmul.f32 %v17000_v32, %v5686_v0  ;;  %vm5681_vm13 = vweird.f32 %v5641_v49 }
 0x7e1   : > { %v5605_v36 = vsel %vm710_vm1, %v5569_v37, 0.0 }
 0x7e2   : > { %5606 = vadd.xlane.f32.xlu0 %v5605_v36  ;;  %v5507_v2 = vpop.xlane.xlu1 %5506  ;;  %v5688_v12 = vmul.f32 0.5, %v5687_v45 }
 0x7e3   : > { %v5501_v54 = vpop.xlane.xlu0 %5500  ;;  %v5538_v11 = vmul.f32 %v16851_v13, %v5507_v2 }
 0x7e4   : > { %v5536_v34 = vmul.f32 %v16851_v13, %v5501_v54  ;;  %v5689_v55 = vsub.f32 1.5, %v5688_v12 }
 0x7e5   : > { %v17021_v16 = vpop.eup %14212  ;;  %v17024_v28 = vsub.f32 %v16909_v14, %v5538_v11 }
 0x7e6   : > { %v14215_v53 = vpop.eup %14214  ;;  %v17027_v10 = vsub.f32 %v16913_v23, %v5536_v34  ;;  %v5696_v1 = vmul.f32 %v17021_v16, %v17005_v22  ;;  %v5690_v4 = vmul.f32 %v17000_v32, %v5689_v55  ;;  %vm5702_vm5 = vweird.f32 %v17021_v16 }
 0x7e7   : > { %v5676_v25 = vmul.f32 %v14215_v53, %v5641_v49  ;;  %v5570_v30 = vmul.f32 %v17024_v28, %v17024_v28  ;;  %vm5682_vm11 = vweird.f32 %v14215_v53  ;;  %vm5703_vm7 = vmor %vm5701_vm6, %vm5702_vm5 }
 0x7e8   : > { %v5568_v9 = vmul.f32 %v17027_v10, %v17027_v10  ;;  %v5697_v57 = vmul.f32 %v17021_v16, %v5696_v1  ;;  %vm5683_vm14 = vmor %vm5681_vm13, %vm5682_vm11  ;;  %v5694_v33 = vsel %vm5693_vm4, %v17000_v32, %v5690_v4 }
 0x7e9   : > { %v5677_v50 = vmul.f32 %v14215_v53, %v5676_v25  ;;  %v5608_v14 = vsel %vm710_vm1, %v5570_v30, 0.0  ;;  %v5818_v51 = vmul.f32 %v5694_v33, %v16881_v60 }
 0x7ea   : > { %v5595_v8 = vpop.xlane.xlu2 %5594  ;;  %v5602_v23 = vsel %vm710_vm1, %v5568_v9, 0.0  ;;  %5609 = vadd.xlane.f32.xlu2 %v5608_v14  ;;  %v5698_v6 = vmul.f32 0.5, %v5697_v57 }
 0x7eb   : > { %v5678_v44 = vmul.f32 0.5, %v5677_v50  ;;  %v5629_v56 = vmul.f32 %v5595_v8, %v16851_v13  ;;  %5603 = vadd.xlane.f32.xlu1 %v5602_v23  ;;  %v5592_v42 = vpop.xlane.xlu0 %5591 }
 0x7ec   : > { %v5628_v21 = vmul.f32 %v5592_v42, %v16851_v13  ;;  %v5699_v59 = vsub.f32 1.5, %v5698_v6  ;;  %v6006_v6 = vld [vmem:[%s20592_s10 + $0x30] sm:$0xff] }
 0x7ed   : > { %v5679_v43 = vsub.f32 1.5, %v5678_v44  ;;  %v17041_v27 = vadd.f32 1e-05, %v5629_v56 }
 0x7ee   : > { %v5644_v46 = vadd.f32 1e-05, %v5628_v21  ;;  %v5700_v2 = vmul.f32 %v17021_v16, %v5699_v59 }
 0x7ef   : > { %v5680_v3 = vmul.f32 %v14215_v53, %v5679_v43  ;;  %14216 = vrsqrt.f32 %v17041_v27  ;;  %vm5721_vm12 = vweird.f32 %v17041_v27 }
 0x7f0   : > { %14218 = vrsqrt.f32 %v5644_v46  ;;  %v5704_v31 = vsel %vm5703_vm7, %v17021_v16, %v5700_v2  ;;  %vm5711_vm9 = vweird.f32 %v5644_v46 }
 0x7f1   : > { %v5684_v39 = vsel %vm5683_vm14, %v14215_v53, %v5680_v3  ;;  %v5835_v53 = vmul.f32 %v16976_v24, %v5818_v51  ;;  %v5819_v9 = vmul.f32 %v5704_v31, %v16890_v19  ;;  %v6007_v3 = vld [vmem:[%s20592_s10 + $0x38] sm:$0xff] }
 0x7f2   : > { %v5817_v17 = vmul.f32 %v5684_v39, %v16893_v52  ;;  %6066 = vmatpush.msra.mxu3 %v6007_v3  ;;  %v6004_v39 = vld [vmem:[%s20592_s10 + $0x20] sm:$0xff] }
 0x7f3   : > { %5518 = vadd.xlane.f32.xlu1 %v5517_v41  ;;  %v5510_v15 = vpop.xlane.xlu0 %5509  ;;  %v17082_v50 = vadd.f32 %v16981_v48, %v5835_v53  ;;  %v6002_v41 = vld [vmem:[%s20592_s10 + $0x10] sm:$0xff] }
 0x7f4   : > { %v5539_v29 = vmul.f32 %v16851_v13, %v5510_v15  ;;  %v5834_v49 = vmul.f32 %v16976_v24, %v5817_v17  ;;  %6067 = vmatpush.msra.mxu3 %v6006_v6  ;;  %v6003_v17 = vld [vmem:[%s20592_s10 + $0x18] sm:$0xff]  ;;  %v6001_v15 = vld [vmem:[%s20592_s10 + $0x8] sm:$0xff] }
 0x7f5   : > { %v14217_v0 = vpop.eup %14216 }
 0x7f6   : > { %v14219_v37 = vpop.eup %14218  ;;  %v17058_v36 = vsub.f32 %v16934_v20, %v5539_v29  ;;  %v17061_v52 = vadd.f32 %v16981_v48, %v5834_v49  ;;  %v5716_v32 = vmul.f32 %v14217_v0, %v17041_v27  ;;  %vm5722_vm11 = vweird.f32 %v14217_v0  ;;  %v6000_v49 = vld [vmem:[%s20592_s10] sm:$0xff] }
 0x7f7   : > { %v5706_v45 = vmul.f32 %v14219_v37, %v5644_v46  ;;  %vm5712_vm8 = vweird.f32 %v14219_v37  ;;  %vm5723_vm13 = vmor %vm5721_vm12, %vm5722_vm11 }
 0x7f8   : > { %v5513_v54 = vpop.xlane.xlu2 %5512  ;;  %13281 = vmatmul.msk.f32.gmra.mxu2 %vm710_vm1, %v17061_v52  ;;  %v5571_v60 = vmul.f32 %v17058_v36, %v17058_v36  ;;  %v5717_v12 = vmul.f32 %v14217_v0, %v5716_v32  ;;  %vm5713_vm10 = vmor %vm5711_vm9, %vm5712_vm8  ;;  %vm6009_vm8 = vcmask 523264  }
 0x7f9   : > { %v5707_v20 = vmul.f32 %v14219_v37, %v5706_v45  ;;  %v5540_v11 = vmul.f32 %v16851_v13, %v5513_v54 }
 0x7fa   : > { %v5611_v34 = vsel %vm710_vm1, %v5571_v60, 0.0  ;;  %v5718_v14 = vmul.f32 0.5, %v5717_v12 }
 0x7fb   : > { %v5708_v25 = vmul.f32 0.5, %v5707_v20  ;;  %v17076_v1 = vsub.f32 %v16940_v58, %v5540_v11  ;;  %5612 = vadd.xlane.f32.xlu0 %v5611_v34  ;;  %v5836_v58 = vmul.f32 %v16976_v24, %v5819_v9 }
 0x7fc   : > { %v5719_v8 = vsub.f32 1.5, %v5718_v14 }
 0x7fd   : > { %v5709_v30 = vsub.f32 1.5, %v5708_v25  ;;  %v5572_v22 = vmul.f32 %v17076_v1, %v17076_v1  ;;  %v17090_v55 = vadd.f32 %v16981_v48, %v5836_v58 }
 0x7fe   : > { %v5720_v44 = vmul.f32 %v14217_v0, %v5719_v8 }
 0x7ff   : > { %v5710_v18 = vmul.f32 %v14219_v37, %v5709_v30  ;;  %v5614_v16 = vsel %vm710_vm1, %v5572_v22, 0.0 }
 0x800   : > { %5615 = vadd.xlane.f32.xlu1 %v5614_v16  ;;  %13282 = vmatmul.msk.f32.gmra.mxu2 %vm710_vm1, %v17082_v50  ;;  %v5724_v56 = vsel %vm5723_vm13, %v14217_v0, %v5720_v44 }
 0x801   : > { %v5714_v23 = vsel %vm5713_vm10, %v14219_v37, %v5710_v18  ;;  %v5821_v42 = vmul.f32 %v5724_v56, %v16924_v7  ;;  %v17147_v18 = vld [vmem:[%s20591_s9] ss:$0 sm:$0xff] }
 0x802   : > { %v5820_v19 = vmul.f32 %v5714_v23, %v16918_v47 }
 0x803   : > { %v5838_v47 = vmul.f32 %v16976_v24, %v5821_v42 }
 0x804   : > { %v5837_v57 = vmul.f32 %v16976_v24, %v5820_v19 }
 0x805   : > { %v17104_v43 = vadd.f32 %v16981_v48, %v5838_v47 }
 0x806   : > { %v17098_v21 = vadd.f32 %v16981_v48, %v5837_v57 }
 0x808   : > { %13283 = vmatmul.msk.f32.gmra.mxu2 %vm710_vm1, %v17090_v55 }
 0x810   : > { %13284 = vmatmul.msk.f32.gmra.mxu2 %vm710_vm1, %v17098_v21 }
 0x818   : > { %13285 = vmatmul.msk.f32.gmra.mxu2 %vm710_vm1, %v17104_v43 }
 0x824   : > { %v5516_v27 = vpop.xlane.xlu2 %5515 }
 0x825   : > { %v5541_v46 = vmul.f32 %v16851_v13, %v5516_v27 }
 0x827   : > { %v17110_v61 = vsub.f32 %v16946_v35, %v5541_v46  ;;  %v6005_v35 = vld [vmem:[%s20592_s10 + $0x28] sm:$0xff] }
 0x828   : > { %6068 = vmatpush.msra.mxu3 %v6005_v35 }
 0x829   : > { %v5573_v7 = vmul.f32 %v17110_v61, %v17110_v61 }
 0x82a   : > { %6069 = vmatpush.msra.mxu3 %v6004_v39 }
 0x82b   : > { %v5617_v4 = vsel %vm710_vm1, %v5573_v7, 0.0 }
 0x82c   : > { %5618 = vadd.xlane.f32.xlu2 %v5617_v4  ;;  %6070 = vmatpush.msra.mxu3 %v6003_v17 }
 0x82e   : > { %6071 = vmatpush.msra.mxu3 %v6002_v41 }
 0x830   : > { %6072 = vmatpush.msra.mxu3 %v6001_v15 }
 0x832   : > { %6073 = vmatpush.msra.mxu3 %v6000_v49 }
 0x83d   : > { %v5598_v33 = vpop.xlane.xlu1 %5597 }
 0x83e   : > { %v5630_v59 = vmul.f32 %v5598_v33, %v16851_v13 }
 0x840   : > { %v5646_v29 = vadd.f32 1e-05, %v5630_v59 }
 0x842   : > { %14220 = vrsqrt.f32 %v5646_v29  ;;  %vm5731_vm15 = vweird.f32 %v5646_v29 }
 0x845   : > { %v5601_v0 = vpop.xlane.xlu0 %5600 }
 0x846   : > { %v5631_v37 = vmul.f32 %v5601_v0, %v16851_v13 }
 0x848   : > { %v14221_v51 = vpop.eup %14220  ;;  %v5647_v2 = vadd.f32 1e-05, %v5631_v37 }
 0x849   : > { %v5726_v32 = vmul.f32 %v14221_v51, %v5646_v29  ;;  %vm5732_vm14 = vweird.f32 %v14221_v51 }
 0x84a   : > { %14222 = vrsqrt.f32 %v5647_v2  ;;  %vm5733_vm4 = vmor %vm5731_vm15, %vm5732_vm14  ;;  %vm5741_vm6 = vweird.f32 %v5647_v2 }
 0x84b   : > { %v5727_v45 = vmul.f32 %v14221_v51, %v5726_v32 }
 0x84d   : > { %v5728_v54 = vmul.f32 0.5, %v5727_v45 }
 0x84f   : > { %v5729_v60 = vsub.f32 1.5, %v5728_v54 }
 0x850   : > { %v14223_v20 = vpop.eup %14222 }
 0x851   : > { %v5730_v11 = vmul.f32 %v14221_v51, %v5729_v60  ;;  %v5736_v34 = vmul.f32 %v14223_v20, %v5647_v2  ;;  %vm5742_vm5 = vweird.f32 %v14223_v20 }
 0x852   : > { %vm5743_vm7 = vmor %vm5741_vm6, %vm5742_vm5 }
 0x853   : > { %v5734_v53 = vsel %vm5733_vm4, %v14221_v51, %v5730_v11  ;;  %v5737_v31 = vmul.f32 %v14223_v20, %v5736_v34 }
 0x854   : > { %v5822_v12 = vmul.f32 %v5734_v53, %v16966_v38 }
 0x855   : > { %v5738_v25 = vmul.f32 0.5, %v5737_v31  ;;  %v5607_v30 = vpop.xlane.xlu0 %5606 }
 0x856   : > { %v5633_v22 = vmul.f32 %v5607_v30, %v16851_v13  ;;  %v5839_v9 = vmul.f32 %v16976_v24, %v5822_v12 }
 0x857   : > { %v5739_v14 = vsub.f32 1.5, %v5738_v25 }
 0x858   : > { %v17149_v16 = vadd.f32 1e-05, %v5633_v22  ;;  %v17152_v58 = vadd.f32 %v16981_v48, %v5839_v9 }
 0x859   : > { %v5740_v8 = vmul.f32 %v14223_v20, %v5739_v14 }
 0x85a   : > { %14224 = vrsqrt.f32 %v17149_v16  ;;  %v5936_v38 = vpop.f32.mrf.mxu2  ;;  %13286 = vmatmul.msk.f32.gmra.mxu2 %vm710_vm1, %v17152_v58  ;;  %vm5761_vm13 = vweird.f32 %v17149_v16 }
 0x85b   : > { %v5744_v23 = vsel %vm5743_vm7, %v14223_v20, %v5740_v8  ;;  %v5937_v19 = vadd.f32 %v17147_v18, %v5936_v38 }
 0x85c   : > { %v5823_v44 = vmul.f32 %v5744_v23, %v16973_v63 }
 0x85d   : > { %v5984_v57 = vmax.f32 %v5937_v19, 0.0  ;;  %v5610_v56 = vpop.xlane.xlu2 %5609 }
 0x85e   : > { %v5634_v42 = vmul.f32 %v5610_v56, %v16851_v13  ;;  %v5604_v47 = vpop.xlane.xlu1 %5603  ;;  %v5840_v27 = vmul.f32 %v16976_v24, %v5823_v44 }
 0x85f   : > { %v5632_v46 = vmul.f32 %v5604_v47, %v16851_v13  ;;  %13295 = vmatmul.msk.f32.vlgmr.msra.gmra.mxu3 %vm6009_vm8, %v5984_v57 }
 0x860   : > { %v14225_v7 = vpop.eup %14224  ;;  %v5650_v4 = vadd.f32 1e-05, %v5634_v42  ;;  %v17164_v3 = vadd.f32 %v16981_v48, %v5840_v27 }
 0x861   : > { %v5648_v6 = vadd.f32 1e-05, %v5632_v46  ;;  %v5756_v63 = vmul.f32 %v14225_v7, %v17149_v16  ;;  %vm5762_vm10 = vweird.f32 %v14225_v7 }
 0x862   : > { %14226 = vrsqrt.f32 %v5650_v4  ;;  %v5939_v35 = vpop.f32.mrf.mxu2  ;;  %13287 = vmatmul.msk.f32.gmra.mxu2 %vm710_vm1, %v17164_v3  ;;  %vm5763_vm14 = vmor %vm5761_vm13, %vm5762_vm10  ;;  %vm5771_vm4 = vweird.f32 %v5650_v4 }
 0x863   : > { %14228 = vrsqrt.f32 %v5648_v6  ;;  %v5940_v39 = vadd.f32 %v17147_v18, %v5939_v35  ;;  %v5757_v41 = vmul.f32 %v14225_v7, %v5756_v63  ;;  %vm5751_vm11 = vweird.f32 %v5648_v6 }
 0x865   : > { %v5985_v17 = vmax.f32 %v5940_v39, 0.0  ;;  %v5758_v0 = vmul.f32 0.5, %v5757_v41 }
 0x866   : > { %v5519_v33 = vpop.xlane.xlu1 %5518 }
 0x867   : > { %v5542_v59 = vmul.f32 %v16851_v13, %v5519_v33  ;;  %13296 = vmatmul.msk.f32.gmra.mxu3 %vm6009_vm8, %v5985_v17  ;;  %v5759_v54 = vsub.f32 1.5, %v5758_v0 }
 0x868   : > { %v14227_v15 = vpop.eup %14226 }
 0x869   : > { %v14229_v29 = vpop.eup %14228  ;;  %v17173_v49 = vsub.f32 %v17045_v40, %v5542_v59  ;;  %v5766_v37 = vmul.f32 %v14227_v15, %v5650_v4  ;;  %v5760_v31 = vmul.f32 %v14225_v7, %v5759_v54  ;;  %vm5772_vm15 = vweird.f32 %v14227_v15 }
 0x86a   : > { %v5746_v51 = vmul.f32 %v14229_v29, %v5648_v6  ;;  %vm5752_vm9 = vweird.f32 %v14229_v29  ;;  %vm5773_vm5 = vmor %vm5771_vm4, %vm5772_vm15 }
 0x86b   : > { %v5574_v2 = vmul.f32 %v17173_v49, %v17173_v49  ;;  %v5767_v60 = vmul.f32 %v14227_v15, %v5766_v37  ;;  %vm5753_vm12 = vmor %vm5751_vm11, %vm5752_vm9  ;;  %v5764_v8 = vsel %vm5763_vm14, %v14225_v7, %v5760_v31 }
 0x86c   : > { %v5747_v32 = vmul.f32 %v14229_v29, %v5746_v51  ;;  %v5825_v57 = vmul.f32 %v5764_v8, %v17003_v5 }
 0x86d   : > { %v5620_v45 = vsel %vm710_vm1, %v5574_v2, 0.0  ;;  %v5768_v12 = vmul.f32 0.5, %v5767_v60 }
 0x86e   : > { %v5748_v20 = vmul.f32 0.5, %v5747_v32  ;;  %v5613_v11 = vpop.xlane.xlu0 %5612  ;;  %5621 = vadd.xlane.f32.xlu0 %v5620_v45  ;;  %v5842_v46 = vmul.f32 %v16976_v24, %v5825_v57 }
 0x86f   : > { %v5635_v34 = vmul.f32 %v5613_v11, %v16851_v13  ;;  %v5769_v38 = vsub.f32 1.5, %v5768_v12 }
 0x870   : > { %v5749_v53 = vsub.f32 1.5, %v5748_v20  ;;  %v17194_v33 = vadd.f32 %v16981_v48, %v5842_v46 }
 0x871   : > { %v5651_v40 = vadd.f32 1e-05, %v5635_v34  ;;  %v5770_v42 = vmul.f32 %v14227_v15, %v5769_v38 }
 0x872   : > { %v5750_v25 = vmul.f32 %v14229_v29, %v5749_v53 }
 0x873   : > { %14230 = vrsqrt.f32 %v5651_v40  ;;  %v5616_v30 = vpop.xlane.xlu1 %5615  ;;  %v5774_v6 = vsel %vm5773_vm5, %v14227_v15, %v5770_v42  ;;  %vm5781_vm7 = vweird.f32 %v5651_v40 }
 0x874   : > { %v5754_v22 = vsel %vm5753_vm12, %v14229_v29, %v5750_v25  ;;  %v5636_v9 = vmul.f32 %v5616_v30, %v16851_v13  ;;  %v5826_v17 = vmul.f32 %v5774_v6, %v17024_v28 }
 0x875   : > { %v5824_v14 = vmul.f32 %v5754_v22, %v17027_v10 }
 0x876   : > { %v5652_v23 = vadd.f32 1e-05, %v5636_v9  ;;  %v5843_v0 = vmul.f32 %v16976_v24, %v5826_v17 }
 0x877   : > { %v5841_v19 = vmul.f32 %v16976_v24, %v5824_v14 }
 0x878   : > { %14232 = vrsqrt.f32 %v5652_v23  ;;  %v17203_v32 = vadd.f32 %v16981_v48, %v5843_v0  ;;  %vm5791_vm11 = vweird.f32 %v5652_v23 }
 0x879   : > { %v14231_v44 = vpop.eup %14230  ;;  %v17185_v56 = vadd.f32 %v16981_v48, %v5841_v19 }
 0x87a   : > { %v5776_v16 = vmul.f32 %v14231_v44, %v5651_v40  ;;  %vm5782_vm6 = vweird.f32 %v14231_v44 }
 0x87b   : > { %v5942_v47 = vpop.f32.mrf.mxu2  ;;  %13288 = vmatmul.msk.f32.gmra.mxu2 %vm710_vm1, %v17185_v56  ;;  %vm5783_vm9 = vmor %vm5781_vm7, %vm5782_vm6 }
 0x87c   : > { %v5777_v10 = vmul.f32 %v14231_v44, %v5776_v16  ;;  %v5943_v27 = vadd.f32 %v17147_v18, %v5942_v47 }
 0x87e   : > { %v14233_v7 = vpop.eup %14232  ;;  %v5778_v5 = vmul.f32 0.5, %v5777_v10  ;;  %v5986_v63 = vmax.f32 %v5943_v27, 0.0 }
 0x87f   : > { %v5786_v35 = vmul.f32 %v14233_v7, %v5652_v23  ;;  %vm5792_vm10 = vweird.f32 %v14233_v7 }
 0x880   : > { %v5779_v39 = vsub.f32 1.5, %v5778_v5  ;;  %13297 = vmatmul.msk.f32.gmra.mxu3 %vm6009_vm8, %v5986_v63  ;;  %vm5793_vm12 = vmor %vm5791_vm11, %vm5792_vm10  ;;  %v17238_v5 = vld [vmem:[%s20589_s7] sm:$0x3f] }
 0x881   : > { %v5787_v41 = vmul.f32 %v14233_v7, %v5786_v35  ;;  %v17241_v63 = vperm.slane %v17238_v5, 5 }
 0x882   : > { %v5780_v4 = vmul.f32 %v14231_v44, %v5779_v39 }
 0x883   : > { %v5788_v59 = vmul.f32 0.5, %v5787_v41  ;;  %v5945_v29 = vpop.f32.mrf.mxu2  ;;  %13289 = vmatmul.msk.f32.gmra.mxu2 %vm710_vm1, %v17194_v33 }
 0x884   : > { %v5946_v15 = vadd.f32 %v17147_v18, %v5945_v29  ;;  %v5784_v37 = vsel %vm5783_vm9, %v14231_v44, %v5780_v4 }
 0x885   : > { %v5789_v51 = vsub.f32 1.5, %v5788_v59  ;;  %v5827_v2 = vmul.f32 %v5784_v37, %v17058_v36 }
 0x886   : > { %v5987_v28 = vmax.f32 %v5946_v15, 0.0 }
 0x887   : > { %v5790_v45 = vmul.f32 %v14233_v7, %v5789_v51  ;;  %v5844_v20 = vmul.f32 %v16976_v24, %v5827_v2 }
 0x888   : > { %13298 = vmatmul.msk.f32.gmra.mxu3 %vm6009_vm8, %v5987_v28 }
 0x889   : > { %v5794_v11 = vsel %vm5793_vm12, %v14233_v7, %v5790_v45  ;;  %v17212_v53 = vadd.f32 %v16981_v48, %v5844_v20 }
 0x88a   : > { %v5828_v36 = vmul.f32 %v5794_v11, %v17076_v1 }
 0x88b   : > { %v5948_v54 = vpop.f32.mrf.mxu2  ;;  %13290 = vmatmul.msk.f32.gmra.mxu2 %vm710_vm1, %v17203_v32 }
 0x88c   : > { %v5949_v60 = vadd.f32 %v17147_v18, %v5948_v54  ;;  %v5845_v12 = vmul.f32 %v16976_v24, %v5828_v36 }
 0x88e   : > { %v5988_v34 = vmax.f32 %v5949_v60, 0.0  ;;  %v17220_v30 = vadd.f32 %v16981_v48, %v5845_v12 }
 0x890   : > { %13299 = vmatmul.msk.f32.gmra.mxu3 %vm6009_vm8, %v5988_v34 }
 0x893   : > { %v5951_v40 = vpop.f32.mrf.mxu2  ;;  %13291 = vmatmul.msk.f32.gmra.mxu2 %vm710_vm1, %v17212_v53 }
 0x894   : > { %v5952_v31 = vadd.f32 %v17147_v18, %v5951_v40 }
 0x896   : > { %v5989_v25 = vmax.f32 %v5952_v31, 0.0 }
 0x898   : > { %13300 = vmatmul.msk.f32.gmra.mxu3 %vm6009_vm8, %v5989_v25 }
 0x89b   : > { %v5954_v22 = vpop.f32.mrf.mxu2  ;;  %13292 = vmatmul.msk.f32.gmra.mxu2 %vm710_vm1, %v17220_v30 }
 0x89c   : > { %v5955_v1 = vadd.f32 %v17147_v18, %v5954_v22 }
 0x89e   : > { %v5990_v9 = vmax.f32 %v5955_v1, 0.0 }
 0x89f   : > { %v5619_v14 = vpop.xlane.xlu2 %5618 }
 0x8a0   : > { %13301 = vmatmul.msk.f32.gmra.mxu3 %vm6009_vm8, %v5990_v9  ;;  %v5637_v8 = vmul.f32 %v5619_v14, %v16851_v13 }
 0x8a2   : > { %v5653_v38 = vadd.f32 1e-05, %v5637_v8 }
 0x8a4   : > { %14234 = vrsqrt.f32 %v5653_v38  ;;  %vm5801_vm14 = vweird.f32 %v5653_v38 }
 0x8aa   : > { %v14235_v23 = vpop.eup %14234 }
 0x8ab   : > { %v5796_v19 = vmul.f32 %v14235_v23, %v5653_v38  ;;  %vm5802_vm13 = vweird.f32 %v14235_v23 }
 0x8ac   : > { %vm5803_vm15 = vmor %vm5801_vm14, %vm5802_vm13 }
 0x8ad   : > { %v5797_v44 = vmul.f32 %v14235_v23, %v5796_v19 }
 0x8af   : > { %v5798_v57 = vmul.f32 0.5, %v5797_v44 }
 0x8b1   : > { %v5799_v42 = vsub.f32 1.5, %v5798_v57 }
 0x8b3   : > { %v5800_v16 = vmul.f32 %v14235_v23, %v5799_v42 }
 0x8b5   : > { %v5804_v47 = vsel %vm5803_vm15, %v14235_v23, %v5800_v16 }
 0x8b6   : > { %v5829_v10 = vmul.f32 %v5804_v47, %v17110_v61 }
 0x8b8   : > { %v5846_v27 = vmul.f32 %v16976_v24, %v5829_v10 }
 0x8ba   : > { %v17230_v46 = vadd.f32 %v16981_v48, %v5846_v27 }
 0x8bc   : > { %13293 = vmatmul.msk.f32.gmra.mxu2 %vm710_vm1, %v17230_v46 }
 0x8dd   : > { %v5957_v7 = vpop.f32.mrf.mxu2 }
 0x8de   : > { %v5958_v6 = vadd.f32 %v17147_v18, %v5957_v7 }
 0x8e0   : > { %v5991_v61 = vmax.f32 %v5958_v6, 0.0 }
 0x8e1   : > { %v5622_v35 = vpop.xlane.xlu0 %5621 }
 0x8e2   : > { %v5638_v39 = vmul.f32 %v5622_v35, %v16851_v13  ;;  %v6075_v17 = vpop.f32.mrf.mxu3  ;;  %13302 = vmatmul.msk.f32.gmra.mxu3 %vm6009_vm8, %v5991_v61 }
 0x8e3   : > { %v6076_v41 = vadd.f32 %v6075_v17, %v17241_v63 }
 0x8e4   : > { %v5654_v4 = vadd.f32 1e-05, %v5638_v39 }
 0x8e5   : > { %v5960_v59 = vpop.f32.mrf.mxu2  ;;  %v17247_v29 = vadd.f32 %v6076_v41, %v16988_v62 }
 0x8e6   : > { %14236 = vrsqrt.f32 %v5654_v4  ;;  %v5961_v15 = vadd.f32 %v17147_v18, %v5960_v59  ;;  %vm5811_vm5 = vweird.f32 %v5654_v4 }
 0x8e7   : > { %v6139_v0 = vsel %vm710_vm1, %v17247_v29, 0.0 }
 0x8e8   : > { %v5992_v37 = vmax.f32 %v5961_v15, 0.0  ;;  %6140 = vadd.xlane.f32.xlu1 %v6139_v0 }
 0x8ea   : > { %v6078_v51 = vpop.f32.mrf.mxu3  ;;  %13303 = vmatmul.msk.f32.gmra.mxu3 %vm6009_vm8, %v5992_v37 }
 0x8eb   : > { %v6079_v28 = vadd.f32 %v6078_v51, %v17241_v63 }
 0x8ec   : > { %v14237_v2 = vpop.eup %14236 }
 0x8ed   : > { %v5806_v45 = vmul.f32 %v14237_v2, %v5654_v4  ;;  %v17255_v54 = vadd.f32 %v6079_v28, %v17008_v26  ;;  %vm5812_vm4 = vweird.f32 %v14237_v2 }
 0x8ee   : > { %vm5813_vm6 = vmor %vm5811_vm5, %vm5812_vm4 }
 0x8ef   : > { %v5807_v62 = vmul.f32 %v14237_v2, %v5806_v45  ;;  %v6142_v60 = vsel %vm710_vm1, %v17255_v54, 0.0 }
 0x8f0   : > { %6143 = vadd.xlane.f32.xlu2 %v6142_v60 }
 0x8f1   : > { %v5808_v20 = vmul.f32 0.5, %v5807_v62 }
 0x8f3   : > { %v5809_v11 = vsub.f32 1.5, %v5808_v20 }
 0x8f5   : > { %v5810_v34 = vmul.f32 %v14237_v2, %v5809_v11 }
 0x8f7   : > { %v5814_v36 = vsel %vm5813_vm6, %v14237_v2, %v5810_v34 }
 0x8f8   : > { %v5830_v40 = vmul.f32 %v5814_v36, %v17173_v49 }
 0x8fa   : > { %v5847_v31 = vmul.f32 %v16976_v24, %v5830_v40 }
 0x8fc   : > { %v17262_v12 = vadd.f32 %v16981_v48, %v5847_v31 }
 0x8fe   : > { %v5963_v26 = vpop.f32.mrf.mxu2  ;;  %13294 = vmatmul.msk.f32.gmra.mxu2 %vm710_vm1, %v17262_v12 }
 0x8ff   : > { %v5964_v25 = vadd.f32 %v17147_v18, %v5963_v26 }
 0x901   : > { %v5993_v22 = vmax.f32 %v5964_v25, 0.0 }
 0x903   : > { %v6081_v1 = vpop.f32.mrf.mxu3  ;;  %13304 = vmatmul.msk.f32.gmra.mxu3 %vm6009_vm8, %v5993_v22 }
 0x904   : > { %v6082_v9 = vadd.f32 %v6081_v1, %v17241_v63 }
 0x906   : > { %v5966_v14 = vpop.f32.mrf.mxu2  ;;  %v17270_v49 = vadd.f32 %v6082_v9, %v17061_v52 }
 0x907   : > { %v5967_v24 = vadd.f32 %v17147_v18, %v5966_v14 }
 0x908   : > { %v6145_v48 = vsel %vm710_vm1, %v17270_v49, 0.0 }
 0x909   : > { %v5994_v8 = vmax.f32 %v5967_v24, 0.0  ;;  %6146 = vadd.xlane.f32.xlu0 %v6145_v48 }
 0x90b   : > { %v6084_v38 = vpop.f32.mrf.mxu3  ;;  %13305 = vmatmul.msk.f32.gmra.mxu3 %vm6009_vm8, %v5994_v8 }
 0x90c   : > { %v6085_v23 = vadd.f32 %v6084_v38, %v17241_v63 }
 0x90e   : > { %v5969_v19 = vpop.f32.mrf.mxu2  ;;  %v17278_v44 = vadd.f32 %v6085_v23, %v17082_v50 }
 0x90f   : > { %v5970_v57 = vadd.f32 %v17147_v18, %v5969_v19 }
 0x910   : > { %v6148_v52 = vsel %vm710_vm1, %v17278_v44, 0.0 }
 0x911   : > { %v5995_v42 = vmax.f32 %v5970_v57, 0.0  ;;  %6149 = vadd.xlane.f32.xlu1 %v6148_v52 }
 0x913   : > { %v6087_v16 = vpop.f32.mrf.mxu3  ;;  %13306 = vmatmul.msk.f32.gmra.mxu3 %vm6009_vm8, %v5995_v42 }
 0x914   : > { %v6088_v47 = vadd.f32 %v6087_v16, %v17241_v63 }
 0x916   : > { %v5972_v10 = vpop.f32.mrf.mxu2  ;;  %v17286_v27 = vadd.f32 %v6088_v47, %v17090_v55 }
 0x917   : > { %v5973_v7 = vadd.f32 %v17147_v18, %v5972_v10 }
 0x918   : > { %v6151_v50 = vsel %vm710_vm1, %v17286_v27, 0.0 }
 0x919   : > { %v5996_v6 = vmax.f32 %v5973_v7, 0.0  ;;  %6152 = vadd.xlane.f32.xlu2 %v6151_v50 }
 0x91b   : > { %v6090_v61 = vpop.f32.mrf.mxu3  ;;  %13307 = vmatmul.msk.f32.gmra.mxu3 %vm6009_vm8, %v5996_v6 }
 0x91c   : > { %v6091_v35 = vadd.f32 %v6090_v61, %v17241_v63 }
 0x91e   : > { %v5975_v39 = vpop.f32.mrf.mxu2  ;;  %v6128_v17 = vadd.f32 %v6091_v35, %v17098_v21 }
 0x91f   : > { %v5976_v41 = vadd.f32 %v17147_v18, %v5975_v39 }
 0x920   : > { %v6154_v55 = vsel %vm710_vm1, %v6128_v17, 0.0 }
 0x921   : > { %v5997_v4 = vmax.f32 %v5976_v41, 0.0  ;;  %6155 = vadd.xlane.f32.xlu0 %v6154_v55 }
 0x923   : > { %v6093_v59 = vpop.f32.mrf.mxu3  ;;  %13308 = vmatmul.msk.f32.gmra.mxu3 %vm6009_vm8, %v5997_v4 }
 0x924   : > { %v6094_v15 = vadd.f32 %v6093_v59, %v17241_v63 }
 0x926   : > { %v17299_v0 = vadd.f32 %v6094_v15, %v17104_v43 }
 0x928   : > { %v6157_v37 = vsel %vm710_vm1, %v17299_v0, 0.0 }
 0x929   : > { %6158 = vadd.xlane.f32.xlu2 %v6157_v37 }
 0x93f   : > { %v5978_v51 = vpop.f32.mrf.mxu2 }
 0x940   : > { %v5979_v21 = vadd.f32 %v17147_v18, %v5978_v51 }
 0x942   : > { %v5998_v28 = vmax.f32 %v5979_v21, 0.0 }
 0x944   : > { %13309 = vmatmul.msk.f32.gmra.mxu3 %vm6009_vm8, %v5998_v28 }
 0x95b   : > { %v6141_v52 = vpop.xlane.xlu1 %6140 }
 0x95c   : > { %v6187_v47 = vmul.f32 %v6141_v52, %v16851_v13 }
 0x965   : > { %v6096_v2 = vpop.f32.mrf.mxu3 }
 0x966   : > { %v6097_v45 = vadd.f32 %v6096_v2, %v17241_v63 }
 0x968   : > { %v17307_v62 = vadd.f32 %v6097_v45, %v17152_v58 }
 0x96a   : > { %v6160_v43 = vsel %vm710_vm1, %v17307_v62, 0.0 }
 0x96b   : > { %6161 = vadd.xlane.f32.xlu1 %v6160_v43 }
 0x96d   : > { %v6099_v60 = vpop.f32.mrf.mxu3 }
 0x96e   : > { %v6100_v20 = vadd.f32 %v6099_v60, %v17241_v63 }
 0x970   : > { %v17313_v11 = vadd.f32 %v6100_v20, %v17164_v3 }
 0x972   : > { %v6163_v34 = vsel %vm710_vm1, %v17313_v11, 0.0 }
 0x973   : > { %6164 = vadd.xlane.f32.xlu0 %v6163_v34 }
 0x97c   : > { %v6147_v8 = vpop.xlane.xlu0 %6146 }
 0x97d   : > { %v6189_v23 = vmul.f32 %v6147_v8, %v16851_v13 }
 0x97f   : > { %v17343_v57 = vsub.f32 %v17270_v49, %v6189_v23  ;;  %v17356_v49 = vsub.f32 %v17247_v29, %v6187_v47 }
 0x981   : > { %v5981_v36 = vpop.f32.mrf.mxu2  ;;  %v6219_v41 = vmul.f32 %v17356_v49, %v17356_v49 }
 0x982   : > { %v5982_v40 = vadd.f32 %v17147_v18, %v5981_v36 }
 0x983   : > { %v6235_v29 = vsel %vm710_vm1, %v6219_v41, 0.0  ;;  %v13315_v41 = vld [vmem:[%s20586_s4 + $0x38] sm:$0xff] }
 0x984   : > { %v5999_v31 = vmax.f32 %v5982_v40, 0.0  ;;  %v6150_v55 = vpop.xlane.xlu1 %6149  ;;  %6594 = vmatpush.msrb.mxu1 %v13315_v41 }
 0x985   : > { %v6190_v15 = vmul.f32 %v6150_v55, %v16851_v13  ;;  %v13312_v55 = vld [vmem:[%s20586_s4 + $0x20] sm:$0xff] }
 0x986   : > { %v6102_v58 = vpop.f32.mrf.mxu3  ;;  %13310 = vmatmul.msk.f32.gmra.mxu3 %vm6009_vm8, %v5999_v31 }
 0x987   : > { %v6103_v26 = vadd.f32 %v6102_v58, %v17241_v63  ;;  %v17375_v21 = vsub.f32 %v17278_v44, %v6190_v15 }
 0x989   : > { %v17321_v25 = vadd.f32 %v6103_v26, %v17185_v56  ;;  %v6222_v43 = vmul.f32 %v17375_v21, %v17375_v21 }
 0x98b   : > { %v6166_v3 = vsel %vm710_vm1, %v17321_v25, 0.0  ;;  %v6244_v20 = vsel %vm710_vm1, %v6222_v43, 0.0 }
 0x98c   : > { %6167 = vadd.xlane.f32.xlu2 %v6166_v3 }
 0x98e   : > { %v6105_v22 = vpop.f32.mrf.mxu3 }
 0x98f   : > { %v6106_v1 = vadd.f32 %v6105_v22, %v17241_v63 }
 0x991   : > { %v17327_v9 = vadd.f32 %v6106_v1, %v17194_v33 }
 0x993   : > { %v6169_v18 = vsel %vm710_vm1, %v17327_v9, 0.0 }
 0x994   : > { %6170 = vadd.xlane.f32.xlu1 %v6169_v18  ;;  %v6156_v42 = vpop.xlane.xlu0 %6155 }
 0x995   : > { %v6192_v10 = vmul.f32 %v6156_v42, %v16851_v13 }
 0x996   : > { %v6108_v14 = vpop.f32.mrf.mxu3 }
 0x997   : > { %v6109_v24 = vadd.f32 %v6108_v14, %v17241_v63  ;;  %v17358_v6 = vsub.f32 %v6128_v17, %v6192_v10  ;;  %v6144_v17 = vpop.xlane.xlu2 %6143 }
 0x998   : > { %v6188_v1 = vmul.f32 %v6144_v17, %v16851_v13  ;;  %v13313_v17 = vld [vmem:[%s20586_s4 + $0x28] sm:$0xff] }
 0x999   : > { %v17333_v56 = vadd.f32 %v6109_v24, %v17203_v32  ;;  %v6224_v39 = vmul.f32 %v17358_v6, %v17358_v6 }
 0x99b   : > { %v6172_v48 = vsel %vm710_vm1, %v17333_v56, 0.0 }
 0x99c   : > { %6173 = vadd.xlane.f32.xlu0 %v6172_v48  ;;  %v17408_v48 = vsub.f32 %v17255_v54, %v6188_v1  ;;  %v17476_v1 = vperm.slane %v17238_v5, 4 }
 0x99e   : > { %v6111_v38 = vpop.f32.mrf.mxu3  ;;  %v6220_v54 = vmul.f32 %v17408_v48, %v17408_v48 }
 0x99f   : > { %v6112_v33 = vadd.f32 %v6111_v38, %v17241_v63  ;;  %v6153_v4 = vpop.xlane.xlu2 %6152 }
 0x9a0   : > { %v6238_v42 = vsel %vm710_vm1, %v6220_v54, 0.0 }
 0x9a1   : > { %v17340_v19 = vadd.f32 %v6112_v33, %v17212_v53  ;;  %v6221_v53 = vmul.f32 %v17343_v57, %v17343_v57 }
 0x9a3   : > { %v6175_v32 = vsel %vm710_vm1, %v17340_v19, 0.0  ;;  %v6241_v61 = vsel %vm710_vm1, %v6221_v53, 0.0 }
 0x9a4   : > { %6176 = vadd.xlane.f32.xlu2 %v6175_v32 }
 0x9a6   : > { %v6114_v16 = vpop.f32.mrf.mxu3 }
 0x9a7   : > { %v6115_v7 = vadd.f32 %v6114_v16, %v17241_v63  ;;  %v6159_v2 = vpop.xlane.xlu2 %6158 }
 0x9a8   : > { %v6193_v45 = vmul.f32 %v6159_v2, %v16851_v13 }
 0x9a9   : > { %v17353_v50 = vadd.f32 %v6115_v7, %v17220_v30  ;;  %v6250_v30 = vsel %vm710_vm1, %v6224_v39, 0.0 }
 0x9aa   : > { %v17383_v60 = vsub.f32 %v17299_v0, %v6193_v45 }
 0x9ab   : > { %v6178_v35 = vsel %vm710_vm1, %v17353_v50, 0.0 }
 0x9ac   : > { %6242 = vadd.xlane.f32.xlu2 %v6241_v61  ;;  %6179 = vadd.xlane.f32.xlu1 %v6178_v35 }
 0x9b4   : > { %6251 = vadd.xlane.f32.xlu2 %v6250_v30  ;;  %6236 = vadd.xlane.f32.xlu1 %v6235_v29  ;;  %v13314_v30 = vld [vmem:[%s20586_s4 + $0x30] sm:$0xff] }
 0x9b5   : > { %6595 = vmatpush.msrb.mxu1 %v13314_v30 }
 0x9b7   : > { %6596 = vmatpush.msrb.mxu1 %v13313_v17 }
 0x9b9   : > { %6597 = vmatpush.msrb.mxu1 %v13312_v55 }
 0x9c7   : > { %v6117_v59 = vpop.f32.mrf.mxu3 }
 0x9c8   : > { %v6118_v37 = vadd.f32 %v6117_v59, %v17241_v63 }
 0x9ca   : > { %v17372_v51 = vadd.f32 %v6118_v37, %v17230_v46  ;;  %v6225_v46 = vmul.f32 %v17383_v60, %v17383_v60 }
 0x9cc   : > { %v6181_v28 = vsel %vm710_vm1, %v17372_v51, 0.0  ;;  %v6253_v44 = vsel %vm710_vm1, %v6225_v46, 0.0 }
 0x9cd   : > { %6182 = vadd.xlane.f32.xlu1 %v6181_v28 }
 0x9d5   : > { %6245 = vadd.xlane.f32.xlu1 %v6244_v20 }
 0x9dd   : > { %6254 = vadd.xlane.f32.xlu1 %v6253_v44 }
 0x9de   : > { %v6162_v58 = vpop.xlane.xlu1 %6161 }
 0x9e6   : > { %v6165_v34 = vpop.xlane.xlu0 %6164 }
 0x9e7   : > { %v6195_v36 = vmul.f32 %v6165_v34, %v16851_v13 }
 0x9e9   : > { %v17391_v40 = vsub.f32 %v17313_v11, %v6195_v36 }
 0x9eb   : > { %v6227_v31 = vmul.f32 %v17391_v40, %v17391_v40 }
 0x9ed   : > { %v6259_v0 = vsel %vm710_vm1, %v6227_v31, 0.0 }
 0x9ee   : > { %6260 = vadd.xlane.f32.xlu2 %v6259_v0 }
 0x9ff   : > { %v6168_v23 = vpop.xlane.xlu2 %6167 }
 0xa00   : > { %v6196_v29 = vmul.f32 %v6168_v23, %v16851_v13 }
 0xa07   : > { %v6171_v26 = vpop.xlane.xlu1 %6170 }
 0xa08   : > { %v6197_v3 = vmul.f32 %v6171_v26, %v16851_v13  ;;  %v17472_v26 = vperm.slane %v17238_v5, 3 }
 0xa09   : > { %v6120_v22 = vpop.f32.mrf.mxu3 }
 0xa0a   : > { %v17399_v18 = vsub.f32 %v17327_v9, %v6197_v3  ;;  %v6121_v14 = vadd.f32 %v6120_v22, %v17241_v63 }
 0xa0c   : > { %v17403_v11 = vadd.f32 %v6121_v14, %v17262_v12  ;;  %v6229_v24 = vmul.f32 %v17399_v18, %v17399_v18  ;;  %v6191_v12 = vmul.f32 %v6153_v4, %v16851_v13  ;;  %v17457_v4 = vsub.f32 %v17321_v25, %v6196_v29 }
 0xa0e   : > { %v6184_v8 = vsel %vm710_vm1, %v17403_v11, 0.0  ;;  %v6265_v38 = vsel %vm710_vm1, %v6229_v24, 0.0  ;;  %v17423_v52 = vsub.f32 %v17286_v27, %v6191_v12  ;;  %v6228_v45 = vmul.f32 %v17457_v4, %v17457_v4 }
 0xa0f   : > { %6185 = vadd.xlane.f32.xlu0 %v6184_v8  ;;  %v6174_v9 = vpop.xlane.xlu0 %6173  ;;  %6266 = vadd.xlane.f32.xlu2 %v6265_v38 }
 0xa10   : > { %v6198_v63 = vmul.f32 %v6174_v9, %v16851_v13  ;;  %v6223_v53 = vmul.f32 %v17423_v52, %v17423_v52  ;;  %v6262_v25 = vsel %vm710_vm1, %v6228_v45, 0.0 }
 0xa12   : > { %v17416_v33 = vsub.f32 %v17333_v56, %v6198_v63  ;;  %v6194_v56 = vmul.f32 %v6162_v58, %v16851_v13  ;;  %v6247_v35 = vsel %vm710_vm1, %v6223_v53, 0.0 }
 0xa14   : > { %v6230_v32 = vmul.f32 %v17416_v33, %v17416_v33  ;;  %v17437_v61 = vsub.f32 %v17307_v62, %v6194_v56 }
 0xa16   : > { %v6268_v16 = vsel %vm710_vm1, %v6230_v32, 0.0  ;;  %v6226_v62 = vmul.f32 %v17437_v61, %v17437_v61 }
 0xa17   : > { %6239 = vadd.xlane.f32.xlu0 %v6238_v42  ;;  %v6177_v47 = vpop.xlane.xlu2 %6176  ;;  %6269 = vadd.xlane.f32.xlu1 %v6268_v16 }
 0xa18   : > { %v6199_v10 = vmul.f32 %v6177_v47, %v16851_v13  ;;  %v6256_v59 = vsel %vm710_vm1, %v6226_v62, 0.0 }
 0xa1a   : > { %v17430_v7 = vsub.f32 %v17340_v19, %v6199_v10 }
 0xa1c   : > { %v6231_v27 = vmul.f32 %v17430_v7, %v17430_v7 }
 0xa1e   : > { %v6271_v39 = vsel %vm710_vm1, %v6231_v27, 0.0 }
 0xa1f   : > { %6248 = vadd.xlane.f32.xlu0 %v6247_v35  ;;  %6272 = vadd.xlane.f32.xlu2 %v6271_v39  ;;  %v6180_v19 = vpop.xlane.xlu1 %6179  ;;  %v6243_v5 = vpop.xlane.xlu2 %6242 }
 0xa20   : > { %v6200_v28 = vmul.f32 %v6180_v19, %v16851_v13  ;;  %v6285_v9 = vmul.f32 %v6243_v5, %v16851_v13 }
 0xa22   : > { %v17465_v43 = vsub.f32 %v17353_v50, %v6200_v28  ;;  %v6301_v63 = vadd.f32 1e-05, %v6285_v9 }
 0xa24   : > { %v6232_v20 = vmul.f32 %v17465_v43, %v17465_v43  ;;  %vm6341_vm15 = vweird.f32 %v6301_v63 }
 0xa26   : > { %v6274_v36 = vsel %vm710_vm1, %v6232_v20, 0.0 }
 0xa27   : > { %6257 = vadd.xlane.f32.xlu0 %v6256_v59  ;;  %v6237_v15 = vpop.xlane.xlu1 %6236  ;;  %v6252_v19 = vpop.xlane.xlu2 %6251 }
 0xa28   : > { %v6283_v37 = vmul.f32 %v6237_v15, %v16851_v13  ;;  %v6288_v55 = vmul.f32 %v6252_v19, %v16851_v13 }
 0xa2a   : > { %v6299_v2 = vadd.f32 1e-05, %v6283_v37  ;;  %v17503_v45 = vadd.f32 1e-05, %v6288_v55 }
 0xa2c   : > { %14238 = vrsqrt.f32 %v6299_v2  ;;  %vm6321_vm9 = vweird.f32 %v6299_v2 }
 0xa2d   : > { %14240 = vrsqrt.f32 %v6301_v63 }
 0xa2f   : > { %6263 = vadd.xlane.f32.xlu0 %v6262_v25 }
 0xa32   : > { %v14239_v46 = vpop.eup %14238 }
 0xa33   : > { %v6316_v44 = vmul.f32 %v14239_v46, %v6299_v2  ;;  %vm6322_vm7 = vweird.f32 %v14239_v46  ;;  %v14241_v56 = vpop.eup %14240 }
 0xa34   : > { %vm6323_vm10 = vmor %vm6321_vm9, %vm6322_vm7  ;;  %v6336_v35 = vmul.f32 %v14241_v56, %v6301_v63  ;;  %vm6342_vm12 = vweird.f32 %v14241_v56 }
 0xa35   : > { %v6317_v34 = vmul.f32 %v14239_v46, %v6316_v44  ;;  %vm6343_vm4 = vmor %vm6341_vm15, %vm6342_vm12 }
 0xa36   : > { %v6337_v41 = vmul.f32 %v14241_v56, %v6336_v35 }
 0xa37   : > { %6275 = vadd.xlane.f32.xlu0 %v6274_v36  ;;  %v6318_v31 = vmul.f32 0.5, %v6317_v34 }
 0xa38   : > { %v6338_v17 = vmul.f32 0.5, %v6337_v41 }
 0xa39   : > { %v6319_v0 = vsub.f32 1.5, %v6318_v31 }
 0xa3a   : > { %v6339_v2 = vsub.f32 1.5, %v6338_v17 }
 0xa3b   : > { %v6320_v58 = vmul.f32 %v14239_v46, %v6319_v0 }
 0xa3c   : > { %v6340_v36 = vmul.f32 %v14241_v56, %v6339_v2 }
 0xa3d   : > { %v6324_v50 = vsel %vm6323_vm10, %v14239_v46, %v6320_v58 }
 0xa3e   : > { %v6475_v3 = vmul.f32 %v6324_v50, %v17356_v49 }
 0xa40   : > { %v6183_v22 = vpop.xlane.xlu1 %6182  ;;  %v6492_v14 = vmul.f32 %v17472_v26, %v6475_v3 }
 0xa41   : > { %v6201_v24 = vmul.f32 %v6183_v22, %v16851_v13 }
 0xa42   : > { %v17481_v8 = vadd.f32 %v17476_v1, %v6492_v14 }
 0xa43   : > { %v17484_v38 = vsub.f32 %v17372_v51, %v6201_v24  ;;  %v6344_v24 = vsel %vm6343_vm4, %v14241_v56, %v6340_v36 }
 0xa44   : > { %20981 = vst [vmem:[#allocation52_spill] sm:$0xff] %v17481_v8  ;;  %13316 = vmatmul.msk.f32.vlgmr.msrb.gmra.mxu1 %vm710_vm1, %v17481_v8 }
 0xa45   : > { %v6233_v49 = vmul.f32 %v17484_v38, %v17484_v38 }
 0xa47   : > { %v6277_v23 = vsel %vm710_vm1, %v6233_v49, 0.0 }
 0xa48   : > { %6278 = vadd.xlane.f32.xlu1 %v6277_v23  ;;  %v6246_v12 = vpop.xlane.xlu1 %6245 }
 0xa49   : > { %v6286_v51 = vmul.f32 %v6246_v12, %v16851_v13 }
 0xa4b   : > { %v6302_v47 = vadd.f32 1e-05, %v6286_v51 }
 0xa4d   : > { %14242 = vrsqrt.f32 %v6302_v47  ;;  %vm6351_vm6 = vweird.f32 %v6302_v47 }
 0xa50   : > { %v6255_v20 = vpop.xlane.xlu1 %6254 }
 0xa51   : > { %v6289_v31 = vmul.f32 %v6255_v20, %v16851_v13 }
 0xa53   : > { %v17507_v22 = vadd.f32 1e-05, %v6289_v31 }
 0xa55   : > { %vm6381_vm4 = vweird.f32 %v17507_v22 }
 0xa82   : > { %v6186_v54 = vpop.xlane.xlu0 %6185 }
 0xa83   : > { %v6202_v32 = vmul.f32 %v6186_v54, %v16851_v13  ;;  %v6477_v54 = vmul.f32 %v6344_v24, %v17343_v57 }
 0xa85   : > { %v17495_v42 = vsub.f32 %v17403_v11, %v6202_v32  ;;  %v14243_v11 = vpop.eup %14242  ;;  %v6494_v57 = vmul.f32 %v17472_v26, %v6477_v54 }
 0xa86   : > { %v6346_v15 = vmul.f32 %v14243_v11, %v6302_v47  ;;  %vm6352_vm5 = vweird.f32 %v14243_v11 }
 0xa87   : > { %v6234_v16 = vmul.f32 %v17495_v42, %v17495_v42  ;;  %vm6353_vm7 = vmor %vm6351_vm6, %vm6352_vm5 }
 0xa88   : > { %v6347_v25 = vmul.f32 %v14243_v11, %v6346_v15 }
 0xa89   : > { %v6280_v10 = vsel %vm710_vm1, %v6234_v16, 0.0 }
 0xa8a   : > { %v6240_v53 = vpop.xlane.xlu0 %6239  ;;  %6281 = vadd.xlane.f32.xlu2 %v6280_v10  ;;  %v6348_v0 = vmul.f32 0.5, %v6347_v25 }
 0xa8b   : > { %v6284_v27 = vmul.f32 %v6240_v53, %v16851_v13 }
 0xa8c   : > { %v6349_v49 = vsub.f32 1.5, %v6348_v0 }
 0xa8d   : > { %v6300_v39 = vadd.f32 1e-05, %v6284_v27  ;;  %v6261_v27 = vpop.xlane.xlu2 %6260 }
 0xa8e   : > { %v6350_v16 = vmul.f32 %v14243_v11, %v6349_v49  ;;  %v6291_v19 = vmul.f32 %v6261_v27, %v16851_v13 }
 0xa8f   : > { %14244 = vrsqrt.f32 %v6300_v39  ;;  %vm6331_vm13 = vweird.f32 %v6300_v39 }
 0xa90   : > { %v6354_v53 = vsel %vm6353_vm7, %v14243_v11, %v6350_v16  ;;  %v17532_v11 = vadd.f32 1e-05, %v6291_v19 }
 0xa91   : > { %v6478_v41 = vmul.f32 %v6354_v53, %v17375_v21 }
 0xa92   : > { %v6249_v30 = vpop.xlane.xlu0 %6248 }
 0xa93   : > { %v6287_v29 = vmul.f32 %v6249_v30, %v16851_v13  ;;  %v17527_v30 = vadd.f32 %v17476_v1, %v6494_v57  ;;  %v6495_v21 = vmul.f32 %v17472_v26, %v6478_v41 }
 0xa95   : > { %v14245_v62 = vpop.eup %14244  ;;  %v6303_v59 = vadd.f32 1e-05, %v6287_v29  ;;  %20983 = vst [vmem:[#allocation74_spill] sm:$0xff] %v17527_v30  ;;  %v17541_v20 = vadd.f32 %v17476_v1, %v6495_v21  ;;  %v6267_v0 = vpop.xlane.xlu2 %6266 }
 0xa96   : > { %v6326_v37 = vmul.f32 %v14245_v62, %v6300_v39  ;;  %vm6332_vm11 = vweird.f32 %v14245_v62 }
 0xa97   : > { %14246 = vrsqrt.f32 %v6303_v59  ;;  %vm6333_vm14 = vmor %vm6331_vm13, %vm6332_vm11  ;;  %vm6361_vm10 = vweird.f32 %v6303_v59  ;;  %20984 = vst [vmem:[#allocation73_spill] sm:$0xff] %v17541_v20  ;;  %vm6371_vm13 = vweird.f32 %v17503_v45 }
 0xa98   : > { %v6327_v28 = vmul.f32 %v14245_v62, %v6326_v37  ;;  %14248 = vrsqrt.f32 %v17503_v45 }
 0xa99   : > { %14250 = vrsqrt.f32 %v17507_v22 }
 0xa9a   : > { %v6328_v46 = vmul.f32 0.5, %v6327_v28  ;;  %v6258_v5 = vpop.xlane.xlu0 %6257 }
 0xa9b   : > { %v6290_v32 = vmul.f32 %v6258_v5, %v16851_v13  ;;  %v17564_v5 = vld [vmem:[%s20587_s5 + $0x1] ss:$0 sm:$0xff] }
 0xa9c   : > { %v6329_v44 = vsub.f32 1.5, %v6328_v46 }
 0xa9d   : > { %v14247_v34 = vpop.eup %14246  ;;  %v17520_v10 = vadd.f32 1e-05, %v6290_v32  ;;  %v6270_v32 = vpop.xlane.xlu1 %6269 }
 0xa9e   : > { %v6330_v58 = vmul.f32 %v14245_v62, %v6329_v44  ;;  %v6356_v50 = vmul.f32 %v14247_v34, %v6303_v59  ;;  %v14249_v9 = vpop.eup %14248  ;;  %vm6362_vm9 = vweird.f32 %v14247_v34 }
 0xa9f   : > { %v6366_v51 = vmul.f32 %v14249_v9, %v17503_v45  ;;  %v14251_v39 = vpop.eup %14250  ;;  %14252 = vrsqrt.f32 %v17520_v10  ;;  %vm6363_vm11 = vmor %vm6361_vm10, %vm6362_vm9  ;;  %vm6372_vm12 = vweird.f32 %v14249_v9  ;;  %vm6391_vm7 = vweird.f32 %v17520_v10 }
 0xaa0   : > { %v6334_v3 = vsel %vm6333_vm14, %v14245_v62, %v6330_v58  ;;  %v6357_v23 = vmul.f32 %v14247_v34, %v6356_v50  ;;  %v6376_v29 = vmul.f32 %v14251_v39, %v17507_v22  ;;  %14254 = vrsqrt.f32 %v17532_v11  ;;  %vm6373_vm14 = vmor %vm6371_vm13, %vm6372_vm12 }
 0xaa1   : > { %v6476_v14 = vmul.f32 %v6334_v3, %v17408_v48  ;;  %v6367_v56 = vmul.f32 %v14249_v9, %v6366_v51  ;;  %vm6382_vm15 = vweird.f32 %v14251_v39  ;;  %v6294_v22 = vmul.f32 %v6270_v32, %v16851_v13 }
 0xaa2   : > { %v6358_v48 = vmul.f32 0.5, %v6357_v23  ;;  %v6377_v55 = vmul.f32 %v14251_v39, %v6376_v29  ;;  %v6264_v37 = vpop.xlane.xlu0 %6263  ;;  %vm6383_vm5 = vmor %vm6381_vm4, %vm6382_vm15 }
 0xaa3   : > { %v6493_v12 = vmul.f32 %v17472_v26, %v6476_v14  ;;  %v6368_v47 = vmul.f32 0.5, %v6367_v56  ;;  %v6292_v25 = vmul.f32 %v6264_v37, %v16851_v13  ;;  %v6293_v14 = vmul.f32 %v6267_v0, %v16851_v13 }
 0xaa4   : > { %v6359_v35 = vsub.f32 1.5, %v6358_v48  ;;  %v6378_v46 = vmul.f32 0.5, %v6377_v55 }
 0xaa5   : > { %v17515_v63 = vadd.f32 %v17476_v1, %v6493_v12  ;;  %v6369_v17 = vsub.f32 1.5, %v6368_v47  ;;  %v17535_v28 = vpop.eup %14252  ;;  %v6273_v47 = vpop.xlane.xlu2 %6272 }
 0xaa6   : > { %v6360_v62 = vmul.f32 %v14247_v34, %v6359_v35  ;;  %v6386_v44 = vmul.f32 %v17535_v28, %v17520_v10  ;;  %v6379_v31 = vsub.f32 1.5, %v6378_v46  ;;  %v14255_v50 = vpop.eup %14254  ;;  %vm6392_vm6 = vweird.f32 %v17535_v28 }
 0xaa7   : > { %20982 = vst [vmem:[#allocation75_spill] sm:$0xff] %v17515_v63  ;;  %13317 = vmatmul.msk.f32.gmra.mxu1 %vm710_vm1, %v17515_v63  ;;  %v6370_v59 = vmul.f32 %v14249_v9, %v6369_v17  ;;  %v6396_v49 = vmul.f32 %v14255_v50, %v17532_v11  ;;  %vm6393_vm9 = vmor %vm6391_vm7, %vm6392_vm6  ;;  %v6295_v17 = vmul.f32 %v6273_v47, %v16851_v13  ;;  %vm6402_vm10 = vweird.f32 %v14255_v50 }
 0xaa8   : > { %v6364_v15 = vsel %vm6363_vm11, %v14247_v34, %v6360_v62  ;;  %v17548_v34 = vadd.f32 1e-05, %v6292_v25  ;;  %v6387_v58 = vmul.f32 %v17535_v28, %v6386_v44  ;;  %v6380_v45 = vmul.f32 %v14251_v39, %v6379_v31 }
 0xaa9   : > { %v6479_v2 = vmul.f32 %v6364_v15, %v17423_v52  ;;  %v6374_v36 = vsel %vm6373_vm14, %v14249_v9, %v6370_v59  ;;  %v6397_v54 = vmul.f32 %v14255_v50, %v6396_v49  ;;  %vm6401_vm11 = vweird.f32 %v17532_v11 }
 0xaaa   : > { %v6480_v3 = vmul.f32 %v6374_v36, %v17358_v6  ;;  %14256 = vrsqrt.f32 %v17548_v34  ;;  %v6388_v23 = vmul.f32 0.5, %v6387_v58  ;;  %v17567_v6 = vadd.f32 1e-05, %v6293_v14  ;;  %vm6403_vm12 = vmor %vm6401_vm11, %vm6402_vm10  ;;  %v6276_v44 = vpop.xlane.xlu0 %6275 }
 0xaab   : > { %v6496_v52 = vmul.f32 %v17472_v26, %v6479_v2  ;;  %v6384_v12 = vsel %vm6383_vm5, %v14251_v39, %v6380_v45  ;;  %v6398_v27 = vmul.f32 0.5, %v6397_v54  ;;  %v17589_v39 = vadd.f32 1e-05, %v6294_v22 }
 0xaac   : > { %v6497_v9 = vmul.f32 %v17472_v26, %v6480_v3  ;;  %v6389_v51 = vsub.f32 1.5, %v6388_v23  ;;  %v6481_v56 = vmul.f32 %v6384_v12, %v17383_v60  ;;  %14258 = vrsqrt.f32 %v17567_v6 }
 0xaad   : > { %v17556_v24 = vadd.f32 %v17476_v1, %v6496_v52  ;;  %v6399_v19 = vsub.f32 1.5, %v6398_v27  ;;  %14260 = vrsqrt.f32 %v17589_v39  ;;  %v6296_v31 = vmul.f32 %v6276_v44, %v16851_v13 }
 0xaae   : > { %v17581_v53 = vadd.f32 %v17476_v1, %v6497_v9  ;;  %v6390_v35 = vmul.f32 %v17535_v28, %v6389_v51  ;;  %v6498_v41 = vmul.f32 %v17472_v26, %v6481_v56  ;;  %vm6411_vm14 = vweird.f32 %v17548_v34 }
 0xaaf   : > { %13318 = vmatmul.msk.f32.gmra.mxu1 %vm710_vm1, %v17527_v30  ;;  %20985 = vst [vmem:[#allocation72_spill] sm:$0xff] %v17556_v24  ;;  %v6400_v15 = vmul.f32 %v14255_v50, %v6399_v19  ;;  %vm6421_vm5 = vweird.f32 %v17567_v6 }
 0xab0   : > { %v14257_v48 = vpop.eup %14256  ;;  %20986 = vst [vmem:[#allocation77_spill] sm:$0xff] %v17581_v53  ;;  %v6394_v29 = vsel %vm6393_vm9, %v17535_v28, %v6390_v35  ;;  %v17599_v10 = vadd.f32 %v17476_v1, %v6498_v41  ;;  %v17605_v28 = vadd.f32 1e-05, %v6295_v17  ;;  %vm6431_vm9 = vweird.f32 %v17589_v39 }
 0xab1   : > { %v6406_v60 = vmul.f32 %v14257_v48, %v17548_v34  ;;  %v6482_v55 = vmul.f32 %v6394_v29, %v17437_v61  ;;  %v6404_v25 = vsel %vm6403_vm12, %v14255_v50, %v6400_v15  ;;  %vm6412_vm13 = vweird.f32 %v14257_v48 }
 0xab2   : > { %v14259_v21 = vpop.eup %14258  ;;  %20988 = vst [vmem:[#allocation78_spill] sm:$0xff] %v17599_v10  ;;  %v6483_v36 = vmul.f32 %v6404_v25, %v17391_v40  ;;  %14262 = vrsqrt.f32 %v17605_v28  ;;  %vm6413_vm15 = vmor %vm6411_vm14, %vm6412_vm13  ;;  %v6312_v40 = vadd.f32 1e-05, %v6296_v31  ;;  %vm6441_vm12 = vweird.f32 %v17605_v28 }
 0xab3   : > { %v6407_v62 = vmul.f32 %v14257_v48, %v6406_v60  ;;  %v6416_v37 = vmul.f32 %v14259_v21, %v17567_v6  ;;  %v6499_v61 = vmul.f32 %v17472_v26, %v6482_v55  ;;  %v14261_v52 = vpop.eup %14260  ;;  %vm6422_vm4 = vweird.f32 %v14259_v21 }
 0xab4   : > { %v6426_v58 = vmul.f32 %v14261_v52, %v17589_v39  ;;  %v6500_v3 = vmul.f32 %v17472_v26, %v6483_v36  ;;  %14264 = vrsqrt.f32 %v6312_v40  ;;  %vm6423_vm6 = vmor %vm6421_vm5, %vm6422_vm4  ;;  %vm6432_vm7 = vweird.f32 %v14261_v52 }
 0xab5   : > { %v6408_v2 = vmul.f32 0.5, %v6407_v62  ;;  %v6417_v59 = vmul.f32 %v14259_v21, %v6416_v37  ;;  %v17614_v11 = vadd.f32 %v17476_v1, %v6499_v61  ;;  %vm6433_vm10 = vmor %vm6431_vm9, %vm6432_vm7 }
 0xab6   : > { %v6427_v45 = vmul.f32 %v14261_v52, %v6426_v58  ;;  %v17624_v32 = vadd.f32 %v17476_v1, %v6500_v3 }
 0xab7   : > { %13319 = vmatmul.msk.f32.gmra.mxu1 %vm710_vm1, %v17541_v20  ;;  %v6409_v46 = vsub.f32 1.5, %v6408_v2  ;;  %20990 = vst [vmem:[#allocation62_spill] sm:$0xff] %v17614_v11  ;;  %v6418_v0 = vmul.f32 0.5, %v6417_v59 }
 0xab8   : > { %v14263_v9 = vpop.eup %14262  ;;  %20991 = vst [vmem:[#allocation51_spill] sm:$0xff] %v17624_v32  ;;  %v6428_v34 = vmul.f32 0.5, %v6427_v45 }
 0xab9   : > { %v6410_v50 = vmul.f32 %v14257_v48, %v6409_v46  ;;  %v6419_v14 = vsub.f32 1.5, %v6418_v0  ;;  %vm6442_vm11 = vweird.f32 %v14263_v9 }
 0xaba   : > { %v6429_v22 = vsub.f32 1.5, %v6428_v34  ;;  %v14265_v35 = vpop.eup %14264  ;;  %vm6443_vm13 = vmor %vm6441_vm12, %vm6442_vm11 }
 0xabb   : > { %v6414_v49 = vsel %vm6413_vm15, %v14257_v48, %v6410_v50  ;;  %v6279_v23 = vpop.xlane.xlu1 %6278  ;;  %v6420_v51 = vmul.f32 %v14259_v21, %v6419_v14  ;;  %v6446_v29 = vmul.f32 %v14265_v35, %v6312_v40  ;;  %vm6452_vm14 = vweird.f32 %v14265_v35 }
 0xabc   : > { %v6484_v12 = vmul.f32 %v6414_v49, %v17457_v4  ;;  %v6297_v54 = vmul.f32 %v6279_v23, %v16851_v13  ;;  %v6430_v19 = vmul.f32 %v14261_v52, %v6429_v22  ;;  %vm6451_vm15 = vweird.f32 %v6312_v40 }
 0xabd   : > { %v6424_v56 = vsel %vm6423_vm6, %v14259_v21, %v6420_v51  ;;  %v6447_v17 = vmul.f32 %v14265_v35, %v6446_v29  ;;  %vm6453_vm4 = vmor %vm6451_vm15, %vm6452_vm14 }
 0xabe   : > { %v6313_v48 = vadd.f32 1e-05, %v6297_v54  ;;  %v6501_v4 = vmul.f32 %v17472_v26, %v6484_v12  ;;  %v6485_v60 = vmul.f32 %v6424_v56, %v17399_v18  ;;  %v6434_v62 = vsel %vm6433_vm10, %v14261_v52, %v6430_v19 }
 0xabf   : > { %13320 = vmatmul.msk.f32.gmra.mxu1 %vm710_vm1, %v17556_v24  ;;  %v6486_v55 = vmul.f32 %v6434_v62, %v17416_v33  ;;  %v6448_v2 = vmul.f32 0.5, %v6447_v17 }
 0xac0   : > { %14266 = vrsqrt.f32 %v6313_v48  ;;  %v17633_v41 = vadd.f32 %v17476_v1, %v6501_v4  ;;  %v6502_v6 = vmul.f32 %v17472_v26, %v6485_v60  ;;  %vm6461_vm6 = vweird.f32 %v6313_v48 }
 0xac1   : > { %v6599_v16 = vpop.f32.mrf.mxu1  ;;  %v6503_v39 = vmul.f32 %v17472_v26, %v6486_v55  ;;  %v6449_v59 = vsub.f32 1.5, %v6448_v2 }
 0xac2   : > { %v17571_v57 = vadd.f32 %v17564_v5, %v6599_v16  ;;  %v6436_v16 = vmul.f32 %v14263_v9, %v17605_v28  ;;  %20992 = vst [vmem:[#allocation60_spill] sm:$0xff] %v17633_v41  ;;  %v17641_v15 = vadd.f32 %v17476_v1, %v6502_v6 }
 0xac3   : > { %v17649_v44 = vadd.f32 %v17476_v1, %v6503_v39  ;;  %v6450_v52 = vmul.f32 %v14265_v35, %v6449_v59 }
 0xac4   : > { %6663 = vrot.lane.b32.xlu0 %v17571_v57, %s14670_s29  ;;  %6727 = vrot.lane.b32.xlu1 %v17571_v57, %s14669_s28  ;;  %v6437_v27 = vmul.f32 %v14263_v9, %v6436_v16  ;;  %20993 = vst [vmem:[#allocation27_spill] sm:$0xff] %v17641_v15 }
 0xac5   : > { %20994 = vst [vmem:[#allocation30_spill] sm:$0xff] %v17649_v44  ;;  %v6454_v31 = vsel %vm6453_vm4, %v14265_v35, %v6450_v52 }
 0xac6   : > { %v6438_v47 = vmul.f32 0.5, %v6437_v27  ;;  %v14267_v18 = vpop.eup %14266  ;;  %v6488_v58 = vmul.f32 %v6454_v31, %v17465_v43 }
 0xac7   : > { %13321 = vmatmul.msk.f32.gmra.mxu1 %vm710_vm1, %v17581_v53  ;;  %v6456_v61 = vmul.f32 %v14267_v18, %v6313_v48  ;;  %vm6462_vm5 = vweird.f32 %v14267_v18 }
 0xac8   : > { %v6439_v21 = vsub.f32 1.5, %v6438_v47  ;;  %vm6463_vm7 = vmor %vm6461_vm6, %vm6462_vm5  ;;  %v6505_v45 = vmul.f32 %v17472_v26, %v6488_v58 }
 0xac9   : > { %v6457_v46 = vmul.f32 %v14267_v18, %v6456_v61 }
 0xaca   : > { %v6440_v37 = vmul.f32 %v14263_v9, %v6439_v21  ;;  %v17664_v23 = vadd.f32 %v17476_v1, %v6505_v45 }
 0xacb   : > { %v6458_v36 = vmul.f32 0.5, %v6457_v46 }
 0xacc   : > { %6759 = vrot.lane.b32.xlu0 %v17571_v57, %s20987_s16  ;;  %v6444_v25 = vsel %vm6443_vm13, %v14263_v9, %v6440_v37  ;;  %20996 = vst [vmem:[#allocation76_spill] sm:$0xff] %v17664_v23 }
 0xacd   : > { %v6487_v33 = vmul.f32 %v6444_v25, %v17430_v7  ;;  %v6459_v0 = vsub.f32 1.5, %v6458_v36 }
 0xacf   : > { %13322 = vmatmul.msk.f32.gmra.mxu1 %vm710_vm1, %v17599_v10  ;;  %v6504_v28 = vmul.f32 %v17472_v26, %v6487_v33  ;;  %v6460_v3 = vmul.f32 %v14267_v18, %v6459_v0 }
 0xad1   : > { %v17656_v7 = vadd.f32 %v17476_v1, %v6504_v28  ;;  %v6464_v49 = vsel %vm6463_vm7, %v14267_v18, %v6460_v3 }
 0xad2   : > { %v6489_v43 = vmul.f32 %v6464_v49, %v17484_v38 }
 0xad3   : > { %20995 = vst [vmem:[#allocation34_spill] sm:$0xff] %v17656_v7 }
 0xad4   : > { %6695 = vrot.lane.b32.xlu0 %v17571_v57, %s20989_s17  ;;  %v6506_v54 = vmul.f32 %v17472_v26, %v6489_v43 }
 0xad6   : > { %v17670_v16 = vadd.f32 %v17476_v1, %v6506_v54 }
 0xad7   : > { %13323 = vmatmul.msk.f32.gmra.mxu1 %vm710_vm1, %v17614_v11 }
 0xad8   : > { %20997 = vst [vmem:[#allocation21_spill] sm:$0xff] %v17670_v16 }
 0xadf   : > { %13324 = vmatmul.msk.f32.gmra.mxu1 %vm710_vm1, %v17624_v32 }
 0xae7   : > { %13325 = vmatmul.msk.f32.gmra.mxu1 %vm710_vm1, %v17633_v41 }
 0xaef   : > { %13326 = vmatmul.msk.f32.gmra.mxu1 %vm710_vm1, %v17641_v15 }
 0xaf7   : > { %13327 = vmatmul.msk.f32.gmra.mxu1 %vm710_vm1, %v17649_v44 }
 0xafd   : > { %v6282_v50 = vpop.xlane.xlu2 %6281 }
 0xafe   : > { %v6298_v14 = vmul.f32 %v6282_v50, %v16851_v13 }
 0xaff   : > { %13328 = vmatmul.msk.f32.gmra.mxu1 %vm710_vm1, %v17656_v7 }
 0xb00   : > { %v6314_v40 = vadd.f32 1e-05, %v6298_v14 }
 0xb02   : > { %14268 = vrsqrt.f32 %v6314_v40  ;;  %vm6471_vm10 = vweird.f32 %v6314_v40 }
 0xb07   : > { %13329 = vmatmul.msk.f32.gmra.mxu1 %vm710_vm1, %v17664_v23 }
 0xb08   : > { %v14269_v9 = vpop.eup %14268 }
 0xb09   : > { %v6466_v12 = vmul.f32 %v14269_v9, %v6314_v40  ;;  %vm6472_vm9 = vweird.f32 %v14269_v9 }
 0xb0a   : > { %vm6473_vm11 = vmor %vm6471_vm10, %vm6472_vm9 }
 0xb0b   : > { %v6467_v51 = vmul.f32 %v14269_v9, %v6466_v12 }
 0xb0d   : > { %v6468_v34 = vmul.f32 0.5, %v6467_v51 }
 0xb0f   : > { %v6469_v48 = vsub.f32 1.5, %v6468_v34  ;;  %13330 = vmatmul.msk.f32.gmra.mxu1 %vm710_vm1, %v17670_v16 }
 0xb11   : > { %v6470_v38 = vmul.f32 %v14269_v9, %v6469_v48 }
 0xb13   : > { %v6474_v4 = vsel %vm6473_vm11, %v14269_v9, %v6470_v38 }
 0xb14   : > { %v6490_v56 = vmul.f32 %v6474_v4, %v17495_v42 }
 0xb16   : > { %v6507_v22 = vmul.f32 %v17472_v26, %v6490_v56 }
 0xb18   : > { %v17677_v27 = vadd.f32 %v17476_v1, %v6507_v22 }
 0xb1a   : > { %20998 = vst [vmem:[#allocation71_spill] sm:$0xff] %v17677_v27  ;;  %13331 = vmatmul.msk.f32.gmra.mxu1 %vm710_vm1, %v17677_v27 }
 0xb24   : > { %v6602_v35 = vpop.f32.mrf.mxu1 }
 0xb25   : > { %v17682_v60 = vadd.f32 %v17564_v5, %v6602_v35 }
 0xb27   : > { %6665 = vrot.lane.b32.xlu2 %v17682_v60, %s14670_s29  ;;  %6697 = vrot.lane.b32.xlu0 %v17682_v60, %s20989_s17  ;;  %v13787_v47 = vpack.i.bf16 %v17682_v60, %v17571_v57 }
 0xb28   : > { %6785 = vrot.lane.b32.xlu1 %v17682_v60, %s20987_s16 }
 0xb2c   : > { %v6605_v26 = vpop.f32.mrf.mxu1 }
 0xb2d   : > { %v17691_v1 = vadd.f32 %v17564_v5, %v6605_v26 }
 0xb2f   : > { %6729 = vrot.lane.b32.xlu2 %v17682_v60, %s14669_s28  ;;  %6699 = vrot.lane.b32.xlu0 %v17691_v1, %s20989_s17 }
 0xb30   : > { %6811 = vrot.lane.b32.xlu1 %v17691_v1, %s20987_s16 }
 0xb34   : > { %v6608_v42 = vpop.f32.mrf.mxu1 }
 0xb35   : > { %v17700_v19 = vadd.f32 %v17564_v5, %v6608_v42 }
 0xb36   : > { %v17704_v29 = vpop.permute.xlu0 %6663  ;;  %v17813_v45 = vpop.permute.xlu1 %6727 }
 0xb37   : > { %13788 = vrot.lane.b32.xlu2 %v13787_v47, %s20999_s23  ;;  %6731 = vrot.lane.b32.xlu0 %v17691_v1, %s14669_s28 }
 0xb38   : > { %6701 = vrot.lane.b32.xlu1 %v17700_v19, %s20989_s17 }
 0xb3c   : > { %v6611_v6 = vpop.f32.mrf.mxu1 }
 0xb3d   : > { %v17712_v62 = vadd.f32 %v17564_v5, %v6611_v6 }
 0xb3e   : > { %v6760_v21 = vpop.permute.xlu0 %6759 }
 0xb3f   : > { %6667 = vrot.lane.b32.xlu2 %v17691_v1, %s14670_s29  ;;  %6733 = vrot.lane.b32.xlu0 %v17700_v19, %s14669_s28 }
 0xb40   : > { %13332 = vmatpush.xpose.msk.msra.mxu0 %vm938_vm2, %v6760_v21  ;;  %6863 = vrot.lane.b32.xlu1 %v17712_v62, %s20987_s16 }
 0xb43   : > { %13333 = vmatmul.msk.f32.vlgmr.msra.gmra.mxu0 %vm938_vm2, %v17571_v57 }
 0xb44   : > { %v6614_v17 = vpop.f32.mrf.mxu1 }
 0xb45   : > { %v17730_v55 = vadd.f32 %v17564_v5, %v6614_v17 }
 0xb46   : > { %v17809_v14 = vpop.permute.xlu0 %6695 }
 0xb47   : > { %6671 = vrot.lane.b32.xlu0 %v17712_v62, %s14670_s29  ;;  %6669 = vrot.lane.b32.xlu2 %v17700_v19, %s14670_s29  ;;  %v13792_v37 = vpack.i.bf16 %v17730_v55, %v17712_v62 }
 0xb48   : > { %6703 = vrot.lane.b32.xlu1 %v17712_v62, %s20989_s17 }
 0xb4c   : > { %v6617_v18 = vpop.f32.mrf.mxu1 }
 0xb4d   : > { %v17746_v61 = vadd.f32 %v17564_v5, %v6617_v18 }
 0xb4f   : > { %6735 = vrot.lane.b32.xlu0 %v17712_v62, %s14669_s28  ;;  %6837 = vrot.lane.b32.xlu2 %v17700_v19, %s20987_s16  ;;  %v13797_v46 = vpack.i.bf16 %v17746_v61, %v17700_v19 }
 0xb50   : > { %6889 = vrot.lane.b32.xlu1 %v17730_v55, %s20987_s16 }
 0xb54   : > { %v6620_v57 = vpop.f32.mrf.mxu1 }
 0xb55   : > { %v17749_v39 = vadd.f32 %v17564_v5, %v6620_v57 }
 0xb57   : > { %6737 = vrot.lane.b32.xlu0 %v17730_v55, %s14669_s28  ;;  %6673 = vrot.lane.b32.xlu2 %v17730_v55, %s14670_s29 }
 0xb58   : > { %13793 = vrot.lane.b32.xlu1 %v13792_v37, %s20999_s23 }
 0xb5c   : > { %v6623_v2 = vpop.f32.mrf.mxu1 }
 0xb5d   : > { %v17778_v28 = vadd.f32 %v17564_v5, %v6623_v2 }
 0xb5f   : > { %6705 = vrot.lane.b32.xlu2 %v17730_v55, %s20989_s17  ;;  %6675 = vrot.lane.b32.xlu0 %v17746_v61, %s14670_s29  ;;  %v13802_v49 = vpack.i.bf16 %v17691_v1, %v17778_v28 }
 0xb60   : > { %6677 = vrot.lane.b32.xlu1 %v17749_v39, %s14670_s29 }
 0xb64   : > { %v6626_v25 = vpop.f32.mrf.mxu1 }
 0xb65   : > { %v17766_v33 = vadd.f32 %v17564_v5, %v6626_v25 }
 0xb67   : > { %6707 = vrot.lane.b32.xlu2 %v17746_v61, %s20989_s17  ;;  %6915 = vrot.lane.b32.xlu0 %v17746_v61, %s20987_s16 }
 0xb68   : > { %6941 = vrot.lane.b32.xlu1 %v17749_v39, %s20987_s16 }
 0xb6c   : > { %v6629_v59 = vpop.f32.mrf.mxu1 }
 0xb6d   : > { %v17800_v50 = vadd.f32 %v17564_v5, %v6629_v59 }
 0xb6f   : > { %6739 = vrot.lane.b32.xlu2 %v17746_v61, %s14669_s28  ;;  %13798 = vrot.lane.b32.xlu0 %v13797_v46, %s20999_s23 }
 0xb70   : > { %6713 = vrot.lane.b32.xlu1 %v17766_v33, %s20989_s17 }
 0xb74   : > { %v6632_v52 = vpop.f32.mrf.mxu1 }
 0xb75   : > { %v17844_v4 = vadd.f32 %v17564_v5, %v6632_v52 }
 0xb77   : > { %6709 = vrot.lane.b32.xlu2 %v17749_v39, %s20989_s17  ;;  %6741 = vrot.lane.b32.xlu0 %v17749_v39, %s14669_s28 }
 0xb7c   : > { %v6635_v36 = vpop.f32.mrf.mxu1 }
 0xb7d   : > { %v17781_v31 = vadd.f32 %v17564_v5, %v6635_v36 }
 0xb7f   : > { %6967 = vrot.lane.b32.xlu2 %v17778_v28, %s20987_s16  ;;  %6679 = vrot.lane.b32.xlu0 %v17778_v28, %s14670_s29  ;;  %v13812_v3 = vpack.i.bf16 %v17781_v31, %v17766_v33 }
 0xb80   : > { %6687 = vrot.lane.b32.xlu1 %v17781_v31, %s14670_s29 }
 0xb81   : > { %v17789_v0 = vpop.permute.xlu2 %6665 }
 0xb84   : > { %v6638_v54 = vpop.f32.mrf.mxu1 }
 0xb85   : > { %v17828_v51 = vadd.f32 %v17564_v5, %v6638_v54 }
 0xb87   : > { %6745 = vrot.lane.b32.xlu2 %v17766_v33, %s14669_s28  ;;  %6711 = vrot.lane.b32.xlu0 %v17778_v28, %s20989_s17  ;;  %v13817_v36 = vpack.i.bf16 %v17704_v29, %v17828_v51 }
 0xb88   : > { %7071 = vrot.lane.b32.xlu1 %v17781_v31, %s20987_s16 }
 0xb89   : > { %v17797_v58 = vpop.permute.xlu2 %6729 }
 0xb8f   : > { %6683 = vrot.lane.b32.xlu2 %v17800_v50, %s14670_s29  ;;  %6743 = vrot.lane.b32.xlu0 %v17778_v28, %s14669_s28 }
 0xb90   : > { %13813 = vrot.lane.b32.xlu1 %v13812_v3, %s20999_s23 }
 0xb91   : > { %v17811_v40 = vpop.permute.xlu2 %13788 }
 0xb97   : > { %7019 = vrot.lane.b32.xlu2 %v17800_v50, %s20987_s16  ;;  %13803 = vrot.lane.b32.xlu0 %v13802_v49, %s20999_s23 }
 0xb98   : > { %7591 = vrot.lane.b32.xlu1 %v17809_v14, %s20987_s16 }
 0xb99   : > { %v17822_v43 = vpop.permute.xlu2 %6667  ;;  %v17824_v9 = vpop.permute.xlu0 %6697 }
 0xb9a   : > { %v6786_v12 = vpop.permute.xlu1 %6785 }
 0xb9b   : > { %13334 = vmatpush.xpose.msk.msrb.mxu2 %vm938_vm2, %v6786_v12 }
 0xb9e   : > { %13335 = vmatmul.msk.f32.vlgmr.msrb.gmra.mxu2 %vm938_vm2, %v17682_v60  ;;  %v6641_v60 = vpop.f32.mrf.mxu1 }
 0xb9f   : > { %6747 = vrot.lane.b32.xlu2 %v17800_v50, %s14669_s28  ;;  %6681 = vrot.lane.b32.xlu0 %v17766_v33, %s14670_s29  ;;  %v17862_v26 = vadd.f32 %v17564_v5, %v6641_v60 }
 0xba0   : > { %7097 = vrot.lane.b32.xlu1 %v17828_v51, %s20987_s16 }
 0xba1   : > { %v17838_v34 = vpop.permute.xlu0 %6699  ;;  %v17840_v48 = vpop.permute.xlu2 %6669  ;;  %v13822_v18 = vpack.i.bf16 %v17862_v26, %v17844_v4 }
 0xba2   : > { %v6812_v38 = vpop.permute.xlu1 %6811 }
 0xba3   : > { %13336 = vmatpush.xpose.msk.msra.mxu1 %vm938_vm2, %v6812_v38 }
 0xba6   : > { %13337 = vmatmul.msk.f32.vlgmr.msra.gmra.mxu1 %vm938_vm2, %v17691_v1 }
 0xba7   : > { %6993 = vrot.lane.b32.xlu0 %v17766_v33, %s20987_s16  ;;  %6717 = vrot.lane.b32.xlu2 %v17844_v4, %s20989_s17 }
 0xba8   : > { %6753 = vrot.lane.b32.xlu1 %v17828_v51, %s14669_s28 }
 0xba9   : > { %v17854_v56 = vpop.permute.xlu0 %6731  ;;  %v6838_v22 = vpop.permute.xlu2 %6837 }
 0xbaa   : > { %v17856_v35 = vpop.permute.xlu1 %6701  ;;  %13338 = vmatpush.xpose.msk.msrb.mxu0 %vm938_vm2, %v6838_v22 }
 0xbad   : > { %13339 = vmatmul.msk.f32.vlgmr.msrb.gmra.mxu0 %vm938_vm2, %v17700_v19  ;;  %v13807_v19 = vpack.i.bf16 %v17800_v50, %v17749_v39 }
 0xbaf   : > { %6715 = vrot.lane.b32.xlu0 %v17800_v50, %s20989_s17  ;;  %6749 = vrot.lane.b32.xlu2 %v17844_v4, %s14669_s28 }
 0xbb0   : > { %6691 = vrot.lane.b32.xlu1 %v17862_v26, %s14670_s29 }
 0xbb1   : > { %v17870_v1 = vpop.permute.xlu0 %6733  ;;  %v17872_v42 = vpop.permute.xlu2 %6673 }
 0xbb2   : > { %21000 = vst [vmem:[#allocation33_spill] sm:$0xff] %v17870_v1  ;;  %v6864_v47 = vpop.permute.xlu1 %6863 }
 0xbb3   : > { %13340 = vmatpush.xpose.msk.msra.mxu2 %vm938_vm2, %v6864_v47 }
 0xbb6   : > { %13341 = vmatmul.msk.f32.vlgmr.msra.gmra.mxu2 %vm938_vm2, %v17712_v62 }
 0xbb7   : > { %13808 = vrot.lane.b32.xlu0 %v13807_v19, %s20999_s23  ;;  %6719 = vrot.lane.b32.xlu2 %v17781_v31, %s20989_s17 }
 0xbb8   : > { %7123 = vrot.lane.b32.xlu1 %v17862_v26, %s20987_s16 }
 0xbb9   : > { %v17884_v6 = vpop.permute.xlu0 %6671  ;;  %v17886_v21 = vpop.permute.xlu2 %6705 }
 0xbba   : > { %v17888_v17 = vpop.permute.xlu1 %6703  ;;  %v13837_v44 = vpack.i.bf16 %v17884_v6, %v17789_v0 }
 0xbbf   : > { %7175 = vrot.lane.b32.xlu2 %v17704_v29, %s20987_s16  ;;  %6685 = vrot.lane.b32.xlu0 %v17844_v4, %s14670_s29 }
 0xbc0   : > { %13823 = vrot.lane.b32.xlu1 %v13822_v18, %s20999_s23 }
 0xbc1   : > { %v17897_v62 = vpop.permute.xlu0 %6735  ;;  %v17899_v57 = vpop.permute.xlu2 %6707 }
 0xbc2   : > { %v6890_v37 = vpop.permute.xlu1 %6889 }
 0xbc3   : > { %13342 = vmatpush.xpose.msk.msrb.mxu3 %vm938_vm2, %v6890_v37 }
 0xbc6   : > { %13343 = vmatmul.msk.f32.vlgmr.msrb.gmra.mxu3 %vm938_vm2, %v17730_v55 }
 0xbc7   : > { %7045 = vrot.lane.b32.xlu0 %v17844_v4, %s20987_s16  ;;  %8007 = vrot.lane.b32.xlu2 %v17813_v45, %s20987_s16 }
 0xbc8   : > { %7617 = vrot.lane.b32.xlu1 %v17824_v9, %s20987_s16 }
 0xbc9   : > { %v17910_v2 = vpop.permute.xlu0 %6737  ;;  %v17912_v25 = vpop.permute.xlu2 %6739 }
 0xbca   : > { %21001 = vst [vmem:[#allocation20_spill] sm:$0xff] %v17910_v2  ;;  %v17914_v59 = vpop.permute.xlu1 %13793 }
 0xbcb   : > { %21002 = vst [vmem:[#allocation69_spill] sm:$0xff] %v17912_v25 }
 0xbcf   : > { %6751 = vrot.lane.b32.xlu0 %v17781_v31, %s14669_s28  ;;  %6689 = vrot.lane.b32.xlu2 %v17828_v51, %s14670_s29 }
 0xbd0   : > { %7669 = vrot.lane.b32.xlu1 %v17856_v35, %s20987_s16 }
 0xbd1   : > { %v17922_v55 = vpop.permute.xlu2 %6709  ;;  %v17924_v46 = vpop.permute.xlu0 %6675 }
 0xbd2   : > { %v17926_v52 = vpop.permute.xlu1 %6677  ;;  %v13852_v15 = vpack.i.bf16 %v17924_v46, %v17840_v48 }
 0xbd7   : > { %6721 = vrot.lane.b32.xlu0 %v17828_v51, %s20989_s17  ;;  %13818 = vrot.lane.b32.xlu2 %v13817_v36, %s20999_s23 }
 0xbd8   : > { %7279 = vrot.lane.b32.xlu1 %v17884_v6, %s20987_s16 }
 0xbd9   : > { %v6968_v3 = vpop.permute.xlu2 %6967  ;;  %v6916_v49 = vpop.permute.xlu0 %6915 }
 0xbda   : > { %v6942_v12 = vpop.permute.xlu1 %6941  ;;  %13344 = vmatpush.xpose.msk.msrb.mxu1 %vm938_vm2, %v6916_v49  ;;  %13348 = vmatpush.xpose.msk.msrb.mxu2 %vm938_vm2, %v6968_v3  ;;  %v13847_v49 = vpack.i.bf16 %v17910_v2, %v17897_v62 }
 0xbdb   : > { %13346 = vmatpush.xpose.msk.msra.mxu0 %vm938_vm2, %v6942_v12 }
 0xbdd   : > { %13345 = vmatmul.msk.f32.vlgmr.msrb.gmra.mxu1 %vm938_vm2, %v17746_v61  ;;  %13349 = vmatmul.msk.f32.vlgmr.msrb.gmra.mxu2 %vm938_vm2, %v17778_v28  ;;  %v6644_v61 = vpop.f32.mrf.mxu1 }
 0xbde   : > { %13347 = vmatmul.msk.f32.vlgmr.msra.gmra.mxu0 %vm938_vm2, %v17749_v39  ;;  %v17955_v22 = vadd.f32 %v17564_v5, %v6644_v61  ;;  %v13842_v39 = vpack.i.bf16 %v17888_v17, %v17824_v9 }
 0xbdf   : > { %6723 = vrot.lane.b32.xlu0 %v17862_v26, %s20989_s17  ;;  %6755 = vrot.lane.b32.xlu2 %v17862_v26, %s14669_s28 }
 0xbe0   : > { %8111 = vrot.lane.b32.xlu1 %v17897_v62, %s20987_s16 }
 0xbe1   : > { %v17950_v54 = vpop.permute.xlu2 %6745  ;;  %v17952_v38 = vpop.permute.xlu0 %13798 }
 0xbe2   : > { %21003 = vst [vmem:[#allocation68_spill] sm:$0xff] %v17950_v54  ;;  %v17968_v47 = vpop.permute.xlu1 %6713 }
 0xbe3   : > { %21004 = vst [vmem:[#allocation50_spill] sm:$0xff] %v17952_v38 }
 0xbe7   : > { %6757 = vrot.lane.b32.xlu0 %v17955_v22, %s14669_s28  ;;  %6693 = vrot.lane.b32.xlu2 %v17955_v22, %s14670_s29  ;;  %s21143_s28 = smov 8   ;;  %s21147_s29 = smov 16  }
 0xbe8   : > { %13843 = vrot.lane.b32.xlu1 %v13842_v39, %s20999_s23  ;;  %v13827_v39 = vpack.i.bf16 %v17822_v43, %v17955_v22 }
 0xbe9   : > { %v17964_v28 = vpop.permute.xlu2 %6683  ;;  %v17966_v60 = vpop.permute.xlu0 %6741 }
 0xbea   : > { %21005 = vst [vmem:[#allocation22_spill] sm:$0xff] %v17966_v60 }
 0xbef   : > { %7201 = vrot.lane.b32.xlu0 %v17789_v0, %s20987_s16  ;;  %7149 = vrot.lane.b32.xlu2 %v17955_v22, %s20987_s16 }
 0xbf0   : > { %7721 = vrot.lane.b32.xlu1 %v17886_v21, %s20987_s16 }
 0xbf1   : > { %v7020_v5 = vpop.permute.xlu2 %7019  ;;  %v17976_v19 = vpop.permute.xlu0 %6679 }
 0xbf2   : > { %v17978_v18 = vpop.permute.xlu1 %6687  ;;  %13352 = vmatpush.xpose.msk.msra.mxu1 %vm938_vm2, %v7020_v5  ;;  %v13862_v20 = vpack.i.bf16 %v17976_v19, %v17872_v42 }
 0xbf5   : > { %13353 = vmatmul.msk.f32.vlgmr.msra.gmra.mxu1 %vm938_vm2, %v17800_v50 }
 0xbf7   : > { %8033 = vrot.lane.b32.xlu0 %v17797_v58, %s20987_s16  ;;  %6725 = vrot.lane.b32.xlu2 %v17955_v22, %s20989_s17 }
 0xbf8   : > { %8137 = vrot.lane.b32.xlu1 %v17910_v2, %s20987_s16 }
 0xbf9   : > { %v17989_v37 = vpop.permute.xlu2 %6747  ;;  %v17991_v36 = vpop.permute.xlu0 %6711 }
 0xbfa   : > { %21006 = vst [vmem:[#allocation65_spill] sm:$0xff] %v17989_v37  ;;  %v7072_v3 = vpop.permute.xlu1 %7071  ;;  %v13867_v13 = vpack.i.bf16 %v17991_v36, %v17886_v21 }
 0xbfb   : > { %13356 = vmatpush.xpose.msk.msra.mxu2 %vm938_vm2, %v7072_v3 }
 0xbfe   : > { %13357 = vmatmul.msk.f32.vlgmr.msra.gmra.mxu2 %vm938_vm2, %v17781_v31 }
 0xbff   : > { %7227 = vrot.lane.b32.xlu0 %v17822_v43, %s20987_s16  ;;  %7643 = vrot.lane.b32.xlu2 %v17838_v34, %s20987_s16 }
 0xc00   : > { %13848 = vrot.lane.b32.xlu1 %v13847_v49, %s20999_s23  ;;  %v13832_v49 = vpack.i.bf16 %v17870_v1, %v17854_v56 }
 0xc01   : > { %v18003_v50 = vpop.permute.xlu0 %6743  ;;  %v18005_v12 = vpop.permute.xlu2 %6717 }
 0xc02   : > { %21007 = vst [vmem:[#allocation55_spill] sm:$0xff] %v18003_v50  ;;  %v18007_v61 = vpop.permute.xlu1 %13813  ;;  %v13882_v24 = vpack.i.bf16 %v18005_v12, %v17797_v58 }
 0xc03   : > { %21008 = vst [vmem:[#allocation29_spill] sm:$0xff] %v18007_v61 }
 0xc07   : > { %13828 = vrot.lane.b32.xlu0 %v13827_v39, %s20999_s23  ;;  %8059 = vrot.lane.b32.xlu2 %v17854_v56, %s20987_s16 }
 0xc08   : > { %7331 = vrot.lane.b32.xlu1 %v17924_v46, %s20987_s16 }
 0xc09   : > { %v18016_v31 = vpop.permute.xlu0 %13803  ;;  %v18018_v5 = vpop.permute.xlu2 %6749 }
 0xc0a   : > { %21009 = vst [vmem:[#allocation63_spill] sm:$0xff] %v18016_v31  ;;  %v18020_v3 = vpop.permute.xlu1 %7591 }
 0xc0b   : > { %21010 = vst [vmem:[#allocation24_spill] sm:$0xff] %v18018_v5 }
 0xc0f   : > { %7253 = vrot.lane.b32.xlu0 %v17840_v48, %s20987_s16  ;;  %13833 = vrot.lane.b32.xlu2 %v13832_v49, %s20999_s23 }
 0xc10   : > { %8163 = vrot.lane.b32.xlu1 %v17912_v25, %s20987_s16 }
 0xc11   : > { %v18029_v39 = vpop.permute.xlu0 %6681  ;;  %v18031_v27 = vpop.permute.xlu2 %6719 }
 0xc12   : > { %v7098_v16 = vpop.permute.xlu1 %7097  ;;  %v13887_v63 = vpack.i.bf16 %v17978_v18, %v18029_v39 }
 0xc17   : > { %8085 = vrot.lane.b32.xlu0 %v17870_v1, %s20987_s16  ;;  %7695 = vrot.lane.b32.xlu2 %v17888_v17, %s20987_s16 }
 0xc18   : > { %7773 = vrot.lane.b32.xlu1 %v17922_v55, %s20987_s16 }
 0xc19   : > { %v6994_v23 = vpop.permute.xlu0 %6993  ;;  %v7176_v7 = vpop.permute.xlu2 %7175 }
 0xc1a   : > { %v18039_v49 = vpop.permute.xlu1 %6753  ;;  %13350 = vmatpush.xpose.msk.msra.mxu3 %vm938_vm2, %v6994_v23  ;;  %13364 = vmatpush.xpose.msk.msrb.mxu2 %vm938_vm2, %v7176_v7 }
 0xc1b   : > { %21011 = vst [vmem:[#allocation26_spill] sm:$0xff] %v18039_v49 }
 0xc1d   : > { %13351 = vmatmul.msk.f32.vlgmr.msra.gmra.mxu3 %vm938_vm2, %v17766_v33  ;;  %13365 = vmatmul.msk.f32.vlgmr.msrb.gmra.mxu2 %vm938_vm2, %v17704_v29 }
 0xc1e   : > { %13358 = vmatpush.xpose.msk.msrb.mxu3 %vm938_vm2, %v7098_v16 }
 0xc1f   : > { %13838 = vrot.lane.b32.xlu0 %v13837_v44, %s20999_s23  ;;  %7305 = vrot.lane.b32.xlu2 %v17872_v42, %s20987_s16 }
 0xc20   : > { %7409 = vrot.lane.b32.xlu1 %v18029_v39, %s20987_s16 }
 0xc21   : > { %v18055_v7 = vpop.permute.xlu0 %6715  ;;  %v18057_v23 = vpop.permute.xlu2 %8007 }
 0xc22   : > { %v18059_v16 = vpop.permute.xlu1 %6691  ;;  %v13877_v30 = vpack.i.bf16 %v18055_v7, %v17922_v55 }
 0xc25   : > { %13359 = vmatmul.msk.f32.vlgmr.msrb.gmra.mxu3 %vm938_vm2, %v17828_v51 }
 0xc27   : > { %7747 = vrot.lane.b32.xlu2 %v17899_v57, %s20987_s16  ;;  %7357 = vrot.lane.b32.xlu0 %v17926_v52, %s20987_s16 }
 0xc28   : > { %7825 = vrot.lane.b32.xlu1 %v17968_v47, %s20987_s16 }
 0xc29   : > { %v18069_v44 = vpop.permute.xlu0 %13808  ;;  %v18071_v29 = vpop.permute.xlu2 %6689 }
 0xc2a   : > { %21012 = vst [vmem:[#allocation66_spill] sm:$0xff] %v18069_v44  ;;  %v7124_v33 = vpop.permute.xlu1 %7123 }
 0xc2b   : > { %13360 = vmatpush.xpose.msk.msrb.mxu1 %vm938_vm2, %v7124_v33  ;;  %v13857_v33 = vpack.i.bf16 %v17899_v57, %v17856_v35 }
 0xc2e   : > { %13361 = vmatmul.msk.f32.vlgmr.msrb.gmra.mxu1 %vm938_vm2, %v17862_v26 }
 0xc2f   : > { %13853 = vrot.lane.b32.xlu2 %v13852_v15, %s20999_s23  ;;  %7383 = vrot.lane.b32.xlu0 %v17976_v19, %s20987_s16 }
 0xc30   : > { %7435 = vrot.lane.b32.xlu1 %v17964_v28, %s20987_s16 }
 0xc31   : > { %v18083_v51 = vpop.permute.xlu0 %6685  ;;  %v18085_v41 = vpop.permute.xlu2 %13818 }
 0xc32   : > { %21013 = vst [vmem:[#allocation37_spill] sm:$0xff] %v18085_v41  ;;  %v18087_v32 = vpop.permute.xlu1 %13823 }
 0xc33   : > { %21014 = vst [vmem:[#allocation56_spill] sm:$0xff] %v18087_v32 }
 0xc37   : > { %13858 = vrot.lane.b32.xlu2 %v13857_v33, %s20999_s23  ;;  %8215 = vrot.lane.b32.xlu0 %v18003_v50, %s20987_s16  ;;  %v13872_v33 = vpack.i.bf16 %v17964_v28, %v17926_v52 }
 0xc38   : > { %8267 = vrot.lane.b32.xlu1 %v17989_v37, %s20987_s16 }
 0xc39   : > { %v7046_v15 = vpop.permute.xlu0 %7045  ;;  %v18096_v26 = vpop.permute.xlu2 %6755 }
 0xc3a   : > { %21015 = vst [vmem:[#allocation32_spill] sm:$0xff] %v18096_v26  ;;  %v18098_v11 = vpop.permute.xlu1 %7617  ;;  %13354 = vmatpush.xpose.msk.msrb.mxu0 %vm938_vm2, %v7046_v15 }
 0xc3d   : > { %13355 = vmatmul.msk.f32.vlgmr.msrb.gmra.mxu0 %vm938_vm2, %v17844_v4 }
 0xc3f   : > { %8189 = vrot.lane.b32.xlu2 %v17966_v60, %s20987_s16  ;;  %13868 = vrot.lane.b32.xlu0 %v13867_v13, %s20999_s23  ;;  %v6834_v60 = vpop.f32.mrf.mxu1 }
 0xc40   : > { %13873 = vrot.lane.b32.xlu1 %v13872_v33, %s20999_s23 }
 0xc41   : > { %v18111_v10 = vpop.permute.xlu0 %6751  ;;  %v18113_v53 = vpop.permute.xlu2 %6693 }
 0xc42   : > { %21016 = vst [vmem:[#allocation43_spill] sm:$0xff] %v18111_v10  ;;  %v18115_v15 = vpop.permute.xlu1 %7669 }
 0xc47   : > { %7799 = vrot.lane.b32.xlu2 %v17991_v36, %s20987_s16  ;;  %8241 = vrot.lane.b32.xlu0 %v17950_v54, %s20987_s16 }
 0xc48   : > { %13883 = vrot.lane.b32.xlu1 %v13882_v24, %s20999_s23 }
 0xc49   : > { %v18124_v13 = vpop.permute.xlu0 %6721  ;;  %v7150_v4 = vpop.permute.xlu2 %7149 }
 0xc4a   : > { %v7280_v33 = vpop.permute.xlu1 %7279  ;;  %13362 = vmatpush.xpose.msk.msra.mxu0 %vm938_vm2, %v7150_v4 }
 0xc4b   : > { %13372 = vmatpush.xpose.msk.msra.mxu2 %vm938_vm2, %v7280_v33 }
 0xc4d   : > { %13363 = vmatmul.msk.f32.vlgmr.msra.gmra.mxu0 %vm938_vm2, %v17955_v22 }
 0xc4e   : > { %13373 = vmatmul.msk.f32.vlgmr.msra.gmra.mxu2 %vm938_vm2, %v17884_v6 }
 0xc4f   : > { %13863 = vrot.lane.b32.xlu2 %v13862_v20, %s20999_s23  ;;  %13878 = vrot.lane.b32.xlu0 %v13877_v30, %s20999_s23 }
 0xc50   : > { %13888 = vrot.lane.b32.xlu1 %v13887_v63, %s20999_s23 }
 0xc51   : > { %v18141_v24 = vpop.permute.xlu0 %6723  ;;  %v18143_v4 = vpop.permute.xlu2 %6725 }
 0xc52   : > { %21017 = vst [vmem:[#allocation40_spill] sm:$0xff] %v18143_v4  ;;  %v18145_v33 = vpop.permute.xlu1 %8111 }
 0xc57   : > { %7851 = vrot.lane.b32.xlu2 %v18055_v7, %s20987_s16  ;;  %7461 = vrot.lane.b32.xlu0 %v18083_v51, %s20987_s16 }
 0xc58   : > { %7929 = vrot.lane.b32.xlu1 %v18124_v13, %s20987_s16 }
 0xc59   : > { %v18153_v20 = vpop.permute.xlu0 %6757  ;;  %v18155_v30 = vpop.permute.xlu2 %7643 }
 0xc5a   : > { %21018 = vst [vmem:[#allocation28_spill] sm:$0xff] %v18153_v20  ;;  %v18157_v63 = vpop.permute.xlu1 %13843 }
 0xc5b   : > { %21019 = vst [vmem:[#allocation45_spill] sm:$0xff] %v18157_v63 }
 0xc5f   : > { %8293 = vrot.lane.b32.xlu2 %v18018_v5, %s20987_s16  ;;  %7877 = vrot.lane.b32.xlu0 %v18005_v12, %s20987_s16 }
 0xc60   : > { %7539 = vrot.lane.b32.xlu1 %v18059_v16, %s20987_s16 }
 0xc61   : > { %v7202_v6 = vpop.permute.xlu0 %7201  ;;  %v18165_v22 = vpop.permute.xlu2 %8059 }
 0xc62   : > { %v18167_v8 = vpop.permute.xlu1 %7721  ;;  %13366 = vmatpush.xpose.msk.msra.mxu3 %vm938_vm2, %v7202_v6  ;;  %v13897_v6 = vpack.i.bf16 %v17809_v14, %v18071_v29 }
 0xc65   : > { %13367 = vmatmul.msk.f32.vlgmr.msra.gmra.mxu3 %vm938_vm2, %v17789_v0 }
 0xc67   : > { %7513 = vrot.lane.b32.xlu0 %v18071_v29, %s20987_s16  ;;  %7487 = vrot.lane.b32.xlu2 %v17978_v18, %s20987_s16 }
 0xc68   : > { %7955 = vrot.lane.b32.xlu1 %v18141_v24, %s20987_s16 }
 0xc69   : > { %v18178_v63 = vpop.permute.xlu0 %8033  ;;  %v18180_v41 = vpop.permute.xlu2 %13833 }
 0xc6a   : > { %21020 = vst [vmem:[#allocation64_spill] sm:$0xff] %v18180_v41  ;;  %v18182_v32 = vpop.permute.xlu1 %8137 }
 0xc6f   : > { %13898 = vrot.lane.b32.xlu0 %v13897_v6, %s20999_s23  ;;  %7903 = vrot.lane.b32.xlu2 %v18031_v27, %s20987_s16 }
 0xc70   : > { %8371 = vrot.lane.b32.xlu1 %v18096_v26, %s20987_s16 }
 0xc71   : > { %v7228_v0 = vpop.permute.xlu0 %7227  ;;  %v18191_v61 = vpop.permute.xlu2 %7695 }
 0xc72   : > { %v18193_v44 = vpop.permute.xlu1 %13848  ;;  %13368 = vmatpush.xpose.msk.msra.mxu1 %vm938_vm2, %v7228_v0 }
 0xc73   : > { %21021 = vst [vmem:[#allocation36_spill] sm:$0xff] %v18193_v44 }
 0xc75   : > { %13369 = vmatmul.msk.f32.vlgmr.msra.gmra.mxu1 %vm938_vm2, %v17822_v43  ;;  %v13892_v43 = vpack.i.bf16 %v18031_v27, %v17968_v47 }
 0xc77   : > { %8397 = vrot.lane.b32.xlu0 %v18153_v20, %s20987_s16  ;;  %8319 = vrot.lane.b32.xlu2 %v18111_v10, %s20987_s16  ;;  %v6808_v20 = vpop.f32.mrf.mxu2 }
 0xc78   : > { %7565 = vrot.lane.b32.xlu1 %v18113_v53, %s20987_s16 }
 0xc79   : > { %v18204_v6 = vpop.permute.xlu0 %13828  ;;  %v7306_v41 = vpop.permute.xlu2 %7305 }
 0xc7a   : > { %21022 = vst [vmem:[#allocation57_spill] sm:$0xff] %v18204_v6  ;;  %v7332_v5 = vpop.permute.xlu1 %7331  ;;  %13374 = vmatpush.xpose.msk.msrb.mxu3 %vm938_vm2, %v7306_v41 }
 0xc7b   : > { %13376 = vmatpush.xpose.msk.msrb.mxu1 %vm938_vm2, %v7332_v5 }
 0xc7d   : > { %13375 = vmatmul.msk.f32.vlgmr.msrb.gmra.mxu3 %vm938_vm2, %v17872_v42 }
 0xc7e   : > { %13377 = vmatmul.msk.f32.vlgmr.msrb.gmra.mxu1 %vm938_vm2, %v17924_v46 }
 0xc7f   : > { %13893 = vrot.lane.b32.xlu2 %v13892_v43, %s20999_s23  ;;  %v13902_v43 = vpack.i.bf16 %v17813_v45, %v18124_v13  ;;  %v18256_v1 = vpop.f32.mrf.mxu2 }
 0xc80   : > { %7981 = vrot.lane.b32.xlu1 %v18143_v4, %s20987_s16 }
 0xc81   : > { %v7254_v0 = vpop.permute.xlu0 %7253  ;;  %v18217_v44 = vpop.permute.xlu2 %7747 }
 0xc82   : > { %v18219_v41 = vpop.permute.xlu1 %8163  ;;  %13370 = vmatpush.xpose.msk.msrb.mxu0 %vm938_vm2, %v7254_v0 }
 0xc85   : > { %13371 = vmatmul.msk.f32.vlgmr.msrb.gmra.mxu0 %vm938_vm2, %v17840_v48 }
 0xc87   : > { %8345 = vrot.lane.b32.xlu2 %v18039_v49, %s20987_s16  ;;  %v8424_v49 = vmul.f32 0.35355338, %v6808_v20  ;;  %v6782_v20 = vpop.f32.mrf.mxu0  ;;  %s13038_s16 = sshll.u32 %s21170_s30, 3 }
 0xc89   : > { %v18226_v42 = vpop.permute.xlu0 %8085  ;;  %v18228_v46 = vpop.permute.xlu2 %13853 }
 0xc8a   : > { %21023 = vst [vmem:[#allocation70_spill] sm:$0xff] %v18226_v42  ;;  %v18230_v5 = vpop.permute.xlu1 %7773 }
 0xc8b   : > { %21024 = vst [vmem:[#allocation35_spill] sm:$0xff] %v18228_v46  ;;  %v13907_v46 = vpack.i.bf16 %v18059_v16, %v18083_v51 }
 0xc8f   : > { %13903 = vrot.lane.b32.xlu2 %v13902_v43, %s20999_s23 }
 0xc91   : > { %v18235_v6 = vpop.permute.xlu0 %13838  ;;  %v18237_v0 = vpop.permute.xlu2 %13858 }
 0xc92   : > { %21025 = vst [vmem:[#allocation18_spill] sm:$0xff] %v18235_v6  ;;  %v7410_v48 = vpop.permute.xlu1 %7409 }
 0xc93   : > { %21026 = vst [vmem:[#allocation53_spill] sm:$0xff] %v18237_v0  ;;  %13382 = vmatpush.xpose.msk.msra.mxu3 %vm938_vm2, %v7410_v48  ;;  %v18251_v0 = vld [vmem:[%s15399_s22 + $0x8] sm:$0xff] }
 0xc94   : > { %v18254_v48 = vadd.f32 %v18251_v0, %v8424_v49  ;;  %v8423_v49 = vmul.f32 0.35355338, %v6782_v20 }
 0xc96   : > { %13383 = vmatmul.msk.f32.vlgmr.msra.gmra.mxu3 %vm938_vm2, %v18029_v39  ;;  %21028 = vst [vmem:[#allocation48_spill] sm:$0xff] %v18254_v48  ;;  %v13917_v39 = vpack.i.bf16 %v18143_v4, %v18141_v24  ;;  %v8554_v38 = vsel %vm938_vm2, %v18254_v48, -inf  ;;  %v18270_v4 = vld [vmem:[%s15399_s22 + $0x30] sm:$0xff]  ;;  %v18298_v48 = vld [vmem:[%s15399_s22 + $0x40] sm:$0xff] }
 0xc97   : > { %13908 = vrot.lane.b32.xlu2 %v13907_v46, %s20999_s23  ;;  %v6938_v46 = vpop.f32.mrf.mxu1  ;;  %21029 = vst [vmem:[#allocation19_spill] sm:$0xff] %v18270_v4 }
 0xc98   : > { %21033 = vst [vmem:[#allocation38_spill] sm:$0xff] %v18298_v48 }
 0xc99   : > { %v7358_v26 = vpop.permute.xlu0 %7357  ;;  %v18245_v43 = vpop.permute.xlu2 %8189 }
 0xc9a   : > { %21027 = vst [vmem:[#allocation23_spill] sm:$0xff] %v18245_v43  ;;  %v18247_v6 = vpop.permute.xlu1 %7825  ;;  %13378 = vmatpush.xpose.msk.msra.mxu0 %vm938_vm2, %v7358_v26  ;;  %v8429_v26 = vmul.f32 0.35355338, %v6938_v46  ;;  %v18278_v46 = vld [vmem:[%s15399_s22] sm:$0xff] }
 0xc9d   : > { %13379 = vmatmul.msk.f32.vlgmr.msra.gmra.mxu0 %vm938_vm2, %v17926_v52  ;;  %v18273_v52 = vadd.f32 %v18270_v4, %v8429_v26 }
 0xc9f   : > { %13918 = vrot.lane.b32.xlu2 %v13917_v39, %s20999_s23  ;;  %21030 = vst [vmem:[#allocation58_spill] sm:$0xff] %v18273_v52  ;;  %v6990_v39 = vpop.f32.mrf.mxu2 }
 0xca1   : > { %8555 = vmax.xlane.f32.xlu0 %v8554_v38  ;;  %v7384_v54 = vpop.permute.xlu0 %7383  ;;  %v18265_v43 = vpop.permute.xlu2 %7799  ;;  %v18281_v38 = vadd.f32 %v18278_v46, %v8423_v49 }
 0xca2   : > { %v7436_v37 = vpop.permute.xlu1 %7435  ;;  %13380 = vmatpush.xpose.msk.msrb.mxu2 %vm938_vm2, %v7384_v54  ;;  %v8431_v54 = vmul.f32 0.35355338, %v6990_v39  ;;  %v18295_v49 = vpop.f32.mrf.mxu0 }
 0xca3   : > { %13384 = vmatpush.xpose.msk.msra.mxu1 %vm938_vm2, %v7436_v37  ;;  %21031 = vst [vmem:[#allocation25_spill] sm:$0xff] %v18281_v38  ;;  %v8569_v37 = vsel %vm938_vm2, %v18273_v52, -inf  ;;  %v8551_v26 = vsel %vm938_vm2, %v18281_v38, -inf }
 0xca5   : > { %13381 = vmatmul.msk.f32.vlgmr.msrb.gmra.mxu2 %vm938_vm2, %v17976_v19 }
 0xca6   : > { %13385 = vmatmul.msk.f32.vlgmr.msra.gmra.mxu1 %vm938_vm2, %v17964_v28  ;;  %v18301_v28 = vadd.f32 %v18298_v48, %v8431_v54 }
 0xca7   : > { %v7094_v10 = vpop.f32.mrf.mxu2 }
 0xca8   : > { %21034 = vst [vmem:[#allocation44_spill] sm:$0xff] %v18301_v28  ;;  %v8575_v39 = vsel %vm938_vm2, %v18301_v28, -inf  ;;  %v18318_v28 = vld [vmem:[%s15399_s22 + $0x58] sm:$0xff]  ;;  %v8435_v42 = vmul.f32 0.35355338, %v7094_v10 }
 0xca9   : > { %8570 = vmax.xlane.f32.xlu0 %v8569_v37  ;;  %v18287_v20 = vpop.permute.xlu0 %8215  ;;  %v18291_v4 = vpop.permute.xlu2 %13863 }
 0xcaa   : > { %21032 = vst [vmem:[#allocation31_spill] sm:$0xff] %v18291_v4  ;;  %8552 = vmax.xlane.f32.xlu1 %v8551_v26  ;;  %v18293_v19 = vpop.permute.xlu1 %8267  ;;  %v6964_v26 = vpop.f32.mrf.mxu0 }
 0xcb1   : > { %8576 = vmax.xlane.f32.xlu0 %v8575_v39  ;;  %v18305_v37 = vpop.permute.xlu0 %13868  ;;  %v18307_v52 = vpop.permute.xlu2 %7851 }
 0xcb2   : > { %21035 = vst [vmem:[#allocation46_spill] sm:$0xff] %v18305_v37  ;;  %v18309_v4 = vpop.permute.xlu1 %13873  ;;  %v8425_v37 = vmul.f32 0.35355338, %v6834_v60  ;;  %v18342_v60 = vld [vmem:[%s15399_s22 + $0x60] sm:$0xff] }
 0xcb3   : > { %21036 = vst [vmem:[#allocation49_spill] sm:$0xff] %v18309_v4 }
 0xcb4   : > { %21042 = vst [vmem:[#allocation61_spill] sm:$0xff] %v18342_v60 }
 0xcb9   : > { %v18311_v38 = vpop.permute.xlu0 %8241  ;;  %v18313_v31 = vpop.permute.xlu2 %8293 }
 0xcba   : > { %21037 = vst [vmem:[#allocation42_spill] sm:$0xff] %v18311_v38  ;;  %v18315_v2 = vpop.permute.xlu1 %13883  ;;  %v7068_v54 = vpop.f32.mrf.mxu0 }
 0xcbb   : > { %21038 = vst [vmem:[#allocation39_spill] sm:$0xff] %v18313_v31  ;;  %v8434_v48 = vmul.f32 0.35355338, %v7068_v54  ;;  %v13912_v31 = vpack.i.bf16 %v17838_v34, %v18113_v53 }
 0xcbc   : > { %21039 = vst [vmem:[#allocation41_spill] sm:$0xff] %v18315_v2 }
 0xcbd   : > { %v18321_v39 = vadd.f32 %v18318_v28, %v8434_v48  ;;  %v18334_v48 = vld [vmem:[%s15399_s22 + $0x10] sm:$0xff] }
 0xcbe   : > { %v18337_v10 = vadd.f32 %v18334_v48, %v8425_v37 }
 0xcbf   : > { %v8584_v4 = vsel %vm938_vm2, %v18321_v39, -inf }
 0xcc0   : > { %8585 = vmax.xlane.f32.xlu0 %v8584_v4  ;;  %v18345_v4 = vadd.f32 %v18342_v60, %v8435_v42 }
 0xcc1   : > { %v18327_v2 = vpop.permute.xlu0 %13878  ;;  %v7488_v38 = vpop.permute.xlu2 %7487 }
 0xcc2   : > { %21040 = vst [vmem:[#allocation47_spill] sm:$0xff] %v18327_v2  ;;  %v18329_v54 = vpop.permute.xlu1 %13888  ;;  %13388 = vmatpush.xpose.msk.msra.mxu2 %vm938_vm2, %v7488_v38  ;;  %v7198_v2 = vpop.f32.mrf.mxu2  ;;  %v8557_v38 = vsel %vm938_vm2, %v18337_v10, -inf }
 0xcc3   : > { %21041 = vst [vmem:[#allocation59_spill] sm:$0xff] %v18329_v54  ;;  %13913 = vrot.lane.b32.xlu1 %v13912_v31, %s20999_s23  ;;  %v8427_v31 = vmul.f32 0.35355338, %v18256_v1  ;;  %v8439_v37 = vmul.f32 0.35355338, %v7198_v2 }
 0xcc4   : > { %21043 = vst [vmem:[#allocation54_spill] sm:$0xff] %v18345_v4 }
 0xcc5   : > { %13389 = vmatmul.msk.f32.vlgmr.msra.gmra.mxu2 %vm938_vm2, %v17978_v18  ;;  %v18360_v18 = vld [vmem:[%s15399_s22 + $0x20] sm:$0xff]  ;;  %v18368_v2 = vadd.f32 %v18278_v46, %v8439_v37 }
 0xcc6   : > { %13396 = vmatpush.xpose.msk.msrb.mxu2 %vm938_vm2, %v18020_v3  ;;  %v8587_v3 = vsel %vm938_vm2, %v18345_v4, -inf  ;;  %v18363_v1 = vadd.f32 %v18360_v18, %v8427_v31 }
 0xcc8   : > { %8558 = vmax.xlane.f32.xlu2 %v8557_v38  ;;  %8588 = vmax.xlane.f32.xlu0 %v8587_v3  ;;  %v6912_v38 = vpop.f32.mrf.mxu3  ;;  %v8430_v3 = vmul.f32 0.35355338, %v6964_v26  ;;  %v8563_v31 = vsel %vm938_vm2, %v18363_v1, -inf }
 0xcc9   : > { %v7462_v42 = vpop.permute.xlu0 %7461  ;;  %v7904_v60 = vpop.permute.xlu2 %7903 }
 0xcca   : > { %13404 = vmatpush.xpose.msk.msra.mxu2 %vm938_vm2, %v18191_v61  ;;  %v18356_v54 = vpop.permute.xlu1 %7929  ;;  %13386 = vmatpush.xpose.msk.msrb.mxu0 %vm938_vm2, %v7462_v42  ;;  %v18365_v61 = vpop.f32.mrf.mxu1  ;;  %v8599_v42 = vsel %vm938_vm2, %v18368_v2, -inf }
 0xccd   : > { %13387 = vmatmul.msk.f32.vlgmr.msrb.gmra.mxu0 %vm938_vm2, %v18083_v51  ;;  %13397 = vmatmul.msk.f32.vlgmr.msrb.gmra.mxu2 %vm938_vm2, %v17809_v14  ;;  %v18384_v51 = vld [vmem:[%s15399_s22 + $0x38] sm:$0xff] }
 0xcce   : > { %13412 = vmatpush.xpose.msk.msrb.mxu2 %vm938_vm2, %v18265_v43  ;;  %v18387_v14 = vadd.f32 %v18384_v51, %v8430_v3 }
 0xcd0   : > { %8564 = vmax.xlane.f32.xlu2 %v8563_v31  ;;  %8600 = vmax.xlane.f32.xlu0 %v8599_v42  ;;  %v7016_v26 = vpop.f32.mrf.mxu3  ;;  %v21049_v42 = vld [vmem:[#allocation63_spill] sm:$0xff] }
 0xcd1   : > { %v18380_v37 = vpop.permute.xlu0 %7877 }
 0xcd2   : > { %v7540_v4 = vpop.permute.xlu1 %7539  ;;  %v7146_v43 = vpop.f32.mrf.mxu1 }
 0xcd3   : > { %13392 = vmatpush.xpose.msk.msrb.mxu1 %vm938_vm2, %v7540_v4  ;;  %v8437_v31 = vmul.f32 0.35355338, %v7146_v43  ;;  %v8572_v4 = vsel %vm938_vm2, %v18387_v14, -inf }
 0xcd5   : > { %13405 = vmatmul.msk.f32.vlgmr.msra.gmra.mxu2 %vm938_vm2, %v17888_v17 }
 0xcd6   : > { %13393 = vmatmul.msk.f32.vlgmr.msrb.gmra.mxu1 %vm938_vm2, %v18059_v16  ;;  %13420 = vmatpush.xpose.msk.msra.mxu2 %vm938_vm2, %v7904_v60  ;;  %v18404_v16 = vld [vmem:[%s15399_s22 + $0x70] sm:$0xff] }
 0xcd7   : > { %13400 = vmatpush.xpose.msk.msra.mxu1 %vm938_vm2, %v18155_v30  ;;  %v18407_v17 = vadd.f32 %v18404_v16, %v8437_v31  ;;  %v21051_v31 = vld [vmem:[#allocation65_spill] sm:$0xff] }
 0xcd8   : > { %8573 = vmax.xlane.f32.xlu2 %v8572_v4  ;;  %v21052_v4 = vld [vmem:[#allocation23_spill] sm:$0xff] }
 0xcd9   : > { %v7514_v3 = vpop.permute.xlu0 %7513 }
 0xcda   : > { %v7956_v30 = vpop.permute.xlu1 %7955  ;;  %13390 = vmatpush.xpose.msk.msrb.mxu3 %vm938_vm2, %v7514_v3  ;;  %v18559_v3 = vld [vmem:[%s15399_s22 + $0x78] sm:$0xff] }
 0xcdb   : > { %13408 = vmatpush.xpose.msk.msrb.mxu1 %vm938_vm2, %v18217_v44  ;;  %v7120_v44 = vpop.f32.mrf.mxu3 }
 0xcdd   : > { %13391 = vmatmul.msk.f32.vlgmr.msrb.gmra.mxu3 %vm938_vm2, %v18071_v29  ;;  %13413 = vmatmul.msk.f32.vlgmr.msrb.gmra.mxu2 %vm938_vm2, %v17991_v36  ;;  %v18438_v36 = vld [vmem:[%s15399_s22 + $0x18] sm:$0xff] }
 0xcde   : > { %13398 = vmatpush.xpose.msk.msra.mxu3 %vm938_vm2, %v18098_v11  ;;  %13401 = vmatmul.msk.f32.vlgmr.msra.gmra.mxu1 %vm938_vm2, %v17838_v34  ;;  %v8593_v11 = vsel %vm938_vm2, %v18407_v17, -inf  ;;  %v8426_v34 = vmul.f32 0.35355338, %v18295_v49  ;;  %v21047_v49 = vld [vmem:[#allocation43_spill] sm:$0xff] }
 0xcdf   : > { %13416 = vmatpush.xpose.msk.msra.mxu1 %vm938_vm2, %v18307_v52  ;;  %13428 = vmatpush.xpose.msk.msrb.mxu2 %vm938_vm2, %v18057_v23 }
 0xce0   : > { %8594 = vmax.xlane.f32.xlu2 %v8593_v11  ;;  %v18441_v23 = vadd.f32 %v18438_v36, %v8426_v34 }
 0xce2   : > { %13406 = vmatpush.xpose.msk.msrb.mxu3 %vm938_vm2, %v18167_v8  ;;  %v18423_v29 = vpop.permute.xlu1 %8371 }
 0xce5   : > { %13399 = vmatmul.msk.f32.vlgmr.msra.gmra.mxu3 %vm938_vm2, %v17824_v9  ;;  %13421 = vmatmul.msk.f32.vlgmr.msra.gmra.mxu2 %vm938_vm2, %v18031_v27  ;;  %v8428_v27 = vmul.f32 0.35355338, %v6912_v38  ;;  %v21048_v38 = vld [vmem:[#allocation20_spill] sm:$0xff] }
 0xce6   : > { %13409 = vmatmul.msk.f32.vlgmr.msrb.gmra.mxu1 %vm938_vm2, %v17899_v57  ;;  %13414 = vmatpush.xpose.msk.msra.mxu3 %vm938_vm2, %v18247_v6 }
 0xce7   : > { %13424 = vmatpush.xpose.msk.msrb.mxu1 %vm938_vm2, %v7956_v30  ;;  %13436 = vmatpush.xpose.msk.msra.mxu2 %vm938_vm2, %v18145_v33  ;;  %v8560_v33 = vsel %vm938_vm2, %v18441_v23, -inf }
 0xce8   : > { %v7224_v8 = vpop.f32.mrf.mxu3 }
 0xce9   : > { %v8440_v9 = vmul.f32 0.35355338, %v7224_v8  ;;  %v13791_v8 = vunpack.i.h.bf16 %v17811_v40 }
 0xcea   : > { %v7566_v57 = vpop.permute.xlu1 %7565 }
 0xceb   : > { %13394 = vmatpush.xpose.msk.msra.mxu0 %vm938_vm2, %v7566_v57  ;;  %v18445_v6 = vadd.f32 %v18251_v0, %v8440_v9  ;;  %v21054_v9 = vld [vmem:[#allocation68_spill] sm:$0xff]  ;;  %v21055_v57 = vld [vmem:[#allocation50_spill] sm:$0xff] }
 0xced   : > { %8561 = vmax.xlane.f32.xlu1 %v8560_v33  ;;  %13407 = vmatmul.msk.f32.vlgmr.msrb.gmra.mxu3 %vm938_vm2, %v17886_v21  ;;  %v8602_v52 = vsel %vm938_vm2, %v18445_v6, -inf  ;;  %v21056_v33 = vld [vmem:[#allocation33_spill] sm:$0xff] }
 0xcee   : > { %13395 = vmatmul.msk.f32.vlgmr.msra.gmra.mxu0 %vm938_vm2, %v18113_v53  ;;  %13417 = vmatmul.msk.f32.vlgmr.msra.gmra.mxu1 %vm938_vm2, %v18055_v7  ;;  %v18468_v53 = vld [vmem:[%s15399_s22 + $0x28] sm:$0xff]  ;;  %v8432_v7 = vmul.f32 0.35355338, %v7016_v26  ;;  %v21050_v26 = vld [vmem:[#allocation40_spill] sm:$0xff] }
 0xcef   : > { %13402 = vmatpush.xpose.msk.msrb.mxu0 %vm938_vm2, %v18115_v15  ;;  %13422 = vmatpush.xpose.msk.msrb.mxu3 %vm938_vm2, %v18356_v54  ;;  %v18471_v21 = vadd.f32 %v18468_v53, %v8428_v27  ;;  %v8320_v15 = vpop.permute.xlu2 %8319  ;;  %v7172_v54 = vpop.f32.mrf.mxu0  ;;  %v13801_v27 = vunpack.i.h.bf16 %v21055_v57 }
 0xcf0   : > { %13429 = vmatmul.msk.f32.vlgmr.msrb.gmra.mxu2 %vm938_vm2, %v17813_v45  ;;  %13432 = vmatpush.xpose.msk.msra.mxu1 %vm938_vm2, %v18165_v22  ;;  %v13790_v22 = vunpack.i.l.bf16 %v17811_v40  ;;  %v8438_v60 = vmul.f32 0.35355338, %v7172_v54  ;;  %v13796_v40 = vunpack.i.h.bf16 %v17914_v59 }
 0xcf1   : > { %13444 = vmatpush.xpose.msk.msrb.mxu2 %vm938_vm2, %v18287_v20  ;;  %8603 = vmax.xlane.f32.xlu0 %v8602_v52  ;;  %v8566_v45 = vsel %vm938_vm2, %v18471_v21, -inf  ;;  %v21045_v20 = vld [vmem:[#allocation70_spill] sm:$0xff]  ;;  %v21057_v52 = vld [vmem:[#allocation32_spill] sm:$0xff] }
 0xcf2   : > { %v18562_v30 = vadd.f32 %v18559_v3, %v8438_v60  ;;  %v7250_v54 = vpop.f32.mrf.mxu1  ;;  %v21063_v60 = vld [vmem:[#allocation24_spill] sm:$0xff] }
 0xcf3   : > { %13410 = vmatpush.xpose.msk.msra.mxu0 %vm938_vm2, %v18230_v5 }
 0xcf4   : > { %v8596_v34 = vsel %vm938_vm2, %v18562_v30, -inf }
 0xcf5   : > { %8567 = vmax.xlane.f32.xlu1 %v8566_v45  ;;  %13415 = vmatmul.msk.f32.vlgmr.msra.gmra.mxu3 %vm938_vm2, %v17968_v47  ;;  %v18492_v47 = vld [vmem:[%s15399_s22 + $0x48] sm:$0xff] }
 0xcf6   : > { %13403 = vmatmul.msk.f32.vlgmr.msrb.gmra.mxu0 %vm938_vm2, %v17856_v35  ;;  %13425 = vmatmul.msk.f32.vlgmr.msrb.gmra.mxu1 %vm938_vm2, %v18141_v24  ;;  %v18495_v35 = vadd.f32 %v18492_v47, %v8432_v7  ;;  %v8433_v24 = vmul.f32 0.35355338, %v18365_v61  ;;  %v21058_v7 = vld [vmem:[#allocation39_spill] sm:$0xff] }
 0xcf7   : > { %13418 = vmatpush.xpose.msk.msrb.mxu0 %vm938_vm2, %v18380_v37  ;;  %13430 = vmatpush.xpose.msk.msra.mxu3 %vm938_vm2, %v18178_v63  ;;  %v13806_v37 = vunpack.i.h.bf16 %v21049_v42 }
 0xcf8   : > { %13437 = vmatmul.msk.f32.vlgmr.msra.gmra.mxu2 %vm938_vm2, %v17897_v62  ;;  %13440 = vmatpush.xpose.msk.msrb.mxu1 %vm938_vm2, %v18219_v41  ;;  %v8578_v63 = vsel %vm938_vm2, %v18495_v35, -inf  ;;  %v7982_v62 = vpop.permute.xlu1 %7981  ;;  %v18521_v41 = vpop.permute.xlu2 %13893 }
 0xcf9   : > { %13452 = vmatpush.xpose.msk.msra.mxu2 %vm938_vm2, %v8320_v15  ;;  %21044 = vst [vmem:[#allocation2_spill] sm:$0xff] %v18521_v41  ;;  %v21076_v41 = vld [vmem:[#allocation38_spill] sm:$0xff] }
 0xcfd   : > { %8579 = vmax.xlane.f32.xlu1 %v8578_v63  ;;  %13423 = vmatmul.msk.f32.vlgmr.msrb.gmra.mxu3 %vm938_vm2, %v18124_v13  ;;  %v18516_v13 = vld [vmem:[%s15399_s22 + $0x50] sm:$0xff] }
 0xcfe   : > { %13411 = vmatmul.msk.f32.vlgmr.msra.gmra.mxu0 %vm938_vm2, %v17922_v55  ;;  %13433 = vmatmul.msk.f32.vlgmr.msra.gmra.mxu1 %vm938_vm2, %v17854_v56  ;;  %v18519_v55 = vadd.f32 %v18516_v13, %v8433_v24  ;;  %v8436_v56 = vmul.f32 0.35355338, %v7120_v44  ;;  %v18564_v44 = vpop.permute.xlu0 %13898 }
 0xcff   : > { %13426 = vmatpush.xpose.msk.msra.mxu0 %vm938_vm2, %v7982_v62  ;;  %13438 = vmatpush.xpose.msk.msrb.mxu3 %vm938_vm2, %v18182_v32  ;;  %v13795_v32 = vunpack.i.l.bf16 %v17914_v59  ;;  %21053 = vst [vmem:[#allocation3_spill] sm:$0xff] %v18564_v44  ;;  %v21059_v62 = vld [vmem:[#allocation26_spill] sm:$0xff] }
 0xd00   : > { %13445 = vmatmul.msk.f32.vlgmr.msrb.gmra.mxu2 %vm938_vm2, %v18003_v50  ;;  %13448 = vmatpush.xpose.msk.msra.mxu1 %vm938_vm2, %v18293_v19  ;;  %v8581_v5 = vsel %vm938_vm2, %v18519_v55, -inf  ;;  %v21046_v19 = vld [vmem:[#allocation42_spill] sm:$0xff]  ;;  %v8346_v43 = vpop.permute.xlu2 %8345 }
 0xd01   : > { %9276 = vmatpush.msrb.mxu2 %v13790_v22  ;;  %v21060_v22 = vld [vmem:[#allocation25_spill] sm:$0xff] }
 0xd02   : > { %v7276_v11 = vpop.f32.mrf.mxu0 }
 0xd05   : > { %8582 = vmax.xlane.f32.xlu1 %v8581_v5  ;;  %13431 = vmatmul.msk.f32.vlgmr.msra.gmra.mxu3 %vm938_vm2, %v17797_v58  ;;  %v18541_v58 = vld [vmem:[%s15399_s22 + $0x68] sm:$0xff]  ;;  %v21061_v5 = vld [vmem:[#allocation22_spill] sm:$0xff] }
 0xd06   : > { %13419 = vmatmul.msk.f32.vlgmr.msrb.gmra.mxu0 %vm938_vm2, %v18005_v12  ;;  %13441 = vmatmul.msk.f32.vlgmr.msrb.gmra.mxu1 %vm938_vm2, %v17912_v25  ;;  %v18544_v12 = vadd.f32 %v18541_v58, %v8436_v56  ;;  %v8398_v24 = vpop.permute.xlu0 %8397 }
 0xd07   : > { %13434 = vmatpush.xpose.msk.msrb.mxu0 %vm938_vm2, %v21045_v20  ;;  %13446 = vmatpush.xpose.msk.msra.mxu3 %vm938_vm2, %v21046_v19  ;;  %v13800_v20 = vunpack.i.l.bf16 %v21055_v57  ;;  %v21067_v57 = vld [vmem:[#allocation28_spill] sm:$0xff] }
 0xd08   : > { %13453 = vmatmul.msk.f32.vlgmr.msra.gmra.mxu2 %vm938_vm2, %v21047_v49  ;;  %13456 = vmatpush.xpose.msk.msrb.mxu1 %vm938_vm2, %v18423_v29  ;;  %v8590_v61 = vsel %vm938_vm2, %v18544_v12, -inf  ;;  %v8442_v29 = vmul.f32 0.35355338, %v7276_v11  ;;  %v21074_v49 = vld [vmem:[#allocation58_spill] sm:$0xff] }
 0xd09   : > { %9380 = vmatpush.msra.mxu2 %v13795_v32  ;;  %v18589_v32 = vpop.permute.xlu2 %13903 }
 0xd0a   : > { %v18579_v45 = vadd.f32 %v18438_v36, %v8442_v29  ;;  %21062 = vst [vmem:[#allocation5_spill] sm:$0xff] %v18589_v32  ;;  %v21066_v29 = vld [vmem:[#allocation66_spill] sm:$0xff] }
 0xd0c   : > { %v8608_v15 = vsel %vm938_vm2, %v18579_v45, -inf }
 0xd0d   : > { %8591 = vmax.xlane.f32.xlu1 %v8590_v61  ;;  %13439 = vmatmul.msk.f32.vlgmr.msrb.gmra.mxu3 %vm938_vm2, %v21048_v38  ;;  %v21064_v38 = vld [vmem:[#allocation48_spill] sm:$0xff] }
 0xd0e   : > { %13427 = vmatmul.msk.f32.vlgmr.msra.gmra.mxu0 %vm938_vm2, %v21050_v26  ;;  %13449 = vmatmul.msk.f32.vlgmr.msra.gmra.mxu1 %vm938_vm2, %v21051_v31  ;;  %v8441_v26 = vmul.f32 0.35355338, %v7250_v54  ;;  %v7328_v54 = vpop.f32.mrf.mxu3 }
 0xd0f   : > { %13442 = vmatpush.xpose.msk.msra.mxu0 %vm938_vm2, %v21052_v4  ;;  %13454 = vmatpush.xpose.msk.msrb.mxu3 %vm938_vm2, %v8346_v43 }
 0xd10   : > { %9328 = vmatpush.msra.mxu1 %v13806_v37 }
 0xd11   : > { %v18598_v43 = vpop.permute.xlu2 %13908 }
 0xd12   : > { %21065 = vst [vmem:[#allocation4_spill] sm:$0xff] %v18598_v43 }
 0xd14   : > { %v8556_v19 = vpop.xlane.xlu0 %8555 }
 0xd15   : > { %8597 = vmax.xlane.f32.xlu1 %v8596_v34  ;;  %13447 = vmatmul.msk.f32.vlgmr.msra.gmra.mxu3 %vm938_vm2, %v21054_v9  ;;  %v8744_v37 = vsub.f32 %v21064_v38, %v8556_v19  ;;  %v13810_v34 = vunpack.i.l.bf16 %v21066_v29 }
 0xd16   : > { %13435 = vmatmul.msk.f32.vlgmr.msrb.gmra.mxu0 %vm938_vm2, %v21056_v33  ;;  %13457 = vmatmul.msk.f32.vlgmr.msrb.gmra.mxu1 %vm938_vm2, %v21057_v52 }
 0xd17   : > { %13450 = vmatpush.xpose.msk.msrb.mxu0 %vm938_vm2, %v21058_v7  ;;  %9302 = vmatpush.msra.mxu3 %v13791_v8  ;;  %v8809_v11 = vmul.f32 1.442695, %v8744_v37  ;;  %v18604_v8 = vadd.f32 %v18334_v48, %v8441_v26 }
 0xd18   : > { %9432 = vmatpush.msrb.mxu1 %v13801_v27 }
 0xd19   : > { %v8605_v27 = vsel %vm938_vm2, %v18604_v8, -inf  ;;  %v18610_v33 = vpop.permute.xlu2 %13918 }
 0xd1a   : > { %21068 = vst [vmem:[#allocation6_spill] sm:$0xff] %v18610_v33 }
 0xd1d   : > { %8609 = vmax.xlane.f32.xlu1 %v8608_v15  ;;  %v8553_v63 = vpop.xlane.xlu1 %8552  ;;  %13455 = vmatmul.msk.f32.vlgmr.msrb.gmra.mxu3 %vm938_vm2, %v21059_v62 }
 0xd1e   : > { %v8743_v56 = vsub.f32 %v21060_v22, %v8553_v63  ;;  %13443 = vmatmul.msk.f32.vlgmr.msra.gmra.mxu0 %vm938_vm2, %v21061_v5  ;;  %9406 = vmatpush.msrb.mxu3 %v13796_v40  ;;  %v7302_v40 = vpop.f32.mrf.mxu2 }
 0xd1f   : > { %13458 = vmatpush.xpose.msk.msra.mxu0 %vm938_vm2, %v8398_v24  ;;  %v8443_v15 = vmul.f32 0.35355338, %v7302_v40 }
 0xd20   : > { %v8807_v59 = vmul.f32 1.442695, %v8743_v56 }
 0xd21   : > { %v18618_v56 = vadd.f32 %v18360_v18, %v8443_v15 }
 0xd22   : > { %14270 = vpow2.f32 %v8807_v59 }
 0xd23   : > { %14272 = vpow2.f32 %v8809_v11  ;;  %21069 = vst [vmem:[#allocation7_spill] sm:$0xff] %v18618_v56 }
 0xd26   : > { %13451 = vmatmul.msk.f32.vlgmr.msrb.gmra.mxu0 %vm938_vm2, %v21063_v60 }
 0xd27   : > { %9354 = vmatpush.msrb.mxu0 %v13800_v20  ;;  %v8611_v20 = vsel %vm938_vm2, %v18618_v56, -inf }
 0xd28   : > { %v18595_v61 = vpop.eup %14270 }
 0xd29   : > { %v8935_v4 = vsel %vm938_vm2, %v18595_v61, 0.0  ;;  %v18612_v7 = vpop.eup %14272 }
 0xd2a   : > { %8936 = vadd.xlane.f32.xlu2 %v8935_v4  ;;  %v8938_v24 = vsel %vm938_vm2, %v18612_v7, 0.0  ;;  %v8444_v4 = vmul.f32 0.35355338, %v7328_v54 }
 0xd2c   : > { %v18628_v11 = vadd.f32 %v18468_v53, %v8444_v4 }
 0xd2e   : > { %13459 = vmatmul.msk.f32.vlgmr.msra.gmra.mxu0 %vm938_vm2, %v21067_v57  ;;  %v8614_v15 = vsel %vm938_vm2, %v18628_v11, -inf }
 0xd2f   : > { %9458 = vmatpush.msra.mxu0 %v13810_v34  ;;  %v7380_v34 = vpop.f32.mrf.mxu0 }
 0xd30   : > { %v8446_v40 = vmul.f32 0.35355338, %v7380_v34 }
 0xd32   : > { %8606 = vmax.xlane.f32.xlu2 %v8605_v27 }
 0xd35   : > { %v18641_v54 = vpop.permute.xlu1 %13913 }
 0xd36   : > { %21071 = vst [vmem:[#allocation9_spill] sm:$0xff] %v18641_v54 }
 0xd3a   : > { %8939 = vadd.xlane.f32.xlu2 %v8938_v24  ;;  %v8571_v24 = vpop.xlane.xlu0 %8570 }
 0xd3b   : > { %v8559_v63 = vpop.xlane.xlu2 %8558 }
 0xd3c   : > { %v8745_v22 = vsub.f32 %v18337_v10, %v8559_v63  ;;  %v18637_v63 = vadd.f32 %v18384_v51, %v8446_v40 }
 0xd3e   : > { %v8811_v59 = vmul.f32 1.442695, %v8745_v22  ;;  %21070 = vst [vmem:[#allocation8_spill] sm:$0xff] %v18637_v63  ;;  %v7354_v22 = vpop.f32.mrf.mxu1 }
 0xd40   : > { %14274 = vpow2.f32 %v8811_v59  ;;  %v7432_v59 = vpop.f32.mrf.mxu3 }
 0xd42   : > { %8612 = vmax.xlane.f32.xlu2 %v8611_v20  ;;  %v8448_v20 = vmul.f32 0.35355338, %v7432_v59 }
 0xd43   : > { %v8565_v19 = vpop.xlane.xlu2 %8564 }
 0xd44   : > { %v8747_v38 = vsub.f32 %v18363_v1, %v8565_v19  ;;  %v8620_v19 = vsel %vm938_vm2, %v18637_v63, -inf }
 0xd46   : > { %v18623_v37 = vpop.eup %14274  ;;  %v8815_v26 = vmul.f32 1.442695, %v8747_v38  ;;  %v8577_v38 = vpop.xlane.xlu0 %8576 }
 0xd47   : > { %v8941_v10 = vsel %vm938_vm2, %v18623_v37, 0.0  ;;  %v7458_v4 = vpop.f32.mrf.mxu1 }
 0xd48   : > { %14276 = vpow2.f32 %v8815_v26  ;;  %8942 = vadd.xlane.f32.xlu0 %v8941_v10  ;;  %v18644_v26 = vadd.f32 %v18492_v47, %v8448_v20  ;;  %v21073_v10 = vld [vmem:[#allocation44_spill] sm:$0xff] }
 0xd49   : > { %v8751_v34 = vsub.f32 %v21073_v10, %v8577_v38 }
 0xd4a   : > { %21072 = vst [vmem:[#allocation10_spill] sm:$0xff] %v18644_v26  ;;  %v8626_v40 = vsel %vm938_vm2, %v18644_v26, -inf }
 0xd4b   : > { %v8823_v57 = vmul.f32 1.442695, %v8751_v34  ;;  %v8574_v38 = vpop.xlane.xlu2 %8573 }
 0xd4e   : > { %v18630_v27 = vpop.eup %14276 }
 0xd4f   : > { %v8947_v1 = vsel %vm938_vm2, %v18630_v27, 0.0 }
 0xd50   : > { %8615 = vmax.xlane.f32.xlu0 %v8614_v15  ;;  %8948 = vadd.xlane.f32.xlu2 %v8947_v1  ;;  %v8449_v15 = vmul.f32 0.35355338, %v7458_v4 }
 0xd52   : > { %v18651_v62 = vadd.f32 %v18516_v13, %v8449_v15 }
 0xd53   : > { %v8595_v43 = vpop.xlane.xlu2 %8594 }
 0xd54   : > { %v8629_v20 = vsel %vm938_vm2, %v18651_v62, -inf }
 0xd58   : > { %8621 = vmax.xlane.f32.xlu0 %v8620_v19  ;;  %v7406_v19 = vpop.f32.mrf.mxu2 }
 0xd60   : > { %v8562_v1 = vpop.xlane.xlu1 %8561  ;;  %8627 = vmax.xlane.f32.xlu0 %v8626_v40  ;;  %v8749_v40 = vsub.f32 %v21074_v49, %v8571_v24  ;;  %v8586_v49 = vpop.xlane.xlu0 %8585 }
 0xd61   : > { %v8746_v59 = vsub.f32 %v18441_v23, %v8562_v1  ;;  %v8750_v23 = vsub.f32 %v18387_v14, %v8574_v38  ;;  %v8445_v1 = vmul.f32 0.35355338, %v7354_v22  ;;  %v21075_v14 = vld [vmem:[#allocation19_spill] sm:$0xff] }
 0xd63   : > { %v8813_v52 = vmul.f32 1.442695, %v8746_v59  ;;  %v8819_v59 = vmul.f32 1.442695, %v8749_v40  ;;  %v18669_v38 = vadd.f32 %v21075_v14, %v8445_v1 }
 0xd65   : > { %14278 = vpow2.f32 %v8813_v52  ;;  %v18662_v52 = vpop.f32.mrf.mxu2  ;;  %v8617_v40 = vsel %vm938_vm2, %v18669_v38, -inf }
 0xd66   : > { %14280 = vpow2.f32 %v8823_v57 }
 0xd68   : > { %v8568_v4 = vpop.xlane.xlu1 %8567  ;;  %8630 = vmax.xlane.f32.xlu0 %v8629_v20  ;;  %v8821_v20 = vmul.f32 1.442695, %v8750_v23 }
 0xd69   : > { %v8748_v10 = vsub.f32 %v18471_v21, %v8568_v4 }
 0xd6b   : > { %v18657_v32 = vpop.eup %14278  ;;  %v8817_v34 = vmul.f32 1.442695, %v8748_v10  ;;  %v8754_v10 = vsub.f32 %v18321_v39, %v8586_v49 }
 0xd6c   : > { %v18660_v15 = vpop.eup %14280  ;;  %v8944_v57 = vsel %vm938_vm2, %v18657_v32, 0.0 }
 0xd6d   : > { %14282 = vpow2.f32 %v8817_v34  ;;  %8945 = vadd.xlane.f32.xlu1 %v8944_v57  ;;  %v8959_v21 = vsel %vm938_vm2, %v18660_v15, 0.0  ;;  %v7614_v1 = vpop.f32.mrf.mxu2  ;;  %v8829_v57 = vmul.f32 1.442695, %v8754_v10 }
 0xd6e   : > { %14284 = vpow2.f32 %v8819_v59  ;;  %v8455_v60 = vmul.f32 0.35355338, %v7614_v1 }
 0xd6f   : > { %14286 = vpow2.f32 %v8821_v20  ;;  %v8447_v20 = vmul.f32 0.35355338, %v7406_v19 }
 0xd70   : > { %v8580_v24 = vpop.xlane.xlu1 %8579  ;;  %8960 = vadd.xlane.f32.xlu0 %v8959_v21  ;;  %v18713_v1 = vadd.f32 %v18278_v46, %v8455_v60 }
 0xd71   : > { %v8752_v22 = vsub.f32 %v18495_v35, %v8580_v24  ;;  %v7536_v35 = vpop.f32.mrf.mxu3  ;;  %v18683_v24 = vpop.f32.mrf.mxu1  ;;  %v18694_v9 = vadd.f32 %v21076_v41, %v8447_v20 }
 0xd73   : > { %v18672_v4 = vpop.eup %14282  ;;  %v8825_v34 = vmul.f32 1.442695, %v8752_v22 }
 0xd74   : > { %v8950_v23 = vsel %vm938_vm2, %v18672_v4, 0.0  ;;  %v18679_v21 = vpop.eup %14284 }
 0xd75   : > { %14288 = vpow2.f32 %v8825_v34  ;;  %8618 = vmax.xlane.f32.xlu1 %v8617_v40  ;;  %8951 = vadd.xlane.f32.xlu2 %v8950_v23  ;;  %v18681_v59 = vpop.eup %14286  ;;  %v8953_v22 = vsel %vm938_vm2, %v18679_v21, 0.0  ;;  %v8452_v34 = vmul.f32 0.35355338, %v7536_v35  ;;  %v7484_v23 = vpop.f32.mrf.mxu0 }
 0xd76   : > { %14290 = vpow2.f32 %v8829_v57  ;;  %v8956_v49 = vsel %vm938_vm2, %v18681_v59, 0.0  ;;  %v7718_v33 = vpop.f32.mrf.mxu2  ;;  %v8450_v25 = vmul.f32 0.35355338, %v7484_v23 }
 0xd77   : > { %v18699_v57 = vadd.f32 %v18541_v58, %v8452_v34 }
 0xd78   : > { %v8583_v40 = vpop.xlane.xlu1 %8582 }
 0xd79   : > { %v7640_v50 = vpop.f32.mrf.mxu3  ;;  %v8753_v5 = vsub.f32 %v18519_v55, %v8583_v40  ;;  %v18702_v35 = vpop.f32.mrf.mxu1  ;;  %v18716_v40 = vadd.f32 %v18318_v28, %v8450_v25 }
 0xd7a   : > { %v8456_v20 = vmul.f32 0.35355338, %v7640_v50 }
 0xd7b   : > { %v18685_v39 = vpop.eup %14288  ;;  %v8827_v34 = vmul.f32 1.442695, %v8753_v5  ;;  %v8647_v5 = vsel %vm938_vm2, %v18713_v1, -inf  ;;  %v8632_v60 = vsel %vm938_vm2, %v18716_v40, -inf }
 0xd7c   : > { %v8962_v10 = vsel %vm938_vm2, %v18685_v39, 0.0  ;;  %v18696_v19 = vpop.eup %14290  ;;  %v18719_v23 = vadd.f32 %v18251_v0, %v8456_v20 }
 0xd7d   : > { %8957 = vadd.xlane.f32.xlu1 %v8956_v49  ;;  %8954 = vadd.xlane.f32.xlu2 %v8953_v22  ;;  %v8968_v49 = vsel %vm938_vm2, %v18696_v19, 0.0  ;;  %v8623_v22 = vsel %vm938_vm2, %v18694_v9, -inf  ;;  %v18710_v31 = vpop.f32.mrf.mxu0  ;;  %14292 = vpow2.f32 %v8827_v34 }
 0xd7e   : > { %8963 = vadd.xlane.f32.xlu0 %v8962_v10  ;;  %v8638_v10 = vsel %vm938_vm2, %v18699_v57, -inf  ;;  %v7822_v50 = vpop.f32.mrf.mxu2  ;;  %v8650_v25 = vsel %vm938_vm2, %v18719_v23, -inf }
 0xd80   : > { %v8592_v55 = vpop.xlane.xlu1 %8591 }
 0xd81   : > { %v18722_v54 = vpop.f32.mrf.mxu3  ;;  %v7770_v20 = vpop.f32.mrf.mxu1 }
 0xd85   : > { %8969 = vadd.xlane.f32.xlu1 %v8968_v49  ;;  %8624 = vmax.xlane.f32.xlu2 %v8623_v22  ;;  %v8756_v49 = vsub.f32 %v18544_v12, %v8592_v55  ;;  %v8459_v22 = vmul.f32 0.35355338, %v7718_v33  ;;  %v18733_v33 = vpop.eup %14292  ;;  %v7692_v44 = vpop.f32.mrf.mxu0 }
 0xd86   : > { %8639 = vmax.xlane.f32.xlu0 %v8638_v10  ;;  %v8463_v10 = vmul.f32 0.35355338, %v7822_v50  ;;  %21078 = vst [vmem:[#allocation13_spill] sm:$0xff] %v18733_v33  ;;  %v8757_v50 = vsub.f32 %v18407_v17, %v8595_v43  ;;  %v8589_v43 = vpop.xlane.xlu0 %8588 }
 0xd87   : > { %v8833_v34 = vmul.f32 1.442695, %v8756_v49  ;;  %v18731_v12 = vadd.f32 %v18360_v18, %v8459_v22  ;;  %v8965_v49 = vsel %vm938_vm2, %v18733_v33, 0.0  ;;  %v8458_v22 = vmul.f32 0.35355338, %v7692_v44  ;;  %v21084_v44 = vld [vmem:[#allocation54_spill] sm:$0xff] }
 0xd88   : > { %v18736_v55 = vadd.f32 %v21076_v41, %v8463_v10  ;;  %v8835_v17 = vmul.f32 1.442695, %v8757_v50 }
 0xd89   : > { %21077 = vst [vmem:[#allocation12_spill] sm:$0xff] %v18731_v12  ;;  %14294 = vpow2.f32 %v8833_v34  ;;  %v18746_v10 = vpop.f32.mrf.mxu3  ;;  %v18748_v34 = vpop.f32.mrf.mxu1 }
 0xd8a   : > { %21079 = vst [vmem:[#allocation11_spill] sm:$0xff] %v18736_v55  ;;  %v8671_v26 = vsel %vm938_vm2, %v18736_v55, -inf  ;;  %14296 = vpow2.f32 %v8835_v17 }
 0xd8d   : > { %8648 = vmax.xlane.f32.xlu1 %v8647_v5  ;;  %8633 = vmax.xlane.f32.xlu2 %v8632_v60  ;;  %v8451_v5 = vmul.f32 0.35355338, %v18662_v52  ;;  %v7926_v60 = vpop.f32.mrf.mxu2  ;;  %v21080_v52 = vld [vmem:[#allocation61_spill] sm:$0xff] }
 0xd8e   : > { %8651 = vmax.xlane.f32.xlu0 %v8650_v25  ;;  %v8659_v25 = vsel %vm938_vm2, %v18731_v12, -inf  ;;  %v18756_v12 = vadd.f32 %v18438_v36, %v8458_v22  ;;  %v8467_v55 = vmul.f32 0.35355338, %v7926_v60 }
 0xd8f   : > { %v18751_v63 = vadd.f32 %v21080_v52, %v8451_v5  ;;  %v18753_v56 = vpop.eup %14294 }
 0xd90   : > { %21082 = vst [vmem:[#allocation15_spill] sm:$0xff] %v18753_v56  ;;  %v8974_v50 = vsel %vm938_vm2, %v18753_v56, 0.0  ;;  %v8656_v5 = vsel %vm938_vm2, %v18756_v12, -inf  ;;  %v18776_v60 = vadd.f32 %v21080_v52, %v8467_v55 }
 0xd91   : > { %21081 = vst [vmem:[#allocation14_spill] sm:$0xff] %v18751_v63  ;;  %v18768_v17 = vpop.f32.mrf.mxu3 }
 0xd92   : > { %21083 = vst [vmem:[#allocation16_spill] sm:$0xff] %v18756_v12  ;;  %v8461_v12 = vmul.f32 0.35355338, %v7770_v20  ;;  %v8683_v55 = vsel %vm938_vm2, %v18776_v60, -inf }
 0xd93   : > { %21086 = vst [vmem:[#allocation70_spill] sm:$0xff] %v18776_v60 }
 0xd95   : > { %8660 = vmax.xlane.f32.xlu1 %v8659_v25  ;;  %8966 = vadd.xlane.f32.xlu2 %v8965_v49  ;;  %v8755_v25 = vsub.f32 %v21084_v44, %v8589_v43  ;;  %v8453_v49 = vmul.f32 0.35355338, %v18683_v24  ;;  %v18766_v36 = vpop.f32.mrf.mxu2  ;;  %v8598_v24 = vpop.xlane.xlu1 %8597 }
 0xd96   : > { %8672 = vmax.xlane.f32.xlu0 %v8671_v26  ;;  %v8635_v26 = vsel %vm938_vm2, %v18751_v63, -inf  ;;  %v18773_v44 = vpop.eup %14296  ;;  %v7978_v63 = vpop.f32.mrf.mxu1 }
 0xd97   : > { %v8831_v22 = vmul.f32 1.442695, %v8755_v25  ;;  %v18771_v43 = vadd.f32 %v18404_v16, %v8453_v49  ;;  %21085 = vst [vmem:[#allocation17_spill] sm:$0xff] %v18773_v44  ;;  %v8977_v25 = vsel %vm938_vm2, %v18773_v44, 0.0 }
 0xd9d   : > { %v8937_v33 = vpop.xlane.xlu2 %8936  ;;  %8636 = vmax.xlane.f32.xlu2 %v8635_v26  ;;  %8975 = vadd.xlane.f32.xlu1 %v8974_v50  ;;  %v8758_v26 = vsub.f32 %v18562_v30, %v8598_v24  ;;  %v13805_v30 = vunpack.i.l.bf16 %v21049_v42  ;;  %v7796_v24 = vpop.f32.mrf.mxu0  ;;  %v8454_v42 = vmul.f32 0.35355338, %v18710_v31 }
 0xd9e   : > { %14298 = vrcp.f32 %v8937_v33  ;;  %8657 = vmax.xlane.f32.xlu0 %v8656_v5  ;;  %v8641_v33 = vsel %vm938_vm2, %v18771_v43, -inf  ;;  %v8469_v5 = vmul.f32 0.35355338, %v7978_v63  ;;  %v18793_v63 = vadd.f32 %v21075_v14, %v8461_v12 }
 0xd9f   : > { %14300 = vpow2.f32 %v8831_v22  ;;  %v8837_v20 = vmul.f32 1.442695, %v8758_v26  ;;  %v18790_v22 = vpop.f32.mrf.mxu2 }
 0xda0   : > { %21087 = vst [vmem:[#allocation42_spill] sm:$0xff] %v18793_v63 }
 0xda1   : > { %14302 = vpow2.f32 %v8837_v20 }
 0xda4   : > { %v14299_v50 = vpop.eup %14298 }
 0xda5   : > { %v9191_v49 = vmul.f32 %v14299_v50, %v18595_v61  ;;  %v18784_v56 = vpop.xlane.xlu2 %8606  ;;  %8642 = vmax.xlane.f32.xlu2 %v8641_v33  ;;  %8978 = vadd.xlane.f32.xlu1 %v8977_v25  ;;  %v18795_v61 = vpop.eup %14300  ;;  %v18798_v50 = vadd.f32 %v18404_v16, %v8469_v5  ;;  %v18810_v5 = vadd.f32 %v18559_v3, %v8454_v42 }
 0xda6   : > { %8684 = vmax.xlane.f32.xlu0 %v8683_v55  ;;  %21088 = vst [vmem:[#allocation20_spill] sm:$0xff] %v18795_v61  ;;  %v8056_v33 = vpop.f32.mrf.mxu3  ;;  %v8601_v25 = vpop.xlane.xlu0 %8600  ;;  %v8971_v26 = vsel %vm938_vm2, %v18795_v61, 0.0 }
 0xda7   : > { %13460 = vmatmul.msk.f32.vlgmr.msrb.gmra.mxu2 %vm938_vm2, %v9191_v49  ;;  %21089 = vst [vmem:[#allocation63_spill] sm:$0xff] %v18798_v50  ;;  %v8665_v49 = vsel %vm938_vm2, %v18793_v63, -inf  ;;  %v8472_v55 = vmul.f32 0.35355338, %v8056_v33  ;;  %v18807_v16 = vpop.f32.mrf.mxu1  ;;  %v18812_v31 = vpop.eup %14302  ;;  %v8759_v33 = vsub.f32 %v18368_v2, %v8601_v25  ;;  %v21091_v25 = vld [vmem:[#allocation29_spill] sm:$0xff] }
 0xda8   : > { %9484 = vmatpush.msrb.mxu2 %v13805_v30  ;;  %v8689_v30 = vsel %vm938_vm2, %v18798_v50, -inf  ;;  %v8238_v60 = vpop.f32.mrf.mxu2  ;;  %v7900_v50 = vpop.f32.mrf.mxu0  ;;  %v8980_v42 = vsel %vm938_vm2, %v18812_v31, 0.0 }
 0xda9   : > { %v18815_v20 = vadd.f32 %v18251_v0, %v8472_v55  ;;  %v8479_v61 = vmul.f32 0.35355338, %v8238_v60  ;;  %v13815_v55 = vunpack.i.l.bf16 %v21091_v25  ;;  %v8839_v44 = vmul.f32 1.442695, %v8759_v33 }
 0xdab   : > { %21090 = vst [vmem:[#allocation40_spill] sm:$0xff] %v18815_v20  ;;  %v8698_v2 = vsel %vm938_vm2, %v18815_v20, -inf }
 0xdad   : > { %v8940_v12 = vpop.xlane.xlu2 %8939  ;;  %8972 = vadd.xlane.f32.xlu2 %v8971_v26  ;;  %8666 = vmax.xlane.f32.xlu1 %v8665_v49  ;;  %v8457_v49 = vmul.f32 0.35355338, %v18702_v35 }
 0xdae   : > { %14304 = vrcp.f32 %v8940_v12  ;;  %8690 = vmax.xlane.f32.xlu0 %v8689_v30  ;;  %v18818_v63 = vpop.xlane.xlu0 %8603  ;;  %v8462_v12 = vmul.f32 0.35355338, %v7796_v24  ;;  %v8644_v30 = vsel %vm938_vm2, %v18810_v5, -inf  ;;  %v18830_v35 = vpop.f32.mrf.mxu3 }
 0xdaf   : > { %v18833_v24 = vadd.f32 %v18334_v48, %v8457_v49  ;;  %14306 = vpow2.f32 %v8839_v44 }
 0xdb0   : > { %v18836_v60 = vadd.f32 %v18384_v51, %v8462_v12  ;;  %v18848_v12 = vpop.f32.mrf.mxu0 }
 0xdb2   : > { %v8668_v48 = vsel %vm938_vm2, %v18836_v60, -inf }
 0xdb4   : > { %v14305_v26 = vpop.eup %14304 }
 0xdb5   : > { %v9192_v0 = vmul.f32 %v14305_v26, %v18612_v7  ;;  %8645 = vmax.xlane.f32.xlu2 %v8644_v30  ;;  %8981 = vadd.xlane.f32.xlu1 %v8980_v42  ;;  %v18839_v7 = vadd.f32 %v21076_v41, %v8479_v61  ;;  %v8186_v26 = vpop.f32.mrf.mxu1  ;;  %v18841_v30 = vpop.xlane.xlu2 %8612  ;;  %v8471_v42 = vmul.f32 0.35355338, %v18766_v36 }
 0xdb6   : > { %8699 = vmax.xlane.f32.xlu0 %v8698_v2  ;;  %v8477_v49 = vmul.f32 0.35355338, %v8186_v26  ;;  %v18852_v44 = vpop.eup %14306 }
 0xdb7   : > { %13461 = vmatmul.msk.f32.vlgmr.msra.gmra.mxu3 %vm938_vm2, %v9192_v0  ;;  %21092 = vst [vmem:[#allocation23_spill] sm:$0xff] %v18839_v7  ;;  %v8653_v0 = vsel %vm938_vm2, %v18833_v24, -inf  ;;  %v8719_v41 = vsel %vm938_vm2, %v18839_v7, -inf  ;;  %v18855_v36 = vadd.f32 %v18278_v46, %v8471_v42  ;;  %v8983_v7 = vsel %vm938_vm2, %v18852_v44, 0.0 }
 0xdb8   : > { %9510 = vmatpush.msra.mxu3 %v13815_v55  ;;  %v18858_v61 = vadd.f32 %v21075_v14, %v8477_v49  ;;  %v8264_v55 = vpop.f32.mrf.mxu3  ;;  %v13811_v42 = vunpack.i.h.bf16 %v21066_v29 }
 0xdb9   : > { %v8695_v46 = vsel %vm938_vm2, %v18855_v36, -inf  ;;  %v8480_v14 = vmul.f32 0.35355338, %v8264_v55  ;;  %v8464_v55 = vmul.f32 0.35355338, %v18746_v10 }
 0xdba   : > { %v8713_v49 = vsel %vm938_vm2, %v18858_v61, -inf }
 0xdbb   : > { %v8943_v33 = vpop.xlane.xlu0 %8942  ;;  %v18879_v29 = vadd.f32 %v18492_v47, %v8480_v14 }
 0xdbc   : > { %14308 = vrcp.f32 %v8943_v33 }
 0xdbd   : > { %8654 = vmax.xlane.f32.xlu2 %v8653_v0  ;;  %8669 = vmax.xlane.f32.xlu1 %v8668_v48  ;;  %v8460_v0 = vmul.f32 0.35355338, %v18722_v54  ;;  %v8466_v48 = vmul.f32 0.35355338, %v7900_v50  ;;  %v8290_v14 = vpop.f32.mrf.mxu1 }
 0xdbe   : > { %8720 = vmax.xlane.f32.xlu0 %v8719_v41  ;;  %v8342_v41 = vpop.f32.mrf.mxu2 }
 0xdbf   : > { %v18873_v54 = vadd.f32 %v18468_v53, %v8460_v0  ;;  %v18876_v50 = vadd.f32 %v18318_v28, %v8466_v48  ;;  %v13816_v0 = vunpack.i.h.bf16 %v21091_v25  ;;  %v8483_v48 = vmul.f32 0.35355338, %v8342_v41 }
 0xdc0   : > { %v8760_v25 = vsub.f32 %v18445_v6, %v18818_v63  ;;  %v8465_v41 = vmul.f32 0.35355338, %v18748_v34  ;;  %v8610_v63 = vpop.xlane.xlu1 %8609 }
 0xdc1   : > { %v8662_v53 = vsel %vm938_vm2, %v18873_v54, -inf  ;;  %v8680_v28 = vsel %vm938_vm2, %v18876_v50, -inf }
 0xdc2   : > { %v14309_v2 = vpop.eup %14308  ;;  %v8841_v6 = vmul.f32 1.442695, %v8760_v25 }
 0xdc3   : > { %v9193_v26 = vmul.f32 %v14309_v2, %v18623_v37  ;;  %v8616_v33 = vpop.xlane.xlu0 %8615  ;;  %v8949_v20 = vpop.xlane.xlu2 %8948 }
 0xdc4   : > { %14310 = vrcp.f32 %v8949_v20  ;;  %v18870_v37 = vpop.f32.mrf.mxu0 }
 0xdc5   : > { %8984 = vadd.xlane.f32.xlu2 %v8983_v7  ;;  %8696 = vmax.xlane.f32.xlu1 %v8695_v46  ;;  %v8722_v46 = vsel %vm938_vm2, %v18879_v29, -inf  ;;  %14312 = vpow2.f32 %v8841_v6 }
 0xdc6   : > { %8714 = vmax.xlane.f32.xlu0 %v8713_v49  ;;  %13462 = vmatmul.msk.f32.vlgmr.msra.gmra.mxu1 %vm938_vm2, %v9193_v26  ;;  %v8475_v26 = vmul.f32 0.35355338, %v18790_v22  ;;  %v8764_v49 = vsub.f32 %v18628_v11, %v8616_v33  ;;  %v18916_v33 = vadd.f32 %v18516_v13, %v8465_v41 }
 0xdc7   : > { %9536 = vmatpush.msra.mxu1 %v13811_v42  ;;  %v18901_v42 = vadd.f32 %v21080_v52, %v8483_v48 }
 0xdc8   : > { %v18898_v10 = vadd.f32 %v18360_v18, %v8475_v26  ;;  %v8849_v11 = vmul.f32 1.442695, %v8764_v49  ;;  %v8761_v49 = vsub.f32 %v18604_v8, %v18784_v56  ;;  %v8762_v8 = vsub.f32 %v18579_v45, %v8610_v63  ;;  %v21095_v45 = vld [vmem:[#allocation37_spill] sm:$0xff] }
 0xdc9   : > { %v8731_v52 = vsel %vm938_vm2, %v18901_v42, -inf }
 0xdca   : > { %v14311_v20 = vpop.eup %14310  ;;  %v8707_v18 = vsel %vm938_vm2, %v18898_v10, -inf  ;;  %14314 = vpow2.f32 %v8849_v11  ;;  %v8843_v6 = vmul.f32 1.442695, %v8761_v49  ;;  %v8845_v63 = vmul.f32 1.442695, %v8762_v8 }
 0xdcb   : > { %v9195_v7 = vmul.f32 %v14311_v20, %v18630_v27  ;;  %v18882_v2 = vpop.xlane.xlu0 %8621  ;;  %v18895_v27 = vadd.f32 %v18492_v47, %v8464_v55  ;;  %v8481_v55 = vmul.f32 0.35355338, %v8290_v14 }
 0xdcc   : > { %v8212_v22 = vpop.f32.mrf.mxu0 }
 0xdcd   : > { %8663 = vmax.xlane.f32.xlu2 %v8662_v53  ;;  %8681 = vmax.xlane.f32.xlu1 %v8680_v28  ;;  %v8674_v47 = vsel %vm938_vm2, %v18895_v27, -inf  ;;  %v18922_v26 = vadd.f32 %v18516_v13, %v8481_v55  ;;  %v8368_v53 = vpop.f32.mrf.mxu3 }
 0xdce   : > { %8723 = vmax.xlane.f32.xlu0 %v8722_v46  ;;  %13464 = vmatmul.msk.f32.vlgmr.msra.gmra.mxu2 %vm938_vm2, %v9195_v7  ;;  %v8478_v7 = vmul.f32 0.35355338, %v8212_v22  ;;  %v8484_v46 = vmul.f32 0.35355338, %v8368_v53 }
 0xdcf   : > { %9588 = vmatpush.msra.mxu2 %v13816_v0  ;;  %v8677_v0 = vsel %vm938_vm2, %v18916_v33, -inf  ;;  %v8725_v22 = vsel %vm938_vm2, %v18922_v26, -inf }
 0xdd0   : > { %v18919_v34 = vadd.f32 %v18384_v51, %v8478_v7  ;;  %v18932_v51 = vpop.eup %14312  ;;  %v18937_v14 = vadd.f32 %v18541_v58, %v8484_v46  ;;  %v8468_v7 = vmul.f32 0.35355338, %v18768_v17 }
 0xdd1   : > { %v18934_v25 = vpop.eup %14314 }
 0xdd2   : > { %v8716_v48 = vsel %vm938_vm2, %v18919_v34, -inf  ;;  %21093 = vst [vmem:[#allocation50_spill] sm:$0xff] %v18937_v14  ;;  %v8734_v55 = vsel %vm938_vm2, %v18937_v14, -inf  ;;  %v18951_v53 = vadd.f32 %v18541_v58, %v8468_v7 }
 0xdd3   : > { %v18906_v20 = vpop.xlane.xlu0 %8627 }
 0xdd4   : > { %v8686_v58 = vsel %vm938_vm2, %v18951_v53, -inf }
 0xdd5   : > { %8675 = vmax.xlane.f32.xlu2 %v8674_v47  ;;  %8708 = vmax.xlane.f32.xlu1 %v8707_v18  ;;  %v8986_v47 = vsel %vm938_vm2, %v18932_v51, 0.0  ;;  %v8998_v18 = vsel %vm938_vm2, %v18934_v25, 0.0 }
 0xdd6   : > { %8732 = vmax.xlane.f32.xlu0 %v8731_v52 }
 0xddb   : > { %v18924_v28 = vpop.xlane.xlu0 %8630 }
 0xddd   : > { %8678 = vmax.xlane.f32.xlu2 %v8677_v0  ;;  %8717 = vmax.xlane.f32.xlu1 %v8716_v48  ;;  %v21094_v0 = vld [vmem:[#allocation56_spill] sm:$0xff] }
 0xdde   : > { %8726 = vmax.xlane.f32.xlu0 %v8725_v22  ;;  %v13825_v48 = vunpack.i.l.bf16 %v21094_v0 }
 0xde0   : > { %v8946_v13 = vpop.xlane.xlu1 %8945 }
 0xde1   : > { %14316 = vrcp.f32 %v8946_v13 }
 0xde3   : > { %v8961_v41 = vpop.xlane.xlu0 %8960 }
 0xde4   : > { %14318 = vrcp.f32 %v8961_v41 }
 0xde5   : > { %8987 = vadd.xlane.f32.xlu2 %v8986_v47  ;;  %8999 = vadd.xlane.f32.xlu1 %v8998_v18  ;;  %v13820_v18 = vunpack.i.l.bf16 %v21095_v45 }
 0xde6   : > { %8735 = vmax.xlane.f32.xlu0 %v8734_v55 }
 0xde7   : > { %v14317_v52 = vpop.eup %14316 }
 0xde8   : > { %v9194_v56 = vmul.f32 %v14317_v52, %v18657_v32  ;;  %v8952_v17 = vpop.xlane.xlu2 %8951  ;;  %v8619_v11 = vpop.xlane.xlu1 %8618  ;;  %v13821_v32 = vunpack.i.h.bf16 %v21095_v45 }
 0xde9   : > { %14320 = vrcp.f32 %v8952_v17  ;;  %v8765_v46 = vsub.f32 %v18669_v38, %v8619_v11  ;;  %v8316_v52 = vpop.f32.mrf.mxu0 }
 0xdea   : > { %v14319_v22 = vpop.eup %14318  ;;  %13463 = vmatmul.msk.f32.vlgmr.msrb.gmra.mxu0 %vm938_vm2, %v9194_v56  ;;  %14322 = vpow2.f32 %v8843_v6  ;;  %v8482_v56 = vmul.f32 0.35355338, %v8316_v52 }
 0xdeb   : > { %v9199_v13 = vmul.f32 %v14319_v22, %v18660_v15  ;;  %v8851_v49 = vmul.f32 1.442695, %v8765_v46  ;;  %9562 = vmatpush.msrb.mxu0 %v13825_v48  ;;  %v13826_v46 = vunpack.i.h.bf16 %v21094_v0  ;;  %v21097_v0 = vld [vmem:[#allocation57_spill] sm:$0xff] }
 0xded   : > { %14324 = vpow2.f32 %v8851_v49  ;;  %8687 = vmax.xlane.f32.xlu2 %v8686_v58  ;;  %13468 = vmatmul.msk.f32.vlgmr.msrb.gmra.mxu2 %vm938_vm2, %v9199_v13 }
 0xdee   : > { %9692 = vmatpush.msrb.mxu2 %v13821_v32  ;;  %14326 = vpow2.f32 %v8845_v63 }
 0xdef   : > { %v14321_v38 = vpop.eup %14320 }
 0xdf0   : > { %v9196_v41 = vmul.f32 %v14321_v38, %v18672_v4  ;;  %v8955_v7 = vpop.xlane.xlu2 %8954  ;;  %v8958_v47 = vpop.xlane.xlu1 %8957  ;;  %v14654_v38 = vld [vmem:[%s15399_s22 + $0x58] sm:$0xff] }
 0xdf1   : > { %v18962_v15 = vpop.eup %14322  ;;  %14328 = vrcp.f32 %v8955_v7  ;;  %v8964_v55 = vpop.xlane.xlu0 %8963  ;;  %v21096_v7 = vld [vmem:[#allocation18_spill] sm:$0xff] }
 0xdf2   : > { %14330 = vrcp.f32 %v8964_v55  ;;  %13465 = vmatmul.msk.f32.vlgmr.msrb.gmra.mxu3 %vm938_vm2, %v9196_v41  ;;  %v8989_v8 = vsel %vm938_vm2, %v18962_v15, 0.0  ;;  %v18979_v41 = vadd.f32 %v14654_v38, %v8482_v56  ;;  %v8769_v55 = vsub.f32 %v18651_v62, %v18924_v28 }
 0xdf3   : > { %v18966_v6 = vpop.eup %14324  ;;  %14332 = vrcp.f32 %v8958_v47  ;;  %9614 = vmatpush.msrb.mxu3 %v13820_v18  ;;  %v13840_v47 = vunpack.i.l.bf16 %v21096_v7 }
 0xdf4   : > { %v9001_v4 = vsel %vm938_vm2, %v18966_v6, 0.0  ;;  %v18972_v17 = vpop.eup %14326  ;;  %v8859_v28 = vmul.f32 1.442695, %v8769_v55 }
 0xdf5   : > { %8990 = vadd.xlane.f32.xlu2 %v8989_v8  ;;  %9002 = vadd.xlane.f32.xlu0 %v9001_v4 }
 0xdf7   : > { %v14329_v11 = vpop.eup %14328 }
 0xdf8   : > { %v14331_v48 = vpop.eup %14330  ;;  %v9197_v22 = vmul.f32 %v14329_v11, %v18679_v21  ;;  %v8625_v13 = vpop.xlane.xlu2 %8624  ;;  %v13830_v21 = vunpack.i.l.bf16 %v21097_v0 }
 0xdf9   : > { %v8970_v49 = vpop.xlane.xlu1 %8969  ;;  %v14333_v45 = vpop.eup %14332  ;;  %v9200_v32 = vmul.f32 %v14331_v48, %v18685_v39  ;;  %v8767_v63 = vsub.f32 %v18694_v9, %v8625_v13  ;;  %v8992_v9 = vsel %vm938_vm2, %v18972_v17, 0.0  ;;  %v8470_v39 = vmul.f32 0.35355338, %v18848_v12  ;;  %v21098_v13 = vld [vmem:[#allocation35_spill] sm:$0xff] }
 0xdfa   : > { %v8640_v58 = vpop.xlane.xlu0 %8639  ;;  %14334 = vrcp.f32 %v8970_v49  ;;  %v9198_v18 = vmul.f32 %v14333_v45, %v18681_v59  ;;  %13466 = vmatmul.msk.f32.vlgmr.msrb.gmra.mxu1 %vm938_vm2, %v9197_v22  ;;  %v8728_v59 = vsel %vm938_vm2, %v18979_v41, -inf  ;;  %v13855_v49 = vunpack.i.l.bf16 %v21098_v13 }
 0xdfb   : > { %v8855_v52 = vmul.f32 1.442695, %v8767_v63  ;;  %13469 = vmatmul.msk.f32.vlgmr.msra.gmra.mxu3 %vm938_vm2, %v9200_v32  ;;  %9640 = vmatpush.msrb.mxu1 %v13826_v46  ;;  %v18997_v46 = vadd.f32 %v18559_v3, %v8470_v39  ;;  %v8772_v12 = vsub.f32 %v18699_v57, %v8640_v58  ;;  %v8476_v39 = vmul.f32 0.35355338, %v18830_v35 }
 0xdfc   : > { %13467 = vmatmul.msk.f32.vlgmr.msra.gmra.mxu0 %vm938_vm2, %v9198_v18  ;;  %9718 = vmatpush.msra.mxu3 %v13840_v47  ;;  %v14655_v18 = vld [vmem:[%s15399_s22 + $0x10] sm:$0xff] }
 0xdfd   : > { %14336 = vpow2.f32 %v8855_v52  ;;  %9666 = vmatpush.msra.mxu0 %v13830_v21  ;;  %8993 = vadd.xlane.f32.xlu2 %v8992_v9  ;;  %v8692_v3 = vsel %vm938_vm2, %v18997_v46, -inf  ;;  %v8865_v57 = vmul.f32 1.442695, %v8772_v12  ;;  %v13831_v12 = vunpack.i.h.bf16 %v21097_v0 }
 0xdfe   : > { %8729 = vmax.xlane.f32.xlu0 %v8728_v59  ;;  %14338 = vpow2.f32 %v8859_v28 }
 0xe00   : > { %v14335_v62 = vpop.eup %14334  ;;  %v8634_v4 = vpop.xlane.xlu2 %8633 }
 0xe01   : > { %v9202_v8 = vmul.f32 %v14335_v62, %v18696_v19  ;;  %v8649_v56 = vpop.xlane.xlu1 %8648  ;;  %v8770_v11 = vsub.f32 %v18716_v40, %v8634_v4  ;;  %v8473_v40 = vmul.f32 0.35355338, %v18807_v16 }
 0xe02   : > { %v8652_v48 = vpop.xlane.xlu0 %8651  ;;  %v8775_v32 = vsub.f32 %v18713_v1, %v8649_v56 }
 0xe03   : > { %v19000_v22 = vpop.eup %14336  ;;  %v8861_v45 = vmul.f32 1.442695, %v8770_v11  ;;  %v19015_v21 = vadd.f32 %v14655_v18, %v8473_v40  ;;  %v8776_v55 = vsub.f32 %v18719_v23, %v8652_v48  ;;  %v21099_v23 = vld [vmem:[#allocation13_spill] sm:$0xff]  ;;  %v21101_v40 = vld [vmem:[#allocation7_spill] sm:$0xff] }
 0xe04   : > { %13471 = vmatmul.msk.f32.vlgmr.msrb.gmra.mxu0 %vm938_vm2, %v9202_v8  ;;  %v9007_v19 = vsel %vm938_vm2, %v19000_v22, 0.0  ;;  %v8871_v63 = vmul.f32 1.442695, %v8775_v32  ;;  %v19010_v1 = vpop.eup %14338  ;;  %v21100_v32 = vld [vmem:[#allocation12_spill] sm:$0xff] }
 0xe05   : > { %14340 = vpow2.f32 %v8861_v45  ;;  %9770 = vmatpush.msrb.mxu0 %v13855_v49  ;;  %9008 = vadd.xlane.f32.xlu1 %v9007_v19  ;;  %v9013_v52 = vsel %vm938_vm2, %v19010_v1, 0.0  ;;  %v8701_v59 = vsel %vm938_vm2, %v19015_v21, -inf  ;;  %v8873_v28 = vmul.f32 1.442695, %v8776_v55  ;;  %v14656_v49 = vld [vmem:[%s15399_s22 + $0x28] sm:$0xff] }
 0xe06   : > { %8693 = vmax.xlane.f32.xlu2 %v8692_v3  ;;  %v19038_v45 = vadd.f32 %v14656_v49, %v8476_v39  ;;  %v8763_v3 = vsub.f32 %v21101_v40, %v18841_v30  ;;  %v21104_v49 = vld [vmem:[#allocation8_spill] sm:$0xff] }
 0xe08   : > { %v8967_v58 = vpop.xlane.xlu2 %8966  ;;  %v8847_v55 = vmul.f32 1.442695, %v8763_v3 }
 0xe09   : > { %v8661_v38 = vpop.xlane.xlu1 %8660  ;;  %14342 = vrcp.f32 %v8967_v58  ;;  %v8710_v58 = vsel %vm938_vm2, %v19038_v45, -inf }
 0xe0a   : > { %v19012_v47 = vpop.xlane.xlu0 %8672  ;;  %14344 = vpow2.f32 %v8865_v57  ;;  %v8779_v19 = vsub.f32 %v21100_v32, %v8661_v38  ;;  %v8766_v32 = vsub.f32 %v21104_v49, %v18882_v2 }
 0xe0b   : > { %v19017_v16 = vpop.eup %14340  ;;  %14346 = vpow2.f32 %v8871_v63  ;;  %v8474_v63 = vmul.f32 0.35355338, %v18870_v37 }
 0xe0c   : > { %v9016_v9 = vsel %vm938_vm2, %v19017_v16, 0.0  ;;  %v8879_v18 = vmul.f32 1.442695, %v8779_v19  ;;  %v8853_v3 = vmul.f32 1.442695, %v8766_v32 }
 0xe0d   : > { %9014 = vadd.xlane.f32.xlu1 %v9013_v52  ;;  %9017 = vadd.xlane.f32.xlu0 %v9016_v9  ;;  %v21102_v52 = vld [vmem:[#allocation15_spill] sm:$0xff] }
 0xe0e   : > { %8702 = vmax.xlane.f32.xlu2 %v8701_v59 }
 0xe0f   : > { %v14343_v62 = vpop.eup %14342 }
 0xe10   : > { %v19027_v8 = vpop.eup %14344  ;;  %v9201_v4 = vmul.f32 %v14343_v62, %v21099_v23  ;;  %v19030_v56 = vpop.xlane.xlu2 %8636  ;;  %v21103_v62 = vld [vmem:[#allocation31_spill] sm:$0xff] }
 0xe11   : > { %v8976_v11 = vpop.xlane.xlu1 %8975  ;;  %v19032_v48 = vpop.eup %14346  ;;  %v9022_v57 = vsel %vm938_vm2, %v19027_v8, 0.0 }
 0xe12   : > { %v19035_v35 = vpop.xlane.xlu0 %8657  ;;  %14348 = vrcp.f32 %v8976_v11  ;;  %13470 = vmatmul.msk.f32.vlgmr.msra.gmra.mxu1 %vm938_vm2, %v9201_v4  ;;  %v9031_v0 = vsel %vm938_vm2, %v19032_v48, 0.0  ;;  %v14657_v4 = vld [vmem:[%s15399_s22 + $0x18] sm:$0xff] }
 0xe13   : > { %14350 = vpow2.f32 %v8873_v28  ;;  %9744 = vmatpush.msra.mxu1 %v13831_v12  ;;  %v13865_v28 = vunpack.i.l.bf16 %v21103_v62  ;;  %v19059_v11 = vadd.f32 %v14657_v4, %v8474_v63 }
 0xe15   : > { %9023 = vadd.xlane.f32.xlu1 %v9022_v57  ;;  %9032 = vadd.xlane.f32.xlu0 %v9031_v0  ;;  %v21105_v57 = vld [vmem:[#allocation17_spill] sm:$0xff] }
 0xe16   : > { %8711 = vmax.xlane.f32.xlu2 %v8710_v58 }
 0xe18   : > { %v14349_v38 = vpop.eup %14348  ;;  %v8643_v9 = vpop.xlane.xlu2 %8642 }
 0xe19   : > { %v9204_v30 = vmul.f32 %v14349_v38, %v21102_v52  ;;  %v8979_v39 = vpop.xlane.xlu1 %8978  ;;  %v19052_v59 = vpop.eup %14350  ;;  %v8773_v37 = vsub.f32 %v18771_v43, %v8643_v9  ;;  %v8704_v43 = vsel %vm938_vm2, %v19059_v11, -inf }
 0xe1a   : > { %v19055_v23 = vpop.xlane.xlu0 %8684  ;;  %14352 = vrcp.f32 %v8979_v39  ;;  %v9034_v19 = vsel %vm938_vm2, %v19052_v59, 0.0 }
 0xe1b   : > { %13473 = vmatmul.msk.f32.vlgmr.msrb.gmra.mxu3 %vm938_vm2, %v9204_v30  ;;  %14354 = vpow2.f32 %v8879_v18  ;;  %v8867_v12 = vmul.f32 1.442695, %v8773_v37  ;;  %v13856_v18 = vunpack.i.h.bf16 %v21098_v13  ;;  %v21106_v30 = vld [vmem:[#allocation10_spill] sm:$0xff] }
 0xe1c   : > { %9822 = vmatpush.msrb.mxu3 %v13865_v28  ;;  %14356 = vpow2.f32 %v8847_v55  ;;  %v8768_v9 = vsub.f32 %v21106_v30, %v18906_v20  ;;  %v13841_v20 = vunpack.i.h.bf16 %v21096_v7 }
 0xe1d   : > { %14358 = vpow2.f32 %v8867_v12  ;;  %9035 = vadd.xlane.f32.xlu0 %v9034_v19  ;;  %v21107_v12 = vld [vmem:[#allocation20_spill] sm:$0xff] }
 0xe1e   : > { %8705 = vmax.xlane.f32.xlu2 %v8704_v43  ;;  %v8857_v4 = vmul.f32 1.442695, %v8768_v9 }
 0xe20   : > { %v14353_v40 = vpop.eup %14352  ;;  %v8973_v63 = vpop.xlane.xlu2 %8972 }
 0xe21   : > { %v9205_v0 = vmul.f32 %v14353_v40, %v21105_v57  ;;  %v8667_v58 = vpop.xlane.xlu1 %8666  ;;  %v19069_v38 = vpop.eup %14354  ;;  %14360 = vrcp.f32 %v8973_v63  ;;  %v21108_v57 = vld [vmem:[#allocation42_spill] sm:$0xff] }
 0xe22   : > { %v19072_v2 = vpop.xlane.xlu0 %8690  ;;  %v19074_v55 = vpop.eup %14356  ;;  %14362 = vpow2.f32 %v8853_v3  ;;  %v9043_v13 = vsel %vm938_vm2, %v19069_v38, 0.0 }
 0xe23   : > { %13474 = vmatmul.msk.f32.vlgmr.msrb.gmra.mxu1 %vm938_vm2, %v9205_v0  ;;  %v19077_v52 = vpop.eup %14358  ;;  %v8995_v28 = vsel %vm938_vm2, %v19074_v55, 0.0  ;;  %v8781_v0 = vsub.f32 %v21108_v57, %v8667_v58  ;;  %v21110_v58 = vld [vmem:[#allocation49_spill] sm:$0xff] }
 0xe24   : > { %9848 = vmatpush.msrb.mxu1 %v13856_v18  ;;  %v9025_v39 = vsel %vm938_vm2, %v19077_v52, 0.0  ;;  %v21109_v18 = vld [vmem:[#allocation14_spill] sm:$0xff] }
 0xe25   : > { %9026 = vadd.xlane.f32.xlu1 %v9025_v39  ;;  %9044 = vadd.xlane.f32.xlu0 %v9043_v13  ;;  %v8771_v30 = vsub.f32 %v21109_v18, %v19030_v56 }
 0xe26   : > { %8996 = vadd.xlane.f32.xlu2 %v8995_v28 }
 0xe27   : > { %v14361_v37 = vpop.eup %14360  ;;  %v8863_v39 = vmul.f32 1.442695, %v8771_v30 }
 0xe28   : > { %v9203_v49 = vmul.f32 %v14361_v37, %v21107_v12  ;;  %v8646_v32 = vpop.xlane.xlu2 %8645  ;;  %v19092_v3 = vpop.eup %14362  ;;  %v13875_v12 = vunpack.i.l.bf16 %v21110_v58 }
 0xe29   : > { %v8982_v19 = vpop.xlane.xlu1 %8981  ;;  %v8774_v40 = vsub.f32 %v18810_v5, %v8646_v32  ;;  %v9004_v7 = vsel %vm938_vm2, %v19092_v3, 0.0  ;;  %v8883_v5 = vmul.f32 1.442695, %v8781_v0 }
 0xe2a   : > { %v19089_v43 = vpop.xlane.xlu0 %8699  ;;  %14364 = vrcp.f32 %v8982_v19  ;;  %13472 = vmatmul.msk.f32.vlgmr.msra.gmra.mxu2 %vm938_vm2, %v9203_v49 }
 0xe2b   : > { %v8869_v63 = vmul.f32 1.442695, %v8774_v40  ;;  %9796 = vmatpush.msra.mxu2 %v13841_v20  ;;  %14366 = vpow2.f32 %v8857_v4 }
 0xe2d   : > { %14368 = vpow2.f32 %v8869_v63 }
 0xe2e   : > { %9005 = vadd.xlane.f32.xlu2 %v9004_v7  ;;  %14370 = vpow2.f32 %v8883_v5 }
 0xe2f   : > { %14372 = vpow2.f32 %v8863_v39 }
 0xe30   : > { %v14365_v9 = vpop.eup %14364  ;;  %v8655_v28 = vpop.xlane.xlu2 %8654 }
 0xe31   : > { %v9206_v13 = vmul.f32 %v14365_v9, %v18812_v31  ;;  %v19101_v37 = vpop.xlane.xlu1 %8669  ;;  %v8777_v4 = vsub.f32 %v18833_v24, %v8655_v28  ;;  %v19105_v49 = vpop.eup %14366 }
 0xe32   : > { %v19107_v56 = vpop.xlane.xlu0 %8720  ;;  %v9010_v20 = vsel %vm938_vm2, %v19105_v49, 0.0 }
 0xe33   : > { %13475 = vmatmul.msk.f32.vlgmr.msra.gmra.mxu0 %vm938_vm2, %v9206_v13  ;;  %v19110_v32 = vpop.eup %14368  ;;  %v8875_v19 = vmul.f32 1.442695, %v8777_v4 }
 0xe34   : > { %9874 = vmatpush.msra.mxu0 %v13875_v12  ;;  %v9028_v31 = vsel %vm938_vm2, %v19110_v32, 0.0  ;;  %v19116_v57 = vpop.eup %14370  ;;  %v13866_v12 = vunpack.i.h.bf16 %v21103_v62  ;;  %v21112_v62 = vld [vmem:[#allocation16_spill] sm:$0xff] }
 0xe35   : > { %14374 = vpow2.f32 %v8875_v19  ;;  %9029 = vadd.xlane.f32.xlu0 %v9028_v31  ;;  %v19118_v0 = vpop.eup %14372  ;;  %v9049_v7 = vsel %vm938_vm2, %v19116_v57, 0.0  ;;  %v21111_v19 = vld [vmem:[#allocation11_spill] sm:$0xff] }
 0xe36   : > { %9011 = vadd.xlane.f32.xlu2 %v9010_v20  ;;  %v9019_v9 = vsel %vm938_vm2, %v19118_v0, 0.0  ;;  %v8783_v31 = vsub.f32 %v21111_v19, %v19012_v47 }
 0xe38   : > { %v8985_v24 = vpop.xlane.xlu2 %8984 }
 0xe39   : > { %v8697_v40 = vpop.xlane.xlu1 %8696  ;;  %14376 = vrcp.f32 %v8985_v24 }
 0xe3a   : > { %v19122_v18 = vpop.xlane.xlu0 %8714 }
 0xe3b   : > { %v19120_v63 = vpop.eup %14374 }
 0xe3c   : > { %v9037_v30 = vsel %vm938_vm2, %v19120_v63, 0.0 }
 0xe3d   : > { %9038 = vadd.xlane.f32.xlu1 %v9037_v30  ;;  %9050 = vadd.xlane.f32.xlu0 %v9049_v7  ;;  %v8887_v30 = vmul.f32 1.442695, %v8783_v31 }
 0xe3e   : > { %9020 = vadd.xlane.f32.xlu2 %v9019_v9 }
 0xe3f   : > { %v14377_v5 = vpop.eup %14376 }
 0xe40   : > { %v9207_v39 = vmul.f32 %v14377_v5, %v18852_v44  ;;  %v8664_v13 = vpop.xlane.xlu2 %8663  ;;  %v8778_v5 = vsub.f32 %v21112_v62, %v19035_v35  ;;  %v8782_v35 = vsub.f32 %v18836_v60, %v19101_v37 }
 0xe41   : > { %v8682_v28 = vpop.xlane.xlu1 %8681  ;;  %v8780_v4 = vsub.f32 %v18873_v54, %v8664_v13 }
 0xe42   : > { %13476 = vmatmul.msk.f32.vlgmr.msrb.gmra.mxu2 %vm938_vm2, %v9207_v39  ;;  %v19136_v24 = vpop.xlane.xlu0 %8723  ;;  %v21113_v39 = vld [vmem:[#allocation70_spill] sm:$0xff] }
 0xe43   : > { %v8881_v20 = vmul.f32 1.442695, %v8780_v4  ;;  %9900 = vmatpush.msrb.mxu2 %v13866_v12  ;;  %v8787_v47 = vsub.f32 %v21113_v39, %v19055_v23  ;;  %v8877_v4 = vmul.f32 1.442695, %v8778_v5  ;;  %v8885_v5 = vmul.f32 1.442695, %v8782_v35 }
 0xe45   : > { %14378 = vpow2.f32 %v8881_v20  ;;  %v8895_v19 = vmul.f32 1.442695, %v8787_v47 }
 0xe46   : > { %14380 = vpow2.f32 %v8887_v30 }
 0xe48   : > { %v8676_v7 = vpop.xlane.xlu2 %8675 }
 0xe49   : > { %v19138_v9 = vpop.xlane.xlu1 %8708  ;;  %v8784_v44 = vsub.f32 %v18895_v27, %v8676_v7  ;;  %v8791_v7 = vsub.f32 %v18855_v36, %v8697_v40  ;;  %v8786_v40 = vsub.f32 %v18876_v50, %v8682_v28  ;;  %v21114_v50 = vld [vmem:[#allocation59_spill] sm:$0xff] }
 0xe4a   : > { %v19149_v31 = vpop.xlane.xlu0 %8732  ;;  %v13890_v28 = vunpack.i.l.bf16 %v21114_v50 }
 0xe4b   : > { %v19143_v54 = vpop.eup %14378  ;;  %v8889_v13 = vmul.f32 1.442695, %v8784_v44  ;;  %v8903_v39 = vmul.f32 1.442695, %v8791_v7 }
 0xe4c   : > { %v9046_v12 = vsel %vm938_vm2, %v19143_v54, 0.0  ;;  %v19151_v20 = vpop.eup %14380 }
 0xe4d   : > { %14382 = vpow2.f32 %v8889_v13  ;;  %9047 = vadd.xlane.f32.xlu2 %v9046_v12  ;;  %v9055_v44 = vsel %vm938_vm2, %v19151_v20, 0.0 }
 0xe4e   : > { %14384 = vpow2.f32 %v8877_v4 }
 0xe4f   : > { %14386 = vpow2.f32 %v8895_v19 }
 0xe50   : > { %v8679_v27 = vpop.xlane.xlu2 %8678 }
 0xe51   : > { %v19155_v30 = vpop.xlane.xlu1 %8717  ;;  %v8785_v36 = vsub.f32 %v18916_v33, %v8679_v27 }
 0xe52   : > { %v19168_v13 = vpop.xlane.xlu0 %8726 }
 0xe53   : > { %v19157_v23 = vpop.eup %14382  ;;  %v8891_v7 = vmul.f32 1.442695, %v8785_v36  ;;  %v21116_v36 = vld [vmem:[#allocation40_spill] sm:$0xff] }
 0xe54   : > { %v9058_v62 = vsel %vm938_vm2, %v19157_v23, 0.0  ;;  %v19164_v47 = vpop.eup %14384 }
 0xe55   : > { %9056 = vadd.xlane.f32.xlu2 %v9055_v44  ;;  %9059 = vadd.xlane.f32.xlu0 %v9058_v62  ;;  %v19166_v37 = vpop.eup %14386  ;;  %v9040_v4 = vsel %vm938_vm2, %v19164_v47, 0.0  ;;  %v8893_v62 = vmul.f32 1.442695, %v8786_v40 }
 0xe56   : > { %v9067_v19 = vsel %vm938_vm2, %v19166_v37, 0.0 }
 0xe58   : > { %v8988_v60 = vpop.xlane.xlu2 %8987 }
 0xe59   : > { %14388 = vrcp.f32 %v8988_v60  ;;  %v9000_v12 = vpop.xlane.xlu1 %8999  ;;  %v21115_v60 = vld [vmem:[#allocation63_spill] sm:$0xff] }
 0xe5a   : > { %14390 = vpow2.f32 %v8885_v5  ;;  %v8789_v14 = vsub.f32 %v21115_v60, %v19072_v2 }
 0xe5b   : > { %14392 = vpow2.f32 %v8903_v39 }
 0xe5c   : > { %14394 = vrcp.f32 %v9000_v12  ;;  %v8792_v12 = vsub.f32 %v21116_v36, %v19089_v43  ;;  %v8899_v2 = vmul.f32 1.442695, %v8789_v14  ;;  %v8795_v14 = vsub.f32 %v18898_v10, %v19138_v9 }
 0xe5d   : > { %9041 = vadd.xlane.f32.xlu2 %v9040_v4  ;;  %9068 = vadd.xlane.f32.xlu0 %v9067_v19  ;;  %14396 = vpow2.f32 %v8891_v7 }
 0xe5e   : > { %14398 = vpow2.f32 %v8893_v62  ;;  %v21117_v62 = vld [vmem:[#allocation3_spill] sm:$0xff] }
 0xe5f   : > { %v14389_v35 = vpop.eup %14388 }
 0xe60   : > { %v19176_v44 = vpop.eup %14390  ;;  %v9208_v5 = vmul.f32 %v14389_v35, %v18932_v51  ;;  %v8688_v33 = vpop.xlane.xlu2 %8687  ;;  %v8905_v35 = vmul.f32 1.442695, %v8792_v12 }
 0xe61   : > { %v19179_v27 = vpop.eup %14392  ;;  %v8788_v39 = vsub.f32 %v18951_v53, %v8688_v33  ;;  %v19188_v51 = vpop.xlane.xlu0 %8735  ;;  %v9052_v40 = vsel %vm938_vm2, %v19176_v44, 0.0  ;;  %v13900_v33 = vunpack.i.l.bf16 %v21117_v62 }
 0xe62   : > { %13477 = vmatmul.msk.f32.vlgmr.msra.gmra.mxu3 %vm938_vm2, %v9208_v5  ;;  %v9079_v53 = vsel %vm938_vm2, %v19179_v27, 0.0  ;;  %v14395_v19 = vpop.eup %14394 }
 0xe63   : > { %v8897_v4 = vmul.f32 1.442695, %v8788_v39  ;;  %9926 = vmatpush.msra.mxu3 %v13890_v28  ;;  %v9212_v43 = vmul.f32 %v14395_v19, %v18934_v25  ;;  %v19195_v5 = vpop.eup %14396 }
 0xe64   : > { %v19198_v28 = vpop.eup %14398  ;;  %v9061_v36 = vsel %vm938_vm2, %v19195_v5, 0.0 }
 0xe65   : > { %14400 = vpow2.f32 %v8897_v4  ;;  %9053 = vadd.xlane.f32.xlu0 %v9052_v40  ;;  %9080 = vadd.xlane.f32.xlu2 %v9079_v53  ;;  %v9064_v12 = vsel %vm938_vm2, %v19198_v28, 0.0  ;;  %v8911_v40 = vmul.f32 1.442695, %v8795_v14 }
 0xe68   : > { %v8991_v7 = vpop.xlane.xlu2 %8990 }
 0xe69   : > { %14402 = vrcp.f32 %v8991_v7  ;;  %v9003_v60 = vpop.xlane.xlu0 %9002 }
 0xe6a   : > { %14404 = vpow2.f32 %v8899_v2  ;;  %13481 = vmatmul.msk.f32.vlgmr.msrb.gmra.mxu3 %vm938_vm2, %v9212_v43  ;;  %v13876_v2 = vunpack.i.h.bf16 %v21110_v58 }
 0xe6b   : > { %v19201_v39 = vpop.eup %14400  ;;  %14406 = vpow2.f32 %v8905_v35  ;;  %10030 = vmatpush.msrb.mxu3 %v13900_v33 }
 0xe6c   : > { %v9070_v25 = vsel %vm938_vm2, %v19201_v39, 0.0  ;;  %14408 = vrcp.f32 %v9003_v60 }
 0xe6d   : > { %9071 = vadd.xlane.f32.xlu1 %v9070_v25  ;;  %9062 = vadd.xlane.f32.xlu0 %v9061_v36  ;;  %v21118_v25 = vld [vmem:[#allocation4_spill] sm:$0xff] }
 0xe6e   : > { %9065 = vadd.xlane.f32.xlu2 %v9064_v12  ;;  %v13911_v36 = vunpack.i.h.bf16 %v21118_v25  ;;  %v13910_v12 = vunpack.i.l.bf16 %v21118_v25 }
 0xe6f   : > { %v14403_v4 = vpop.eup %14402 }
 0xe70   : > { %v19211_v53 = vpop.eup %14404  ;;  %v9209_v10 = vmul.f32 %v14403_v4, %v18962_v15  ;;  %v8994_v9 = vpop.xlane.xlu2 %8993 }
 0xe71   : > { %v19214_v19 = vpop.eup %14406  ;;  %14410 = vrcp.f32 %v8994_v9  ;;  %v9073_v35 = vsel %vm938_vm2, %v19211_v53, 0.0  ;;  %v19237_v9 = vpop.xlane.xlu0 %8729 }
 0xe72   : > { %13478 = vmatmul.msk.f32.vlgmr.msra.gmra.mxu1 %vm938_vm2, %v9209_v10  ;;  %14412 = vpow2.f32 %v8911_v40  ;;  %v9082_v43 = vsel %vm938_vm2, %v19214_v19, 0.0  ;;  %v14409_v7 = vpop.eup %14408 }
 0xe73   : > { %9952 = vmatpush.msra.mxu1 %v13876_v2  ;;  %v9213_v33 = vmul.f32 %v14409_v7, %v18966_v6  ;;  %v8797_v6 = vsub.f32 %v18858_v61, %v19122_v18 }
 0xe75   : > { %9074 = vadd.xlane.f32.xlu1 %v9073_v35  ;;  %9083 = vadd.xlane.f32.xlu0 %v9082_v43  ;;  %v8915_v2 = vmul.f32 1.442695, %v8797_v6 }
 0xe77   : > { %v14411_v15 = vpop.eup %14410 }
 0xe78   : > { %v9210_v14 = vmul.f32 %v14411_v15, %v18972_v17  ;;  %v19224_v58 = vpop.xlane.xlu1 %9008  ;;  %v19226_v60 = vpop.eup %14412 }
 0xe79   : > { %v8694_v4 = vpop.xlane.xlu2 %8693  ;;  %v9091_v10 = vsel %vm938_vm2, %v19226_v60, 0.0 }
 0xe7a   : > { %v8790_v40 = vsub.f32 %v18997_v46, %v8694_v4  ;;  %13479 = vmatmul.msk.f32.vlgmr.msrb.gmra.mxu0 %vm938_vm2, %v9210_v14  ;;  %13482 = vmatmul.msk.f32.vlgmr.msrb.gmra.mxu1 %vm938_vm2, %v9213_v33  ;;  %v8420_v4 = vpop.f32.mrf.mxu0 }
 0xe7b   : > { %9978 = vmatpush.msrb.mxu0 %v13910_v12  ;;  %10056 = vmatpush.msrb.mxu1 %v13911_v36  ;;  %v21120_v12 = vld [vmem:[#allocation9_spill] sm:$0xff] }
 0xe7c   : > { %v8901_v17 = vmul.f32 1.442695, %v8790_v40 }
 0xe7d   : > { %9092 = vadd.xlane.f32.xlu1 %v9091_v10 }
 0xe7e   : > { %14414 = vpow2.f32 %v8901_v17  ;;  %v21121_v17 = vld [vmem:[#allocation23_spill] sm:$0xff] }
 0xe7f   : > { %v8799_v10 = vsub.f32 %v21121_v17, %v19107_v56 }
 0xe80   : > { %v9015_v35 = vpop.xlane.xlu1 %9014  ;;  %v19244_v18 = vpop.xlane.xlu0 %9017 }
 0xe81   : > { %v8703_v46 = vpop.xlane.xlu2 %8702  ;;  %14416 = vrcp.f32 %v9015_v35  ;;  %v8486_v35 = vmul.f32 0.35355338, %v8420_v4 }
 0xe82   : > { %v8793_v43 = vsub.f32 %v19015_v21, %v8703_v46  ;;  %14418 = vpow2.f32 %v8915_v2  ;;  %v13916_v21 = vunpack.i.h.bf16 %v21120_v12 }
 0xe84   : > { %v19240_v7 = vpop.eup %14414  ;;  %v8907_v15 = vmul.f32 1.442695, %v8793_v43 }
 0xe85   : > { %v9076_v61 = vsel %vm938_vm2, %v19240_v7, 0.0 }
 0xe86   : > { %14420 = vpow2.f32 %v8907_v15  ;;  %9077 = vadd.xlane.f32.xlu1 %v9076_v61 }
 0xe87   : > { %v14417_v33 = vpop.eup %14416 }
 0xe88   : > { %v9217_v14 = vmul.f32 %v14417_v33, %v19010_v1  ;;  %v19247_v36 = vpop.eup %14418  ;;  %v19260_v43 = vpop.xlane.xlu0 %9032  ;;  %v14658_v33 = vld [vmem:[%s15399_s22 + $0x78] sm:$0xff] }
 0xe89   : > { %v8712_v25 = vpop.xlane.xlu2 %8711  ;;  %21119 = vst [vmem:[#allocation33_spill] sm:$0xff] %v19247_v36  ;;  %v9097_v46 = vsel %vm938_vm2, %v19247_v36, 0.0  ;;  %v19262_v15 = vpop.xlane.xlu1 %9023  ;;  %v19265_v56 = vadd.f32 %v14658_v33, %v8486_v35  ;;  %v21123_v36 = vld [vmem:[#allocation53_spill] sm:$0xff] }
 0xe8a   : > { %v8796_v40 = vsub.f32 %v19038_v45, %v8712_v25  ;;  %13486 = vmatmul.msk.f32.vlgmr.msra.gmra.mxu1 %vm938_vm2, %v9217_v14  ;;  %v8919_v45 = vmul.f32 1.442695, %v8799_v10  ;;  %v8394_v35 = vpop.f32.mrf.mxu1 }
 0xe8b   : > { %10160 = vmatpush.msra.mxu1 %v13916_v21 }
 0xe8c   : > { %v19252_v6 = vpop.eup %14420  ;;  %v8913_v2 = vmul.f32 1.442695, %v8796_v40  ;;  %v8740_v40 = vsel %vm938_vm2, %v19265_v56, -inf }
 0xe8d   : > { %v9085_v1 = vsel %vm938_vm2, %v19252_v6, 0.0 }
 0xe8e   : > { %14422 = vpow2.f32 %v8913_v2  ;;  %9086 = vadd.xlane.f32.xlu2 %v9085_v1  ;;  %9098 = vadd.xlane.f32.xlu1 %v9097_v46  ;;  %v8485_v46 = vmul.f32 0.35355338, %v8394_v35 }
 0xe8f   : > { %14424 = vpow2.f32 %v8919_v45 }
 0xe91   : > { %v8706_v61 = vpop.xlane.xlu2 %8705 }
 0xe92   : > { %v8794_v14 = vsub.f32 %v19059_v11, %v8706_v61  ;;  %v19276_v11 = vpop.xlane.xlu0 %9035 }
 0xe94   : > { %v19268_v25 = vpop.eup %14422  ;;  %v8909_v21 = vmul.f32 1.442695, %v8794_v14 }
 0xe95   : > { %v9094_v4 = vsel %vm938_vm2, %v19268_v25, 0.0  ;;  %v19274_v2 = vpop.eup %14424 }
 0xe96   : > { %14426 = vpow2.f32 %v8909_v21  ;;  %9095 = vadd.xlane.f32.xlu2 %v9094_v4  ;;  %8741 = vmax.xlane.f32.xlu1 %v8740_v40  ;;  %v9103_v61 = vsel %vm938_vm2, %v19274_v2, 0.0  ;;  %v14659_v40 = vld [vmem:[%s15399_s22 + $0x70] sm:$0xff]  ;;  %s21148_s22 = smov 24  }
 0xe98   : > { %v9027_v17 = vpop.xlane.xlu1 %9026 }
 0xe99   : > { %v8997_v10 = vpop.xlane.xlu2 %8996 }
 0xe9a   : > { %14428 = vrcp.f32 %v8997_v10  ;;  %v13891_v10 = vunpack.i.h.bf16 %v21114_v50 }
 0xe9b   : > { %14430 = vrcp.f32 %v9027_v17  ;;  %v19287_v17 = vadd.f32 %v14659_v40, %v8485_v46 }
 0xe9c   : > { %v19278_v1 = vpop.eup %14426  ;;  %14432 = vrcp.f32 %v19224_v58 }
 0xe9d   : > { %21122 = vst [vmem:[#allocation39_spill] sm:$0xff] %v19278_v1  ;;  %v9088_v45 = vsel %vm938_vm2, %v19278_v1, 0.0  ;;  %v13861_v1 = vunpack.i.h.bf16 %v21123_v36 }
 0xe9e   : > { %9089 = vadd.xlane.f32.xlu0 %v9088_v45  ;;  %9104 = vadd.xlane.f32.xlu2 %v9103_v61  ;;  %v19293_v45 = vpop.xlane.xlu0 %9044 }
 0xea0   : > { %v14429_v33 = vpop.eup %14428 }
 0xea1   : > { %v14431_v14 = vpop.eup %14430  ;;  %v9211_v21 = vmul.f32 %v14429_v33, %v19074_v55  ;;  %v9006_v4 = vpop.xlane.xlu2 %9005  ;;  %v8737_v55 = vsel %vm938_vm2, %v19287_v17, -inf  ;;  %v13901_v33 = vunpack.i.h.bf16 %v21117_v62 }
 0xea2   : > { %v9221_v35 = vmul.f32 %v14431_v14, %v19077_v52  ;;  %14434 = vrcp.f32 %v9006_v4  ;;  %v14433_v58 = vpop.eup %14432  ;;  %v13915_v14 = vunpack.i.l.bf16 %v21120_v12  ;;  %v21125_v4 = vld [vmem:[#allocation24_spill] sm:$0xff] }
 0xea3   : > { %13480 = vmatmul.msk.f32.vlgmr.msra.gmra.mxu2 %vm938_vm2, %v9211_v21  ;;  %14436 = vrcp.f32 %v19244_v18  ;;  %v9215_v52 = vmul.f32 %v14433_v58, %v19000_v22  ;;  %v21124_v21 = vld [vmem:[#allocation65_spill] sm:$0xff] }
 0xea4   : > { %10004 = vmatpush.msra.mxu2 %v13891_v10  ;;  %13490 = vmatmul.msk.f32.vlgmr.msrb.gmra.mxu1 %vm938_vm2, %v9221_v35  ;;  %v13932_v18 = vpack.i.bf16 %v21125_v4, %v21124_v21  ;;  %v21127_v10 = vld [vmem:[#allocation22_spill] sm:$0xff] }
 0xea5   : > { %10264 = vmatpush.msrb.mxu1 %v13861_v1 }
 0xea6   : > { %8738 = vmax.xlane.f32.xlu2 %v8737_v55 }
 0xea8   : > { %v14435_v46 = vpop.eup %14434  ;;  %v9030_v1 = vpop.xlane.xlu0 %9029 }
 0xea9   : > { %v9214_v50 = vmul.f32 %v14435_v46, %v19092_v3  ;;  %v9012_v61 = vpop.xlane.xlu2 %9011  ;;  %v14437_v40 = vpop.eup %14436  ;;  %v21126_v3 = vld [vmem:[#allocation69_spill] sm:$0xff] }
 0xeaa   : > { %14438 = vrcp.f32 %v9012_v61  ;;  %v13922_v62 = vpack.i.bf16 %v21127_v10, %v21126_v3  ;;  %v9218_v35 = vmul.f32 %v14437_v40, %v19017_v16  ;;  %v21128_v46 = vld [vmem:[#allocation45_spill] sm:$0xff] }
 0xeab   : > { %13483 = vmatmul.msk.f32.vlgmr.msra.gmra.mxu0 %vm938_vm2, %v9214_v50  ;;  %13484 = vmatmul.msk.f32.vlgmr.msrb.gmra.mxu2 %vm938_vm2, %v9215_v52  ;;  %14440 = vrcp.f32 %v19262_v15  ;;  %v13845_v52 = vunpack.i.l.bf16 %v21128_v46  ;;  %v13860_v50 = vunpack.i.l.bf16 %v21123_v36  ;;  %v13846_v4 = vunpack.i.h.bf16 %v21128_v46  ;;  %v21133_v46 = vld [vmem:[#allocation2_spill] sm:$0xff] }
 0xeac   : > { %10082 = vmatpush.msra.mxu0 %v13915_v14  ;;  %10108 = vmatpush.msrb.mxu2 %v13901_v33  ;;  %14442 = vrcp.f32 %v9030_v1 }
 0xeaf   : > { %13933 = vrot.lane.b32.xlu1 %v13932_v18, %s20999_s23  ;;  %v21129_v18 = vld [vmem:[#allocation46_spill] sm:$0xff] }
 0xeb0   : > { %v14439_v22 = vpop.eup %14438  ;;  %v9039_v12 = vpop.xlane.xlu1 %9038  ;;  %v13870_v40 = vunpack.i.l.bf16 %v21129_v18 }
 0xeb1   : > { %v9216_v55 = vmul.f32 %v14439_v22, %v19105_v49  ;;  %v9021_v58 = vpop.xlane.xlu2 %9020  ;;  %v14441_v15 = vpop.eup %14440 }
 0xeb2   : > { %14444 = vrcp.f32 %v9021_v58  ;;  %13923 = vrot.lane.b32.xlu0 %v13922_v62, %s20999_s23  ;;  %v9051_v16 = vpop.xlane.xlu0 %9050  ;;  %v14443_v61 = vpop.eup %14442  ;;  %v9220_v36 = vmul.f32 %v14441_v15, %v19027_v8 }
 0xeb3   : > { %14446 = vrcp.f32 %v9039_v12  ;;  %13485 = vmatmul.msk.f32.vlgmr.msra.gmra.mxu3 %vm938_vm2, %v9216_v55  ;;  %13487 = vmatmul.msk.f32.vlgmr.msrb.gmra.mxu0 %vm938_vm2, %v9218_v35  ;;  %v9222_v1 = vmul.f32 %v14443_v61, %v19110_v32  ;;  %v21131_v32 = vld [vmem:[#allocation55_spill] sm:$0xff]  ;;  %v13871_v55 = vunpack.i.h.bf16 %v21129_v18 }
 0xeb4   : > { %10134 = vmatpush.msra.mxu3 %v13845_v52  ;;  %10186 = vmatpush.msrb.mxu0 %v13860_v50  ;;  %14448 = vrcp.f32 %v19260_v43  ;;  %v21130_v43 = vld [vmem:[#allocation47_spill] sm:$0xff]  ;;  %v13895_v52 = vunpack.i.l.bf16 %v21133_v46  ;;  %v21134_v50 = vld [vmem:[#allocation6_spill] sm:$0xff] }
 0xeb5   : > { %14450 = vrcp.f32 %v19276_v11  ;;  %v13881_v11 = vunpack.i.h.bf16 %v21130_v43  ;;  %v13880_v22 = vunpack.i.l.bf16 %v21130_v43  ;;  %v13920_v15 = vunpack.i.l.bf16 %v21134_v50 }
 0xeb6   : > { %14452 = vrcp.f32 %v9051_v16 }
 0xeb7   : > { %14454 = vrcp.f32 %v19293_v45  ;;  %v8801_v45 = vsub.f32 %v18922_v26, %v19168_v13 }
 0xeb8   : > { %v14445_v49 = vpop.eup %14444 }
 0xeb9   : > { %v14447_v33 = vpop.eup %14446  ;;  %v9219_v14 = vmul.f32 %v14445_v49, %v19118_v0  ;;  %v21132_v0 = vld [vmem:[#allocation68_spill] sm:$0xff] }
 0xeba   : > { %v9225_v21 = vmul.f32 %v14447_v33, %v19120_v63  ;;  %v14449_v8 = vpop.eup %14448  ;;  %v13927_v63 = vpack.i.bf16 %v21132_v0, %v21131_v32  ;;  %v8803_v32 = vsub.f32 %v18901_v42, %v19149_v31 }
 0xebb   : > { %13488 = vmatmul.msk.f32.vlgmr.msra.gmra.mxu2 %vm938_vm2, %v9219_v14  ;;  %13489 = vmatmul.msk.f32.vlgmr.msrb.gmra.mxu3 %vm938_vm2, %v9220_v36  ;;  %v14451_v3 = vpop.eup %14450  ;;  %v9223_v12 = vmul.f32 %v14449_v8, %v19032_v48  ;;  %v13896_v36 = vunpack.i.h.bf16 %v21133_v46  ;;  %v21135_v14 = vld [vmem:[#allocation5_spill] sm:$0xff] }
 0xebc   : > { %13491 = vmatmul.msk.f32.vlgmr.msra.gmra.mxu0 %vm938_vm2, %v9222_v1  ;;  %13494 = vmatmul.msk.f32.vlgmr.msra.gmra.mxu1 %vm938_vm2, %v9225_v21  ;;  %v14453_v10 = vpop.eup %14452  ;;  %v9224_v35 = vmul.f32 %v14451_v3, %v19052_v59  ;;  %v13905_v1 = vunpack.i.l.bf16 %v21135_v14  ;;  %v8923_v21 = vmul.f32 1.442695, %v8801_v45  ;;  %v8927_v31 = vmul.f32 1.442695, %v8803_v32  ;;  %v21138_v45 = vld [vmem:[#allocation50_spill] sm:$0xff] }
 0xebd   : > { %10212 = vmatpush.msra.mxu2 %v13846_v4  ;;  %10238 = vmatpush.msrb.mxu3 %v13870_v40  ;;  %v9229_v58 = vmul.f32 %v14453_v10, %v19116_v57  ;;  %v14455_v48 = vpop.eup %14454  ;;  %v8798_v57 = vsub.f32 %v18919_v34, %v19155_v30  ;;  %v21136_v40 = vld [vmem:[#allocation41_spill] sm:$0xff] }
 0xebe   : > { %10290 = vmatpush.msra.mxu0 %v13880_v22  ;;  %10368 = vmatpush.msra.mxu1 %v13881_v11  ;;  %v9227_v33 = vmul.f32 %v14455_v48, %v19069_v38  ;;  %v8800_v38 = vsub.f32 %v18879_v29, %v19136_v24  ;;  %v13885_v43 = vunpack.i.l.bf16 %v21136_v40  ;;  %v13906_v11 = vunpack.i.h.bf16 %v21135_v14 }
 0xebf   : > { %13928 = vrot.lane.b32.xlu2 %v13927_v63, %s20999_s23  ;;  %v8917_v26 = vmul.f32 1.442695, %v8798_v57  ;;  %v8804_v57 = vsub.f32 %v21138_v45, %v19188_v51 }
 0xec0   : > { %v9048_v62 = vpop.xlane.xlu2 %9047  ;;  %v8921_v22 = vmul.f32 1.442695, %v8800_v38 }
 0xec1   : > { %14456 = vrcp.f32 %v9048_v62  ;;  %v13886_v62 = vunpack.i.h.bf16 %v21136_v40  ;;  %v21141_v40 = vld [vmem:[#allocation26_spill] sm:$0xff] }
 0xec3   : > { %13492 = vmatmul.msk.f32.vlgmr.msrb.gmra.mxu2 %vm938_vm2, %v9223_v12  ;;  %13493 = vmatmul.msk.f32.vlgmr.msra.gmra.mxu3 %vm938_vm2, %v9224_v35 }
 0xec4   : > { %13498 = vmatmul.msk.f32.vlgmr.msrb.gmra.mxu1 %vm938_vm2, %v9229_v58  ;;  %10316 = vmatpush.msrb.mxu2 %v13871_v55 }
 0xec5   : > { %10342 = vmatpush.msra.mxu3 %v13895_v52  ;;  %10472 = vmatpush.msrb.mxu1 %v13920_v15  ;;  %v13921_v15 = vunpack.i.h.bf16 %v21134_v50  ;;  %v19394_v50 = vpop.f32.mrf.mxu3 }
 0xec7   : > { %v14457_v59 = vpop.eup %14456 }
 0xec8   : > { %v9228_v16 = vmul.f32 %v14457_v59, %v19143_v54  ;;  %v9057_v61 = vpop.xlane.xlu2 %9056  ;;  %v9060_v49 = vpop.xlane.xlu0 %9059 }
 0xec9   : > { %14458 = vrcp.f32 %v9057_v61 }
 0xeca   : > { %14460 = vrcp.f32 %v9060_v49  ;;  %v8929_v49 = vmul.f32 1.442695, %v8804_v57 }
 0xecb   : > { %13496 = vmatmul.msk.f32.vlgmr.msra.gmra.mxu2 %vm938_vm2, %v9227_v33  ;;  %13497 = vmatmul.msk.f32.vlgmr.msrb.gmra.mxu3 %vm938_vm2, %v9228_v16  ;;  %14462 = vpow2.f32 %v8923_v21 }
 0xecc   : > { %10420 = vmatpush.msra.mxu2 %v13896_v36  ;;  %10446 = vmatpush.msrb.mxu3 %v13905_v1  ;;  %14464 = vpow2.f32 %v8917_v26  ;;  %v21139_v26 = vld [vmem:[#allocation64_spill] sm:$0xff] }
 0xecd   : > { %v13836_v38 = vunpack.i.h.bf16 %v21139_v26 }
 0xecf   : > { %v14459_v34 = vpop.eup %14458 }
 0xed0   : > { %v14461_v54 = vpop.eup %14460  ;;  %v9231_v30 = vmul.f32 %v14459_v34, %v19151_v20  ;;  %v9042_v13 = vpop.xlane.xlu2 %9041  ;;  %v8802_v20 = vsub.f32 %v18979_v41, %v19237_v9  ;;  %v21137_v41 = vld [vmem:[#allocation36_spill] sm:$0xff]  ;;  %v13835_v34 = vunpack.i.l.bf16 %v21139_v26 }
 0xed1   : > { %v9069_v4 = vpop.xlane.xlu0 %9068  ;;  %v9232_v18 = vmul.f32 %v14461_v54, %v19157_v23  ;;  %14466 = vrcp.f32 %v9042_v13  ;;  %v19363_v29 = vpop.eup %14462  ;;  %v13850_v9 = vunpack.i.l.bf16 %v21137_v41  ;;  %v13851_v13 = vunpack.i.h.bf16 %v21137_v41 }
 0xed2   : > { %14468 = vrcp.f32 %v9069_v4  ;;  %v19365_v24 = vpop.eup %14464  ;;  %v9109_v10 = vsel %vm938_vm2, %v19363_v29, 0.0  ;;  %v8925_v35 = vmul.f32 1.442695, %v8802_v20 }
 0xed3   : > { %13500 = vmatmul.msk.f32.vlgmr.msrb.gmra.mxu2 %vm938_vm2, %v9231_v30  ;;  %13501 = vmatmul.msk.f32.vlgmr.msra.gmra.mxu3 %vm938_vm2, %v9232_v18  ;;  %14470 = vpow2.f32 %v8921_v22  ;;  %v9100_v42 = vsel %vm938_vm2, %v19365_v24, 0.0  ;;  %v21140_v18 = vld [vmem:[#allocation43_spill] sm:$0xff] }
 0xed4   : > { %10524 = vmatpush.msrb.mxu2 %v13906_v11  ;;  %10550 = vmatpush.msra.mxu3 %v13885_v43  ;;  %v13937_v43 = vpack.i.bf16 %v21141_v40, %v21140_v18 }
 0xed7   : > { %v14467_v23 = vpop.eup %14466 }
 0xed8   : > { %v14469_v8 = vpop.eup %14468  ;;  %v9226_v0 = vmul.f32 %v14467_v23, %v19164_v47  ;;  %v9081_v3 = vpop.xlane.xlu2 %9080 }
 0xed9   : > { %v9054_v63 = vpop.xlane.xlu0 %9053  ;;  %v9235_v12 = vmul.f32 %v14469_v8, %v19166_v37  ;;  %9110 = vadd.xlane.f32.xlu1 %v9109_v10  ;;  %v19381_v47 = vpop.eup %14470  ;;  %v21142_v10 = vld [vmem:[#allocation32_spill] sm:$0xff] }
 0xeda   : > { %14472 = vrcp.f32 %v9054_v63  ;;  %13495 = vmatmul.msk.f32.vlgmr.msrb.gmra.mxu0 %vm938_vm2, %v9226_v0 }
 0xedb   : > { %14474 = vrcp.f32 %v9081_v3  ;;  %10394 = vmatpush.msrb.mxu0 %v13886_v62  ;;  %13504 = vmatmul.msk.f32.vlgmr.msra.gmra.mxu2 %vm938_vm2, %v9235_v12 }
 0xedc   : > { %10628 = vmatpush.msra.mxu2 %v13850_v9  ;;  %9101 = vadd.xlane.f32.xlu0 %v9100_v42  ;;  %14476 = vpow2.f32 %v8925_v35  ;;  %v19434_v9 = vpop.f32.mrf.mxu2 }
 0xedd   : > { %14478 = vpow2.f32 %v8927_v31 }
 0xee0   : > { %v14473_v37 = vpop.eup %14472  ;;  %v9072_v52 = vpop.xlane.xlu1 %9071 }
 0xee1   : > { %v14475_v55 = vpop.eup %14474  ;;  %v9230_v58 = vmul.f32 %v14473_v37, %v19176_v44  ;;  %v9063_v46 = vpop.xlane.xlu0 %9062  ;;  %v9106_v44 = vsel %vm938_vm2, %v19381_v47, 0.0 }
 0xee2   : > { %v9239_v48 = vmul.f32 %v14475_v55, %v19179_v27  ;;  %14480 = vrcp.f32 %v9063_v46  ;;  %v9066_v59 = vpop.xlane.xlu2 %9065  ;;  %v19392_v16 = vpop.eup %14476 }
 0xee3   : > { %14482 = vrcp.f32 %v9066_v59  ;;  %13499 = vmatmul.msk.f32.vlgmr.msra.gmra.mxu0 %vm938_vm2, %v9230_v58  ;;  %v19396_v27 = vpop.eup %14478  ;;  %v9112_v33 = vsel %vm938_vm2, %v19392_v16, 0.0 }
 0xee4   : > { %14484 = vrcp.f32 %v9072_v52  ;;  %10498 = vmatpush.msra.mxu0 %v13921_v15  ;;  %13508 = vmatmul.msk.f32.vlgmr.msrb.gmra.mxu2 %vm938_vm2, %v9239_v48 }
 0xee5   : > { %9107 = vadd.xlane.f32.xlu0 %v9106_v44 }
 0xee8   : > { %v14481_v61 = vpop.eup %14480  ;;  %9113 = vadd.xlane.f32.xlu2 %v9112_v33  ;;  %v9075_v1 = vpop.xlane.xlu1 %9074 }
 0xee9   : > { %v14483_v51 = vpop.eup %14482  ;;  %v9233_v36 = vmul.f32 %v14481_v61, %v19195_v5  ;;  %v9084_v14 = vpop.xlane.xlu0 %9083  ;;  %v9115_v5 = vsel %vm938_vm2, %v19396_v27, 0.0 }
 0xeea   : > { %v14485_v21 = vpop.eup %14484  ;;  %v9234_v54 = vmul.f32 %v14483_v51, %v19198_v28  ;;  %14486 = vrcp.f32 %v9084_v14  ;;  %v19411_v28 = vpop.f32.mrf.mxu3 }
 0xeeb   : > { %v9236_v30 = vmul.f32 %v14485_v21, %v19201_v39  ;;  %14488 = vrcp.f32 %v9075_v1  ;;  %13502 = vmatmul.msk.f32.vlgmr.msra.gmra.mxu1 %vm938_vm2, %v9233_v36  ;;  %v19455_v14 = vpop.f32.mrf.mxu1 }
 0xeec   : > { %14490 = vpow2.f32 %v8929_v49  ;;  %13503 = vmatmul.msk.f32.vlgmr.msrb.gmra.mxu0 %vm938_vm2, %v9234_v54  ;;  %10576 = vmatpush.msra.mxu1 %v13835_v34 }
 0xeed   : > { %13505 = vmatmul.msk.f32.vlgmr.msrb.gmra.mxu3 %vm938_vm2, %v9236_v30  ;;  %10602 = vmatpush.msrb.mxu0 %v13836_v38 }
 0xeee   : > { %10654 = vmatpush.msrb.mxu3 %v13851_v13  ;;  %9116 = vadd.xlane.f32.xlu0 %v9115_v5 }
 0xef0   : > { %v14487_v39 = vpop.eup %14486  ;;  %v9093_v22 = vpop.xlane.xlu1 %9092 }
 0xef1   : > { %v14489_v4 = vpop.eup %14488  ;;  %v9240_v11 = vmul.f32 %v14487_v39, %v19214_v19  ;;  %14492 = vrcp.f32 %v9093_v22  ;;  %v19469_v22 = vpop.f32.mrf.mxu0 }
 0xef2   : > { %v19416_v20 = vpop.eup %14490  ;;  %v9237_v23 = vmul.f32 %v14489_v4, %v19211_v53  ;;  %13938 = vrot.lane.b32.xlu1 %v13937_v43, %s20999_s23  ;;  %v19424_v0 = vpop.f32.mrf.mxu3  ;;  %v21145_v4 = vld [vmem:[#allocation33_spill] sm:$0xff] }
 0xef3   : > { %v9118_v8 = vsel %vm938_vm2, %v19416_v20, 0.0 }
 0xef4   : > { %13506 = vmatmul.msk.f32.vlgmr.msrb.gmra.mxu1 %vm938_vm2, %v9237_v23 }
 0xef5   : > { %13509 = vmatmul.msk.f32.vlgmr.msra.gmra.mxu3 %vm938_vm2, %v9240_v11 }
 0xef6   : > { %9119 = vadd.xlane.f32.xlu0 %v9118_v8 }
 0xef7   : > { %v14493_v32 = vpop.eup %14492 }
 0xef8   : > { %v9243_v19 = vmul.f32 %v14493_v32, %v19226_v60 }
 0xef9   : > { %v9078_v63 = vpop.xlane.xlu1 %9077  ;;  %v19475_v32 = vpop.f32.mrf.mxu0 }
 0xefa   : > { %14494 = vrcp.f32 %v9078_v63  ;;  %13512 = vmatmul.msk.f32.vlgmr.msra.gmra.mxu2 %vm938_vm2, %v9243_v19  ;;  %v19428_v53 = vpop.f32.mrf.mxu3 }
 0xf00   : > { %v14495_v3 = vpop.eup %14494  ;;  %10867 = vrot.lane.b32.xlu2 %v21142_v10, %s20999_s23  ;;  %v21146_v10 = vld [vmem:[#allocation28_spill] sm:$0xff] }
 0xf01   : > { %v9238_v62 = vmul.f32 %v14495_v3, %v19240_v7  ;;  %v9087_v12 = vpop.xlane.xlu2 %9086  ;;  %v9099_v41 = vpop.xlane.xlu1 %9098 }
 0xf02   : > { %14496 = vrcp.f32 %v9087_v12  ;;  %v9720_v60 = vpop.f32.mrf.mxu3  ;;  %v19440_v7 = vpop.f32.mrf.mxu2 }
 0xf03   : > { %13507 = vmatmul.msk.f32.vlgmr.msra.gmra.mxu0 %vm938_vm2, %v9238_v62 }
 0xf08   : > { %v14497_v35 = vpop.eup %14496  ;;  %10937 = vrot.lane.b32.xlu2 %v9720_v60, %s21143_s28 }
 0xf09   : > { %v9241_v42 = vmul.f32 %v14497_v35, %v19252_v6  ;;  %v9096_v31 = vpop.xlane.xlu2 %9095  ;;  %v8742_v37 = vpop.xlane.xlu1 %8741 }
 0xf0a   : > { %14498 = vrcp.f32 %v9096_v31  ;;  %v8806_v55 = vsub.f32 %v19265_v56, %v8742_v37  ;;  %v19444_v6 = vpop.f32.mrf.mxu2  ;;  %v21144_v56 = vld [vmem:[#allocation39_spill] sm:$0xff]  ;;  %v19471_v23 = vpop.f32.mrf.mxu3 }
 0xf0b   : > { %13510 = vmatmul.msk.f32.vlgmr.msra.gmra.mxu1 %vm938_vm2, %v9241_v42 }
 0xf0c   : > { %v8933_v58 = vmul.f32 1.442695, %v8806_v55 }
 0xf0e   : > { %14500 = vpow2.f32 %v8933_v58 }
 0xf10   : > { %v14499_v46 = vpop.eup %14498 }
 0xf11   : > { %v9244_v52 = vmul.f32 %v14499_v46, %v19268_v25  ;;  %v9090_v15 = vpop.xlane.xlu0 %9089  ;;  %v9105_v48 = vpop.xlane.xlu2 %9104 }
 0xf12   : > { %14502 = vrcp.f32 %v9090_v15  ;;  %v19453_v49 = vpop.f32.mrf.mxu2 }
 0xf13   : > { %13513 = vmatmul.msk.f32.vlgmr.msrb.gmra.mxu3 %vm938_vm2, %v9244_v52  ;;  %14504 = vrcp.f32 %v9105_v48 }
 0xf14   : > { %v19446_v59 = vpop.eup %14500  ;;  %14506 = vrcp.f32 %v9099_v41  ;;  %v19489_v41 = vpop.f32.mrf.mxu0 }
 0xf15   : > { %v9124_v25 = vsel %vm938_vm2, %v19446_v59, 0.0 }
 0xf18   : > { %v14503_v45 = vpop.eup %14502 }
 0xf19   : > { %v9242_v57 = vmul.f32 %v14503_v45, %v21144_v56  ;;  %v8739_v44 = vpop.xlane.xlu2 %8738  ;;  %v14505_v51 = vpop.eup %14504 }
 0xf1a   : > { %v8805_v61 = vsub.f32 %v19287_v17, %v8739_v44  ;;  %v14507_v26 = vpop.eup %14506  ;;  %v9247_v17 = vmul.f32 %v14505_v51, %v19274_v2  ;;  %v9694_v38 = vpop.f32.mrf.mxu2 }
 0xf1b   : > { %13511 = vmatmul.msk.f32.vlgmr.msrb.gmra.mxu0 %vm938_vm2, %v9242_v57  ;;  %v9245_v18 = vmul.f32 %v14507_v26, %v21145_v4  ;;  %v19465_v2 = vpop.f32.mrf.mxu1 }
 0xf1c   : > { %v8931_v33 = vmul.f32 1.442695, %v8805_v61  ;;  %9125 = vadd.xlane.f32.xlu1 %v9124_v25  ;;  %v19493_v42 = vpop.f32.mrf.mxu0 }
 0xf1e   : > { %14508 = vpow2.f32 %v8931_v33 }
 0xf21   : > { %v13929_v36 = vpop.permute.xlu2 %13928  ;;  %v13934_v34 = vpop.permute.xlu1 %13933 }
 0xf22   : > { %v13931_v1 = vunpack.i.h.bf16 %v13929_v36  ;;  %v13930_v21 = vunpack.i.l.bf16 %v13929_v36  ;;  %v13936_v40 = vunpack.i.h.bf16 %v13934_v34  ;;  %v13935_v43 = vunpack.i.l.bf16 %v13934_v34 }
 0xf23   : > { %v19473_v8 = vpop.f32.mrf.mxu1 }
 0xf24   : > { %v19458_v54 = vpop.eup %14508  ;;  %v13924_v30 = vpop.permute.xlu0 %13923  ;;  %10732 = vmatpush.msrb.mxu2 %v13930_v21  ;;  %10758 = vmatpush.msra.mxu3 %v13931_v1 }
 0xf25   : > { %v13926_v13 = vunpack.i.h.bf16 %v13924_v30  ;;  %v13925_v5 = vunpack.i.l.bf16 %v13924_v30  ;;  %13516 = vmatmul.msk.f32.vlgmr.msrb.gmra.mxu2 %vm938_vm2, %v9247_v17  ;;  %v9121_v39 = vsel %vm938_vm2, %v19458_v54, 0.0  ;;  %v9772_v52 = vpop.f32.mrf.mxu0 }
 0xf26   : > { %9122 = vadd.xlane.f32.xlu0 %v9121_v39  ;;  %v19467_v11 = vpop.f32.mrf.mxu2 }
 0xf27   : > { %10680 = vmatpush.msrb.mxu1 %v13925_v5  ;;  %10706 = vmatpush.msra.mxu0 %v13926_v13 }
 0xf28   : > { %13514 = vmatmul.msk.f32.vlgmr.msrb.gmra.mxu1 %vm938_vm2, %v9245_v18 }
 0xf29   : > { %10810 = vmatpush.msrb.mxu0 %v13936_v40  ;;  %10784 = vmatpush.msra.mxu1 %v13935_v43 }
 0xf2b   : > { %v19481_v3 = vpop.f32.mrf.mxu1 }
 0xf2d   : > { %v9876_v25 = vpop.f32.mrf.mxu0 }
 0xf2e   : > { %v19477_v19 = vpop.f32.mrf.mxu2 }
 0xf33   : > { %v9746_v60 = vpop.f32.mrf.mxu1 }
 0xf35   : > { %v19515_v17 = vpop.f32.mrf.mxu0 }
 0xf36   : > { %v19479_v63 = vpop.f32.mrf.mxu3 }
 0xf3a   : > { %10893 = vrot.lane.b32.xlu0 %v21146_v10, %s20999_s23 }
 0xf3b   : > { %v19496_v37 = vpop.f32.mrf.mxu1 }
 0xf3e   : > { %v19485_v62 = vpop.f32.mrf.mxu2  ;;  %v19487_v12 = vpop.f32.mrf.mxu3 }
 0xf42   : > { %10935 = vrot.lane.b32.xlu0 %v9694_v38, %s21143_s28 }
 0xf43   : > { %v19501_v48 = vpop.f32.mrf.mxu1 }
 0xf46   : > { %v10110_v35 = vpop.f32.mrf.mxu2  ;;  %v10136_v31 = vpop.f32.mrf.mxu3 }
 0xf47   : > { %10999 = vrot.lane.b32.xlu2 %v10110_v35, %s21147_s29 }
 0xf4a   : > { %11001 = vrot.lane.b32.xlu0 %v10136_v31, %s21147_s29 }
 0xf4b   : > { %v19509_v51 = vpop.f32.mrf.mxu1 }
 0xf4c   : > { %v9111_v55 = vpop.xlane.xlu1 %9110 }
 0xf4d   : > { %14510 = vrcp.f32 %v9111_v55 }
 0xf4e   : > { %v19498_v58 = vpop.f32.mrf.mxu2  ;;  %v10240_v36 = vpop.f32.mrf.mxu3 }
 0xf4f   : > { %v9102_v46 = vpop.xlane.xlu0 %9101  ;;  %10939 = vrot.lane.b32.xlu2 %v9746_v60, %s21143_s28 }
 0xf50   : > { %14512 = vrcp.f32 %v9102_v46 }
 0xf53   : > { %v14511_v15 = vpop.eup %14510  ;;  %v10162_v30 = vpop.f32.mrf.mxu1 }
 0xf54   : > { %v9249_v45 = vmul.f32 %v14511_v15, %v19363_v29 }
 0xf56   : > { %v14513_v56 = vpop.eup %14512  ;;  %v19504_v57 = vpop.f32.mrf.mxu2  ;;  %13518 = vmatmul.msk.f32.vlgmr.msra.gmra.mxu1 %vm938_vm2, %v9249_v45 }
 0xf57   : > { %v9246_v44 = vmul.f32 %v14513_v56, %v19365_v24 }
 0xf58   : > { %v9108_v61 = vpop.xlane.xlu0 %9107 }
 0xf59   : > { %14514 = vrcp.f32 %v9108_v61  ;;  %13515 = vmatmul.msk.f32.vlgmr.msra.gmra.mxu0 %vm938_vm2, %v9246_v44 }
 0xf5b   : > { %v9114_v33 = vpop.xlane.xlu2 %9113  ;;  %v10266_v10 = vpop.f32.mrf.mxu1 }
 0xf5c   : > { %14516 = vrcp.f32 %v9114_v33 }
 0xf5e   : > { %v19511_v21 = vpop.f32.mrf.mxu2 }
 0xf5f   : > { %v14515_v1 = vpop.eup %14514 }
 0xf60   : > { %v9248_v29 = vmul.f32 %v14515_v1, %v19381_v47  ;;  %v19519_v47 = vpop.f32.mrf.mxu3 }
 0xf61   : > { %v9117_v26 = vpop.xlane.xlu0 %9116 }
 0xf62   : > { %14518 = vrcp.f32 %v9117_v26  ;;  %13517 = vmatmul.msk.f32.vlgmr.msra.gmra.mxu3 %vm938_vm2, %v9248_v29  ;;  %v14517_v24 = vpop.eup %14516 }
 0xf63   : > { %v9250_v34 = vmul.f32 %v14517_v24, %v19392_v16  ;;  %v10868_v38 = vpop.permute.xlu2 %10867  ;;  %v19524_v16 = vpop.f32.mrf.mxu0 }
 0xf64   : > { %10888 = vmatpush.msrb.mxu1 %v10868_v38  ;;  %v13939_v13 = vpop.permute.xlu1 %13938 }
 0xf65   : > { %v13941_v5 = vunpack.i.h.bf16 %v13939_v13  ;;  %v13940_v39 = vunpack.i.l.bf16 %v13939_v13  ;;  %13519 = vmatmul.msk.f32.vlgmr.msrb.gmra.mxu0 %vm938_vm2, %v9250_v34 }
 0xf67   : > { %v10526_v4 = vpop.f32.mrf.mxu2  ;;  %10836 = vmatpush.msra.mxu2 %v13940_v39  ;;  %10862 = vmatpush.msrb.mxu3 %v13941_v5 }
 0xf68   : > { %v14519_v18 = vpop.eup %14518  ;;  %11063 = vrot.lane.b32.xlu0 %v10526_v4, %s21148_s22 }
 0xf69   : > { %v9251_v40 = vmul.f32 %v14519_v18, %v19396_v27  ;;  %v9120_v43 = vpop.xlane.xlu0 %9119  ;;  %v10370_v27 = vpop.f32.mrf.mxu1 }
 0xf6a   : > { %14520 = vrcp.f32 %v9120_v43 }
 0xf6b   : > { %13520 = vmatmul.msk.f32.vlgmr.msra.gmra.mxu2 %vm938_vm2, %v9251_v40  ;;  %v10188_v55 = vpop.f32.mrf.mxu0 }
 0xf70   : > { %v14521_v60 = vpop.eup %14520  ;;  %v19526_v35 = vpop.f32.mrf.mxu3  ;;  %11003 = vrot.lane.b32.xlu0 %v10162_v30, %s21147_s29 }
 0xf71   : > { %v9252_v31 = vmul.f32 %v14521_v60, %v19416_v20  ;;  %v19533_v45 = vpop.f32.mrf.mxu1 }
 0xf73   : > { %13521 = vmatmul.msk.f32.vlgmr.msrb.gmra.mxu3 %vm938_vm2, %v9252_v31  ;;  %v10292_v15 = vpop.f32.mrf.mxu0 }
 0xf78   : > { %v10552_v46 = vpop.f32.mrf.mxu3  ;;  %10941 = vrot.lane.b32.xlu0 %v9772_v52, %s21143_s28 }
 0xf79   : > { %11065 = vrot.lane.b32.xlu1 %v10552_v46, %s21148_s22 }
 0xf7b   : > { %v10396_v56 = vpop.f32.mrf.mxu0 }
 0xf81   : > { %10943 = vrot.lane.b32.xlu1 %v19467_v11, %s21143_s28 }
 0xf83   : > { %v19540_v44 = vpop.f32.mrf.mxu0 }
 0xf88   : > { %v10578_v20 = vpop.f32.mrf.mxu1 }
 0xf89   : > { %10945 = vrot.lane.b32.xlu1 %v19471_v23, %s21143_s28  ;;  %11067 = vrot.lane.b32.xlu2 %v10578_v20, %s21148_s22  ;;  %v10630_v23 = vpop.f32.mrf.mxu2 }
 0xf8f   : > { %v9126_v33 = vpop.xlane.xlu1 %9125 }
 0xf91   : > { %10947 = vrot.lane.b32.xlu1 %v19496_v37, %s21143_s28  ;;  %11005 = vrot.lane.b32.xlu2 %v10188_v55, %s21147_s29 }
 0xf98   : > { %v10604_v52 = vpop.f32.mrf.mxu0 }
 0xf99   : > { %10949 = vrot.lane.b32.xlu1 %v9876_v25, %s21143_s28  ;;  %v9123_v61 = vpop.xlane.xlu0 %9122  ;;  %11007 = vrot.lane.b32.xlu2 %v19498_v58, %s21147_s29  ;;  %v10656_v25 = vpop.f32.mrf.mxu3 }
 0xf9a   : > { %11069 = vrot.lane.b32.xlu0 %v10604_v52, %s21148_s22  ;;  %14522 = vrcp.f32 %v9123_v61 }
 0xf9b   : > { %14524 = vrcp.f32 %v9126_v33 }
 0xfa0   : > { %v14523_v11 = vpop.eup %14522 }
 0xfa1   : > { %10951 = vrot.lane.b32.xlu1 %v19477_v19, %s21143_s28  ;;  %v9253_v37 = vmul.f32 %v14523_v11, %v19458_v54  ;;  %11009 = vrot.lane.b32.xlu2 %v10240_v36, %s21147_s29  ;;  %v14525_v58 = vpop.eup %14524  ;;  %v13524_v36 = vld [vmem:[%s20588_s6 + $0x20] sm:$0xff] }
 0xfa2   : > { %11071 = vrot.lane.b32.xlu0 %v10630_v23, %s21148_s22  ;;  %v9254_v19 = vmul.f32 %v14525_v58, %v19446_v59  ;;  %v13526_v59 = vld [vmem:[%s20588_s6 + $0x30] sm:$0xff] }
 0xfa3   : > { %13522 = vmatmul.msk.f32.vlgmr.msrb.gmra.mxu1 %vm938_vm2, %v9253_v37 }
 0xfa5   : > { %v10682_v54 = vpop.f32.mrf.mxu1 }
 0xfa8   : > { %v10734_v38 = vpop.f32.mrf.mxu2 }
 0xfa9   : > { %10953 = vrot.lane.b32.xlu1 %v19479_v63, %s21143_s28  ;;  %11011 = vrot.lane.b32.xlu2 %v10266_v10, %s21147_s29  ;;  %v13527_v63 = vld [vmem:[%s20588_s6 + $0x38] sm:$0xff] }
 0xfaa   : > { %11073 = vrot.lane.b32.xlu0 %v10656_v25, %s21148_s22  ;;  %11225 = vmatpush.msrb.mxu2 %v13527_v63 }
 0xfac   : > { %v10894_v1 = vpop.permute.xlu0 %10893  ;;  %11226 = vmatpush.msrb.mxu2 %v13526_v59 }
 0xfad   : > { %10914 = vmatpush.msra.mxu0 %v10894_v1 }
 0xfae   : > { %13523 = vmatmul.msk.f32.vlgmr.msra.gmra.mxu0 %vm938_vm2, %v9254_v19 }
 0xfb1   : > { %10955 = vrot.lane.b32.xlu1 %v19501_v48, %s21143_s28  ;;  %11013 = vrot.lane.b32.xlu2 %v10292_v15, %s21147_s29  ;;  %v13525_v48 = vld [vmem:[%s20588_s6 + $0x28] sm:$0xff] }
 0xfb2   : > { %11075 = vrot.lane.b32.xlu0 %v10682_v54, %s21148_s22  ;;  %11227 = vmatpush.msrb.mxu2 %v13525_v48 }
 0xfb4   : > { %11228 = vmatpush.msrb.mxu2 %v13524_v36  ;;  %v10936_v29 = vpop.permute.xlu0 %10935 }
 0xfb9   : > { %10957 = vrot.lane.b32.xlu1 %v19515_v17, %s21143_s28  ;;  %11015 = vrot.lane.b32.xlu2 %v19504_v57, %s21147_s29  ;;  %v10938_v57 = vpop.permute.xlu2 %10937 }
 0xfbc   : > { %v11002_v26 = vpop.permute.xlu0 %11001 }
 0xfc1   : > { %10959 = vrot.lane.b32.xlu1 %v19485_v62, %s21143_s28  ;;  %11017 = vrot.lane.b32.xlu2 %v19519_v47, %s21147_s29  ;;  %v11111_v62 = vsel %vm938_vm2, %v19434_v9, %v10936_v29  ;;  %v11000_v17 = vpop.permute.xlu2 %10999 }
 0xfc9   : > { %10961 = vrot.lane.b32.xlu1 %v19487_v12, %s21143_s28  ;;  %11019 = vrot.lane.b32.xlu2 %v10370_v27, %s21147_s29  ;;  %v11127_v12 = vsel %vm589_vm0, %v11111_v62, %v11000_v17  ;;  %v10940_v30 = vpop.permute.xlu2 %10939 }
 0xfca   : > { %v11113_v47 = vsel %vm938_vm2, %v19455_v14, %v10940_v30 }
 0xfd1   : > { %10963 = vrot.lane.b32.xlu1 %v19509_v51, %s21143_s28  ;;  %11021 = vrot.lane.b32.xlu2 %v10396_v56, %s21147_s29 }
 0xfd3   : > { %v10786_v18 = vpop.f32.mrf.mxu1 }
 0xfd6   : > { %v10708_v24 = vpop.f32.mrf.mxu0 }
 0xfd7   : > { %11077 = vrot.lane.b32.xlu0 %v10708_v24, %s21148_s22 }
 0xfd9   : > { %10965 = vrot.lane.b32.xlu1 %v19524_v16, %s21143_s28  ;;  %11023 = vrot.lane.b32.xlu2 %v19511_v21, %s21147_s29  ;;  %v11112_v21 = vsel %vm938_vm2, %v19394_v50, %v10938_v57 }
 0xfda   : > { %v11064_v51 = vpop.permute.xlu0 %11063  ;;  %v11128_v13 = vsel %vm589_vm0, %v11112_v21, %v11002_v26 }
 0xfdb   : > { %v11143_v34 = vsel %vm5321_vm3, %v11127_v12, %v11064_v51 }
 0xfdc   : > { %13528 = vmatmul.msk.f32.vlgmr.msrb.gmra.mxu2 %vm710_vm1, %v11143_v34 }
 0xfdf   : > { %11079 = vrot.lane.b32.xlu0 %v10734_v38, %s21148_s22 }
 0xfe1   : > { %11025 = vrot.lane.b32.xlu2 %v19526_v35, %s21147_s29 }
 0xfe2   : > { %v11004_v4 = vpop.permute.xlu0 %11003  ;;  %v10812_v16 = vpop.f32.mrf.mxu0 }
 0xfe3   : > { %v11129_v40 = vsel %vm589_vm0, %v11113_v47, %v11004_v4  ;;  %v11068_v50 = vpop.permute.xlu2 %11067 }
 0xfe4   : > { %v11145_v43 = vsel %vm5321_vm3, %v11129_v40, %v11068_v50 }
 0xfe5   : > { %v10760_v9 = vpop.f32.mrf.mxu3 }
 0xfe7   : > { %11081 = vrot.lane.b32.xlu0 %v10760_v9, %s21148_s22 }
 0xfe9   : > { %11027 = vrot.lane.b32.xlu2 %v19533_v45, %s21147_s29 }
 0xfea   : > { %v10942_v14 = vpop.permute.xlu0 %10941 }
 0xfeb   : > { %v11066_v5 = vpop.permute.xlu1 %11065  ;;  %v11006_v60 = vpop.permute.xlu2 %11005  ;;  %v11114_v31 = vsel %vm938_vm2, %v19469_v22, %v10942_v14 }
 0xfec   : > { %v11144_v39 = vsel %vm5321_vm3, %v11128_v13, %v11066_v5  ;;  %v11130_v27 = vsel %vm589_vm0, %v11114_v31, %v11006_v60 }
 0xfed   : > { %13529 = vmatmul.msk.f32.gmra.mxu2 %vm710_vm1, %v11144_v39 }
 0xfee   : > { %v10838_v10 = vpop.f32.mrf.mxu2 }
 0xfef   : > { %11083 = vrot.lane.b32.xlu0 %v10786_v18, %s21148_s22 }
 0xff1   : > { %11029 = vrot.lane.b32.xlu2 %v19540_v44, %s21147_s29 }
 0xff3   : > { %v10944_v55 = vpop.permute.xlu1 %10943  ;;  %v11008_v15 = vpop.permute.xlu2 %11007 }
 0xff4   : > { %v11115_v56 = vsel %vm938_vm2, %v19440_v7, %v10944_v55 }
 0xff5   : > { %13530 = vmatmul.msk.f32.gmra.mxu2 %vm710_vm1, %v11145_v43  ;;  %v11131_v20 = vsel %vm589_vm0, %v11115_v56, %v11008_v15 }
 0xff6   : > { %v10864_v35 = vpop.f32.mrf.mxu3 }
 0xff7   : > { %11085 = vrot.lane.b32.xlu0 %v10812_v16, %s21148_s22  ;;  %v21149_v16 = vld [vmem:[#allocation52_spill] sm:$0xff] }
 0xffb   : > { %v10946_v44 = vpop.permute.xlu1 %10945  ;;  %v11010_v22 = vpop.permute.xlu2 %11009 }
 0xffc   : > { %v11116_v11 = vsel %vm938_vm2, %v19411_v28, %v10946_v44 }
 0xffd   : > { %v11132_v23 = vsel %vm589_vm0, %v11116_v11, %v11010_v22 }
 0xfff   : > { %11087 = vrot.lane.b32.xlu0 %v10838_v10, %s21148_s22 }
0x1003   : > { %v10948_v25 = vpop.permute.xlu1 %10947  ;;  %v11012_v58 = vpop.permute.xlu2 %11011 }
0x1004   : > { %v11117_v7 = vsel %vm938_vm2, %v19465_v2, %v10948_v25 }
0x1005   : > { %v11133_v1 = vsel %vm589_vm0, %v11117_v7, %v11012_v58  ;;  %v21151_v58 = vld [vmem:[#allocation74_spill] sm:$0xff] }
0x1007   : > { %11089 = vrot.lane.b32.xlu0 %v10864_v35, %s21148_s22 }
0x100b   : > { %v10950_v59 = vpop.permute.xlu1 %10949  ;;  %v11014_v48 = vpop.permute.xlu2 %11013 }
0x100c   : > { %v11070_v46 = vpop.permute.xlu0 %11069  ;;  %v11118_v2 = vsel %vm938_vm2, %v19475_v32, %v10950_v59 }
0x100d   : > { %v11146_v45 = vsel %vm5321_vm3, %v11130_v27, %v11070_v46  ;;  %v11134_v57 = vsel %vm589_vm0, %v11118_v2, %v11014_v48 }
0x100e   : > { %13531 = vmatmul.msk.f32.gmra.mxu2 %vm710_vm1, %v11146_v45 }
0x1013   : > { %v10952_v36 = vpop.permute.xlu1 %10951  ;;  %v11016_v29 = vpop.permute.xlu2 %11015 }
0x1014   : > { %v11072_v52 = vpop.permute.xlu0 %11071  ;;  %v11119_v17 = vsel %vm938_vm2, %v19444_v6, %v10952_v36  ;;  %v19661_v6 = vld [vmem:[%s20589_s7 + $0x8] sm:$0x3f] }
0x1015   : > { %v11147_v61 = vsel %vm5321_vm3, %v11131_v20, %v11072_v52  ;;  %v11135_v51 = vsel %vm589_vm0, %v11119_v17, %v11016_v29  ;;  %v19666_v39 = vperm.slane %v19661_v6, 0  ;;  %v21150_v52 = vld [vmem:[#allocation75_spill] sm:$0xff]  ;;  %v21152_v29 = vld [vmem:[#allocation73_spill] sm:$0xff] }
0x1016   : > { %13532 = vmatmul.msk.f32.gmra.mxu2 %vm710_vm1, %v11147_v61 }
0x101b   : > { %v10954_v62 = vpop.permute.xlu1 %10953  ;;  %v11018_v12 = vpop.permute.xlu2 %11017 }
0x101c   : > { %v11074_v33 = vpop.permute.xlu0 %11073  ;;  %v11120_v9 = vsel %vm938_vm2, %v19424_v0, %v10954_v62 }
0x101d   : > { %v11148_v37 = vsel %vm5321_vm3, %v11132_v23, %v11074_v33  ;;  %v11136_v21 = vsel %vm589_vm0, %v11120_v9, %v11018_v12 }
0x101e   : > { %13533 = vmatmul.msk.f32.gmra.mxu2 %vm710_vm1, %v11148_v37 }
0x1020   : > { %v10890_v19 = vpop.f32.mrf.mxu1 }
0x1021   : > { %11091 = vrot.lane.b32.xlu0 %v10890_v19, %s21148_s22 }
0x1023   : > { %v10956_v32 = vpop.permute.xlu1 %10955  ;;  %v11020_v30 = vpop.permute.xlu2 %11019 }
0x1024   : > { %v11076_v54 = vpop.permute.xlu0 %11075  ;;  %v11121_v4 = vsel %vm938_vm2, %v19473_v8, %v10956_v32 }
0x1025   : > { %v11149_v28 = vsel %vm5321_vm3, %v11133_v1, %v11076_v54  ;;  %v11137_v40 = vsel %vm589_vm0, %v11121_v4, %v11020_v30  ;;  %v21154_v4 = vld [vmem:[#allocation77_spill] sm:$0xff] }
0x1026   : > { %13534 = vmatmul.msk.f32.gmra.mxu2 %vm710_vm1, %v11149_v28 }
0x102b   : > { %v10916_v63 = vpop.f32.mrf.mxu0  ;;  %v10958_v0 = vpop.permute.xlu1 %10957 }
0x102c   : > { %11093 = vrot.lane.b32.xlu0 %v10916_v63, %s21148_s22  ;;  %v11022_v43 = vpop.permute.xlu2 %11021  ;;  %v11122_v8 = vsel %vm938_vm2, %v19489_v41, %v10958_v0  ;;  %s537_s22 = scalar_lea.vmem %s20597_s15, %s13038_s16 }
0x102d   : > { %v11138_v35 = vsel %vm589_vm0, %v11122_v8, %v11022_v43 }
0x1033   : > { %v10960_v31 = vpop.permute.xlu1 %10959 }
0x1034   : > { %v11024_v46 = vpop.permute.xlu2 %11023  ;;  %v11123_v15 = vsel %vm938_vm2, %v19453_v49, %v10960_v31 }
0x1035   : > { %v11139_v20 = vsel %vm589_vm0, %v11123_v15, %v11024_v46  ;;  %v21157_v46 = vld [vmem:[#allocation62_spill] sm:$0xff] }
0x103b   : > { %v10962_v22 = vpop.permute.xlu1 %10961 }
0x103c   : > { %v11124_v49 = vsel %vm938_vm2, %v19428_v53, %v10962_v22  ;;  %v11026_v23 = vpop.permute.xlu2 %11025 }
0x103d   : > { %v11140_v25 = vsel %vm589_vm0, %v11124_v49, %v11026_v23  ;;  %v21158_v23 = vld [vmem:[#allocation51_spill] sm:$0xff] }
0x1043   : > { %v10964_v28 = vpop.permute.xlu1 %10963 }
0x1044   : > { %v11125_v53 = vsel %vm938_vm2, %v19481_v3, %v10964_v28  ;;  %v11028_v63 = vpop.permute.xlu2 %11027 }
0x1045   : > { %v11141_v36 = vsel %vm589_vm0, %v11125_v53, %v11028_v63 }
0x1049   : > { %v11078_v26 = vpop.permute.xlu0 %11077 }
0x104a   : > { %v11150_v24 = vsel %vm5321_vm3, %v11134_v57, %v11078_v26 }
0x104b   : > { %13535 = vmatmul.msk.f32.gmra.mxu2 %vm710_vm1, %v11150_v24  ;;  %v10966_v62 = vpop.permute.xlu1 %10965 }
0x104c   : > { %v11126_v12 = vsel %vm938_vm2, %v19493_v42, %v10966_v62 }
0x1051   : > { %v11080_v34 = vpop.permute.xlu0 %11079 }
0x1052   : > { %v11151_v38 = vsel %vm5321_vm3, %v11135_v51, %v11080_v34  ;;  %v11030_v51 = vpop.permute.xlu2 %11029  ;;  %v21153_v34 = vld [vmem:[#allocation72_spill] sm:$0xff] }
0x1053   : > { %13536 = vmatmul.msk.f32.gmra.mxu2 %vm710_vm1, %v11151_v38  ;;  %v11142_v9 = vsel %vm589_vm0, %v11126_v12, %v11030_v51 }
0x1059   : > { %v11082_v13 = vpop.permute.xlu0 %11081 }
0x105a   : > { %v11152_v5 = vsel %vm5321_vm3, %v11136_v21, %v11082_v13 }
0x105b   : > { %13537 = vmatmul.msk.f32.gmra.mxu2 %vm710_vm1, %v11152_v5 }
0x105f   : > { %v11230_v18 = vpop.f32.mrf.mxu2 }
0x1060   : > { %v11231_v47 = vadd.f32 %v11230_v18, %v19666_v39 }
0x1061   : > { %v11084_v50 = vpop.permute.xlu0 %11083 }
0x1062   : > { %v19673_v10 = vadd.f32 %v11231_v47, %v21149_v16  ;;  %v11153_v60 = vsel %vm5321_vm3, %v11137_v40, %v11084_v50  ;;  %v21155_v40 = vld [vmem:[#allocation78_spill] sm:$0xff] }
0x1063   : > { %13538 = vmatmul.msk.f32.gmra.mxu2 %vm710_vm1, %v11153_v60  ;;  %v21156_v60 = vld [vmem:[#allocation67_spill] sm:$0xff] }
0x1064   : > { %v11294_v14 = vsel %vm710_vm1, %v19673_v10, 0.0 }
0x1065   : > { %11295 = vadd.xlane.f32.xlu1 %v11294_v14 }
0x1069   : > { %v11086_v55 = vpop.permute.xlu0 %11085 }
0x106a   : > { %v11154_v27 = vsel %vm5321_vm3, %v11138_v35, %v11086_v55 }
0x106b   : > { %13539 = vmatmul.msk.f32.gmra.mxu2 %vm710_vm1, %v11154_v27 }
0x1070   : > { %v11233_v45 = vpop.f32.mrf.mxu2 }
0x1071   : > { %v11234_v56 = vadd.f32 %v11233_v45, %v19666_v39  ;;  %v11088_v44 = vpop.permute.xlu0 %11087 }
0x1072   : > { %v11155_v61 = vsel %vm5321_vm3, %v11139_v20, %v11088_v44 }
0x1073   : > { %v19689_v41 = vadd.f32 %v11234_v56, %v21150_v52  ;;  %13540 = vmatmul.msk.f32.gmra.mxu2 %vm710_vm1, %v11155_v61 }
0x1075   : > { %v11297_v11 = vsel %vm710_vm1, %v19689_v41, 0.0 }
0x1076   : > { %11298 = vadd.xlane.f32.xlu2 %v11297_v11 }
0x1078   : > { %v11236_v33 = vpop.f32.mrf.mxu2 }
0x1079   : > { %v11237_v37 = vadd.f32 %v11236_v33, %v19666_v39  ;;  %v11090_v7 = vpop.permute.xlu0 %11089 }
0x107a   : > { %v11156_v1 = vsel %vm5321_vm3, %v11140_v25, %v11090_v7 }
0x107b   : > { %v11280_v19 = vadd.f32 %v11237_v37, %v21151_v58  ;;  %13541 = vmatmul.msk.f32.gmra.mxu2 %vm710_vm1, %v11156_v1 }
0x107d   : > { %v11300_v54 = vsel %vm710_vm1, %v11280_v19, 0.0 }
0x107e   : > { %11301 = vadd.xlane.f32.xlu0 %v11300_v54  ;;  %v21159_v54 = vld [vmem:[#allocation60_spill] sm:$0xff] }
0x1091   : > { %v11239_v59 = vpop.f32.mrf.mxu2 }
0x1092   : > { %v11240_v48 = vadd.f32 %v11239_v59, %v19666_v39 }
0x1093   : > { %v11092_v57 = vpop.permute.xlu0 %11091 }
0x1094   : > { %v19708_v2 = vadd.f32 %v11240_v48, %v21152_v29  ;;  %v11157_v26 = vsel %vm5321_vm3, %v11141_v36, %v11092_v57 }
0x1095   : > { %13542 = vmatmul.msk.f32.gmra.mxu2 %vm710_vm1, %v11157_v26 }
0x1096   : > { %v11303_v24 = vsel %vm710_vm1, %v19708_v2, 0.0 }
0x1097   : > { %11304 = vadd.xlane.f32.xlu2 %v11303_v24 }
0x1099   : > { %v11242_v3 = vpop.f32.mrf.mxu2 }
0x109a   : > { %v11243_v17 = vadd.f32 %v11242_v3, %v19666_v39  ;;  %v21160_v3 = vld [vmem:[#allocation27_spill] sm:$0xff] }
0x109c   : > { %v11282_v38 = vadd.f32 %v11243_v17, %v21153_v34 }
0x109e   : > { %v11306_v32 = vsel %vm710_vm1, %v11282_v38, 0.0  ;;  %v11094_v30 = vpop.permute.xlu0 %11093 }
0x109f   : > { %11307 = vadd.xlane.f32.xlu1 %v11306_v32  ;;  %v11158_v21 = vsel %vm5321_vm3, %v11142_v9, %v11094_v30 }
0x10a0   : > { %13543 = vmatmul.msk.f32.gmra.mxu2 %vm710_vm1, %v11158_v21 }
0x10a1   : > { %v11245_v13 = vpop.f32.mrf.mxu2 }
0x10a2   : > { %v11246_v5 = vadd.f32 %v11245_v13, %v19666_v39  ;;  %v21161_v13 = vld [vmem:[#allocation30_spill] sm:$0xff] }
0x10a4   : > { %v19724_v0 = vadd.f32 %v11246_v5, %v21154_v4 }
0x10a6   : > { %v11309_v42 = vsel %vm710_vm1, %v19724_v0, 0.0 }
0x10a7   : > { %11310 = vadd.xlane.f32.xlu0 %v11309_v42 }
0x10a9   : > { %v11248_v18 = vpop.f32.mrf.mxu2 }
0x10aa   : > { %v11249_v47 = vadd.f32 %v11248_v18, %v19666_v39 }
0x10ac   : > { %v19730_v50 = vadd.f32 %v11249_v47, %v21155_v40 }
0x10ae   : > { %v11312_v43 = vsel %vm710_vm1, %v19730_v50, 0.0 }
0x10af   : > { %11313 = vadd.xlane.f32.xlu1 %v11312_v43 }
0x10ce   : > { %v11251_v35 = vpop.f32.mrf.mxu2 }
0x10cf   : > { %v11252_v55 = vadd.f32 %v11251_v35, %v19666_v39 }
0x10d1   : > { %v19743_v15 = vadd.f32 %v11252_v55, %v21157_v46 }
0x10d3   : > { %v11315_v45 = vsel %vm710_vm1, %v19743_v15, 0.0 }
0x10d6   : > { %v11254_v20 = vpop.f32.mrf.mxu2 }
0x10d7   : > { %v11255_v61 = vadd.f32 %v11254_v20, %v19666_v39  ;;  %v13546_v20 = vld [vmem:[%s20590_s8 + $0x30] sm:$0xff] }
0x10d8   : > { %v11296_v16 = vpop.xlane.xlu1 %11295 }
0x10d9   : > { %v11342_v14 = vmul.f32 %v11296_v16, %v21156_v60  ;;  %v19757_v33 = vadd.f32 %v11255_v61, %v21158_v23  ;;  %v21162_v16 = vld [vmem:[#allocation34_spill] sm:$0xff] }
0x10da   : > { %v13544_v61 = vld [vmem:[%s20590_s8 + $0x20] sm:$0xff] }
0x10db   : > { %v19736_v8 = vsub.f32 %v19673_v10, %v11342_v14  ;;  %v11318_v58 = vsel %vm710_vm1, %v19757_v33, 0.0 }
0x10dd   : > { %v11374_v31 = vmul.f32 %v19736_v8, %v19736_v8 }
0x10de   : > { %v11257_v25 = vpop.f32.mrf.mxu2 }
0x10df   : > { %v11390_v27 = vsel %vm710_vm1, %v11374_v31, 0.0  ;;  %v11258_v7 = vadd.f32 %v11257_v25, %v19666_v39 }
0x10e0   : > { %11391 = vadd.xlane.f32.xlu2 %v11390_v27 }
0x10e1   : > { %v19768_v28 = vadd.f32 %v11258_v7, %v21159_v54 }
0x10e6   : > { %v11260_v53 = vpop.f32.mrf.mxu2 }
0x10e7   : > { %v11261_v29 = vadd.f32 %v11260_v53, %v19666_v39 }
0x10e8   : > { %11316 = vadd.xlane.f32.xlu2 %v11315_v45  ;;  %v21163_v45 = vld [vmem:[#allocation76_spill] sm:$0xff] }
0x10e9   : > { %v11299_v56 = vpop.xlane.xlu2 %11298  ;;  %v19782_v17 = vadd.f32 %v11261_v29, %v21160_v3  ;;  %v19849_v3 = vperm.slane %v19661_v6, 1 }
0x10ea   : > { %v11343_v10 = vmul.f32 %v11299_v56, %v21156_v60 }
0x10eb   : > { %v11324_v34 = vsel %vm710_vm1, %v19782_v17, 0.0 }
0x10ec   : > { %v19749_v44 = vsub.f32 %v19689_v41, %v11343_v10  ;;  %v13547_v10 = vld [vmem:[%s20590_s8 + $0x38] sm:$0xff] }
0x10ed   : > { %11747 = vmatpush.msra.mxu3 %v13547_v10 }
0x10ee   : > { %v11375_v52 = vmul.f32 %v19749_v44, %v19749_v44  ;;  %v11263_v26 = vpop.f32.mrf.mxu2 }
0x10ef   : > { %v11264_v51 = vadd.f32 %v11263_v26, %v19666_v39  ;;  %11748 = vmatpush.msra.mxu3 %v13546_v20  ;;  %v21164_v26 = vld [vmem:[#allocation21_spill] sm:$0xff] }
0x10f0   : > { %v11393_v22 = vsel %vm710_vm1, %v11375_v52, 0.0  ;;  %v13545_v52 = vld [vmem:[%s20590_s8 + $0x28] sm:$0xff] }
0x10f1   : > { %v11302_v11 = vpop.xlane.xlu0 %11301  ;;  %11394 = vadd.xlane.f32.xlu0 %v11393_v22  ;;  %v19794_v5 = vadd.f32 %v11264_v51, %v21161_v13  ;;  %11749 = vmatpush.msra.mxu3 %v13545_v52  ;;  %v19852_v51 = vperm.slane %v19661_v6, 2 }
0x10f2   : > { %v11344_v49 = vmul.f32 %v11302_v11, %v21156_v60 }
0x10f3   : > { %v11327_v47 = vsel %vm710_vm1, %v19794_v5, 0.0  ;;  %11750 = vmatpush.msra.mxu3 %v13544_v61 }
0x10f4   : > { %v19759_v37 = vsub.f32 %v11280_v19, %v11344_v49  ;;  %v11321_v19 = vsel %vm710_vm1, %v19768_v28, 0.0 }
0x10f6   : > { %v11376_v41 = vmul.f32 %v19759_v37, %v19759_v37  ;;  %v11266_v21 = vpop.f32.mrf.mxu2 }
0x10f7   : > { %v11267_v42 = vadd.f32 %v11266_v21, %v19666_v39 }
0x10f8   : > { %v11396_v1 = vsel %vm710_vm1, %v11376_v41, 0.0 }
0x10f9   : > { %11319 = vadd.xlane.f32.xlu0 %v11318_v58  ;;  %11397 = vadd.xlane.f32.xlu1 %v11396_v1  ;;  %v19807_v14 = vadd.f32 %v11267_v42, %v21162_v16 }
0x10fb   : > { %v11330_v27 = vsel %vm710_vm1, %v19807_v14, 0.0 }
0x10fe   : > { %v11269_v35 = vpop.f32.mrf.mxu2 }
0x10ff   : > { %v11270_v55 = vadd.f32 %v11269_v35, %v19666_v39 }
0x1101   : > { %11322 = vadd.xlane.f32.xlu1 %v11321_v19  ;;  %v19819_v56 = vadd.f32 %v11270_v55, %v21163_v45 }
0x110a   : > { %v11305_v63 = vpop.xlane.xlu2 %11304 }
0x110b   : > { %v11345_v59 = vmul.f32 %v11305_v63, %v21156_v60 }
0x110d   : > { %v19774_v48 = vsub.f32 %v19708_v2, %v11345_v59 }
0x110f   : > { %v11377_v36 = vmul.f32 %v19774_v48, %v19774_v48 }
0x1111   : > { %v11399_v57 = vsel %vm710_vm1, %v11377_v36, 0.0 }
0x1112   : > { %11400 = vadd.xlane.f32.xlu2 %v11399_v57  ;;  %v11308_v24 = vpop.xlane.xlu1 %11307 }
0x1113   : > { %v11346_v62 = vmul.f32 %v11308_v24, %v21156_v60 }
0x1115   : > { %v19784_v12 = vsub.f32 %v11282_v38, %v11346_v62 }
0x1117   : > { %v11378_v2 = vmul.f32 %v19784_v12, %v19784_v12 }
0x1118   : > { %v11272_v58 = vpop.f32.mrf.mxu2 }
0x1119   : > { %v11402_v32 = vsel %vm710_vm1, %v11378_v2, 0.0  ;;  %v11273_v53 = vadd.f32 %v11272_v58, %v19666_v39 }
0x111a   : > { %v11311_v9 = vpop.xlane.xlu0 %11310  ;;  %11325 = vadd.xlane.f32.xlu2 %v11324_v34  ;;  %11403 = vadd.xlane.f32.xlu0 %v11402_v32 }
0x111b   : > { %v11347_v30 = vmul.f32 %v11311_v9, %v21156_v60 }
0x111d   : > { %v19797_v38 = vsub.f32 %v19724_v0, %v11347_v30 }
0x111f   : > { %v11379_v4 = vmul.f32 %v19797_v38, %v19797_v38 }
0x1121   : > { %v11405_v18 = vsel %vm710_vm1, %v11379_v4, 0.0 }
0x1122   : > { %11406 = vadd.xlane.f32.xlu1 %v11405_v18  ;;  %11328 = vadd.xlane.f32.xlu0 %v11327_v47  ;;  %v11314_v40 = vpop.xlane.xlu1 %11313 }
0x1123   : > { %v11348_v43 = vmul.f32 %v11314_v40, %v21156_v60  ;;  %v11275_v47 = vpop.f32.mrf.mxu2 }
0x1124   : > { %v11276_v35 = vadd.f32 %v11275_v47, %v19666_v39 }
0x1125   : > { %v19810_v0 = vsub.f32 %v19730_v50, %v11348_v43  ;;  %v11333_v50 = vsel %vm710_vm1, %v19819_v56, 0.0 }
0x1127   : > { %v11380_v31 = vmul.f32 %v19810_v0, %v19810_v0 }
0x1129   : > { %v11408_v46 = vsel %vm710_vm1, %v11380_v31, 0.0 }
0x112a   : > { %11331 = vadd.xlane.f32.xlu1 %v11330_v27  ;;  %11409 = vadd.xlane.f32.xlu2 %v11408_v46 }
0x1132   : > { %11334 = vadd.xlane.f32.xlu2 %v11333_v50  ;;  %v21165_v50 = vld [vmem:[#allocation71_spill] sm:$0xff] }
0x1133   : > { %v19874_v10 = vadd.f32 %v11276_v35, %v21165_v50 }
0x1153   : > { %v11392_v22 = vpop.xlane.xlu2 %11391 }
0x1154   : > { %v11438_v11 = vmul.f32 %v11392_v22, %v21156_v60 }
0x1156   : > { %v11454_v49 = vadd.f32 1e-05, %v11438_v11 }
0x1158   : > { %14526 = vrsqrt.f32 %v11454_v49  ;;  %vm11476_vm3 = vweird.f32 %v11454_v49 }
0x115b   : > { %v11317_v23 = vpop.xlane.xlu2 %11316 }
0x115c   : > { %v11349_v25 = vmul.f32 %v11317_v23, %v21156_v60  ;;  %v11339_v23 = vsel %vm710_vm1, %v19874_v10, 0.0 }
0x115e   : > { %v14527_v41 = vpop.eup %14526  ;;  %v19838_v7 = vsub.f32 %v19743_v15, %v11349_v25  ;;  %v19846_v15 = vadd.f32 %v11273_v53, %v21164_v26 }
0x115f   : > { %v11471_v1 = vmul.f32 %v14527_v41, %v11454_v49  ;;  %vm11477_vm0 = vweird.f32 %v14527_v41 }
0x1160   : > { %v11381_v54 = vmul.f32 %v19838_v7, %v19838_v7  ;;  %vm11478_vm12 = vmor %vm11476_vm3, %vm11477_vm0  ;;  %v11336_v32 = vsel %vm710_vm1, %v19846_v15, 0.0 }
0x1161   : > { %v11472_v19 = vmul.f32 %v14527_v41, %v11471_v1 }
0x1162   : > { %v11411_v63 = vsel %vm710_vm1, %v11381_v54, 0.0 }
0x1163   : > { %v11473_v59 = vmul.f32 0.5, %v11472_v19  ;;  %11412 = vadd.xlane.f32.xlu0 %v11411_v63 }
0x1164   : > { %v11395_v36 = vpop.xlane.xlu0 %11394 }
0x1165   : > { %v11439_v29 = vmul.f32 %v11395_v36, %v21156_v60  ;;  %v11474_v57 = vsub.f32 1.5, %v11473_v59 }
0x1167   : > { %v11455_v24 = vadd.f32 1e-05, %v11439_v29  ;;  %v11475_v62 = vmul.f32 %v14527_v41, %v11474_v57 }
0x1169   : > { %14528 = vrsqrt.f32 %v11455_v24  ;;  %v11479_v2 = vsel %vm11478_vm12, %v14527_v41, %v11475_v62  ;;  %vm11486_vm14 = vweird.f32 %v11455_v24 }
0x116a   : > { %v11630_v34 = vmul.f32 %v11479_v2, %v19736_v8 }
0x116b   : > { %11337 = vadd.xlane.f32.xlu0 %v11336_v32 }
0x116c   : > { %v11320_v9 = vpop.xlane.xlu0 %11319  ;;  %v11398_v30 = vpop.xlane.xlu1 %11397  ;;  %v11647_v21 = vmul.f32 %v19849_v3, %v11630_v34 }
0x116d   : > { %v11350_v13 = vmul.f32 %v11320_v9, %v21156_v60  ;;  %v11440_v4 = vmul.f32 %v11398_v30, %v21156_v60 }
0x116e   : > { %v19861_v18 = vadd.f32 %v19852_v51, %v11647_v21 }
0x116f   : > { %v14529_v42 = vpop.eup %14528  ;;  %v19864_v6 = vsub.f32 %v19757_v33, %v11350_v13  ;;  %v11456_v8 = vadd.f32 1e-05, %v11440_v4 }
0x1170   : > { %v11481_v40 = vmul.f32 %v14529_v42, %v11455_v24  ;;  %13548 = vmatmul.msk.f32.vlgmr.msra.gmra.mxu3 %vm710_vm1, %v19861_v18  ;;  %vm11487_vm13 = vweird.f32 %v14529_v42 }
0x1171   : > { %14530 = vrsqrt.f32 %v11456_v8  ;;  %v11382_v43 = vmul.f32 %v19864_v6, %v19864_v6  ;;  %vm11488_vm15 = vmor %vm11486_vm14, %vm11487_vm13  ;;  %vm11496_vm5 = vweird.f32 %v11456_v8 }
0x1172   : > { %v11482_v16 = vmul.f32 %v14529_v42, %v11481_v40 }
0x1173   : > { %v11414_v31 = vsel %vm710_vm1, %v11382_v43, 0.0 }
0x1174   : > { %v11483_v55 = vmul.f32 0.5, %v11482_v16  ;;  %11415 = vadd.xlane.f32.xlu1 %v11414_v31  ;;  %v11323_v27 = vpop.xlane.xlu1 %11322 }
0x1175   : > { %v11351_v33 = vmul.f32 %v11323_v27, %v21156_v60 }
0x1176   : > { %v11484_v46 = vsub.f32 1.5, %v11483_v55 }
0x1177   : > { %v14531_v45 = vpop.eup %14530  ;;  %v19877_v20 = vsub.f32 %v19768_v28, %v11351_v33 }
0x1178   : > { %v11485_v52 = vmul.f32 %v14529_v42, %v11484_v46  ;;  %v11491_v61 = vmul.f32 %v14531_v45, %v11456_v8  ;;  %vm11497_vm4 = vweird.f32 %v14531_v45 }
0x1179   : > { %v11383_v39 = vmul.f32 %v19877_v20, %v19877_v20  ;;  %vm11498_vm6 = vmor %vm11496_vm5, %vm11497_vm4 }
0x117a   : > { %v11489_v22 = vsel %vm11488_vm15, %v14529_v42, %v11485_v52  ;;  %v11492_v11 = vmul.f32 %v14531_v45, %v11491_v61 }
0x117b   : > { %v11631_v49 = vmul.f32 %v11489_v22, %v19749_v44  ;;  %v11417_v25 = vsel %vm710_vm1, %v11383_v39, 0.0 }
0x117c   : > { %v11493_v41 = vmul.f32 0.5, %v11492_v11  ;;  %11340 = vadd.xlane.f32.xlu1 %v11339_v23  ;;  %11418 = vadd.xlane.f32.xlu2 %v11417_v25 }
0x117d   : > { %v11648_v28 = vmul.f32 %v19849_v3, %v11631_v49 }
0x117e   : > { %v11494_v58 = vsub.f32 1.5, %v11493_v41 }
0x117f   : > { %v19887_v1 = vadd.f32 %v19852_v51, %v11648_v28 }
0x1180   : > { %v11495_v54 = vmul.f32 %v14531_v45, %v11494_v58 }
0x1181   : > { %13549 = vmatmul.msk.f32.gmra.mxu3 %vm710_vm1, %v19887_v1 }
0x1182   : > { %v11499_v44 = vsel %vm11498_vm6, %v14531_v45, %v11495_v54 }
0x1183   : > { %v11632_v19 = vmul.f32 %v11499_v44, %v19759_v37 }
0x1185   : > { %v11401_v53 = vpop.xlane.xlu2 %11400  ;;  %v11649_v63 = vmul.f32 %v19849_v3, %v11632_v19 }
0x1186   : > { %v11441_v59 = vmul.f32 %v11401_v53, %v21156_v60 }
0x1187   : > { %v19895_v36 = vadd.f32 %v19852_v51, %v11649_v63 }
0x1188   : > { %v11457_v29 = vadd.f32 1e-05, %v11441_v59 }
0x1189   : > { %13550 = vmatmul.msk.f32.gmra.mxu3 %vm710_vm1, %v19895_v36 }
0x118a   : > { %14532 = vrsqrt.f32 %v11457_v29  ;;  %vm11506_vm9 = vweird.f32 %v11457_v29 }
0x118d   : > { %v11326_v57 = vpop.xlane.xlu2 %11325  ;;  %v11404_v26 = vpop.xlane.xlu0 %11403 }
0x118e   : > { %v11352_v24 = vmul.f32 %v11326_v57, %v21156_v60  ;;  %v11442_v62 = vmul.f32 %v11404_v26, %v21156_v60 }
0x1190   : > { %v14533_v37 = vpop.eup %14532  ;;  %v19902_v2 = vsub.f32 %v19782_v17, %v11352_v24  ;;  %v11458_v34 = vadd.f32 1e-05, %v11442_v62 }
0x1191   : > { %v11501_v32 = vmul.f32 %v14533_v37, %v11457_v29  ;;  %vm11507_vm7 = vweird.f32 %v14533_v37 }
0x1192   : > { %14534 = vrsqrt.f32 %v11458_v34  ;;  %v11384_v9 = vmul.f32 %v19902_v2, %v19902_v2  ;;  %vm11508_vm10 = vmor %vm11506_vm9, %vm11507_vm7  ;;  %vm11516_vm0 = vweird.f32 %v11458_v34 }
0x1193   : > { %v11502_v30 = vmul.f32 %v14533_v37, %v11501_v32 }
0x1194   : > { %v11420_v21 = vsel %vm710_vm1, %v11384_v9, 0.0 }
0x1195   : > { %v11503_v13 = vmul.f32 0.5, %v11502_v30  ;;  %11421 = vadd.xlane.f32.xlu0 %v11420_v21  ;;  %v11329_v4 = vpop.xlane.xlu0 %11328  ;;  %v11407_v42 = vpop.xlane.xlu1 %11406 }
0x1196   : > { %v11353_v8 = vmul.f32 %v11329_v4, %v21156_v60  ;;  %v11443_v47 = vmul.f32 %v11407_v42, %v21156_v60 }
0x1197   : > { %v11504_v40 = vsub.f32 1.5, %v11503_v13 }
0x1198   : > { %v14535_v17 = vpop.eup %14534  ;;  %v19910_v43 = vsub.f32 %v19794_v5, %v11353_v8  ;;  %v11459_v16 = vadd.f32 1e-05, %v11443_v47 }
0x1199   : > { %v11505_v35 = vmul.f32 %v14533_v37, %v11504_v40  ;;  %v11511_v31 = vmul.f32 %v14535_v17, %v11458_v34  ;;  %vm11517_vm11 = vweird.f32 %v14535_v17 }
0x119a   : > { %14536 = vrsqrt.f32 %v11459_v16  ;;  %v11385_v55 = vmul.f32 %v19910_v43, %v19910_v43  ;;  %vm11518_vm3 = vmor %vm11516_vm0, %vm11517_vm11  ;;  %vm11526_vm13 = vweird.f32 %v11459_v16 }
0x119b   : > { %v11509_v27 = vsel %vm11508_vm10, %v14533_v37, %v11505_v35  ;;  %v11512_v33 = vmul.f32 %v14535_v17, %v11511_v31  ;;  %v13570_v35 = vld [vmem:[%s20592_s10 + $0x70] sm:$0xff]  ;;  %v13568_v31 = vld [vmem:[%s20592_s10 + $0x60] sm:$0xff] }
0x119c   : > { %v11633_v46 = vmul.f32 %v11509_v27, %v19774_v48  ;;  %v11423_v45 = vsel %vm710_vm1, %v11385_v55, 0.0  ;;  %v13567_v55 = vld [vmem:[%s20592_s10 + $0x58] sm:$0xff]  ;;  %v13566_v27 = vld [vmem:[%s20592_s10 + $0x50] sm:$0xff] }
0x119d   : > { %v11513_v50 = vmul.f32 0.5, %v11512_v33  ;;  %v11410_v52 = vpop.xlane.xlu2 %11409  ;;  %11424 = vadd.xlane.f32.xlu2 %v11423_v45  ;;  %v11332_v5 = vpop.xlane.xlu1 %11331 }
0x119e   : > { %v11444_v61 = vmul.f32 %v11410_v52, %v21156_v60  ;;  %v11354_v39 = vmul.f32 %v11332_v5, %v21156_v60  ;;  %v11650_v22 = vmul.f32 %v19849_v3, %v11633_v46  ;;  %v13565_v46 = vld [vmem:[%s20592_s10 + $0x48] sm:$0xff] }
0x119f   : > { %v11514_v11 = vsub.f32 1.5, %v11513_v50  ;;  %v13564_v50 = vld [vmem:[%s20592_s10 + $0x40] sm:$0xff] }
0x11a0   : > { %v14537_v49 = vpop.eup %14536  ;;  %v11460_v23 = vadd.f32 1e-05, %v11444_v61  ;;  %v19920_v25 = vsub.f32 %v19807_v14, %v11354_v39  ;;  %v19923_v48 = vadd.f32 %v19852_v51, %v11650_v22 }
0x11a1   : > { %v11515_v41 = vmul.f32 %v14535_v17, %v11514_v11  ;;  %v11521_v28 = vmul.f32 %v14537_v49, %v11459_v16  ;;  %vm11527_vm12 = vweird.f32 %v14537_v49  ;;  %v13571_v16 = vld [vmem:[%s20592_s10 + $0x78] sm:$0xff] }
0x11a2   : > { %14538 = vrsqrt.f32 %v11460_v23  ;;  %13551 = vmatmul.msk.f32.gmra.mxu3 %vm710_vm1, %v19923_v48  ;;  %v11386_v58 = vmul.f32 %v19920_v25, %v19920_v25  ;;  %vm11528_vm14 = vmor %vm11526_vm13, %vm11527_vm12  ;;  %vm11536_vm4 = vweird.f32 %v11460_v23  ;;  %11882 = vmatpush.msra.mxu1 %v13571_v16 }
0x11a3   : > { %v11519_v54 = vsel %vm11518_vm3, %v14535_v17, %v11515_v41  ;;  %v11522_v44 = vmul.f32 %v14537_v49, %v11521_v28 }
0x11a4   : > { %v11634_v19 = vmul.f32 %v11519_v54, %v19784_v12  ;;  %v11426_v14 = vsel %vm710_vm1, %v11386_v58, 0.0  ;;  %11883 = vmatpush.msra.mxu1 %v13570_v35 }
0x11a5   : > { %v11523_v53 = vmul.f32 0.5, %v11522_v44  ;;  %v11335_v63 = vpop.xlane.xlu2 %11334  ;;  %11427 = vadd.xlane.f32.xlu1 %v11426_v14 }
0x11a6   : > { %v11355_v59 = vmul.f32 %v11335_v63, %v21156_v60  ;;  %v11651_v29 = vmul.f32 %v19849_v3, %v11634_v19 }
0x11a7   : > { %v11524_v57 = vsub.f32 1.5, %v11523_v53 }
0x11a8   : > { %v14539_v26 = vpop.eup %14538  ;;  %v19934_v24 = vsub.f32 %v19819_v56, %v11355_v59  ;;  %v19937_v62 = vadd.f32 %v19852_v51, %v11651_v29 }
0x11a9   : > { %v11525_v37 = vmul.f32 %v14537_v49, %v11524_v57  ;;  %v11531_v12 = vmul.f32 %v14539_v26, %v11460_v23  ;;  %vm11537_vm15 = vweird.f32 %v14539_v26 }
0x11aa   : > { %13552 = vmatmul.msk.f32.gmra.mxu3 %vm710_vm1, %v19937_v62  ;;  %v11387_v34 = vmul.f32 %v19934_v24, %v19934_v24  ;;  %vm11538_vm5 = vmor %vm11536_vm4, %vm11537_vm15 }
0x11ab   : > { %v11529_v32 = vsel %vm11528_vm14, %v14537_v49, %v11525_v37  ;;  %v11532_v9 = vmul.f32 %v14539_v26, %v11531_v12  ;;  %v19998_v37 = vld [vmem:[%s20591_s9 + $0x1] ss:$0 sm:$0xff] }
0x11ac   : > { %v11635_v30 = vmul.f32 %v11529_v32, %v19797_v38  ;;  %v11429_v56 = vsel %vm710_vm1, %v11387_v34, 0.0 }
0x11ad   : > { %v11533_v21 = vmul.f32 0.5, %v11532_v9  ;;  %11430 = vadd.xlane.f32.xlu0 %v11429_v56 }
0x11ae   : > { %v11652_v13 = vmul.f32 %v19849_v3, %v11635_v30 }
0x11af   : > { %v11534_v4 = vsub.f32 1.5, %v11533_v21 }
0x11b0   : > { %v19947_v42 = vadd.f32 %v19852_v51, %v11652_v13 }
0x11b1   : > { %v11535_v8 = vmul.f32 %v14539_v26, %v11534_v4 }
0x11b2   : > { %13553 = vmatmul.msk.f32.gmra.mxu3 %vm710_vm1, %v19947_v42 }
0x11b3   : > { %v11539_v47 = vsel %vm11538_vm5, %v14539_v26, %v11535_v8 }
0x11b4   : > { %v11636_v38 = vmul.f32 %v11539_v47, %v19810_v0  ;;  %v13569_v0 = vld [vmem:[%s20592_s10 + $0x68] sm:$0xff] }
0x11b5   : > { %11884 = vmatpush.msra.mxu1 %v13569_v0 }
0x11b6   : > { %v11653_v40 = vmul.f32 %v19849_v3, %v11636_v38 }
0x11b7   : > { %11885 = vmatpush.msra.mxu1 %v13568_v31 }
0x11b8   : > { %v19954_v17 = vadd.f32 %v19852_v51, %v11653_v40 }
0x11b9   : > { %11886 = vmatpush.msra.mxu1 %v13567_v55 }
0x11ba   : > { %13554 = vmatmul.msk.f32.gmra.mxu3 %vm710_vm1, %v19954_v17 }
0x11bb   : > { %11887 = vmatpush.msra.mxu1 %v13566_v27 }
0x11bd   : > { %11888 = vmatpush.msra.mxu1 %v13565_v46 }
0x11bf   : > { %11889 = vmatpush.msra.mxu1 %v13564_v50 }
0x11d6   : > { %v11413_v33 = vpop.xlane.xlu0 %11412 }
0x11d7   : > { %v11445_v45 = vmul.f32 %v11413_v33, %v21156_v60 }
0x11d9   : > { %v11461_v52 = vadd.f32 1e-05, %v11445_v45 }
0x11db   : > { %14540 = vrsqrt.f32 %v11461_v52  ;;  %vm11546_vm7 = vweird.f32 %v11461_v52 }
0x11de   : > { %v11338_v5 = vpop.xlane.xlu0 %11337 }
0x11df   : > { %v11356_v61 = vmul.f32 %v11338_v5, %v21156_v60 }
0x11e1   : > { %v14541_v39 = vpop.eup %14540  ;;  %v19985_v22 = vsub.f32 %v19846_v15, %v11356_v61 }
0x11e2   : > { %v11541_v11 = vmul.f32 %v14541_v39, %v11461_v52  ;;  %vm11547_vm6 = vweird.f32 %v14541_v39 }
0x11e3   : > { %v11388_v49 = vmul.f32 %v19985_v22, %v19985_v22  ;;  %vm11548_vm9 = vmor %vm11546_vm7, %vm11547_vm6 }
0x11e4   : > { %v11542_v23 = vmul.f32 %v14541_v39, %v11541_v11 }
0x11e5   : > { %v11432_v41 = vsel %vm710_vm1, %v11388_v49, 0.0 }
0x11e6   : > { %v11543_v28 = vmul.f32 0.5, %v11542_v23  ;;  %11433 = vadd.xlane.f32.xlu2 %v11432_v41 }
0x11e7   : > { %v11416_v58 = vpop.xlane.xlu1 %11415 }
0x11e8   : > { %v11446_v54 = vmul.f32 %v11416_v58, %v21156_v60  ;;  %v11544_v44 = vsub.f32 1.5, %v11543_v28 }
0x11ea   : > { %v11462_v19 = vadd.f32 1e-05, %v11446_v54  ;;  %v11545_v14 = vmul.f32 %v14541_v39, %v11544_v44 }
0x11ec   : > { %14542 = vrsqrt.f32 %v11462_v19  ;;  %v11549_v15 = vsel %vm11548_vm9, %v14541_v39, %v11545_v14  ;;  %vm11556_vm11 = vweird.f32 %v11462_v19 }
0x11ed   : > { %v11637_v53 = vmul.f32 %v11549_v15, %v19838_v7 }
0x11ef   : > { %v11419_v63 = vpop.xlane.xlu2 %11418  ;;  %v11341_v59 = vpop.xlane.xlu1 %11340  ;;  %v11654_v26 = vmul.f32 %v19849_v3, %v11637_v53 }
0x11f0   : > { %v11447_v29 = vmul.f32 %v11419_v63, %v21156_v60  ;;  %v11357_v57 = vmul.f32 %v11341_v59, %v21156_v60 }
0x11f1   : > { %v20004_v7 = vadd.f32 %v19852_v51, %v11654_v26 }
0x11f2   : > { %v14543_v12 = vpop.eup %14542  ;;  %v11463_v34 = vadd.f32 1e-05, %v11447_v29  ;;  %v20001_v32 = vsub.f32 %v19874_v10, %v11357_v57 }
0x11f3   : > { %v11551_v9 = vmul.f32 %v14543_v12, %v11462_v19  ;;  %v11752_v30 = vpop.f32.mrf.mxu3  ;;  %13555 = vmatmul.msk.f32.gmra.mxu3 %vm710_vm1, %v20004_v7  ;;  %vm11557_vm10 = vweird.f32 %v14543_v12 }
0x11f4   : > { %14544 = vrsqrt.f32 %v11463_v34  ;;  %v11389_v56 = vmul.f32 %v20001_v32, %v20001_v32  ;;  %v11753_v13 = vadd.f32 %v19998_v37, %v11752_v30  ;;  %vm11558_vm0 = vmor %vm11556_vm11, %vm11557_vm10  ;;  %vm11566_vm12 = vweird.f32 %v11463_v34 }
0x11f5   : > { %v11552_v21 = vmul.f32 %v14543_v12, %v11551_v9 }
0x11f6   : > { %v11435_v4 = vsel %vm710_vm1, %v11389_v56, 0.0  ;;  %v11800_v10 = vmax.f32 %v11753_v13, 0.0 }
0x11f7   : > { %v11553_v8 = vmul.f32 0.5, %v11552_v21  ;;  %11436 = vadd.xlane.f32.xlu1 %v11435_v4 }
0x11f8   : > { %13572 = vmatmul.msk.f32.vlgmr.msra.gmra.mxu1 %vm6009_vm8, %v11800_v10 }
0x11f9   : > { %v11554_v47 = vsub.f32 1.5, %v11553_v8 }
0x11fa   : > { %v14545_v38 = vpop.eup %14544 }
0x11fb   : > { %v11555_v40 = vmul.f32 %v14543_v12, %v11554_v47  ;;  %v11561_v16 = vmul.f32 %v14545_v38, %v11463_v34  ;;  %vm11567_vm3 = vweird.f32 %v14545_v38 }
0x11fc   : > { %vm11568_vm13 = vmor %vm11566_vm12, %vm11567_vm3 }
0x11fd   : > { %v11559_v35 = vsel %vm11558_vm0, %v14543_v12, %v11555_v40  ;;  %v11562_v0 = vmul.f32 %v14545_v38, %v11561_v16 }
0x11fe   : > { %v11638_v31 = vmul.f32 %v11559_v35, %v19864_v6 }
0x11ff   : > { %v11563_v55 = vmul.f32 0.5, %v11562_v0 }
0x1200   : > { %v11655_v27 = vmul.f32 %v19849_v3, %v11638_v31 }
0x1201   : > { %v11564_v33 = vsub.f32 1.5, %v11563_v55 }
0x1202   : > { %v20016_v46 = vadd.f32 %v19852_v51, %v11655_v27 }
0x1203   : > { %v11565_v45 = vmul.f32 %v14545_v38, %v11564_v33 }
0x1204   : > { %v11755_v50 = vpop.f32.mrf.mxu3  ;;  %13556 = vmatmul.msk.f32.gmra.mxu3 %vm710_vm1, %v20016_v46 }
0x1205   : > { %v11569_v52 = vsel %vm11568_vm13, %v14545_v38, %v11565_v45  ;;  %v11756_v5 = vadd.f32 %v19998_v37, %v11755_v50 }
0x1206   : > { %v11639_v6 = vmul.f32 %v11569_v52, %v19877_v20 }
0x1207   : > { %v11801_v61 = vmax.f32 %v11756_v5, 0.0 }
0x1208   : > { %v11422_v39 = vpop.xlane.xlu0 %11421  ;;  %v11656_v11 = vmul.f32 %v19849_v3, %v11639_v6 }
0x1209   : > { %13573 = vmatmul.msk.f32.gmra.mxu1 %vm6009_vm8, %v11801_v61  ;;  %v11448_v49 = vmul.f32 %v11422_v39, %v21156_v60 }
0x120a   : > { %v20026_v23 = vadd.f32 %v19852_v51, %v11656_v11 }
0x120b   : > { %v11464_v41 = vadd.f32 1e-05, %v11448_v49 }
0x120c   : > { %v11758_v28 = vpop.f32.mrf.mxu3  ;;  %13557 = vmatmul.msk.f32.gmra.mxu3 %vm710_vm1, %v20026_v23 }
0x120d   : > { %14546 = vrsqrt.f32 %v11464_v41  ;;  %v11759_v58 = vadd.f32 %v19998_v37, %v11758_v28  ;;  %vm11576_vm15 = vweird.f32 %v11464_v41 }
0x120f   : > { %v11802_v20 = vmax.f32 %v11759_v58, 0.0 }
0x1210   : > { %v11425_v54 = vpop.xlane.xlu2 %11424 }
0x1211   : > { %13574 = vmatmul.msk.f32.gmra.mxu1 %vm6009_vm8, %v11802_v20  ;;  %v11449_v44 = vmul.f32 %v11425_v54, %v21156_v60 }
0x1213   : > { %v14547_v19 = vpop.eup %14546  ;;  %v11465_v14 = vadd.f32 1e-05, %v11449_v44 }
0x1214   : > { %v11571_v15 = vmul.f32 %v14547_v19, %v11464_v41  ;;  %vm11577_vm14 = vweird.f32 %v14547_v19 }
0x1215   : > { %14548 = vrsqrt.f32 %v11465_v14  ;;  %vm11578_vm4 = vmor %vm11576_vm15, %vm11577_vm14  ;;  %vm11586_vm6 = vweird.f32 %v11465_v14 }
0x1216   : > { %v11572_v53 = vmul.f32 %v14547_v19, %v11571_v15 }
0x1218   : > { %v11573_v63 = vmul.f32 0.5, %v11572_v53  ;;  %v11428_v59 = vpop.xlane.xlu1 %11427 }
0x1219   : > { %v11450_v29 = vmul.f32 %v11428_v59, %v21156_v60 }
0x121a   : > { %v11574_v57 = vsub.f32 1.5, %v11573_v63 }
0x121b   : > { %v14549_v26 = vpop.eup %14548  ;;  %v11466_v12 = vadd.f32 1e-05, %v11450_v29 }
0x121c   : > { %v11575_v34 = vmul.f32 %v14547_v19, %v11574_v57  ;;  %v11581_v9 = vmul.f32 %v14549_v26, %v11465_v14  ;;  %vm11587_vm5 = vweird.f32 %v14549_v26 }
0x121d   : > { %14550 = vrsqrt.f32 %v11466_v12  ;;  %vm11588_vm7 = vmor %vm11586_vm6, %vm11587_vm5  ;;  %vm11596_vm10 = vweird.f32 %v11466_v12 }
0x121e   : > { %v11579_v30 = vsel %vm11578_vm4, %v14547_v19, %v11575_v34  ;;  %v11582_v56 = vmul.f32 %v14549_v26, %v11581_v9 }
0x121f   : > { %v11640_v21 = vmul.f32 %v11579_v30, %v19902_v2 }
0x1220   : > { %v11583_v13 = vmul.f32 0.5, %v11582_v56  ;;  %v11431_v4 = vpop.xlane.xlu0 %11430 }
0x1221   : > { %v11451_v8 = vmul.f32 %v11431_v4, %v21156_v60  ;;  %v11657_v10 = vmul.f32 %v19849_v3, %v11640_v21 }
0x1222   : > { %v11584_v47 = vsub.f32 1.5, %v11583_v13 }
0x1223   : > { %v14551_v38 = vpop.eup %14550  ;;  %v11467_v40 = vadd.f32 1e-05, %v11451_v8  ;;  %v20038_v16 = vadd.f32 %v19852_v51, %v11657_v10 }
0x1224   : > { %v11585_v35 = vmul.f32 %v14549_v26, %v11584_v47  ;;  %v11591_v0 = vmul.f32 %v14551_v38, %v11466_v12  ;;  %vm11597_vm9 = vweird.f32 %v14551_v38 }
0x1225   : > { %14552 = vrsqrt.f32 %v11467_v40  ;;  %v11761_v31 = vpop.f32.mrf.mxu3  ;;  %13558 = vmatmul.msk.f32.gmra.mxu3 %vm710_vm1, %v20038_v16  ;;  %vm11598_vm11 = vmor %vm11596_vm10, %vm11597_vm9  ;;  %vm11606_vm3 = vweird.f32 %v11467_v40 }
0x1226   : > { %v11589_v2 = vsel %vm11588_vm7, %v14549_v26, %v11585_v35  ;;  %v11592_v55 = vmul.f32 %v14551_v38, %v11591_v0  ;;  %v11762_v27 = vadd.f32 %v19998_v37, %v11761_v31 }
0x1227   : > { %v11641_v33 = vmul.f32 %v11589_v2, %v19910_v43  ;;  %v20077_v2 = vld [vmem:[%s20589_s7 + $0x8] sm:$0x3f] }
0x1228   : > { %v11593_v45 = vmul.f32 0.5, %v11592_v55  ;;  %v11803_v50 = vmax.f32 %v11762_v27, 0.0  ;;  %v20080_v55 = vperm.slane %v20077_v2, 5 }
0x1229   : > { %v11658_v52 = vmul.f32 %v19849_v3, %v11641_v33 }
0x122a   : > { %v11594_v5 = vsub.f32 1.5, %v11593_v45  ;;  %13575 = vmatmul.msk.f32.gmra.mxu1 %vm6009_vm8, %v11803_v50 }
0x122b   : > { %v14553_v6 = vpop.eup %14552  ;;  %v20047_v61 = vadd.f32 %v19852_v51, %v11658_v52 }
0x122c   : > { %v11595_v39 = vmul.f32 %v14551_v38, %v11594_v5  ;;  %v11601_v11 = vmul.f32 %v14553_v6, %v11467_v40  ;;  %vm11607_vm0 = vweird.f32 %v14553_v6 }
0x122d   : > { %v11764_v49 = vpop.f32.mrf.mxu3  ;;  %13559 = vmatmul.msk.f32.gmra.mxu3 %vm710_vm1, %v20047_v61  ;;  %vm11608_vm12 = vmor %vm11606_vm3, %vm11607_vm0 }
0x122e   : > { %v11599_v43 = vsel %vm11598_vm11, %v14551_v38, %v11595_v39  ;;  %v11602_v41 = vmul.f32 %v14553_v6, %v11601_v11  ;;  %v11765_v28 = vadd.f32 %v19998_v37, %v11764_v49 }
0x122f   : > { %v11642_v58 = vmul.f32 %v11599_v43, %v19920_v25 }
0x1230   : > { %v11603_v20 = vmul.f32 0.5, %v11602_v41  ;;  %v11804_v54 = vmax.f32 %v11765_v28, 0.0 }
0x1231   : > { %v11659_v44 = vmul.f32 %v19849_v3, %v11642_v58 }
0x1232   : > { %v11604_v19 = vsub.f32 1.5, %v11603_v20  ;;  %13576 = vmatmul.msk.f32.gmra.mxu1 %vm6009_vm8, %v11804_v54 }
0x1233   : > { %v20056_v14 = vadd.f32 %v19852_v51, %v11659_v44 }
0x1234   : > { %v11605_v15 = vmul.f32 %v14553_v6, %v11604_v19 }
0x1235   : > { %v11767_v53 = vpop.f32.mrf.mxu3  ;;  %13560 = vmatmul.msk.f32.gmra.mxu3 %vm710_vm1, %v20056_v14 }
0x1236   : > { %v11609_v63 = vsel %vm11608_vm12, %v14553_v6, %v11605_v15  ;;  %v11768_v25 = vadd.f32 %v19998_v37, %v11767_v53 }
0x1237   : > { %v11643_v59 = vmul.f32 %v11609_v63, %v19934_v24 }
0x1238   : > { %v11805_v29 = vmax.f32 %v11768_v25, 0.0 }
0x1239   : > { %v11660_v57 = vmul.f32 %v19849_v3, %v11643_v59 }
0x123a   : > { %13577 = vmatmul.msk.f32.gmra.mxu1 %vm6009_vm8, %v11805_v29 }
0x123b   : > { %v20065_v26 = vadd.f32 %v19852_v51, %v11660_v57 }
0x123d   : > { %v11770_v12 = vpop.f32.mrf.mxu3  ;;  %13561 = vmatmul.msk.f32.gmra.mxu3 %vm710_vm1, %v20065_v26 }
0x123e   : > { %v11771_v34 = vadd.f32 %v19998_v37, %v11770_v12 }
0x1240   : > { %v11806_v9 = vmax.f32 %v11771_v34, 0.0 }
0x1242   : > { %13578 = vmatmul.msk.f32.gmra.mxu1 %vm6009_vm8, %v11806_v9 }
0x1259   : > { %v11434_v30 = vpop.xlane.xlu2 %11433 }
0x125a   : > { %v11452_v24 = vmul.f32 %v11434_v30, %v21156_v60 }
0x125c   : > { %v11468_v56 = vadd.f32 1e-05, %v11452_v24 }
0x125e   : > { %14554 = vrsqrt.f32 %v11468_v56  ;;  %vm11616_vm14 = vweird.f32 %v11468_v56 }
0x1264   : > { %v14555_v21 = vpop.eup %14554 }
0x1265   : > { %v11611_v13 = vmul.f32 %v14555_v21, %v11468_v56  ;;  %vm11617_vm13 = vweird.f32 %v14555_v21 }
0x1266   : > { %vm11618_vm15 = vmor %vm11616_vm14, %vm11617_vm13 }
0x1267   : > { %v11612_v4 = vmul.f32 %v14555_v21, %v11611_v13 }
0x1269   : > { %v11613_v8 = vmul.f32 0.5, %v11612_v4 }
0x126a   : > { %v11437_v10 = vpop.xlane.xlu1 %11436 }
0x126b   : > { %v11453_v47 = vmul.f32 %v11437_v10, %v21156_v60  ;;  %v11614_v38 = vsub.f32 1.5, %v11613_v8 }
0x126d   : > { %v11469_v40 = vadd.f32 1e-05, %v11453_v47  ;;  %v11615_v35 = vmul.f32 %v14555_v21, %v11614_v38 }
0x126f   : > { %14556 = vrsqrt.f32 %v11469_v40  ;;  %v11619_v0 = vsel %vm11618_vm15, %v14555_v21, %v11615_v35  ;;  %vm11626_vm5 = vweird.f32 %v11469_v40 }
0x1270   : > { %v11644_v31 = vmul.f32 %v11619_v0, %v19985_v22 }
0x1272   : > { %v11661_v27 = vmul.f32 %v19849_v3, %v11644_v31 }
0x1274   : > { %v20084_v45 = vadd.f32 %v19852_v51, %v11661_v27 }
0x1275   : > { %v14557_v33 = vpop.eup %14556  ;;  %v11891_v52 = vpop.f32.mrf.mxu1 }
0x1276   : > { %v11621_v50 = vmul.f32 %v14557_v33, %v11469_v40  ;;  %v11892_v5 = vadd.f32 %v11891_v52, %v20080_v55  ;;  %v11773_v6 = vpop.f32.mrf.mxu3  ;;  %13562 = vmatmul.msk.f32.gmra.mxu3 %vm710_vm1, %v20084_v45  ;;  %vm11627_vm4 = vweird.f32 %v14557_v33 }
0x1277   : > { %v11774_v39 = vadd.f32 %v19998_v37, %v11773_v6  ;;  %vm11628_vm6 = vmor %vm11626_vm5, %vm11627_vm4 }
0x1278   : > { %v11622_v22 = vmul.f32 %v14557_v33, %v11621_v50  ;;  %v20091_v11 = vadd.f32 %v11892_v5, %v19861_v18 }
0x1279   : > { %v11807_v43 = vmax.f32 %v11774_v39, 0.0 }
0x127a   : > { %v11623_v49 = vmul.f32 0.5, %v11622_v22  ;;  %v11955_v41 = vsel %vm710_vm1, %v20091_v11, 0.0 }
0x127b   : > { %11956 = vadd.xlane.f32.xlu0 %v11955_v41  ;;  %13579 = vmatmul.msk.f32.gmra.mxu1 %vm6009_vm8, %v11807_v43 }
0x127c   : > { %v11624_v28 = vsub.f32 1.5, %v11623_v49 }
0x127e   : > { %v11625_v58 = vmul.f32 %v14557_v33, %v11624_v28 }
0x1280   : > { %v11629_v20 = vsel %vm11628_vm6, %v14557_v33, %v11625_v58 }
0x1281   : > { %v11645_v54 = vmul.f32 %v11629_v20, %v20001_v32 }
0x1283   : > { %v11662_v44 = vmul.f32 %v19849_v3, %v11645_v54 }
0x1285   : > { %v20099_v18 = vadd.f32 %v19852_v51, %v11662_v44 }
0x1286   : > { %v11894_v19 = vpop.f32.mrf.mxu1 }
0x1287   : > { %v11895_v15 = vadd.f32 %v11894_v19, %v20080_v55  ;;  %v11776_v53 = vpop.f32.mrf.mxu3  ;;  %13563 = vmatmul.msk.f32.gmra.mxu3 %vm710_vm1, %v20099_v18 }
0x1288   : > { %v11777_v63 = vadd.f32 %v19998_v37, %v11776_v53 }
0x1289   : > { %v20106_v25 = vadd.f32 %v11895_v15, %v19887_v1 }
0x128a   : > { %v11808_v59 = vmax.f32 %v11777_v63, 0.0 }
0x128b   : > { %v11958_v32 = vsel %vm710_vm1, %v20106_v25, 0.0 }
0x128c   : > { %11959 = vadd.xlane.f32.xlu2 %v11958_v32  ;;  %13580 = vmatmul.msk.f32.gmra.mxu1 %vm6009_vm8, %v11808_v59 }
0x128e   : > { %v11897_v3 = vpop.f32.mrf.mxu1 }
0x128f   : > { %v11898_v51 = vadd.f32 %v11897_v3, %v20080_v55  ;;  %v11779_v29 = vpop.f32.mrf.mxu3 }
0x1290   : > { %v11780_v57 = vadd.f32 %v19998_v37, %v11779_v29 }
0x1291   : > { %v20114_v12 = vadd.f32 %v11898_v51, %v19895_v36 }
0x1292   : > { %v11809_v34 = vmax.f32 %v11780_v57, 0.0 }
0x1293   : > { %v11961_v1 = vsel %vm710_vm1, %v20114_v12, 0.0 }
0x1294   : > { %13581 = vmatmul.msk.f32.gmra.mxu1 %vm6009_vm8, %v11809_v34  ;;  %11962 = vadd.xlane.f32.xlu1 %v11961_v1 }
0x12a7   : > { %v11900_v9 = vpop.f32.mrf.mxu1 }
0x12a8   : > { %v11901_v30 = vadd.f32 %v11900_v9, %v20080_v55  ;;  %v11782_v24 = vpop.f32.mrf.mxu3 }
0x12a9   : > { %v11783_v56 = vadd.f32 %v19998_v37, %v11782_v24 }
0x12aa   : > { %v20122_v21 = vadd.f32 %v11901_v30, %v19923_v48 }
0x12ab   : > { %v11810_v13 = vmax.f32 %v11783_v56, 0.0 }
0x12ac   : > { %v11964_v36 = vsel %vm710_vm1, %v20122_v21, 0.0 }
0x12ad   : > { %11965 = vadd.xlane.f32.xlu0 %v11964_v36  ;;  %13582 = vmatmul.msk.f32.gmra.mxu1 %vm6009_vm8, %v11810_v13 }
0x12af   : > { %v11903_v4 = vpop.f32.mrf.mxu1 }
0x12b0   : > { %v11904_v8 = vadd.f32 %v11903_v4, %v20080_v55  ;;  %v11785_v10 = vpop.f32.mrf.mxu3 }
0x12b1   : > { %v11786_v47 = vadd.f32 %v19998_v37, %v11785_v10 }
0x12b2   : > { %v20130_v38 = vadd.f32 %v11904_v8, %v19937_v62 }
0x12b3   : > { %v11811_v40 = vmax.f32 %v11786_v47, 0.0 }
0x12b4   : > { %v11967_v48 = vsel %vm710_vm1, %v20130_v38, 0.0 }
0x12b5   : > { %11968 = vadd.xlane.f32.xlu2 %v11967_v48  ;;  %13583 = vmatmul.msk.f32.gmra.mxu1 %vm6009_vm8, %v11811_v40 }
0x12b7   : > { %v11906_v35 = vpop.f32.mrf.mxu1 }
0x12b8   : > { %v11907_v0 = vadd.f32 %v11906_v35, %v20080_v55  ;;  %v11788_v31 = vpop.f32.mrf.mxu3 }
0x12b9   : > { %v11789_v27 = vadd.f32 %v19998_v37, %v11788_v31 }
0x12ba   : > { %v20138_v33 = vadd.f32 %v11907_v0, %v19947_v42 }
0x12bb   : > { %v11812_v50 = vmax.f32 %v11789_v27, 0.0 }
0x12bc   : > { %v11970_v62 = vsel %vm710_vm1, %v20138_v33, 0.0 }
0x12bd   : > { %11971 = vadd.xlane.f32.xlu1 %v11970_v62  ;;  %13584 = vmatmul.msk.f32.gmra.mxu1 %vm6009_vm8, %v11812_v50 }
0x12bf   : > { %v11909_v52 = vpop.f32.mrf.mxu1 }
0x12c0   : > { %v11910_v5 = vadd.f32 %v11909_v52, %v20080_v55  ;;  %v11791_v6 = vpop.f32.mrf.mxu3 }
0x12c1   : > { %v11792_v22 = vadd.f32 %v19998_v37, %v11791_v6 }
0x12c2   : > { %v20146_v39 = vadd.f32 %v11910_v5, %v19954_v17 }
0x12c3   : > { %v11813_v49 = vmax.f32 %v11792_v22, 0.0 }
0x12c4   : > { %v11973_v42 = vsel %vm710_vm1, %v20146_v39, 0.0 }
0x12c5   : > { %11974 = vadd.xlane.f32.xlu2 %v11973_v42  ;;  %13585 = vmatmul.msk.f32.gmra.mxu1 %vm6009_vm8, %v11813_v49 }
0x12ee   : > { %v11957_v43 = vpop.xlane.xlu0 %11956 }
0x12ef   : > { %v12003_v41 = vmul.f32 %v11957_v43, %v21156_v60 }
0x12f1   : > { %v20153_v28 = vsub.f32 %v20091_v11, %v12003_v41 }
0x12f3   : > { %v12035_v58 = vmul.f32 %v20153_v28, %v20153_v28 }
0x12f5   : > { %v12051_v20 = vsel %vm710_vm1, %v12035_v58, 0.0 }
0x12f6   : > { %12052 = vadd.xlane.f32.xlu0 %v12051_v20 }
0x12f8   : > { %v11912_v17 = vpop.f32.mrf.mxu1 }
0x12f9   : > { %v11913_v54 = vadd.f32 %v11912_v17, %v20080_v55  ;;  %v11794_v44 = vpop.f32.mrf.mxu3 }
0x12fa   : > { %v11795_v19 = vadd.f32 %v19998_v37, %v11794_v44 }
0x12fb   : > { %v20161_v15 = vadd.f32 %v11913_v54, %v20004_v7 }
0x12fc   : > { %v11814_v53 = vmax.f32 %v11795_v19, 0.0 }
0x12fd   : > { %v11976_v11 = vsel %vm710_vm1, %v20161_v15, 0.0 }
0x12fe   : > { %11977 = vadd.xlane.f32.xlu0 %v11976_v11  ;;  %13586 = vmatmul.msk.f32.gmra.mxu1 %vm6009_vm8, %v11814_v53 }
0x12ff   : > { %v11960_v63 = vpop.xlane.xlu2 %11959 }
0x1300   : > { %v12004_v59 = vmul.f32 %v11960_v63, %v21156_v60 }
0x1302   : > { %v20168_v32 = vsub.f32 %v20106_v25, %v12004_v59 }
0x1304   : > { %v12036_v3 = vmul.f32 %v20168_v32, %v20168_v32 }
0x1306   : > { %v12054_v51 = vsel %vm710_vm1, %v12036_v3, 0.0 }
0x1307   : > { %12055 = vadd.xlane.f32.xlu1 %v12054_v51  ;;  %v11963_v7 = vpop.xlane.xlu1 %11962 }
0x1308   : > { %v12005_v29 = vmul.f32 %v11963_v7, %v21156_v60 }
0x1309   : > { %v11915_v57 = vpop.f32.mrf.mxu1 }
0x130a   : > { %v20175_v34 = vsub.f32 %v20114_v12, %v12005_v29  ;;  %v11916_v1 = vadd.f32 %v11915_v57, %v20080_v55  ;;  %v11797_v9 = vpop.f32.mrf.mxu3 }
0x130b   : > { %v11798_v30 = vadd.f32 %v19998_v37, %v11797_v9 }
0x130c   : > { %v20180_v25 = vadd.f32 %v11916_v1, %v20016_v46  ;;  %v12037_v24 = vmul.f32 %v20175_v34, %v20175_v34 }
0x130d   : > { %v11815_v56 = vmax.f32 %v11798_v30, 0.0 }
0x130e   : > { %v11979_v13 = vsel %vm710_vm1, %v20180_v25, 0.0  ;;  %v12057_v36 = vsel %vm710_vm1, %v12037_v24, 0.0 }
0x130f   : > { %11980 = vadd.xlane.f32.xlu1 %v11979_v13  ;;  %13587 = vmatmul.msk.f32.gmra.mxu1 %vm6009_vm8, %v11815_v56 }
0x1310   : > { %12058 = vadd.xlane.f32.xlu2 %v12057_v36 }
0x1311   : > { %v11918_v12 = vpop.f32.mrf.mxu1 }
0x1312   : > { %v11919_v4 = vadd.f32 %v11918_v12, %v20080_v55 }
0x1314   : > { %v20190_v37 = vadd.f32 %v11919_v4, %v20026_v23 }
0x1316   : > { %v11982_v46 = vsel %vm710_vm1, %v20190_v37, 0.0 }
0x1318   : > { %11983 = vadd.xlane.f32.xlu2 %v11982_v46 }
0x1320   : > { %v11966_v8 = vpop.xlane.xlu0 %11965 }
0x1321   : > { %v12006_v10 = vmul.f32 %v11966_v8, %v21156_v60 }
0x1323   : > { %v20196_v47 = vsub.f32 %v20122_v21, %v12006_v10 }
0x1325   : > { %v12038_v40 = vmul.f32 %v20196_v47, %v20196_v47 }
0x1327   : > { %v12060_v48 = vsel %vm710_vm1, %v12038_v40, 0.0  ;;  %v20266_v40 = vperm.slane %v20077_v2, 3 }
0x1328   : > { %v11969_v35 = vpop.xlane.xlu2 %11968  ;;  %12061 = vadd.xlane.f32.xlu0 %v12060_v48 }
0x1329   : > { %v12007_v23 = vmul.f32 %v11969_v35, %v21156_v60 }
0x132a   : > { %v11921_v0 = vpop.f32.mrf.mxu1 }
0x132b   : > { %v20203_v31 = vsub.f32 %v20130_v38, %v12007_v23  ;;  %v11922_v27 = vadd.f32 %v11921_v0, %v20080_v55  ;;  %v20272_v0 = vperm.slane %v20077_v2, 4 }
0x132d   : > { %v20207_v50 = vadd.f32 %v11922_v27, %v20038_v16  ;;  %v12039_v21 = vmul.f32 %v20203_v31, %v20203_v31  ;;  %v20275_v27 = vld [vmem:[%s20260_s20] sm:$0x1] }
0x132f   : > { %v11985_v62 = vsel %vm710_vm1, %v20207_v50, 0.0  ;;  %v12063_v52 = vsel %vm710_vm1, %v12039_v21, 0.0 }
0x1330   : > { %11986 = vadd.xlane.f32.xlu0 %v11985_v62  ;;  %12064 = vadd.xlane.f32.xlu1 %v12063_v52  ;;  %v11972_v5 = vpop.xlane.xlu1 %11971 }
0x1331   : > { %v12008_v6 = vmul.f32 %v11972_v5, %v21156_v60 }
0x1332   : > { %v11924_v38 = vpop.f32.mrf.mxu1 }
0x1333   : > { %v20216_v22 = vsub.f32 %v20138_v33, %v12008_v6  ;;  %v11925_v16 = vadd.f32 %v11924_v38, %v20080_v55  ;;  %v12341_v6 = vsub.f32 1.0, %v20275_v27 }
0x1335   : > { %v20220_v49 = vadd.f32 %v11925_v16, %v20047_v61  ;;  %v12040_v42 = vmul.f32 %v20216_v22, %v20216_v22 }
0x1337   : > { %v11988_v43 = vsel %vm710_vm1, %v20220_v49, 0.0  ;;  %v12066_v41 = vsel %vm710_vm1, %v12040_v42, 0.0 }
0x1338   : > { %v11975_v58 = vpop.xlane.xlu2 %11974  ;;  %11989 = vadd.xlane.f32.xlu1 %v11988_v43  ;;  %12067 = vadd.xlane.f32.xlu2 %v12066_v41 }
0x1339   : > { %v12009_v20 = vmul.f32 %v11975_v58, %v21156_v60 }
0x133a   : > { %v11927_v33 = vpop.f32.mrf.mxu1 }
0x133b   : > { %v20229_v17 = vsub.f32 %v20146_v39, %v12009_v20  ;;  %v11928_v61 = vadd.f32 %v11927_v33, %v20080_v55 }
0x133d   : > { %v20233_v54 = vadd.f32 %v11928_v61, %v20056_v14  ;;  %v12041_v44 = vmul.f32 %v20229_v17, %v20229_v17 }
0x133f   : > { %v12069_v19 = vsel %vm710_vm1, %v12041_v44, 0.0  ;;  %v11991_v53 = vsel %vm710_vm1, %v20233_v54, 0.0 }
0x1340   : > { %12070 = vadd.xlane.f32.xlu0 %v12069_v19  ;;  %11992 = vadd.xlane.f32.xlu2 %v11991_v53 }
0x1342   : > { %v11930_v11 = vpop.f32.mrf.mxu1 }
0x1343   : > { %v11931_v63 = vadd.f32 %v11930_v11, %v20080_v55 }
0x1345   : > { %v20242_v39 = vadd.f32 %v11931_v63, %v20065_v26 }
0x1347   : > { %v11994_v14 = vsel %vm710_vm1, %v20242_v39, 0.0 }
0x1348   : > { %11995 = vadd.xlane.f32.xlu0 %v11994_v14 }
0x1369   : > { %v12053_v59 = vpop.xlane.xlu0 %12052 }
0x136a   : > { %v12099_v3 = vmul.f32 %v12053_v59, %v21156_v60 }
0x136c   : > { %v12115_v51 = vadd.f32 1e-05, %v12099_v3 }
0x136e   : > { %14558 = vrsqrt.f32 %v12115_v51  ;;  %vm12137_vm7 = vweird.f32 %v12115_v51 }
0x1371   : > { %v11978_v7 = vpop.xlane.xlu0 %11977 }
0x1372   : > { %v12010_v29 = vmul.f32 %v11978_v7, %v21156_v60 }
0x1374   : > { %v14559_v57 = vpop.eup %14558  ;;  %v20249_v1 = vsub.f32 %v20161_v15, %v12010_v29 }
0x1375   : > { %v12132_v9 = vmul.f32 %v14559_v57, %v12115_v51  ;;  %vm12138_vm8 = vweird.f32 %v14559_v57 }
0x1376   : > { %v12042_v26 = vmul.f32 %v20249_v1, %v20249_v1  ;;  %vm12139_vm9 = vmor %vm12137_vm7, %vm12138_vm8 }
0x1377   : > { %v12133_v30 = vmul.f32 %v14559_v57, %v12132_v9 }
0x1378   : > { %v12072_v24 = vsel %vm710_vm1, %v12042_v26, 0.0 }
0x1379   : > { %v12134_v56 = vmul.f32 0.5, %v12133_v30  ;;  %12073 = vadd.xlane.f32.xlu1 %v12072_v24 }
0x137a   : > { %v12056_v13 = vpop.xlane.xlu1 %12055 }
0x137b   : > { %v12100_v36 = vmul.f32 %v12056_v13, %v21156_v60  ;;  %v12135_v12 = vsub.f32 1.5, %v12134_v56  ;;  %v11933_v4 = vpop.f32.mrf.mxu1 }
0x137c   : > { %v11934_v8 = vadd.f32 %v11933_v4, %v20080_v55 }
0x137d   : > { %v12116_v46 = vadd.f32 1e-05, %v12100_v36  ;;  %v12136_v15 = vmul.f32 %v14559_v57, %v12135_v12 }
0x137e   : > { %v20263_v10 = vadd.f32 %v11934_v8, %v20084_v45 }
0x137f   : > { %14560 = vrsqrt.f32 %v12116_v46  ;;  %v12140_v48 = vsel %vm12139_vm9, %v14559_v57, %v12136_v15  ;;  %vm12147_vm11 = vweird.f32 %v12116_v46  ;;  %v20319_v15 = vld [vmem:[%s20260_s20 + $0x2] sm:$0x1] }
0x1380   : > { %v12291_v35 = vmul.f32 %v12140_v48, %v20153_v28  ;;  %v11997_v23 = vsel %vm710_vm1, %v20263_v10, 0.0  ;;  %v12343_v48 = vsub.f32 1.0, %v20319_v15 }
0x1381   : > { %11998 = vadd.xlane.f32.xlu1 %v11997_v23 }
0x1382   : > { %v11981_v21 = vpop.xlane.xlu1 %11980  ;;  %v12308_v52 = vmul.f32 %v20266_v40, %v12291_v35 }
0x1383   : > { %v12059_v62 = vpop.xlane.xlu2 %12058  ;;  %v12011_v45 = vmul.f32 %v11981_v21, %v21156_v60 }
0x1384   : > { %v12101_v5 = vmul.f32 %v12059_v62, %v21156_v60  ;;  %v12325_v2 = vadd.f32 %v20272_v0, %v12308_v52 }
0x1385   : > { %v14561_v28 = vpop.eup %14560  ;;  %v20282_v38 = vsub.f32 %v20180_v25, %v12011_v45 }
0x1386   : > { %v12142_v16 = vmul.f32 %v14561_v28, %v12116_v46  ;;  %v12117_v42 = vadd.f32 1e-05, %v12101_v5  ;;  %12375 = vmatpush.msrb.mxu0 %v12325_v2  ;;  %vm12148_vm10 = vweird.f32 %v14561_v28 }
0x1387   : > { %v12043_v43 = vmul.f32 %v20282_v38, %v20282_v38  ;;  %13588 = vmatmul.msk.f32.vlgmr.msrb.gmra.mxu0 %vm938_vm2, %v12341_v6  ;;  %vm12149_vm0 = vmor %vm12147_vm11, %vm12148_vm10 }
0x1388   : > { %v12143_v41 = vmul.f32 %v14561_v28, %v12142_v16  ;;  %14562 = vrsqrt.f32 %v12117_v42  ;;  %vm12157_vm12 = vweird.f32 %v12117_v42 }
0x1389   : > { %v12075_v58 = vsel %vm710_vm1, %v12043_v43, 0.0 }
0x138a   : > { %v12144_v20 = vmul.f32 0.5, %v12143_v41  ;;  %12076 = vadd.xlane.f32.xlu2 %v12075_v58 }
0x138b   : > { %v11984_v25 = vpop.xlane.xlu2 %11983 }
0x138c   : > { %v12145_v33 = vsub.f32 1.5, %v12144_v20  ;;  %v12012_v61 = vmul.f32 %v11984_v25, %v21156_v60  ;;  %v11936_v44 = vpop.f32.mrf.mxu1 }
0x138d   : > { %v11937_v19 = vadd.f32 %v11936_v44, %v20080_v55 }
0x138e   : > { %v14563_v53 = vpop.eup %14562  ;;  %v12146_v11 = vmul.f32 %v14561_v28, %v12145_v33  ;;  %v20294_v63 = vsub.f32 %v20190_v37, %v12012_v61 }
0x138f   : > { %v12152_v14 = vmul.f32 %v14563_v53, %v12117_v42  ;;  %v20297_v59 = vadd.f32 %v11937_v19, %v20099_v18  ;;  %vm12158_vm3 = vweird.f32 %v14563_v53 }
0x1390   : > { %v12150_v3 = vsel %vm12149_vm0, %v14561_v28, %v12146_v11  ;;  %v12044_v51 = vmul.f32 %v20294_v63, %v20294_v63  ;;  %vm12159_vm13 = vmor %vm12157_vm12, %vm12158_vm3  ;;  %vm12725_vm12 = vcmask 57344  }
0x1391   : > { %v12292_v7 = vmul.f32 %v12150_v3, %v20168_v32  ;;  %v12153_v29 = vmul.f32 %v14563_v53, %v12152_v14  ;;  %v12000_v55 = vsel %vm710_vm1, %v20297_v59, 0.0  ;;  %v20308_v32 = vld [vmem:[%s20260_s20 + $0x1] sm:$0x1] }
0x1392   : > { %v12078_v57 = vsel %vm710_vm1, %v12044_v51, 0.0  ;;  %12001 = vadd.xlane.f32.xlu2 %v12000_v55  ;;  %v12342_v56 = vsub.f32 1.0, %v20308_v32  ;;  %v12732_v32 = vsel %vm12725_vm12, %v12343_v48, 0.0 }
0x1393   : > { %v12154_v37 = vmul.f32 0.5, %v12153_v29  ;;  %12079 = vadd.xlane.f32.xlu0 %v12078_v57  ;;  %v12309_v9 = vmul.f32 %v20266_v40, %v12292_v7  ;;  %v20343_v7 = vld [vmem:[%s20260_s20 + $0x3] sm:$0x1] }
0x1395   : > { %v12155_v18 = vsub.f32 1.5, %v12154_v37  ;;  %v12326_v26 = vadd.f32 %v20272_v0, %v12309_v9 }
0x1397   : > { %v12156_v30 = vmul.f32 %v14563_v53, %v12155_v18  ;;  %12398 = vmatpush.msra.mxu0 %v12326_v26  ;;  %v12344_v26 = vsub.f32 1.0, %v20343_v7 }
0x1398   : > { %13589 = vmatmul.msk.f32.vlgmr.msra.gmra.mxu0 %vm938_vm2, %v12342_v56 }
0x1399   : > { %v12160_v24 = vsel %vm12159_vm13, %v14563_v53, %v12156_v30 }
0x139a   : > { %v12293_v13 = vmul.f32 %v12160_v24, %v20175_v34 }
0x139b   : > { %v12062_v36 = vpop.xlane.xlu0 %12061 }
0x139c   : > { %v12102_v12 = vmul.f32 %v12062_v36, %v21156_v60  ;;  %v12310_v4 = vmul.f32 %v20266_v40, %v12293_v13 }
0x139e   : > { %v12118_v46 = vadd.f32 1e-05, %v12102_v12  ;;  %v12327_v8 = vadd.f32 %v20272_v0, %v12310_v4 }
0x13a0   : > { %14564 = vrsqrt.f32 %v12118_v46  ;;  %12421 = vmatpush.msrb.mxu0 %v12327_v8  ;;  %vm12167_vm15 = vweird.f32 %v12118_v46 }
0x13a1   : > { %13590 = vmatmul.msk.f32.vlgmr.msrb.gmra.mxu0 %vm938_vm2, %v12343_v48 }
0x13a3   : > { %v11987_v35 = vpop.xlane.xlu0 %11986  ;;  %v12065_v34 = vpop.xlane.xlu1 %12064 }
0x13a4   : > { %v12013_v23 = vmul.f32 %v11987_v35, %v21156_v60  ;;  %v12103_v21 = vmul.f32 %v12065_v34, %v21156_v60  ;;  %v20361_v34 = vld [vmem:[%s20260_s20 + $0x4] sm:$0x1] }
0x13a6   : > { %v14565_v62 = vpop.eup %14564  ;;  %v20328_v45 = vsub.f32 %v20207_v50, %v12013_v23  ;;  %v12119_v52 = vadd.f32 1e-05, %v12103_v21 }
0x13a7   : > { %v12162_v5 = vmul.f32 %v14565_v62, %v12118_v46  ;;  %vm12168_vm14 = vweird.f32 %v14565_v62 }
0x13a8   : > { %14566 = vrsqrt.f32 %v12119_v52  ;;  %v12045_v28 = vmul.f32 %v20328_v45, %v20328_v45  ;;  %vm12169_vm4 = vmor %vm12167_vm15, %vm12168_vm14  ;;  %vm12177_vm6 = vweird.f32 %v12119_v52 }
0x13a9   : > { %v12163_v2 = vmul.f32 %v14565_v62, %v12162_v5 }
0x13aa   : > { %v12081_v16 = vsel %vm710_vm1, %v12045_v28, 0.0  ;;  %v12345_v28 = vsub.f32 1.0, %v20361_v34 }
0x13ab   : > { %v12164_v42 = vmul.f32 0.5, %v12163_v2  ;;  %12082 = vadd.xlane.f32.xlu1 %v12081_v16  ;;  %v12068_v43 = vpop.xlane.xlu2 %12067  ;;  %v11990_v41 = vpop.xlane.xlu1 %11989 }
0x13ac   : > { %v12104_v58 = vmul.f32 %v12068_v43, %v21156_v60  ;;  %v12014_v20 = vmul.f32 %v11990_v41, %v21156_v60 }
0x13ad   : > { %v12165_v50 = vsub.f32 1.5, %v12164_v42 }
0x13ae   : > { %v14567_v25 = vpop.eup %14566  ;;  %v12120_v33 = vadd.f32 1e-05, %v12104_v58  ;;  %v20336_v61 = vsub.f32 %v20220_v49, %v12014_v20 }
0x13af   : > { %v12166_v44 = vmul.f32 %v14565_v62, %v12165_v50  ;;  %v12172_v19 = vmul.f32 %v14567_v25, %v12119_v52  ;;  %vm12178_vm5 = vweird.f32 %v14567_v25 }
0x13b0   : > { %14568 = vrsqrt.f32 %v12120_v33  ;;  %v12046_v53 = vmul.f32 %v20336_v61, %v20336_v61  ;;  %vm12179_vm8 = vmor %vm12177_vm6, %vm12178_vm5  ;;  %vm12187_vm9 = vweird.f32 %v12120_v33 }
0x13b1   : > { %v12170_v11 = vsel %vm12169_vm4, %v14565_v62, %v12166_v44  ;;  %v12173_v14 = vmul.f32 %v14567_v25, %v12172_v19 }
0x13b2   : > { %v12294_v3 = vmul.f32 %v12170_v11, %v20196_v47  ;;  %v12084_v51 = vsel %vm710_vm1, %v12046_v53, 0.0 }
0x13b3   : > { %v12174_v29 = vmul.f32 0.5, %v12173_v14  ;;  %v12071_v55 = vpop.xlane.xlu0 %12070  ;;  %v11993_v49 = vpop.xlane.xlu2 %11992  ;;  %12085 = vadd.xlane.f32.xlu0 %v12084_v51  ;;  %v20383_v51 = vld [vmem:[%s20260_s20 + $0x5] sm:$0x1] }
0x13b4   : > { %v12105_v57 = vmul.f32 %v12071_v55, %v21156_v60  ;;  %v12015_v37 = vmul.f32 %v11993_v49, %v21156_v60  ;;  %v12311_v9 = vmul.f32 %v20266_v40, %v12294_v3 }
0x13b5   : > { %v12175_v18 = vsub.f32 1.5, %v12174_v29  ;;  %v12346_v29 = vsub.f32 1.0, %v20383_v51 }
0x13b6   : > { %v14569_v30 = vpop.eup %14568  ;;  %v12121_v47 = vadd.f32 1e-05, %v12105_v57  ;;  %v20350_v24 = vsub.f32 %v20233_v54, %v12015_v37  ;;  %v12328_v13 = vadd.f32 %v20272_v0, %v12311_v9 }
0x13b7   : > { %v12176_v36 = vmul.f32 %v14567_v25, %v12175_v18  ;;  %v12182_v12 = vmul.f32 %v14569_v30, %v12120_v33  ;;  %vm12188_vm7 = vweird.f32 %v14569_v30  ;;  %v12741_v27 = vsel %vm12725_vm12, %v12346_v29, 0.0 }
0x13b8   : > { %14570 = vrsqrt.f32 %v12121_v47  ;;  %12444 = vmatpush.msra.mxu0 %v12328_v13  ;;  %v12047_v4 = vmul.f32 %v20350_v24, %v20350_v24  ;;  %vm12189_vm10 = vmor %vm12187_vm9, %vm12188_vm7  ;;  %vm12197_vm0 = vweird.f32 %v12121_v47 }
0x13b9   : > { %v12180_v46 = vsel %vm12179_vm8, %v14567_v25, %v12176_v36  ;;  %v12183_v8 = vmul.f32 %v14569_v30, %v12182_v12  ;;  %13591 = vmatmul.msk.f32.vlgmr.msra.gmra.mxu0 %vm938_vm2, %v12344_v26 }
0x13ba   : > { %v12295_v54 = vmul.f32 %v12180_v46, %v20203_v31  ;;  %v12087_v35 = vsel %vm710_vm1, %v12047_v4, 0.0  ;;  %v12729_v4 = vsel %vm12725_vm12, %v12342_v56, 0.0 }
0x13bb   : > { %v12184_v23 = vmul.f32 0.5, %v12183_v8  ;;  %v11996_v21 = vpop.xlane.xlu0 %11995  ;;  %12088 = vadd.xlane.f32.xlu2 %v12087_v35 }
0x13bc   : > { %v12016_v62 = vmul.f32 %v11996_v21, %v21156_v60  ;;  %v12312_v52 = vmul.f32 %v20266_v40, %v12295_v54 }
0x13bd   : > { %v12185_v5 = vsub.f32 1.5, %v12184_v23 }
0x13be   : > { %v14571_v2 = vpop.eup %14570  ;;  %v20367_v16 = vsub.f32 %v20242_v39, %v12016_v62  ;;  %v12329_v31 = vadd.f32 %v20272_v0, %v12312_v52  ;;  %v12735_v62 = vsel %vm12725_vm12, %v12344_v26, 0.0 }
0x13bf   : > { %v12186_v42 = vmul.f32 %v14569_v30, %v12185_v5  ;;  %v12192_v43 = vmul.f32 %v14571_v2, %v12121_v47  ;;  %vm12198_vm11 = vweird.f32 %v14571_v2  ;;  %v561_v47 = vld [vmem:[%s20260_s20 + $0x6] sm:$0x1]  ;;  %v562_v5 = vld [vmem:[%s20260_s20 + $0x7] sm:$0x1] }
0x13c0   : > { %12467 = vmatpush.msrb.mxu0 %v12329_v31  ;;  %v12048_v41 = vmul.f32 %v20367_v16, %v20367_v16  ;;  %vm12199_vm3 = vmor %vm12197_vm0, %vm12198_vm11  ;;  %v12347_v36 = vsub.f32 1.0, %v561_v47 }
0x13c1   : > { %v12190_v58 = vsel %vm12189_vm10, %v14569_v30, %v12186_v42  ;;  %v12193_v20 = vmul.f32 %v14571_v2, %v12192_v43  ;;  %13592 = vmatmul.msk.f32.vlgmr.msrb.gmra.mxu0 %vm938_vm2, %v12345_v28 }
0x13c2   : > { %v12296_v50 = vmul.f32 %v12190_v58, %v20216_v22  ;;  %v12090_v39 = vsel %vm710_vm1, %v12048_v41, 0.0  ;;  %v12348_v41 = vsub.f32 1.0, %v562_v5 }
0x13c3   : > { %v12194_v25 = vmul.f32 0.5, %v12193_v20  ;;  %12091 = vadd.xlane.f32.xlu1 %v12090_v39 }
0x13c4   : > { %v12313_v33 = vmul.f32 %v20266_v40, %v12296_v50  ;;  %v12738_v50 = vsel %vm12725_vm12, %v12345_v28, 0.0  ;;  %v12726_v28 = vsel %vm12725_vm12, %v12341_v6, 0.0  ;;  %v20437_v6 = vld [vmem:[%s20260_s20 + $0x8] sm:$0x1] }
0x13c5   : > { %v12195_v44 = vsub.f32 1.5, %v12194_v25  ;;  %v12744_v25 = vsel %vm12725_vm12, %v12347_v36, 0.0 }
0x13c6   : > { %v12330_v19 = vadd.f32 %v20272_v0, %v12313_v33 }
0x13c7   : > { %v12196_v53 = vmul.f32 %v14571_v2, %v12195_v44 }
0x13c8   : > { %12490 = vmatpush.msra.mxu0 %v12330_v19 }
0x13c9   : > { %v12200_v11 = vsel %vm12199_vm3, %v14571_v2, %v12196_v53  ;;  %13593 = vmatmul.msk.f32.vlgmr.msra.gmra.mxu0 %vm938_vm2, %v12346_v29 }
0x13ca   : > { %v12297_v14 = vmul.f32 %v12200_v11, %v20229_v17  ;;  %v12747_v11 = vsel %vm12725_vm12, %v12348_v41, 0.0 }
0x13cb   : > { %12730 = vadd.xlane.f32.xlu1 %v12729_v4 }
0x13cc   : > { %v12314_v22 = vmul.f32 %v20266_v40, %v12297_v14 }
0x13ce   : > { %v12331_v3 = vadd.f32 %v20272_v0, %v12314_v22 }
0x13d0   : > { %12513 = vmatpush.msrb.mxu0 %v12331_v3 }
0x13d1   : > { %13594 = vmatmul.msk.f32.vlgmr.msrb.gmra.mxu0 %vm938_vm2, %v12347_v36 }
0x13d3   : > { %12736 = vadd.xlane.f32.xlu1 %v12735_v62 }
0x13db   : > { %12745 = vadd.xlane.f32.xlu1 %v12744_v25 }
0x13ec   : > { %v12074_v55 = vpop.xlane.xlu1 %12073 }
0x13ed   : > { %v12106_v49 = vmul.f32 %v12074_v55, %v21156_v60 }
0x13ef   : > { %v12122_v57 = vadd.f32 1e-05, %v12106_v49 }
0x13f1   : > { %14572 = vrsqrt.f32 %v12122_v57  ;;  %vm12207_vm14 = vweird.f32 %v12122_v57 }
0x13f4   : > { %v11999_v17 = vpop.xlane.xlu1 %11998 }
0x13f5   : > { %v12017_v37 = vmul.f32 %v11999_v17, %v21156_v60 }
0x13f7   : > { %v14573_v9 = vpop.eup %14572  ;;  %v20392_v18 = vsub.f32 %v20263_v10, %v12017_v37 }
0x13f8   : > { %v12202_v30 = vmul.f32 %v14573_v9, %v12122_v57  ;;  %vm12208_vm13 = vweird.f32 %v14573_v9 }
0x13f9   : > { %v12049_v13 = vmul.f32 %v20392_v18, %v20392_v18  ;;  %vm12209_vm15 = vmor %vm12207_vm14, %vm12208_vm13 }
0x13fa   : > { %v12203_v12 = vmul.f32 %v14573_v9, %v12202_v30 }
0x13fb   : > { %v12093_v46 = vsel %vm710_vm1, %v12049_v13, 0.0 }
0x13fc   : > { %v12204_v10 = vmul.f32 0.5, %v12203_v12  ;;  %12094 = vadd.xlane.f32.xlu0 %v12093_v46  ;;  %v564_v12 = vld [vmem:[%s20260_s20 + $0x9] sm:$0x1] }
0x13fd   : > { %v12077_v8 = vpop.xlane.xlu2 %12076  ;;  %v12350_v4 = vsub.f32 1.0, %v564_v12 }
0x13fe   : > { %v12107_v54 = vmul.f32 %v12077_v8, %v21156_v60  ;;  %v12205_v35 = vsub.f32 1.5, %v12204_v10 }
0x1400   : > { %v12123_v23 = vadd.f32 1e-05, %v12107_v54  ;;  %v12206_v21 = vmul.f32 %v14573_v9, %v12205_v35 }
0x1402   : > { %14574 = vrsqrt.f32 %v12123_v23  ;;  %v12210_v56 = vsel %vm12209_vm15, %v14573_v9, %v12206_v21  ;;  %vm12217_vm5 = vweird.f32 %v12123_v23  ;;  %v12349_v9 = vsub.f32 1.0, %v20437_v6 }
0x1403   : > { %v12298_v52 = vmul.f32 %v12210_v56, %v20249_v1 }
0x1404   : > { %12733 = vadd.xlane.f32.xlu0 %v12732_v32 }
0x1405   : > { %v12002_v2 = vpop.xlane.xlu2 %12001  ;;  %v12315_v43 = vmul.f32 %v20266_v40, %v12298_v52 }
0x1406   : > { %v12080_v31 = vpop.xlane.xlu0 %12079  ;;  %v12018_v42 = vmul.f32 %v12002_v2, %v21156_v60 }
0x1407   : > { %v12108_v15 = vmul.f32 %v12080_v31, %v21156_v60  ;;  %v12332_v7 = vadd.f32 %v20272_v0, %v12315_v43 }
0x1408   : > { %v14575_v48 = vpop.eup %14574  ;;  %v20415_v58 = vsub.f32 %v20297_v59, %v12018_v42 }
0x1409   : > { %v12212_v26 = vmul.f32 %v14575_v48, %v12123_v23  ;;  %v12124_v1 = vadd.f32 1e-05, %v12108_v15  ;;  %12536 = vmatpush.msra.mxu0 %v12332_v7  ;;  %vm12218_vm4 = vweird.f32 %v14575_v48  ;;  %v565_v15 = vld [vmem:[%s20260_s20 + $0xa] sm:$0x1] }
0x140a   : > { %v12050_v20 = vmul.f32 %v20415_v58, %v20415_v58  ;;  %13595 = vmatmul.msk.f32.vlgmr.msra.gmra.mxu0 %vm938_vm2, %v12348_v41  ;;  %vm12219_vm6 = vmor %vm12217_vm5, %vm12218_vm4 }
0x140b   : > { %v12213_v39 = vmul.f32 %v14575_v48, %v12212_v26  ;;  %14576 = vrsqrt.f32 %v12124_v1  ;;  %vm12227_vm7 = vweird.f32 %v12124_v1 }
0x140c   : > { %v12096_v59 = vsel %vm710_vm1, %v12050_v20, 0.0  ;;  %12739 = vadd.xlane.f32.xlu0 %v12738_v50  ;;  %v12351_v20 = vsub.f32 1.0, %v565_v15 }
0x140d   : > { %v12214_v33 = vmul.f32 0.5, %v12213_v39  ;;  %12097 = vadd.xlane.f32.xlu2 %v12096_v59 }
0x140f   : > { %v12215_v44 = vsub.f32 1.5, %v12214_v33 }
0x1411   : > { %v14577_v19 = vpop.eup %14576  ;;  %v12216_v53 = vmul.f32 %v14575_v48, %v12215_v44 }
0x1412   : > { %v12222_v34 = vmul.f32 %v14577_v19, %v12124_v1  ;;  %vm12228_vm8 = vweird.f32 %v14577_v19 }
0x1413   : > { %v12220_v14 = vsel %vm12219_vm6, %v14575_v48, %v12216_v53  ;;  %vm12229_vm9 = vmor %vm12227_vm7, %vm12228_vm8  ;;  %v566_v53 = vld [vmem:[%s20260_s20 + $0xb] sm:$0x1] }
0x1414   : > { %v12299_v22 = vmul.f32 %v12220_v14, %v20282_v38  ;;  %v12223_v3 = vmul.f32 %v14577_v19, %v12222_v34  ;;  %12748 = vadd.xlane.f32.xlu0 %v12747_v11  ;;  %v12352_v14 = vsub.f32 1.0, %v566_v53 }
0x1415   : > { %12727 = vadd.xlane.f32.xlu2 %v12726_v28 }
0x1416   : > { %v12224_v55 = vmul.f32 0.5, %v12223_v3  ;;  %v12316_v49 = vmul.f32 %v20266_v40, %v12299_v22  ;;  %v12753_v22 = vsel %vm12725_vm12, %v12350_v4, 0.0 }
0x1418   : > { %v12225_v57 = vsub.f32 1.5, %v12224_v55  ;;  %v12333_v17 = vadd.f32 %v20272_v0, %v12316_v49  ;;  %v12756_v49 = vsel %vm12725_vm12, %v12351_v20, 0.0 }
0x1419   : > { %12757 = vadd.xlane.f32.xlu1 %v12756_v49 }
0x141a   : > { %v12226_v37 = vmul.f32 %v14577_v19, %v12225_v57  ;;  %12559 = vmatpush.msrb.mxu0 %v12333_v17  ;;  %v12750_v17 = vsel %vm12725_vm12, %v12349_v9, 0.0 }
0x141b   : > { %13596 = vmatmul.msk.f32.vlgmr.msrb.gmra.mxu0 %vm938_vm2, %v12349_v9  ;;  %v12759_v9 = vsel %vm12725_vm12, %v12352_v14, 0.0 }
0x141c   : > { %v12230_v38 = vsel %vm12229_vm9, %v14577_v19, %v12226_v37  ;;  %12751 = vadd.xlane.f32.xlu0 %v12750_v17 }
0x141d   : > { %v12300_v30 = vmul.f32 %v12230_v38, %v20294_v63  ;;  %12742 = vadd.xlane.f32.xlu2 %v12741_v27  ;;  %v567_v38 = vld [vmem:[%s20260_s20 + $0xc] sm:$0x1] }
0x141e   : > { %v12083_v47 = vpop.xlane.xlu1 %12082 }
0x141f   : > { %v12109_v13 = vmul.f32 %v12083_v47, %v21156_v60  ;;  %v12317_v51 = vmul.f32 %v20266_v40, %v12300_v30 }
0x1421   : > { %v12125_v36 = vadd.f32 1e-05, %v12109_v13  ;;  %v12334_v29 = vadd.f32 %v20272_v0, %v12317_v51  ;;  %v12353_v51 = vsub.f32 1.0, %v567_v38 }
0x1423   : > { %14578 = vrsqrt.f32 %v12125_v36  ;;  %12582 = vmatpush.msra.mxu0 %v12334_v29  ;;  %vm12237_vm11 = vweird.f32 %v12125_v36 }
0x1424   : > { %13597 = vmatmul.msk.f32.vlgmr.msra.gmra.mxu0 %vm938_vm2, %v12350_v4  ;;  %v12762_v4 = vsel %vm12725_vm12, %v12353_v51, 0.0 }
0x1425   : > { %12754 = vadd.xlane.f32.xlu2 %v12753_v22  ;;  %12763 = vadd.xlane.f32.xlu1 %v12762_v4 }
0x1426   : > { %v12086_v46 = vpop.xlane.xlu0 %12085 }
0x1427   : > { %v12110_v63 = vmul.f32 %v12086_v46, %v21156_v60 }
0x1429   : > { %v14579_v10 = vpop.eup %14578  ;;  %v12126_v8 = vadd.f32 1e-05, %v12110_v63 }
0x142a   : > { %v12232_v54 = vmul.f32 %v14579_v10, %v12125_v36  ;;  %vm12238_vm10 = vweird.f32 %v14579_v10  ;;  %v568_v36 = vld [vmem:[%s20260_s20 + $0xd] sm:$0x1] }
0x142b   : > { %14580 = vrsqrt.f32 %v12126_v8  ;;  %vm12239_vm0 = vmor %vm12237_vm11, %vm12238_vm10  ;;  %vm12247_vm13 = vweird.f32 %v12126_v8  ;;  %v12354_v6 = vsub.f32 1.0, %v568_v36  ;;  %vm12847_vm11 = vcmask 1041409  }
0x142c   : > { %v12233_v35 = vmul.f32 %v14579_v10, %v12232_v54 }
0x142d   : > { %12760 = vadd.xlane.f32.xlu2 %v12759_v9 }
0x142e   : > { %v12234_v23 = vmul.f32 0.5, %v12233_v35  ;;  %v12089_v21 = vpop.xlane.xlu2 %12088  ;;  %v20479_v35 = vpop.f32.mrf.mxu0 }
0x142f   : > { %v12111_v32 = vmul.f32 %v12089_v21, %v21156_v60 }
0x1430   : > { %v12235_v56 = vsub.f32 1.5, %v12234_v23 }
0x1431   : > { %v14581_v62 = vpop.eup %14580  ;;  %v12127_v52 = vadd.f32 1e-05, %v12111_v32  ;;  %v20487_v32 = vld [vmem:[%s20260_s20 + $0xe] sm:$0x1] }
0x1432   : > { %v12236_v5 = vmul.f32 %v14579_v10, %v12235_v56  ;;  %v12242_v2 = vmul.f32 %v14581_v62, %v12126_v8  ;;  %vm12248_vm3 = vweird.f32 %v14581_v62 }
0x1433   : > { %14582 = vrsqrt.f32 %v12127_v52  ;;  %vm12249_vm14 = vmor %vm12247_vm13, %vm12248_vm3  ;;  %vm12257_vm4 = vweird.f32 %v12127_v52  ;;  %vm12850_vm3 = vcmask 1042434  }
0x1434   : > { %v12240_v31 = vsel %vm12239_vm0, %v14579_v10, %v12236_v5  ;;  %v12243_v42 = vmul.f32 %v14581_v62, %v12242_v2 }
0x1435   : > { %v12301_v43 = vmul.f32 %v12240_v31, %v20328_v45 }
0x1436   : > { %v12244_v41 = vmul.f32 0.5, %v12243_v42  ;;  %v12092_v48 = vpop.xlane.xlu1 %12091  ;;  %v20482_v23 = vpop.f32.mrf.mxu0 }
0x1437   : > { %v12112_v7 = vmul.f32 %v12092_v48, %v21156_v60  ;;  %v12318_v26 = vmul.f32 %v20266_v40, %v12301_v43  ;;  %v20499_v48 = vld [vmem:[%s20260_s20 + $0xf] sm:$0x1] }
0x1438   : > { %v12245_v1 = vsub.f32 1.5, %v12244_v41 }
0x1439   : > { %v14583_v50 = vpop.eup %14582  ;;  %v12128_v39 = vadd.f32 1e-05, %v12112_v7  ;;  %v12335_v25 = vadd.f32 %v20272_v0, %v12318_v26 }
0x143a   : > { %v12246_v59 = vmul.f32 %v14581_v62, %v12245_v1  ;;  %v12252_v33 = vmul.f32 %v14583_v50, %v12127_v52  ;;  %vm12258_vm15 = vweird.f32 %v14583_v50  ;;  %v12356_v1 = vsub.f32 1.0, %v20499_v48 }
0x143b   : > { %14584 = vrsqrt.f32 %v12128_v39  ;;  %12605 = vmatpush.msrb.mxu0 %v12335_v25  ;;  %vm12259_vm5 = vmor %vm12257_vm4, %vm12258_vm15  ;;  %vm12267_vm8 = vweird.f32 %v12128_v39  ;;  %vm12853_vm15 = vcmask 1043459   ;;  %vm12856_vm4 = vcmask 1044484  }
0x143c   : > { %v12250_v45 = vsel %vm12249_vm14, %v14581_v62, %v12246_v59  ;;  %v12253_v44 = vmul.f32 %v14583_v50, %v12252_v33  ;;  %13598 = vmatmul.msk.f32.vlgmr.msrb.gmra.mxu0 %vm938_vm2, %v12351_v20  ;;  %v12825_v20 = vld [vmem:[%s20593_s11 + $0x18] sm:$0xff]  ;;  %v12771_v59 = vsel %vm12725_vm12, %v12356_v1, 0.0 }
0x143d   : > { %v12302_v19 = vmul.f32 %v12250_v45, %v20336_v61  ;;  %12897 = vmatpush.msra.mxu2 %v12825_v20  ;;  %12772 = vadd.xlane.f32.xlu1 %v12771_v59 }
0x143e   : > { %v12254_v34 = vmul.f32 0.5, %v12253_v44  ;;  %v20484_v21 = vpop.f32.mrf.mxu0  ;;  %v12731_v31 = vpop.xlane.xlu1 %12730  ;;  %v12824_v44 = vld [vmem:[%s20593_s11 + $0x10] sm:$0xff] }
0x143f   : > { %v12319_v28 = vmul.f32 %v20266_v40, %v12302_v19  ;;  %v12823_v19 = vld [vmem:[%s20593_s11 + $0x8] sm:$0xff]  ;;  %12898 = vmatpush.msra.mxu2 %v12824_v44 }
0x1440   : > { %v12255_v11 = vsub.f32 1.5, %v12254_v34 }
0x1441   : > { %v14585_v3 = vpop.eup %14584  ;;  %v12336_v55 = vadd.f32 %v20272_v0, %v12319_v28  ;;  %12899 = vmatpush.msra.mxu2 %v12823_v19 }
0x1442   : > { %v12256_v57 = vmul.f32 %v14583_v50, %v12255_v11  ;;  %v12262_v61 = vmul.f32 %v14585_v3, %v12128_v39  ;;  %vm12268_vm6 = vweird.f32 %v14585_v3  ;;  %v12822_v11 = vld [vmem:[%s20593_s11] sm:$0xff] }
0x1443   : > { %12628 = vmatpush.msra.mxu0 %v12336_v55  ;;  %vm12269_vm7 = vmor %vm12267_vm8, %vm12268_vm6  ;;  %12900 = vmatpush.msra.mxu2 %v12822_v11  ;;  %vm12862_vm6 = vcmask 1046534   ;;  %vm12865_vm8 = vcmask 1047559  }
0x1444   : > { %v12260_v37 = vsel %vm12259_vm5, %v14583_v50, %v12256_v57  ;;  %v12263_v27 = vmul.f32 %v14585_v3, %v12262_v61  ;;  %13599 = vmatmul.msk.f32.vlgmr.msra.gmra.mxu0 %vm938_vm2, %v12352_v14  ;;  %v12775_v50 = vmax.f32 %v12731_v31, 1.0  ;;  %vm12859_vm5 = vcmask 1045509  }
0x1445   : > { %v12303_v30 = vmul.f32 %v12260_v37, %v20350_v24  ;;  %v12765_v24 = vsel %vm12725_vm12, %v12354_v6, 0.0 }
0x1446   : > { %v12264_v47 = vmul.f32 0.5, %v12263_v27  ;;  %12766 = vadd.xlane.f32.xlu0 %v12765_v24  ;;  %v20489_v56 = vpop.f32.mrf.mxu0  ;;  %v12737_v7 = vpop.xlane.xlu1 %12736 }
0x1447   : > { %v12320_v13 = vmul.f32 %v20266_v40, %v12303_v30  ;;  %v12777_v22 = vmax.f32 %v12737_v7, 1.0 }
0x1448   : > { %v12265_v29 = vsub.f32 1.5, %v12264_v47 }
0x1449   : > { %v12337_v12 = vadd.f32 %v20272_v0, %v12320_v13 }
0x144a   : > { %v12266_v46 = vmul.f32 %v14585_v3, %v12265_v29 }
0x144b   : > { %12651 = vmatpush.msrb.mxu0 %v12337_v12 }
0x144c   : > { %v12270_v63 = vsel %vm12269_vm7, %v14585_v3, %v12266_v46  ;;  %13600 = vmatmul.msk.f32.vlgmr.msrb.gmra.mxu0 %vm938_vm2, %v12353_v51 }
0x144d   : > { %v12304_v10 = vmul.f32 %v12270_v63, %v20367_v16  ;;  %v12355_v16 = vsub.f32 1.0, %v20487_v32 }
0x144e   : > { %v20496_v42 = vpop.f32.mrf.mxu0  ;;  %v12746_v57 = vpop.xlane.xlu1 %12745 }
0x144f   : > { %v12321_v8 = vmul.f32 %v20266_v40, %v12304_v10  ;;  %v12768_v52 = vsel %vm12725_vm12, %v12355_v16, 0.0  ;;  %v12780_v47 = vmax.f32 %v12746_v57, 1.0 }
0x1450   : > { %12769 = vadd.xlane.f32.xlu2 %v12768_v52 }
0x1451   : > { %v12338_v54 = vadd.f32 %v20272_v0, %v12321_v8 }
0x1453   : > { %12674 = vmatpush.msra.mxu0 %v12338_v54 }
0x1454   : > { %13601 = vmatmul.msk.f32.vlgmr.msra.gmra.mxu0 %vm938_vm2, %v12354_v6 }
0x1456   : > { %v20515_v34 = vpop.f32.mrf.mxu0 }
0x145e   : > { %v12515_v29 = vpop.f32.mrf.mxu0 }
0x146f   : > { %v12095_v62 = vpop.xlane.xlu0 %12094 }
0x1470   : > { %v12113_v5 = vmul.f32 %v12095_v62, %v21156_v60 }
0x1472   : > { %v12129_v2 = vadd.f32 1e-05, %v12113_v5 }
0x1474   : > { %14586 = vrsqrt.f32 %v12129_v2  ;;  %vm12277_vm12 = vweird.f32 %v12129_v2 }
0x1475   : > { %14588 = vrcp.f32 %v12775_v50 }
0x1477   : > { %v12734_v43 = vpop.xlane.xlu0 %12733 }
0x1478   : > { %v12776_v33 = vmax.f32 %v12734_v43, 1.0 }
0x147a   : > { %v14587_v15 = vpop.eup %14586  ;;  %14590 = vrcp.f32 %v12776_v33 }
0x147b   : > { %v12272_v41 = vmul.f32 %v14587_v15, %v12129_v2  ;;  %vm12278_vm9 = vweird.f32 %v14587_v15  ;;  %v14589_v37 = vpop.eup %14588 }
0x147c   : > { %vm12279_vm10 = vmor %vm12277_vm12, %vm12278_vm9 }
0x147d   : > { %v12273_v26 = vmul.f32 %v14587_v15, %v12272_v41 }
0x147f   : > { %v12274_v39 = vmul.f32 0.5, %v12273_v26  ;;  %v12740_v45 = vpop.xlane.xlu0 %12739 }
0x1480   : > { %v12098_v25 = vpop.xlane.xlu2 %12097  ;;  %v12778_v55 = vmax.f32 %v12740_v45, 1.0  ;;  %v14591_v30 = vpop.eup %14590 }
0x1481   : > { %v12114_v53 = vmul.f32 %v12098_v25, %v21156_v60  ;;  %v12275_v28 = vsub.f32 1.5, %v12274_v39  ;;  %v12808_v12 = vmul.f32 %v14591_v30, %v20484_v21 }
0x1483   : > { %v12130_v14 = vadd.f32 1e-05, %v12114_v53  ;;  %v12276_v3 = vmul.f32 %v14587_v15, %v12275_v28  ;;  %v12849_v62 = vrot.slane %v12808_v12, 6 }
0x1485   : > { %14592 = vrsqrt.f32 %v12130_v14  ;;  %v12280_v60 = vsel %vm12279_vm10, %v14587_v15, %v12276_v3  ;;  %vm12287_vm13 = vweird.f32 %v12130_v14 }
0x1486   : > { %v12305_v49 = vmul.f32 %v12280_v60, %v20392_v18  ;;  %14594 = vrcp.f32 %v12777_v22  ;;  %v12807_v18 = vmul.f32 %v14589_v37, %v20482_v23 }
0x1487   : > { %v12749_v17 = vpop.xlane.xlu0 %12748  ;;  %14596 = vrcp.f32 %v12778_v55  ;;  %v12538_v15 = vpop.f32.mrf.mxu0 }
0x1488   : > { %v12728_v61 = vpop.xlane.xlu2 %12727  ;;  %v12322_v27 = vmul.f32 %v20266_v40, %v12305_v49  ;;  %v12781_v36 = vmax.f32 %v12749_v17, 1.0  ;;  %v12846_v63 = vrot.slane %v12807_v18, 7 }
0x1489   : > { %v12774_v38 = vmax.f32 %v12728_v61, 1.0 }
0x148a   : > { %v12339_v51 = vadd.f32 %v20272_v0, %v12322_v27 }
0x148b   : > { %v14593_v13 = vpop.eup %14592  ;;  %14598 = vrcp.f32 %v12774_v38 }
0x148c   : > { %v12282_v6 = vmul.f32 %v14593_v13, %v12130_v14  ;;  %v14595_v9 = vpop.eup %14594  ;;  %12697 = vmatpush.msrb.mxu0 %v12339_v51  ;;  %14600 = vrcp.f32 %v12780_v47  ;;  %vm12288_vm0 = vweird.f32 %v14593_v13  ;;  %v12758_v14 = vpop.xlane.xlu1 %12757 }
0x148d   : > { %13602 = vmatmul.msk.f32.vlgmr.msrb.gmra.mxu0 %vm938_vm2, %v12355_v16  ;;  %14602 = vrcp.f32 %v12781_v36  ;;  %v14597_v46 = vpop.eup %14596  ;;  %v12809_v10 = vmul.f32 %v14595_v9, %v20489_v56  ;;  %vm12289_vm14 = vmor %vm12287_vm13, %vm12288_vm0  ;;  %v12784_v22 = vmax.f32 %v12758_v14, 1.0 }
0x148e   : > { %v12283_v4 = vmul.f32 %v14593_v13, %v12282_v6  ;;  %v12810_v32 = vmul.f32 %v14597_v46, %v20496_v42 }
0x148f   : > { %v12852_v31 = vrot.slane %v12809_v10, 5  ;;  %v12752_v3 = vpop.xlane.xlu0 %12751 }
0x1490   : > { %v12284_v24 = vmul.f32 0.5, %v12283_v4  ;;  %v12743_v8 = vpop.xlane.xlu2 %12742  ;;  %v12782_v60 = vmax.f32 %v12752_v3, 1.0 }
0x1491   : > { %v14599_v54 = vpop.eup %14598  ;;  %v12779_v23 = vmax.f32 %v12743_v8, 1.0 }
0x1492   : > { %v12285_v52 = vsub.f32 1.5, %v12284_v24  ;;  %v12806_v21 = vmul.f32 %v14599_v54, %v20479_v35  ;;  %v14601_v16 = vpop.eup %14600  ;;  %v12855_v35 = vrot.slane %v12810_v32, 4 }
0x1493   : > { %14604 = vrcp.f32 %v12779_v23  ;;  %v14603_v56 = vpop.eup %14602  ;;  %v12812_v26 = vmul.f32 %v14601_v16, %v12515_v29  ;;  %v12913_v16 = vld [vmem:[%s20595_s13 + $0x18] sm:$0xff] }
0x1494   : > { %v12286_v5 = vmul.f32 %v14593_v13, %v12285_v52  ;;  %v12848_v2 = vsel %vm12847_vm11, %v12846_v63, %v12806_v21  ;;  %v12813_v20 = vmul.f32 %v14603_v56, %v12538_v15  ;;  %12936 = vmatpush.msrb.mxu3 %v12913_v16  ;;  %v12910_v56 = vld [vmem:[%s20595_s13] sm:$0xff] }
0x1495   : > { %v12851_v43 = vsel %vm12850_vm3, %v12849_v62, %v12848_v2  ;;  %v12861_v45 = vrot.slane %v12812_v26, 2  ;;  %v12912_v2 = vld [vmem:[%s20595_s13 + $0x10] sm:$0xff] }
0x1496   : > { %v12290_v41 = vsel %vm12289_vm14, %v14593_v13, %v12286_v5  ;;  %v12854_v42 = vsel %vm12853_vm15, %v12852_v31, %v12851_v43  ;;  %v12911_v31 = vld [vmem:[%s20595_s13 + $0x8] sm:$0xff]  ;;  %12937 = vmatpush.msrb.mxu3 %v12912_v2 }
0x1497   : > { %v12306_v7 = vmul.f32 %v12290_v41, %v20415_v58  ;;  %v12857_v33 = vsel %vm12856_vm4, %v12855_v35, %v12854_v42  ;;  %v12864_v58 = vrot.slane %v12813_v20, 1 }
0x1498   : > { %v12755_v28 = vpop.xlane.xlu2 %12754  ;;  %v12764_v57 = vpop.xlane.xlu1 %12763  ;;  %12938 = vmatpush.msrb.mxu3 %v12911_v31 }
0x1499   : > { %v14605_v50 = vpop.eup %14604  ;;  %v12323_v39 = vmul.f32 %v20266_v40, %v12306_v7  ;;  %v12783_v11 = vmax.f32 %v12755_v28, 1.0  ;;  %v12786_v37 = vmax.f32 %v12764_v57, 1.0 }
0x149a   : > { %v12811_v25 = vmul.f32 %v14605_v50, %v20515_v34  ;;  %12939 = vmatpush.msrb.mxu3 %v12910_v56 }
0x149b   : > { %v12340_v59 = vadd.f32 %v20272_v0, %v12323_v39  ;;  %v12561_v0 = vpop.f32.mrf.mxu0  ;;  %14606 = vrcp.f32 %v12783_v11 }
0x149c   : > { %v12858_v44 = vrot.slane %v12811_v25, 3  ;;  %14608 = vrcp.f32 %v12784_v22 }
0x149d   : > { %12720 = vmatpush.msra.mxu0 %v12340_v59  ;;  %14610 = vrcp.f32 %v12782_v60 }
0x149e   : > { %13603 = vmatmul.msk.f32.vlgmr.msra.gmra.mxu0 %vm938_vm2, %v12356_v1  ;;  %v12860_v19 = vsel %vm12859_vm5, %v12858_v44, %v12857_v33  ;;  %vm12947_vm2 = vcmask 23552  }
0x149f   : > { %v12863_v40 = vsel %vm12862_vm6, %v12861_v45, %v12860_v19  ;;  %v13946_v45 = vld [vmem:[%s20594_s12] ss:$0 sm:$0xff] }
0x14a0   : > { %v12866_v53 = vsel %vm12865_vm8, %v12864_v58, %v12863_v40  ;;  %v12761_v1 = vpop.xlane.xlu2 %12760 }
0x14a1   : > { %13604 = vmatmul.msk.f32.vlgmr.msra.gmra.mxu2 %vm710_vm1, %v12866_v53  ;;  %v14607_v55 = vpop.eup %14606  ;;  %v12785_v49 = vmax.f32 %v12761_v1, 1.0 }
0x14a2   : > { %v14609_v61 = vpop.eup %14608 }
0x14a3   : > { %v12584_v34 = vpop.f32.mrf.mxu0  ;;  %v14611_v27 = vpop.eup %14610  ;;  %14612 = vrcp.f32 %v12785_v49 }
0x14a4   : > { %v12815_v17 = vmul.f32 %v14607_v55, %v12584_v34  ;;  %14614 = vrcp.f32 %v12786_v37  ;;  %v12814_v13 = vmul.f32 %v14611_v27, %v12561_v0  ;;  %v13947_v34 = vld [vmem:[%s20596_s14] ss:$0 sm:$0xff] }
0x14a6   : > { %v12867_v47 = vrot.slane %v12815_v17, 7 }
0x14a8   : > { %v12868_v18 = vsel %vm12847_vm11, %v12867_v47, %v12814_v13 }
0x14a9   : > { %v14613_v36 = vpop.eup %14612 }
0x14aa   : > { %v14615_v12 = vpop.eup %14614 }
0x14b0   : > { %v12773_v15 = vpop.xlane.xlu1 %12772 }
0x14b1   : > { %v12789_v41 = vmax.f32 %v12773_v15, 1.0 }
0x14b9   : > { %v12607_v48 = vpop.f32.mrf.mxu0  ;;  %v12767_v51 = vpop.xlane.xlu0 %12766 }
0x14ba   : > { %v12816_v30 = vmul.f32 %v14609_v61, %v12607_v48  ;;  %v12787_v6 = vmax.f32 %v12767_v51, 1.0 }
0x14bc   : > { %v12869_v29 = vrot.slane %v12816_v30, 6  ;;  %14616 = vrcp.f32 %v12787_v6 }
0x14be   : > { %v12870_v24 = vsel %vm12850_vm3, %v12869_v29, %v12868_v18 }
0x14c1   : > { %v12630_v38 = vpop.f32.mrf.mxu0 }
0x14c2   : > { %v12817_v9 = vmul.f32 %v14613_v36, %v12630_v38  ;;  %v14617_v62 = vpop.eup %14616 }
0x14c3   : > { %v12770_v5 = vpop.xlane.xlu2 %12769 }
0x14c4   : > { %v12871_v4 = vrot.slane %v12817_v9, 5  ;;  %v12788_v43 = vmax.f32 %v12770_v5, 1.0 }
0x14c6   : > { %v12872_v10 = vsel %vm12853_vm15, %v12871_v4, %v12870_v24  ;;  %14618 = vrcp.f32 %v12788_v43 }
0x14c7   : > { %14620 = vrcp.f32 %v12789_v41 }
0x14c9   : > { %v12653_v46 = vpop.f32.mrf.mxu0 }
0x14ca   : > { %v12818_v63 = vmul.f32 %v14615_v12, %v12653_v46 }
0x14cc   : > { %v12873_v8 = vrot.slane %v12818_v63, 4  ;;  %v14619_v35 = vpop.eup %14618 }
0x14cd   : > { %v14621_v42 = vpop.eup %14620 }
0x14ce   : > { %v12874_v54 = vsel %vm12856_vm4, %v12873_v8, %v12872_v10 }
0x14d1   : > { %v12676_v23 = vpop.f32.mrf.mxu0 }
0x14d2   : > { %v12819_v52 = vmul.f32 %v14617_v62, %v12676_v23 }
0x14d4   : > { %v12875_v21 = vrot.slane %v12819_v52, 3 }
0x14d6   : > { %v12876_v32 = vsel %vm12859_vm5, %v12875_v21, %v12874_v54 }
0x150a   : > { %v12699_v7 = vpop.f32.mrf.mxu0 }
0x150b   : > { %v12820_v26 = vmul.f32 %v14619_v35, %v12699_v7 }
0x150d   : > { %v12877_v20 = vrot.slane %v12820_v26, 2 }
0x150f   : > { %v12878_v59 = vsel %vm12862_vm6, %v12877_v20, %v12876_v32 }
0x151b   : > { %v12722_v50 = vpop.f32.mrf.mxu0 }
0x151c   : > { %v12821_v39 = vmul.f32 %v14621_v42, %v12722_v50 }
0x151e   : > { %v12879_v25 = vrot.slane %v12821_v39, 1 }
0x1520   : > { %v12880_v33 = vsel %vm12865_vm8, %v12879_v25, %v12878_v59 }
0x1521   : > { %13605 = vmatmul.msk.f32.gmra.mxu2 %vm710_vm1, %v12880_v33 }
0x1524   : > { %v12902_v44 = vpop.f32.mrf.mxu2 }
0x1525   : > { %v12903_v58 = vadd.f32 %v13946_v45, %v12902_v44 }
0x1527   : > { %v12908_v19 = vmax.f32 %v12903_v58, 0.0 }
0x1529   : > { %13606 = vmatmul.msk.f32.vlgmr.msrb.gmra.mxu3 %vm710_vm1, %v12908_v19 }
0x15a4   : > { %v12905_v40 = vpop.f32.mrf.mxu2 }
0x15a5   : > { %v12906_v53 = vadd.f32 %v13946_v45, %v12905_v40 }
0x15a7   : > { %v12909_v0 = vmax.f32 %v12906_v53, 0.0 }
0x15a9   : > { %13607 = vmatmul.msk.f32.gmra.mxu3 %vm710_vm1, %v12909_v0 }
0x15ac   : > { %v12941_v28 = vpop.f32.mrf.mxu3 }
0x15ad   : > { %v12942_v11 = vadd.f32 %v13947_v34, %v12941_v28 }
0x15af   : > { %12948 = vst.msk [vmem:[%s537_s22] sm:$0xff] %vm12947_vm2, %v12942_v11 }
0x162c   : > { %v12944_v14 = vpop.f32.mrf.mxu3 }
0x162d   : > { %v12945_v22 = vadd.f32 %v13947_v34, %v12944_v14 }
0x162f   : > { %12949 = vst.msk [vmem:[%s537_s22 + $0x8] sm:$0xff] %vm12947_vm2, %v12945_v22 }
0x1630 PF: > { %s25_s18 = sadd.s32 1, %s14667_s18  }
0x1631   : > { %p22_p5 = scmp.ge.s32.totalorder %s25_s18, 4  }
0x1633   :  { %24 = sbr.rel (!%p22_p5) target bundleno = 1 (0x1), region = 121 }

</bundles_post_ra>
